<compile_context>
chip_gen: v6e
topology: v6e:2x2x1
jax: 0.10.0
libtpu: 0.0.40
codegen_flags: <defaults>
</compile_context>

<pallas_src>
import jax
import jax.numpy as jnp
from jax.experimental import pallas as pl
from jax.experimental.pallas import tpu as pltpu

IN_FEATURES = 3 * 224 * 224   # 150528 = 4 * 37632
HIDDEN = 64
OUT_FEATURES = 2

TK = 37632                    # K tile (multiple of 128); 150528 / 37632 = 4 blocks
P_SHARDS = 2                  # K-reduction shards (= TensorCores per v7x chip)
NK_PER_SHARD = IN_FEATURES // TK // P_SHARDS   # 2 reduction steps per shard

assert IN_FEATURES % (TK * P_SHARDS) == 0
assert TK % 128 == 0


def _fc1_partial_kernel(x_ref, w1_ref, o_ref):
    """Grid (P_SHARDS, NK_PER_SHARD).

    Axis 0 ("parallel"): independent K-shards -> distinct (1, B, HIDDEN)
    partial-sum output blocks (megacore-shardable on v7x).
    Axis 1 ("arbitrary"): reduction over the shard's K chunks; the output
    block is resident across it and used directly as the f32 accumulator.
    """
    k = pl.program_id(1)

    @pl.when(k == 0)
    def _():
        o_ref[...] = jnp.zeros_like(o_ref)

    # x tile is streamed as f32 (tiny vs W1) and cast in-registers to bf16 so
    # the matmul runs as a native bf16 MXU op against the bf16 W1 tile.
    x_bf16 = x_ref[...].astype(jnp.bfloat16)
    o_ref[...] += jnp.dot(
        x_bf16, w1_ref[...], preferred_element_type=jnp.float32
    )[None, :, :]


def prepare_fc1_weight(w1_f32):
    """One-time weight prep (do NOT do this inside the jitted forward, or the
    f32->bf16 convert re-reads the full 38.5 MB every call)."""
    return w1_f32.astype(jnp.bfloat16)


@jax.jit
def cat_classifier_forward(x_nchw, w1_bf16, b1, w2, b2):
    """x_nchw: (B, 3, 224, 224) f32.  w1_bf16: (150528, 64) bf16 (torch W1.T,
    pre-cast via prepare_fc1_weight).  Returns (B, 2) f32 sigmoid probs."""
    B = x_nchw.shape[0]
    x = x_nchw.reshape(B, IN_FEATURES)          # torch.nn.Flatten semantics

    partials = pl.pallas_call(
        _fc1_partial_kernel,
        out_shape=jax.ShapeDtypeStruct((P_SHARDS, B, HIDDEN), jnp.float32),
        grid_spec=pltpu.PrefetchScalarGridSpec(
            num_scalar_prefetch=0,
            grid=(P_SHARDS, NK_PER_SHARD),
            in_specs=[
                # x tile: (B, TK) at K-block p*NK + k
                pl.BlockSpec((B, TK),
                             lambda p, k: (0, p * NK_PER_SHARD + k)),
                # W1 tile: (TK, HIDDEN) bf16 at K-block p*NK + k
                pl.BlockSpec((TK, HIDDEN),
                             lambda p, k: (p * NK_PER_SHARD + k, 0)),
            ],
            out_specs=pl.BlockSpec((1, B, HIDDEN), lambda p, k: (p, 0, 0)),
        ),
        compiler_params=pltpu.CompilerParams(
            dimension_semantics=("parallel", "arbitrary"),
            # ~21 MB of double-buffered (lane-padded) tiles; 40 MiB gives
            # headroom yet stays under v7x's 64 MiB physical VMEM.
            vmem_limit_bytes=40 * 1024 * 1024,
        ),
    )(x, w1_bf16)

    # Tiny epilogue on (P_SHARDS, B, 64) partials, at JAX level (f32).
    h = jnp.sum(partials, axis=0) + b1                  # fc1 bias
    # dropout(p=0.5): identity in eval/inference mode
    h = jnp.maximum(h, 0.0)                             # ReLU
    logits = jnp.dot(h, w2, precision=jax.lax.Precision.HIGHEST) + b2
    return jax.nn.sigmoid(logits)                       # numerically-stable sigmoid


def _reference_forward(x_nchw, w1, b1, w2, b2):
    """Pure-JAX full-f32 reference (eval-mode dropout)."""
    B = x_nchw.shape[0]
    x = x_nchw.reshape(B, IN_FEATURES)
    h = jnp.maximum(
        jnp.dot(x, w1, precision=jax.lax.Precision.HIGHEST) + b1, 0.0)
    logits = jnp.dot(h, w2, precision=jax.lax.Precision.HIGHEST) + b2
    return jax.nn.sigmoid(logits)


if __name__ == "__main__":
    key = jax.random.PRNGKey(0)
    k_x, k_w1, k_b1, k_w2, k_b2 = jax.random.split(key, 5)

    B = 2
    x = jax.random.normal(k_x, (B, 3, 224, 224), dtype=jnp.float32)

    # torch Linear default init: U(-1/sqrt(fan_in), +1/sqrt(fan_in)).
    # Weights stored as (in_features, out_features) == torch W.T.
    lim1 = 1.0 / jnp.sqrt(float(IN_FEATURES))
    w1 = jax.random.uniform(k_w1, (IN_FEATURES, HIDDEN), jnp.float32, -lim1, lim1)
    b1 = jax.random.uniform(k_b1, (HIDDEN,), jnp.float32, -lim1, lim1)
    lim2 = 1.0 / jnp.sqrt(float(HIDDEN))
    w2 = jax.random.uniform(k_w2, (HIDDEN, OUT_FEATURES), jnp.float32, -lim2, lim2)
    b2 = jax.random.uniform(k_b2, (OUT_FEATURES,), jnp.float32, -lim2, lim2)

    w1_bf16 = prepare_fc1_weight(w1)            # one-time cast, outside the jit

    out = cat_classifier_forward(x, w1_bf16, b1, w2, b2)
    out = jax.block_until_ready(out)

    ref = _reference_forward(x, w1, b1, w2, b2)
    assert out.shape == (B, OUT_FEATURES), out.shape
    # bf16 weight streaming with f32 accumulation: sigmoid outputs agree with
    # the full-f32 reference to well under 5e-3.
    max_err = float(jnp.max(jnp.abs(out - ref)))
    assert jnp.allclose(out, ref, atol=5e-3, rtol=0.0), (
        "mismatch vs f32 reference", max_err, out, ref
    )

    print("KERNEL_OK")
</pallas_src>

<mosaic_0001>
module attributes {stable_mosaic.version = 11 : i64} {
  func.func @_fc1_partial_kernel(%arg0: i32, %arg1: i32, %arg2: memref<2x37632xf32, #tpu.memory_space<vmem>>, %arg3: memref<37632x64xbf16, #tpu.memory_space<vmem>>, %arg4: memref<1x2x64xf32, #tpu.memory_space<vmem>>) attributes {dimension_semantics = [#tpu.dimension_semantics<parallel>, #tpu.dimension_semantics<arbitrary>], iteration_bounds = array<i64: 2, 2>, scalar_prefetch = 0 : i64, scratch_operands = 0 : i64, tpu.core_type = #tpu.core_type<tc>, window_params = [{transform_indices = @transform_0, window_bounds = array<i64: 2, 37632>}, {transform_indices = @transform_1, window_bounds = array<i64: 37632, 64>}, {transform_indices = @transform_2, window_bounds = array<i64: 1, 2, 64>}]} {
    %c0_i32 = arith.constant 0 : i32
    %0 = arith.cmpi eq, %arg1, %c0_i32 : i32
    %1 = arith.extui %0 : i1 to i32
    %c0_i32_0 = arith.constant 0 : i32
    %2 = arith.cmpi ne, %1, %c0_i32_0 : i32
    scf.if %2 {
      %cst_10 = arith.constant 0.000000e+00 : f32
      %11 = vector.broadcast %cst_10 : f32 to vector<1x2x64xf32>
      %c0_11 = arith.constant 0 : index
      %c0_12 = arith.constant 0 : index
      %c0_13 = arith.constant 0 : index
      %12 = vector.load %arg4[%c0_11, %c0_12, %c0_13] : memref<1x2x64xf32, #tpu.memory_space<vmem>>, vector<1x2x64xf32>
      tpu.vector_store %arg4[%c0_11, %c0_12, %c0_13], %11 {strides = array<i32>} : memref<1x2x64xf32, #tpu.memory_space<vmem>>, vector<1x2x64xf32>,
    } else {
    }
    %c0 = arith.constant 0 : index
    %c0_1 = arith.constant 0 : index
    %3 = vector.load %arg2[%c0, %c0_1] : memref<2x37632xf32, #tpu.memory_space<vmem>>, vector<2x37632xf32>
    %4 = arith.truncf %3 : vector<2x37632xf32> to vector<2x37632xbf16>
    %c0_2 = arith.constant 0 : index
    %c0_3 = arith.constant 0 : index
    %c0_4 = arith.constant 0 : index
    %5 = vector.load %arg4[%c0_2, %c0_3, %c0_4] : memref<1x2x64xf32, #tpu.memory_space<vmem>>, vector<1x2x64xf32>
    %c0_5 = arith.constant 0 : index
    %c0_6 = arith.constant 0 : index
    %6 = vector.load %arg3[%c0_5, %c0_6] : memref<37632x64xbf16, #tpu.memory_space<vmem>>, vector<37632x64xbf16>
    %cst = arith.constant dense<0.000000e+00> : vector<2x64xf32>
    %7 = tpu.matmul %4, %6, %cst {dimension_numbers = #tpu.dot_dimension_numbers<[1], [0], [0], [1], [0, 0, 1, 1], [], []>} : vector<2x37632xbf16>, vector<37632x64xbf16>, vector<2x64xf32> -> vector<2x64xf32>
    %8 = vector.shape_cast %7 : vector<2x64xf32> to vector<1x2x64xf32>
    %9 = arith.addf %5, %8 : vector<1x2x64xf32>
    %c0_7 = arith.constant 0 : index
    %c0_8 = arith.constant 0 : index
    %c0_9 = arith.constant 0 : index
    %10 = vector.load %arg4[%c0_7, %c0_8, %c0_9] : memref<1x2x64xf32, #tpu.memory_space<vmem>>, vector<1x2x64xf32>
    tpu.vector_store %arg4[%c0_7, %c0_8, %c0_9], %9 {strides = array<i32>} : memref<1x2x64xf32, #tpu.memory_space<vmem>>, vector<1x2x64xf32>,
    return
  }
  func.func @transform_0(%arg0: i32, %arg1: i32) -> (i32, i32) {
    %c2_i32 = arith.constant 2 : i32
    %0 = arith.muli %arg0, %c2_i32 : i32
    %1 = arith.addi %0, %arg1 : i32
    %c0_i32 = arith.constant 0 : i32
    %c0_i32_0 = arith.constant 0 : i32
    return %c0_i32, %1 : i32, i32
  }
  func.func @transform_1(%arg0: i32, %arg1: i32) -> (i32, i32) {
    %c2_i32 = arith.constant 2 : i32
    %0 = arith.muli %arg0, %c2_i32 : i32
    %1 = arith.addi %0, %arg1 : i32
    %c0_i32 = arith.constant 0 : i32
    %c0_i32_0 = arith.constant 0 : i32
    return %1, %c0_i32 : i32, i32
  }
  func.func @transform_2(%arg0: i32, %arg1: i32) -> (i32, i32, i32) {
    %c0_i32 = arith.constant 0 : i32
    %c0_i32_0 = arith.constant 0 : i32
    %c0_i32_1 = arith.constant 0 : i32
    return %arg0, %c0_i32, %c0_i32_0 : i32, i32, i32
  }
}

</mosaic_0001>

<bundles_post_ra>
// kernel: cat_classifier_forward.1
= control target key start
LH: loop header
LB: loop body
LE: loop exit
PB: predicated region body
PF: predicated region fallthrough
CT: control target
= control target key end

     0   :  { %s35102_s9 = smov 0   ;;  %s35104_s10 = smov 0   ;;  %s37941_s0 = inlined_call_operand.vmem [shape: f32[2,150528], index: 0, kind: input, shape index: {}]   ;;  %s37942_s1 = inlined_call_operand.vmem [shape: bf16[150528,64], index: 1, kind: input, shape index: {}]   ;;  %s37943_s2 = inlined_call_operand.vmem [shape: f32[2,2,64], index: 2, kind: output, shape index: {}]  }
   0x1   :  { %s35106_s11 = smov 0   ;;  %s35108_s12 = smov 0  }
   0x2   :  { %s35110_s13 = smov 0  }
   0x3 LB: > { %s21_s14 = sadd.s32 1, %s35075_s11  ;;  %s24_s15 = sadd.s32 1, %s35079_s12  ;;  %s35083_s13 = sphi %s35110_s13, %s12_s13   ;;  %s35079_s12 = sphi %s35108_s12, %s37947_s12   ;;  %s35075_s11 = sphi %s35106_s11, %s37946_s11   ;;  %s35071_s10 = sphi %s35104_s10, %s37945_s10   ;;  %s35067_s9 = sphi %s35102_s9, %s37944_s9  }
   0x4   : > { %p22_p0 = scmp.ge.s32.totalorder %s21_s14, 2  ;;  %p26982_p1 = scmp.ge.s32.totalorder %s35083_s13, 1 }
   0x5   : > { %p152_p2 = scmp.lt.s32.totalorder %s35083_s13, 5 }
   0x6   : > { %s37949_s14 = smov (%p22_p0, %s21_s14), 0  ;;  %s37951_s15 = smov (!%p22_p0, %s24_s15), %s35079_s12 }
   0x7   : > { %p153_p3 = pnand %p26982_p1, %p152_p2  ;;  %p26_p4 = scmp.ge.s32.totalorder %s37951_s15, 2 }
   0x8   : > { %s26983_s16 = sshll.u32 (!%p153_p3), %s35071_s10, 1  ;;  %p202_p7 = scmp.lt.s32.totalorder (!%p153_p3), %s35071_s10, 1 }
   0x9   : > { %s37953_s15 = smov (%p26_p4, %s37951_s15), 0  ;;  %156 = sbr.rel (%p153_p3) target bundleno = 2598 (0xa26), region = 28 }
   0xa   : > { %s183_s17 = sadd.s32 (!%p153_p3), %s35067_s9, %s26983_s16  ;;  %p26988_p8 = scmp.ne.s32.totalorder (!%p153_p3), %s35067_s9, 0 }
   0xb   : > { %s184_s18 = smul.u32 (!%p153_p3), 294, %s183_s17 }
   0xc   : > { %s194_s19 = smul.u32 (!%p153_p3), 4704, %s183_s17 }
   0xd   : > { %p185_p5 = scmp.lt.s32.totalorder (!%p153_p3), %s184_s18, 1175 }
   0xe   : > { %p195_p6 = scmp.lt.s32.totalorder %s194_s19, 18815  ;;  %s37959_s10 = smov (!%p202_p7, %s35071_s10), 1 }
   0xf   : > { %s37955_s18 = smov (!%p185_p5, %s184_s18), 1175  ;;  %s26987_s28 = sshll.u32 %s37959_s10, 1 }
  0x10   : > { %s37957_s19 = smov (!%p195_p6, %s194_s19), 18815  ;;  %s26984_s20 = sshll.u32 %s37955_s18, 1 }
  0x11   : > { %s35138_s23 = scalar_lea.vmem %s37941_s0, %s26984_s20  ;;  %s26986_s24 = sshll.u32 %s37957_s19, 2 }
  0x12   : > { %s35143_s27 = scalar_lea.vmem %s37942_s1, %s26986_s24  ;;  %s35148_s3 = scalar_lea.vmem %s37943_s2, %s26987_s28 }
  0x13   : > { %210 = sbr.rel (%p26988_p8) target bundleno = 26 (0x1a), region = 32 }
  0x18   : > { %vm211_vm0 = vcmask 517120   ;;  %v35085_v0 = vmov 0.0  }
  0x19   : > { %212 = vst.msk [vmem:[%s35148_s3] sm:$0x3] %vm211_vm0, %v35085_v0 }
  0x1a PF: > { %v32620_v1 = vld [vmem:[%s35143_s27 + $0x78] sm:$0xff]   ;;  %v32624_v5 = vld [vmem:[%s35143_s27 + $0x70] sm:$0xff]   ;;  %v32628_v9 = vld [vmem:[%s35143_s27 + $0x68] sm:$0xff]   ;;  %v365_v29 = vlaneseq  ;;  %v35086_v37 = vmov 1983009808   ;;  %vm26896_vm1 = vcmask 517120  }
  0x1b   : > { %v32621_v2 = vld [vmem:[%s35143_s27 + $0xf8] sm:$0xff]   ;;  %29344 = vmatprep.subr.bf16.mxu0 %v32620_v1  ;;  %v32625_v6 = vld [vmem:[%s35143_s27 + $0xf0] sm:$0xff]   ;;  %v32629_v10 = vld [vmem:[%s35143_s27 + $0xe8] sm:$0xff]   ;;  %v363_v38 = vunpack.c.l.s4 %v35086_v37 }
  0x1c   : > { %v32622_v3 = vld [vmem:[%s35143_s27 + $0x38] sm:$0xff]   ;;  %29366 = vmatprep.subr.bf16.mxu1 %v32621_v2  ;;  %v32626_v7 = vld [vmem:[%s35143_s27 + $0x30] sm:$0xff]   ;;  %v32630_v11 = vld [vmem:[%s35143_s27 + $0x28] sm:$0xff]   ;;  %v366_v34 = vshrl.u32 %v365_v29, 7 }
  0x1d   : > { %v32623_v4 = vld [vmem:[%s35143_s27 + $0xb8] sm:$0xff]   ;;  %29345 = vmatpush3.bf16.msra.mxu0 %v32622_v3  ;;  %v32627_v8 = vld [vmem:[%s35143_s27 + $0xb0] sm:$0xff]   ;;  %v32631_v12 = vld [vmem:[%s35143_s27 + $0xa8] sm:$0xff]   ;;  %v364_v39 = vunpack.c.0.s8 %v363_v38 }
  0x1e   : > { %29367 = vmatpush3.bf16.msra.mxu1 %v32623_v4  ;;  %29346 = vmatprep.subr.bf16.mxu0 %v32624_v5  ;;  %v32632_v13 = vld [vmem:[%s35143_s27 + $0x60] sm:$0xff]   ;;  %v32636_v17 = vld [vmem:[%s35143_s27 + $0x58] sm:$0xff]   ;;  %v32640_v21 = vld [vmem:[%s35143_s27 + $0x50] sm:$0xff]  }
  0x1f   : > { %29368 = vmatprep.subr.bf16.mxu1 %v32625_v6  ;;  %v32633_v14 = vld [vmem:[%s35143_s27 + $0xe0] sm:$0xff]   ;;  %v32637_v18 = vld [vmem:[%s35143_s27 + $0xd8] sm:$0xff]   ;;  %v32641_v22 = vld [vmem:[%s35143_s27 + $0xd0] sm:$0xff]   ;;  %v35187_v42 = vsub.s32 %v364_v39, %v366_v34 }
  0x20   : > { %v32634_v15 = vld [vmem:[%s35143_s27 + $0x20] sm:$0xff]   ;;  %v32638_v19 = vld [vmem:[%s35143_s27 + $0x18] sm:$0xff]   ;;  %v32642_v23 = vld [vmem:[%s35143_s27 + $0x10] sm:$0xff]  }
  0x21   : > { %29347 = vmatpush3.bf16.msra.mxu0 %v32626_v7  ;;  %v32635_v16 = vld [vmem:[%s35143_s27 + $0xa0] sm:$0xff]   ;;  %v32639_v20 = vld [vmem:[%s35143_s27 + $0x98] sm:$0xff]   ;;  %v32643_v24 = vld [vmem:[%s35143_s27 + $0x90] sm:$0xff]  }
  0x22   : > { %29369 = vmatpush3.bf16.msra.mxu1 %v32627_v8  ;;  %29348 = vmatprep.subr.bf16.mxu0 %v32628_v9  ;;  %v32644_v25 = vld [vmem:[%s35143_s27 + $0x48] sm:$0xff]   ;;  %v32648_v30 = vld [vmem:[%s35143_s27 + $0x40] sm:$0xff]   ;;  %v32653_v36 = vld [vmem:[%s35143_s27 + $0x178] sm:$0xff]  }
  0x23   : > { %29370 = vmatprep.subr.bf16.mxu1 %v32629_v10  ;;  %v32645_v26 = vld [vmem:[%s35143_s27 + $0xc8] sm:$0xff]   ;;  %v32649_v31 = vld [vmem:[%s35143_s27 + $0xc0] sm:$0xff]   ;;  %v32655_v41 = vld [vmem:[%s35143_s27 + $0x1f8] sm:$0xff]  }
  0x24   : > { %v32646_v27 = vld [vmem:[%s35143_s27 + $0x8] sm:$0xff]   ;;  %v32650_v32 = vld [vmem:[%s35143_s27] sm:$0xff]   ;;  %v32654_v47 = vld [vmem:[%s35143_s27 + $0x138] sm:$0xff]  }
  0x25   : > { %29349 = vmatpush3.bf16.msra.mxu0 %v32630_v11  ;;  %v32647_v28 = vld [vmem:[%s35143_s27 + $0x88] sm:$0xff]   ;;  %v32651_v33 = vld [vmem:[%s35143_s27 + $0x80] sm:$0xff]   ;;  %v32656_v50 = vld [vmem:[%s35143_s27 + $0x1b8] sm:$0xff]  }
  0x26   : > { %29371 = vmatpush3.bf16.msra.mxu1 %v32631_v12  ;;  %29350 = vmatprep.subr.bf16.mxu0 %v32632_v13  ;;  %v213_v35 = vld [vmem:[%s35138_s23] sm:$0xff]  ;;  %v32657_v53 = vld [vmem:[%s35143_s27 + $0x170] sm:$0xff]   ;;  %v32661_v57 = vld [vmem:[%s35143_s27 + $0x168] sm:$0xff]  }
  0x27   : > { %29372 = vmatprep.subr.bf16.mxu1 %v32633_v14  ;;  %v361_v40 = vcombine.high %v213_v35, %v213_v35  ;;  %v368_v43 = vrot.slane %v213_v35, %v35187_v42  ;;  %v32659_v54 = vld [vmem:[%s35143_s27 + $0x1f0] sm:$0xff]   ;;  %v32663_v58 = vld [vmem:[%s35143_s27 + $0x1e8] sm:$0xff]   ;;  %v32665_v61 = vld [vmem:[%s35143_s27 + $0x160] sm:$0xff]  }
  0x28   : > { %v32658_v55 = vld [vmem:[%s35143_s27 + $0x130] sm:$0xff]   ;;  %v32662_v59 = vld [vmem:[%s35143_s27 + $0x128] sm:$0xff]   ;;  %v32667_v62 = vld [vmem:[%s35143_s27 + $0x1e0] sm:$0xff]  }
  0x29   : > { %29351 = vmatpush3.bf16.msra.mxu0 %v32634_v15  ;;  %v375_v44 = vrot.slane %v361_v40, %v35187_v42  ;;  %v376_v45 = vcombine.high %v368_v43, %v368_v43  ;;  %v1904_v48 = vpack.c.bf16 %v368_v43, %v368_v43  ;;  %v32660_v56 = vld [vmem:[%s35143_s27 + $0x1b0] sm:$0xff]   ;;  %v32664_v60 = vld [vmem:[%s35143_s27 + $0x1a8] sm:$0xff]   ;;  %v32666_v63 = vld [vmem:[%s35143_s27 + $0x120] sm:$0xff]  }
  0x2a   : > { %29373 = vmatpush3.bf16.msra.mxu1 %v32635_v16  ;;  %29352 = vmatprep.subr.bf16.mxu0 %v32636_v17  ;;  %v32668_v0 = vld [vmem:[%s35143_s27 + $0x1a0] sm:$0xff]   ;;  %v32669_v1 = vld [vmem:[%s35143_s27 + $0x158] sm:$0xff]   ;;  %v32673_v5 = vld [vmem:[%s35143_s27 + $0x150] sm:$0xff]  }
  0x2b   : > { %29374 = vmatprep.subr.bf16.mxu1 %v32637_v18  ;;  %v377_v46 = vcombine.high %v375_v44, %v375_v44  ;;  %v1906_v49 = vpack.c.bf16 %v375_v44, %v375_v44  ;;  %v1905_v51 = vpack.c.bf16 %v376_v45, %v376_v45  ;;  %v32671_v2 = vld [vmem:[%s35143_s27 + $0x1d8] sm:$0xff]   ;;  %v32675_v6 = vld [vmem:[%s35143_s27 + $0x1d0] sm:$0xff]   ;;  %v32677_v9 = vld [vmem:[%s35143_s27 + $0x148] sm:$0xff]  }
  0x2c   : > { %v32670_v3 = vld [vmem:[%s35143_s27 + $0x118] sm:$0xff]   ;;  %v32674_v7 = vld [vmem:[%s35143_s27 + $0x110] sm:$0xff]   ;;  %v214_v10 = vld [vmem:[%s35138_s23 + $0x8] sm:$0xff] }
  0x2d   : > { %29353 = vmatpush3.bf16.msra.mxu0 %v32638_v19  ;;  %v1907_v52 = vpack.c.bf16 %v377_v46, %v377_v46  ;;  %21047 = vmatprep.mubr.bf16.mxu0 %v1905_v51  ;;  %v32672_v4 = vld [vmem:[%s35143_s27 + $0x198] sm:$0xff]   ;;  %v32676_v8 = vld [vmem:[%s35143_s27 + $0x190] sm:$0xff]   ;;  %v32679_v11 = vld [vmem:[%s35143_s27 + $0x1c8] sm:$0xff]   ;;  %v385_v12 = vrot.slane %v214_v10, %v35187_v42  ;;  %v378_v13 = vcombine.high %v214_v10, %v214_v10 }
  0x2e   : > { %29375 = vmatpush3.bf16.msra.mxu1 %v32639_v20  ;;  %29354 = vmatprep.subr.bf16.mxu0 %v32640_v21  ;;  %v32678_v14 = vld [vmem:[%s35143_s27 + $0x108] sm:$0xff]   ;;  %v32681_v18 = vld [vmem:[%s35143_s27 + $0x140] sm:$0xff]   ;;  %v32693_v34 = vld [vmem:[%s35143_s27 + $0x2b0] sm:$0xff]  }
  0x2f   : > { %29376 = vmatprep.subr.bf16.mxu1 %v32641_v22  ;;  %21087 = vmatprep.mubr.bf16.mxu1 %v1907_v52  ;;  %v32680_v15 = vld [vmem:[%s35143_s27 + $0x188] sm:$0xff]   ;;  %v393_v16 = vcombine.high %v385_v12, %v385_v12  ;;  %v392_v17 = vrot.slane %v378_v13, %v35187_v42  ;;  %v32683_v19 = vld [vmem:[%s35143_s27 + $0x1c0] sm:$0xff]   ;;  %v32702_v44 = vld [vmem:[%s35143_s27 + $0x258] sm:$0xff]  }
  0x30   : > { %v32682_v22 = vld [vmem:[%s35143_s27 + $0x100] sm:$0xff]   ;;  %v32694_v35 = vld [vmem:[%s35143_s27 + $0x268] sm:$0xff]   ;;  %v32704_v45 = vld [vmem:[%s35143_s27 + $0x2d8] sm:$0xff]  }
  0x31   : > { %29355 = vmatpush3.bf16.msra.mxu0 %v32642_v23  ;;  %v1909_v20 = vpack.c.bf16 %v393_v16, %v393_v16  ;;  %v394_v21 = vcombine.high %v392_v17, %v392_v17  ;;  %v32684_v23 = vld [vmem:[%s35143_s27 + $0x180] sm:$0xff]   ;;  %v1910_v29 = vpack.c.bf16 %v392_v17, %v392_v17  ;;  %v32695_v37 = vld [vmem:[%s35143_s27 + $0x228] sm:$0xff]   ;;  %v32703_v46 = vld [vmem:[%s35143_s27 + $0x218] sm:$0xff]  }
  0x32   : > { %29377 = vmatpush3.bf16.msra.mxu1 %v32643_v24  ;;  %29356 = vmatprep.subr.bf16.mxu0 %v32644_v25  ;;  %v32685_v25 = vld [vmem:[%s35143_s27 + $0x278] sm:$0xff]   ;;  %v32697_v38 = vld [vmem:[%s35143_s27 + $0x2a8] sm:$0xff]   ;;  %v32698_v39 = vld [vmem:[%s35143_s27 + $0x260] sm:$0xff]  }
  0x33   : > { %29378 = vmatprep.subr.bf16.mxu1 %v32645_v26  ;;  %v1911_v24 = vpack.c.bf16 %v394_v21, %v394_v21  ;;  %v32688_v26 = vld [vmem:[%s35143_s27 + $0x2f8] sm:$0xff]   ;;  %v32700_v40 = vld [vmem:[%s35143_s27 + $0x2e0] sm:$0xff]   ;;  %v32709_v51 = vld [vmem:[%s35143_s27 + $0x290] sm:$0xff]  }
  0x34   : > { %v32701_v43 = vld [vmem:[%s35143_s27 + $0x2a0] sm:$0xff]   ;;  %v32710_v52 = vld [vmem:[%s35143_s27 + $0x248] sm:$0xff]   ;;  %v32723_v10 = vld [vmem:[%s35143_s27 + $0x370] sm:$0xff]  }
  0x35   : > { %29357 = vmatpush3.bf16.msra.mxu0 %v32646_v27  ;;  %v32687_v27 = vld [vmem:[%s35143_s27 + $0x238] sm:$0xff]   ;;  %v32726_v13 = vld [vmem:[%s35143_s27 + $0x3b0] sm:$0xff]   ;;  %v32728_v16 = vld [vmem:[%s35143_s27 + $0x328] sm:$0xff]  }
  0x36   : > { %29379 = vmatpush3.bf16.msra.mxu1 %v32647_v28  ;;  %29358 = vmatprep.subr.bf16.mxu0 %v32648_v30  ;;  %v1908_v28 = vpack.c.bf16 %v385_v12, %v385_v12  ;;  %v32689_v30 = vld [vmem:[%s35143_s27 + $0x2b8] sm:$0xff]   ;;  %v32724_v12 = vld [vmem:[%s35143_s27 + $0x330] sm:$0xff]   ;;  %v32730_v17 = vld [vmem:[%s35143_s27 + $0x3a8] sm:$0xff]  }
  0x37   : > { %29380 = vmatprep.subr.bf16.mxu1 %v32649_v31  ;;  %v32690_v31 = vld [vmem:[%s35143_s27 + $0x270] sm:$0xff]   ;;  %v32734_v21 = vld [vmem:[%s35143_s27 + $0x3a0] sm:$0xff]  }
  0x39   : > { %29359 = vmatpush3.bf16.msra.mxu0 %v32650_v32  ;;  %v32692_v32 = vld [vmem:[%s35143_s27 + $0x2f0] sm:$0xff]  }
  0x3a   : > { %29381 = vmatpush3.bf16.msra.mxu1 %v32651_v33  ;;  %29388 = vmatprep.subr.bf16.mxu0 %v32653_v36  ;;  %v32691_v33 = vld [vmem:[%s35143_s27 + $0x230] sm:$0xff]   ;;  %v32696_v36 = vld [vmem:[%s35143_s27 + $0x2e8] sm:$0xff]  }
  0x3b   : > { %29410 = vmatprep.subr.bf16.mxu1 %v32655_v41  ;;  %v32699_v41 = vld [vmem:[%s35143_s27 + $0x220] sm:$0xff]  }
  0x3c   : > { %21048 = vmatmul.mubr.bf16.vlgmr.msra.gmra.mxu0 %v1904_v48  ;;  %v32706_v48 = vld [vmem:[%s35143_s27 + $0x250] sm:$0xff]  }
  0x3d   : > { %21088 = vmatmul.mubr.bf16.vlgmr.msra.gmra.mxu1 %v1906_v49  ;;  %29389 = vmatpush3.bf16.msra.mxu0 %v32654_v47  ;;  %v32705_v47 = vld [vmem:[%s35143_s27 + $0x298] sm:$0xff]   ;;  %v32708_v49 = vld [vmem:[%s35143_s27 + $0x2d0] sm:$0xff]  }
  0x3e   : > { %29411 = vmatpush3.bf16.msra.mxu1 %v32656_v50  ;;  %29390 = vmatprep.subr.bf16.mxu0 %v32657_v53  ;;  %v32707_v50 = vld [vmem:[%s35143_s27 + $0x210] sm:$0xff]  }
  0x3f   : > { %29412 = vmatprep.subr.bf16.mxu1 %v32659_v54  ;;  %21127 = vmatprep.mubr.bf16.mxu0 %v1909_v20  ;;  %v215_v53 = vld [vmem:[%s35138_s23 + $0x10] sm:$0xff]  ;;  %v32712_v54 = vld [vmem:[%s35143_s27 + $0x2c8] sm:$0xff]   ;;  %v32732_v20 = vld [vmem:[%s35143_s27 + $0x320] sm:$0xff]  }
  0x40   : > { %21167 = vmatprep.mubr.bf16.mxu1 %v1911_v24  ;;  %v32736_v24 = vld [vmem:[%s35143_s27 + $0x318] sm:$0xff]  }
  0x41   : > { %29391 = vmatpush3.bf16.msra.mxu0 %v32658_v55  ;;  %v402_v55 = vrot.slane %v215_v53, %v35187_v42 }
  0x42   : > { %29413 = vmatpush3.bf16.msra.mxu1 %v32660_v56  ;;  %29392 = vmatprep.subr.bf16.mxu0 %v32661_v57  ;;  %v395_v56 = vcombine.high %v215_v53, %v215_v53  ;;  %v32711_v57 = vld [vmem:[%s35143_s27 + $0x208] sm:$0xff]   ;;  %v32756_v53 = vld [vmem:[%s35143_s27 + $0x470] sm:$0xff]  }
  0x43   : > { %29414 = vmatprep.subr.bf16.mxu1 %v32663_v58  ;;  %v32713_v58 = vld [vmem:[%s35143_s27 + $0x288] sm:$0xff]  }
  0x45   : > { %29393 = vmatpush3.bf16.msra.mxu0 %v32662_v59  ;;  %v410_v59 = vcombine.high %v402_v55, %v402_v55 }
  0x46   : > { %29415 = vmatpush3.bf16.msra.mxu1 %v32664_v60  ;;  %29394 = vmatprep.subr.bf16.mxu0 %v32665_v61  ;;  %v409_v60 = vrot.slane %v395_v56, %v35187_v42  ;;  %v32714_v61 = vld [vmem:[%s35143_s27 + $0x240] sm:$0xff]   ;;  %v32759_v56 = vld [vmem:[%s35143_s27 + $0x4b0] sm:$0xff]  }
  0x47   : > { %29416 = vmatprep.subr.bf16.mxu1 %v32667_v62  ;;  %v32716_v62 = vld [vmem:[%s35143_s27 + $0x2c0] sm:$0xff]  }
  0x49   : > { %29395 = vmatpush3.bf16.msra.mxu0 %v32666_v63  ;;  %v1913_v63 = vpack.c.bf16 %v410_v59, %v410_v59  ;;  %v32761_v59 = vld [vmem:[%s35143_s27 + $0x428] sm:$0xff]  }
  0x4a   : > { %29417 = vmatpush3.bf16.msra.mxu1 %v32668_v0  ;;  %29396 = vmatprep.subr.bf16.mxu0 %v32669_v1  ;;  %v411_v0 = vcombine.high %v409_v60, %v409_v60  ;;  %v32715_v1 = vld [vmem:[%s35143_s27 + $0x200] sm:$0xff]  }
  0x4b   : > { %29418 = vmatprep.subr.bf16.mxu1 %v32671_v2  ;;  %v32717_v2 = vld [vmem:[%s35143_s27 + $0x280] sm:$0xff]  }
  0x4d   : > { %29397 = vmatpush3.bf16.msra.mxu0 %v32670_v3  ;;  %v1915_v3 = vpack.c.bf16 %v411_v0, %v411_v0  ;;  %v32767_v0 = vld [vmem:[%s35143_s27 + $0x4a0] sm:$0xff]  }
  0x4e   : > { %29419 = vmatpush3.bf16.msra.mxu1 %v32672_v4  ;;  %29398 = vmatprep.subr.bf16.mxu0 %v32673_v5  ;;  %v32718_v4 = vld [vmem:[%s35143_s27 + $0x378] sm:$0xff]  }
  0x4f   : > { %29420 = vmatprep.subr.bf16.mxu1 %v32675_v6  ;;  %v32721_v5 = vld [vmem:[%s35143_s27 + $0x3f8] sm:$0xff]  }
  0x50   : > { %v32720_v6 = vld [vmem:[%s35143_s27 + $0x338] sm:$0xff]  }
  0x51   : > { %29399 = vmatpush3.bf16.msra.mxu0 %v32674_v7  ;;  %v1912_v7 = vpack.c.bf16 %v402_v55, %v402_v55  ;;  %v32757_v55 = vld [vmem:[%s35143_s27 + $0x430] sm:$0xff]  }
  0x52   : > { %29421 = vmatpush3.bf16.msra.mxu1 %v32676_v8  ;;  %29400 = vmatprep.subr.bf16.mxu0 %v32677_v9  ;;  %v1914_v8 = vpack.c.bf16 %v409_v60, %v409_v60  ;;  %v32722_v9 = vld [vmem:[%s35143_s27 + $0x3b8] sm:$0xff]   ;;  %v32763_v60 = vld [vmem:[%s35143_s27 + $0x4a8] sm:$0xff]  }
  0x53   : > { %29422 = vmatprep.subr.bf16.mxu1 %v32679_v11  ;;  %v32725_v11 = vld [vmem:[%s35143_s27 + $0x3f0] sm:$0xff]  }
  0x55   : > { %29401 = vmatpush3.bf16.msra.mxu0 %v32678_v14  ;;  %v32727_v14 = vld [vmem:[%s35143_s27 + $0x368] sm:$0xff]  }
  0x56   : > { %29423 = vmatpush3.bf16.msra.mxu1 %v32680_v15  ;;  %29402 = vmatprep.subr.bf16.mxu0 %v32681_v18  ;;  %v32729_v15 = vld [vmem:[%s35143_s27 + $0x3e8] sm:$0xff]   ;;  %v32731_v18 = vld [vmem:[%s35143_s27 + $0x360] sm:$0xff]  }
  0x57   : > { %29424 = vmatprep.subr.bf16.mxu1 %v32683_v19  ;;  %v32733_v19 = vld [vmem:[%s35143_s27 + $0x3e0] sm:$0xff]  }
  0x59   : > { %29403 = vmatpush3.bf16.msra.mxu0 %v32682_v22  ;;  %v32735_v22 = vld [vmem:[%s35143_s27 + $0x358] sm:$0xff]  }
  0x5a   : > { %29425 = vmatpush3.bf16.msra.mxu1 %v32684_v23  ;;  %29432 = vmatprep.subr.bf16.mxu0 %v32685_v25  ;;  %v32737_v23 = vld [vmem:[%s35143_s27 + $0x3d8] sm:$0xff]  }
  0x5b   : > { %29454 = vmatprep.subr.bf16.mxu1 %v32688_v26  ;;  %v32738_v25 = vld [vmem:[%s35143_s27 + $0x398] sm:$0xff]   ;;  %v32739_v26 = vld [vmem:[%s35143_s27 + $0x350] sm:$0xff]  }
  0x5c   : > { %21128 = vmatmul.mubr.bf16.vlgmr.msra.gmra.mxu0 %v1908_v28  ;;  %v32740_v28 = vld [vmem:[%s35143_s27 + $0x310] sm:$0xff]  }
  0x5d   : > { %21168 = vmatmul.mubr.bf16.vlgmr.msra.gmra.mxu1 %v1910_v29  ;;  %29433 = vmatpush3.bf16.msra.mxu0 %v32687_v27  ;;  %v32741_v27 = vld [vmem:[%s35143_s27 + $0x3d0] sm:$0xff]  }
  0x5e   : > { %29455 = vmatpush3.bf16.msra.mxu1 %v32689_v30  ;;  %29434 = vmatprep.subr.bf16.mxu0 %v32690_v31  ;;  %v32742_v29 = vld [vmem:[%s35143_s27 + $0x390] sm:$0xff]   ;;  %v32743_v30 = vld [vmem:[%s35143_s27 + $0x348] sm:$0xff]  }
  0x5f   : > { %29456 = vmatprep.subr.bf16.mxu1 %v32692_v32  ;;  %21207 = vmatprep.mubr.bf16.mxu0 %v1913_v63  ;;  %v32745_v31 = vld [vmem:[%s35143_s27 + $0x3c8] sm:$0xff]   ;;  %v216_v32 = vld [vmem:[%s35138_s23 + $0x18] sm:$0xff]  ;;  %v32765_v63 = vld [vmem:[%s35143_s27 + $0x420] sm:$0xff]  }
  0x60   : > { %21247 = vmatprep.mubr.bf16.mxu1 %v1915_v3  ;;  %v32769_v3 = vld [vmem:[%s35143_s27 + $0x418] sm:$0xff]  }
  0x61   : > { %29435 = vmatpush3.bf16.msra.mxu0 %v32691_v33  ;;  %v32744_v33 = vld [vmem:[%s35143_s27 + $0x308] sm:$0xff]  }
  0x62   : > { %29457 = vmatpush3.bf16.msra.mxu1 %v32693_v34  ;;  %29436 = vmatprep.subr.bf16.mxu0 %v32694_v35  ;;  %v419_v34 = vrot.slane %v216_v32, %v35187_v42  ;;  %v412_v35 = vcombine.high %v216_v32, %v216_v32  ;;  %v32791_v32 = vld [vmem:[%s35143_s27 + $0x5f0] sm:$0xff]  }
  0x63   : > { %29458 = vmatprep.subr.bf16.mxu1 %v32696_v36  ;;  %v32746_v36 = vld [vmem:[%s35143_s27 + $0x388] sm:$0xff]  }
  0x65   : > { %29437 = vmatpush3.bf16.msra.mxu0 %v32695_v37  ;;  %v32747_v37 = vld [vmem:[%s35143_s27 + $0x340] sm:$0xff]  }
  0x66   : > { %29459 = vmatpush3.bf16.msra.mxu1 %v32697_v38  ;;  %29438 = vmatprep.subr.bf16.mxu0 %v32698_v39  ;;  %v427_v38 = vcombine.high %v419_v34, %v419_v34  ;;  %v426_v39 = vrot.slane %v412_v35, %v35187_v42  ;;  %v32793_v35 = vld [vmem:[%s35143_s27 + $0x568] sm:$0xff]  }
  0x67   : > { %29460 = vmatprep.subr.bf16.mxu1 %v32700_v40  ;;  %v32749_v40 = vld [vmem:[%s35143_s27 + $0x3c0] sm:$0xff]  }
  0x69   : > { %29439 = vmatpush3.bf16.msra.mxu0 %v32699_v41  ;;  %v32748_v41 = vld [vmem:[%s35143_s27 + $0x300] sm:$0xff]  }
  0x6a   : > { %29461 = vmatpush3.bf16.msra.mxu1 %v32701_v43  ;;  %29440 = vmatprep.subr.bf16.mxu0 %v32702_v44  ;;  %v1917_v43 = vpack.c.bf16 %v427_v38, %v427_v38  ;;  %v428_v44 = vcombine.high %v426_v39, %v426_v39  ;;  %v32796_v38 = vld [vmem:[%s35143_s27 + $0x5a8] sm:$0xff]  }
  0x6b   : > { %29462 = vmatprep.subr.bf16.mxu1 %v32704_v45  ;;  %v32750_v45 = vld [vmem:[%s35143_s27 + $0x380] sm:$0xff]  }
  0x6d   : > { %29441 = vmatpush3.bf16.msra.mxu0 %v32703_v46  ;;  %v32751_v46 = vld [vmem:[%s35143_s27 + $0x478] sm:$0xff]  }
  0x6e   : > { %29463 = vmatpush3.bf16.msra.mxu1 %v32705_v47  ;;  %29442 = vmatprep.subr.bf16.mxu0 %v32706_v48  ;;  %v1919_v47 = vpack.c.bf16 %v428_v44, %v428_v44  ;;  %v32754_v48 = vld [vmem:[%s35143_s27 + $0x4f8] sm:$0xff]  }
  0x6f   : > { %29464 = vmatprep.subr.bf16.mxu1 %v32708_v49  ;;  %v32753_v49 = vld [vmem:[%s35143_s27 + $0x438] sm:$0xff]  }
  0x70   : > { %v32801_v44 = vld [vmem:[%s35143_s27 + $0x558] sm:$0xff]  }
  0x71   : > { %29443 = vmatpush3.bf16.msra.mxu0 %v32707_v50  ;;  %v1916_v50 = vpack.c.bf16 %v419_v34, %v419_v34  ;;  %v32792_v34 = vld [vmem:[%s35143_s27 + $0x5b0] sm:$0xff]  }
  0x72   : > { %29465 = vmatpush3.bf16.msra.mxu1 %v32709_v51  ;;  %29444 = vmatprep.subr.bf16.mxu0 %v32710_v52  ;;  %v1918_v51 = vpack.c.bf16 %v426_v39, %v426_v39  ;;  %v32755_v52 = vld [vmem:[%s35143_s27 + $0x4b8] sm:$0xff]   ;;  %v32797_v39 = vld [vmem:[%s35143_s27 + $0x560] sm:$0xff]  }
  0x73   : > { %29466 = vmatprep.subr.bf16.mxu1 %v32712_v54  ;;  %v32758_v54 = vld [vmem:[%s35143_s27 + $0x4f0] sm:$0xff]  }
  0x75   : > { %29445 = vmatpush3.bf16.msra.mxu0 %v32711_v57  ;;  %v32760_v57 = vld [vmem:[%s35143_s27 + $0x468] sm:$0xff]  }
  0x76   : > { %29467 = vmatpush3.bf16.msra.mxu1 %v32713_v58  ;;  %29446 = vmatprep.subr.bf16.mxu0 %v32714_v61  ;;  %v32762_v58 = vld [vmem:[%s35143_s27 + $0x4e8] sm:$0xff]   ;;  %v32764_v61 = vld [vmem:[%s35143_s27 + $0x460] sm:$0xff]  }
  0x77   : > { %29468 = vmatprep.subr.bf16.mxu1 %v32716_v62  ;;  %v32766_v62 = vld [vmem:[%s35143_s27 + $0x4e0] sm:$0xff]  }
  0x79   : > { %29447 = vmatpush3.bf16.msra.mxu0 %v32715_v1  ;;  %v32768_v1 = vld [vmem:[%s35143_s27 + $0x458] sm:$0xff]  }
  0x7a   : > { %29469 = vmatpush3.bf16.msra.mxu1 %v32717_v2  ;;  %29476 = vmatprep.subr.bf16.mxu0 %v32718_v4  ;;  %v32770_v2 = vld [vmem:[%s35143_s27 + $0x4d8] sm:$0xff]  }
  0x7b   : > { %29498 = vmatprep.subr.bf16.mxu1 %v32721_v5  ;;  %v32771_v4 = vld [vmem:[%s35143_s27 + $0x498] sm:$0xff]   ;;  %v32772_v5 = vld [vmem:[%s35143_s27 + $0x450] sm:$0xff]  }
  0x7c   : > { %21208 = vmatmul.mubr.bf16.vlgmr.msra.gmra.mxu0 %v1912_v7  ;;  %v32773_v7 = vld [vmem:[%s35143_s27 + $0x410] sm:$0xff]  }
  0x7d   : > { %21248 = vmatmul.mubr.bf16.vlgmr.msra.gmra.mxu1 %v1914_v8  ;;  %29477 = vmatpush3.bf16.msra.mxu0 %v32720_v6  ;;  %v32774_v6 = vld [vmem:[%s35143_s27 + $0x4d0] sm:$0xff]  }
  0x7e   : > { %29499 = vmatpush3.bf16.msra.mxu1 %v32722_v9  ;;  %29478 = vmatprep.subr.bf16.mxu0 %v32723_v10  ;;  %v32775_v8 = vld [vmem:[%s35143_s27 + $0x490] sm:$0xff]   ;;  %v32776_v9 = vld [vmem:[%s35143_s27 + $0x448] sm:$0xff]  }
  0x7f   : > { %29500 = vmatprep.subr.bf16.mxu1 %v32725_v11  ;;  %21287 = vmatprep.mubr.bf16.mxu0 %v1917_v43  ;;  %v32778_v10 = vld [vmem:[%s35143_s27 + $0x4c8] sm:$0xff]   ;;  %v217_v11 = vld [vmem:[%s35138_s23 + $0x20] sm:$0xff] }
  0x80   : > { %21327 = vmatprep.mubr.bf16.mxu1 %v1919_v47  ;;  %v32800_v43 = vld [vmem:[%s35143_s27 + $0x5a0] sm:$0xff]   ;;  %v32804_v47 = vld [vmem:[%s35143_s27 + $0x598] sm:$0xff]  }
  0x81   : > { %29479 = vmatpush3.bf16.msra.mxu0 %v32724_v12  ;;  %v32777_v12 = vld [vmem:[%s35143_s27 + $0x408] sm:$0xff]  }
  0x82   : > { %29501 = vmatpush3.bf16.msra.mxu1 %v32726_v13  ;;  %29480 = vmatprep.subr.bf16.mxu0 %v32727_v14  ;;  %v436_v13 = vrot.slane %v217_v11, %v35187_v42  ;;  %v429_v14 = vcombine.high %v217_v11, %v217_v11  ;;  %v32824_v11 = vld [vmem:[%s35143_s27 + $0x6f0] sm:$0xff]  }
  0x83   : > { %29502 = vmatprep.subr.bf16.mxu1 %v32729_v15  ;;  %v32779_v15 = vld [vmem:[%s35143_s27 + $0x488] sm:$0xff]  }
  0x85   : > { %29481 = vmatpush3.bf16.msra.mxu0 %v32728_v16  ;;  %v32780_v16 = vld [vmem:[%s35143_s27 + $0x440] sm:$0xff]  }
  0x86   : > { %29503 = vmatpush3.bf16.msra.mxu1 %v32730_v17  ;;  %29482 = vmatprep.subr.bf16.mxu0 %v32731_v18  ;;  %v444_v17 = vcombine.high %v436_v13, %v436_v13  ;;  %v443_v18 = vrot.slane %v429_v14, %v35187_v42  ;;  %v32826_v14 = vld [vmem:[%s35143_s27 + $0x668] sm:$0xff]  }
  0x87   : > { %29504 = vmatprep.subr.bf16.mxu1 %v32733_v19  ;;  %v32782_v19 = vld [vmem:[%s35143_s27 + $0x4c0] sm:$0xff]  }
  0x89   : > { %29483 = vmatpush3.bf16.msra.mxu0 %v32732_v20  ;;  %v32781_v20 = vld [vmem:[%s35143_s27 + $0x400] sm:$0xff]  }
  0x8a   : > { %29505 = vmatpush3.bf16.msra.mxu1 %v32734_v21  ;;  %29484 = vmatprep.subr.bf16.mxu0 %v32735_v22  ;;  %v1921_v21 = vpack.c.bf16 %v444_v17, %v444_v17  ;;  %v445_v22 = vcombine.high %v443_v18, %v443_v18  ;;  %v32829_v17 = vld [vmem:[%s35143_s27 + $0x6a8] sm:$0xff]  }
  0x8b   : > { %29506 = vmatprep.subr.bf16.mxu1 %v32737_v23  ;;  %v32783_v23 = vld [vmem:[%s35143_s27 + $0x480] sm:$0xff]  }
  0x8d   : > { %29485 = vmatpush3.bf16.msra.mxu0 %v32736_v24  ;;  %v32784_v24 = vld [vmem:[%s35143_s27 + $0x578] sm:$0xff]  }
  0x8e   : > { %29507 = vmatpush3.bf16.msra.mxu1 %v32738_v25  ;;  %29486 = vmatprep.subr.bf16.mxu0 %v32739_v26  ;;  %v1923_v25 = vpack.c.bf16 %v445_v22, %v445_v22  ;;  %v32787_v26 = vld [vmem:[%s35143_s27 + $0x5f8] sm:$0xff]  }
  0x8f   : > { %29508 = vmatprep.subr.bf16.mxu1 %v32741_v27  ;;  %v32786_v27 = vld [vmem:[%s35143_s27 + $0x538] sm:$0xff]  }
  0x90   : > { %v32834_v22 = vld [vmem:[%s35143_s27 + $0x658] sm:$0xff]  }
  0x91   : > { %29487 = vmatpush3.bf16.msra.mxu0 %v32740_v28  ;;  %v1920_v28 = vpack.c.bf16 %v436_v13, %v436_v13  ;;  %v32825_v13 = vld [vmem:[%s35143_s27 + $0x6b0] sm:$0xff]  }
  0x92   : > { %29509 = vmatpush3.bf16.msra.mxu1 %v32742_v29  ;;  %29488 = vmatprep.subr.bf16.mxu0 %v32743_v30  ;;  %v1922_v29 = vpack.c.bf16 %v443_v18, %v443_v18  ;;  %v32788_v30 = vld [vmem:[%s35143_s27 + $0x5b8] sm:$0xff]   ;;  %v32830_v18 = vld [vmem:[%s35143_s27 + $0x660] sm:$0xff]  }
  0x93   : > { %29510 = vmatprep.subr.bf16.mxu1 %v32745_v31  ;;  %v32789_v31 = vld [vmem:[%s35143_s27 + $0x570] sm:$0xff]  }
  0x95   : > { %29489 = vmatpush3.bf16.msra.mxu0 %v32744_v33  ;;  %v32790_v33 = vld [vmem:[%s35143_s27 + $0x530] sm:$0xff]  }
  0x96   : > { %29511 = vmatpush3.bf16.msra.mxu1 %v32746_v36  ;;  %29490 = vmatprep.subr.bf16.mxu0 %v32747_v37  ;;  %v32795_v36 = vld [vmem:[%s35143_s27 + $0x5e8] sm:$0xff]  }
  0x97   : > { %29512 = vmatprep.subr.bf16.mxu1 %v32749_v40  ;;  %v32794_v37 = vld [vmem:[%s35143_s27 + $0x528] sm:$0xff]   ;;  %v32799_v40 = vld [vmem:[%s35143_s27 + $0x5e0] sm:$0xff]  }
  0x99   : > { %29491 = vmatpush3.bf16.msra.mxu0 %v32748_v41  ;;  %v32798_v41 = vld [vmem:[%s35143_s27 + $0x520] sm:$0xff]  }
  0x9a   : > { %29513 = vmatpush3.bf16.msra.mxu1 %v32750_v45  ;;  %29520 = vmatprep.subr.bf16.mxu0 %v32751_v46  ;;  %v32803_v45 = vld [vmem:[%s35143_s27 + $0x5d8] sm:$0xff]  }
  0x9b   : > { %29542 = vmatprep.subr.bf16.mxu1 %v32754_v48  ;;  %v32802_v46 = vld [vmem:[%s35143_s27 + $0x518] sm:$0xff]   ;;  %v32805_v48 = vld [vmem:[%s35143_s27 + $0x550] sm:$0xff]  }
  0x9c   : > { %21288 = vmatmul.mubr.bf16.vlgmr.msra.gmra.mxu0 %v1916_v50  ;;  %v32806_v50 = vld [vmem:[%s35143_s27 + $0x510] sm:$0xff]  }
  0x9d   : > { %21328 = vmatmul.mubr.bf16.vlgmr.msra.gmra.mxu1 %v1918_v51  ;;  %29521 = vmatpush3.bf16.msra.mxu0 %v32753_v49  ;;  %v32807_v49 = vld [vmem:[%s35143_s27 + $0x5d0] sm:$0xff]  }
  0x9e   : > { %29543 = vmatpush3.bf16.msra.mxu1 %v32755_v52  ;;  %29522 = vmatprep.subr.bf16.mxu0 %v32756_v53  ;;  %v32808_v51 = vld [vmem:[%s35143_s27 + $0x590] sm:$0xff]   ;;  %v32809_v52 = vld [vmem:[%s35143_s27 + $0x548] sm:$0xff]  }
  0x9f   : > { %29544 = vmatprep.subr.bf16.mxu1 %v32758_v54  ;;  %21367 = vmatprep.mubr.bf16.mxu0 %v1921_v21  ;;  %v32811_v53 = vld [vmem:[%s35143_s27 + $0x5c8] sm:$0xff]   ;;  %v32833_v21 = vld [vmem:[%s35143_s27 + $0x6a0] sm:$0xff]  }
  0xa0   : > { %21407 = vmatprep.mubr.bf16.mxu1 %v1923_v25  ;;  %v218_v54 = vld [vmem:[%s35138_s23 + $0x28] sm:$0xff]  ;;  %v32837_v25 = vld [vmem:[%s35143_s27 + $0x698] sm:$0xff]  }
  0xa1   : > { %29523 = vmatpush3.bf16.msra.mxu0 %v32757_v55  ;;  %v32810_v55 = vld [vmem:[%s35143_s27 + $0x508] sm:$0xff]  }
  0xa2   : > { %29545 = vmatpush3.bf16.msra.mxu1 %v32759_v56  ;;  %29524 = vmatprep.subr.bf16.mxu0 %v32760_v57  ;;  %v453_v56 = vrot.slane %v218_v54, %v35187_v42  ;;  %v446_v57 = vcombine.high %v218_v54, %v218_v54  ;;  %v32857_v54 = vld [vmem:[%s35143_s27 + $0x7f0] sm:$0xff]  }
  0xa3   : > { %29546 = vmatprep.subr.bf16.mxu1 %v32762_v58  ;;  %v32812_v58 = vld [vmem:[%s35143_s27 + $0x588] sm:$0xff]  }
  0xa5   : > { %29525 = vmatpush3.bf16.msra.mxu0 %v32761_v59  ;;  %v32813_v59 = vld [vmem:[%s35143_s27 + $0x540] sm:$0xff]  }
  0xa6   : > { %29547 = vmatpush3.bf16.msra.mxu1 %v32763_v60  ;;  %29526 = vmatprep.subr.bf16.mxu0 %v32764_v61  ;;  %v461_v60 = vcombine.high %v453_v56, %v453_v56  ;;  %v460_v61 = vrot.slane %v446_v57, %v35187_v42 }
  0xa7   : > { %29548 = vmatprep.subr.bf16.mxu1 %v32766_v62  ;;  %v32815_v62 = vld [vmem:[%s35143_s27 + $0x5c0] sm:$0xff]  }
  0xa9   : > { %29527 = vmatpush3.bf16.msra.mxu0 %v32765_v63  ;;  %v32814_v63 = vld [vmem:[%s35143_s27 + $0x500] sm:$0xff]  }
  0xaa   : > { %29549 = vmatpush3.bf16.msra.mxu1 %v32767_v0  ;;  %29528 = vmatprep.subr.bf16.mxu0 %v32768_v1  ;;  %v1925_v0 = vpack.c.bf16 %v461_v60, %v461_v60  ;;  %v462_v1 = vcombine.high %v460_v61, %v460_v61 }
  0xab   : > { %29550 = vmatprep.subr.bf16.mxu1 %v32770_v2  ;;  %v32816_v2 = vld [vmem:[%s35143_s27 + $0x580] sm:$0xff]  }
  0xad   : > { %29529 = vmatpush3.bf16.msra.mxu0 %v32769_v3  ;;  %v32817_v3 = vld [vmem:[%s35143_s27 + $0x678] sm:$0xff]  }
  0xae   : > { %29551 = vmatpush3.bf16.msra.mxu1 %v32771_v4  ;;  %29530 = vmatprep.subr.bf16.mxu0 %v32772_v5  ;;  %v1927_v4 = vpack.c.bf16 %v462_v1, %v462_v1  ;;  %v32820_v5 = vld [vmem:[%s35143_s27 + $0x6f8] sm:$0xff]   ;;  %v32860_v1 = vld [vmem:[%s35143_s27 + $0x728] sm:$0xff]  }
  0xaf   : > { %29552 = vmatprep.subr.bf16.mxu1 %v32774_v6  ;;  %v32819_v6 = vld [vmem:[%s35143_s27 + $0x638] sm:$0xff]  }
  0xb1   : > { %29531 = vmatpush3.bf16.msra.mxu0 %v32773_v7  ;;  %v1924_v7 = vpack.c.bf16 %v453_v56, %v453_v56 }
  0xb2   : > { %29553 = vmatpush3.bf16.msra.mxu1 %v32775_v8  ;;  %29532 = vmatprep.subr.bf16.mxu0 %v32776_v9  ;;  %v1926_v8 = vpack.c.bf16 %v460_v61, %v460_v61  ;;  %v32821_v9 = vld [vmem:[%s35143_s27 + $0x6b8] sm:$0xff]  }
  0xb3   : > { %29554 = vmatprep.subr.bf16.mxu1 %v32778_v10  ;;  %v32822_v10 = vld [vmem:[%s35143_s27 + $0x670] sm:$0xff]  }
  0xb5   : > { %29533 = vmatpush3.bf16.msra.mxu0 %v32777_v12  ;;  %v32823_v12 = vld [vmem:[%s35143_s27 + $0x630] sm:$0xff]  }
  0xb6   : > { %29555 = vmatpush3.bf16.msra.mxu1 %v32779_v15  ;;  %29534 = vmatprep.subr.bf16.mxu0 %v32780_v16  ;;  %v32828_v15 = vld [vmem:[%s35143_s27 + $0x6e8] sm:$0xff]  }
  0xb7   : > { %29556 = vmatprep.subr.bf16.mxu1 %v32782_v19  ;;  %v32827_v16 = vld [vmem:[%s35143_s27 + $0x628] sm:$0xff]   ;;  %v32832_v19 = vld [vmem:[%s35143_s27 + $0x6e0] sm:$0xff]  }
  0xb9   : > { %29535 = vmatpush3.bf16.msra.mxu0 %v32781_v20  ;;  %v32831_v20 = vld [vmem:[%s35143_s27 + $0x620] sm:$0xff]  }
  0xba   : > { %29557 = vmatpush3.bf16.msra.mxu1 %v32783_v23  ;;  %29564 = vmatprep.subr.bf16.mxu0 %v32784_v24  ;;  %v32836_v23 = vld [vmem:[%s35143_s27 + $0x6d8] sm:$0xff]  }
  0xbb   : > { %29586 = vmatprep.subr.bf16.mxu1 %v32787_v26  ;;  %v32835_v24 = vld [vmem:[%s35143_s27 + $0x618] sm:$0xff]   ;;  %v32838_v26 = vld [vmem:[%s35143_s27 + $0x650] sm:$0xff]  }
  0xbc   : > { %21368 = vmatmul.mubr.bf16.vlgmr.msra.gmra.mxu0 %v1920_v28  ;;  %v32839_v28 = vld [vmem:[%s35143_s27 + $0x610] sm:$0xff]  }
  0xbd   : > { %21408 = vmatmul.mubr.bf16.vlgmr.msra.gmra.mxu1 %v1922_v29  ;;  %29565 = vmatpush3.bf16.msra.mxu0 %v32786_v27  ;;  %v32840_v27 = vld [vmem:[%s35143_s27 + $0x6d0] sm:$0xff]  }
  0xbe   : > { %29587 = vmatpush3.bf16.msra.mxu1 %v32788_v30  ;;  %29566 = vmatprep.subr.bf16.mxu0 %v32789_v31  ;;  %v32841_v29 = vld [vmem:[%s35143_s27 + $0x690] sm:$0xff]   ;;  %v32842_v30 = vld [vmem:[%s35143_s27 + $0x648] sm:$0xff]  }
  0xbf   : > { %29588 = vmatprep.subr.bf16.mxu1 %v32791_v32  ;;  %21447 = vmatprep.mubr.bf16.mxu0 %v1925_v0  ;;  %v32844_v31 = vld [vmem:[%s35143_s27 + $0x6c8] sm:$0xff]  }
  0xc0   : > { %21487 = vmatprep.mubr.bf16.mxu1 %v1927_v4  ;;  %v32843_v32 = vld [vmem:[%s35143_s27 + $0x608] sm:$0xff]  }
  0xc1   : > { %29567 = vmatpush3.bf16.msra.mxu0 %v32790_v33  ;;  %v219_v33 = vld [vmem:[%s35138_s23 + $0x30] sm:$0xff] }
  0xc2   : > { %29589 = vmatpush3.bf16.msra.mxu1 %v32792_v34  ;;  %29568 = vmatprep.subr.bf16.mxu0 %v32793_v35  ;;  %v32845_v34 = vld [vmem:[%s35143_s27 + $0x688] sm:$0xff]   ;;  %v470_v35 = vrot.slane %v219_v33, %v35187_v42 }
  0xc3   : > { %29590 = vmatprep.subr.bf16.mxu1 %v32795_v36  ;;  %v463_v36 = vcombine.high %v219_v33, %v219_v33  ;;  %v32882_v33 = vld [vmem:[%s35143_s27 + $0x780] sm:$0xff]  }
  0xc5   : > { %29569 = vmatpush3.bf16.msra.mxu0 %v32794_v37  ;;  %v32846_v37 = vld [vmem:[%s35143_s27 + $0x640] sm:$0xff]  }
  0xc6   : > { %29591 = vmatpush3.bf16.msra.mxu1 %v32796_v38  ;;  %29570 = vmatprep.subr.bf16.mxu0 %v32797_v39  ;;  %v32848_v38 = vld [vmem:[%s35143_s27 + $0x6c0] sm:$0xff]   ;;  %v478_v39 = vcombine.high %v470_v35, %v470_v35 }
  0xc7   : > { %29592 = vmatprep.subr.bf16.mxu1 %v32799_v40  ;;  %v477_v40 = vrot.slane %v463_v36, %v35187_v42 }
  0xc9   : > { %29571 = vmatpush3.bf16.msra.mxu0 %v32798_v41  ;;  %v32847_v41 = vld [vmem:[%s35143_s27 + $0x600] sm:$0xff]  }
  0xca   : > { %29593 = vmatpush3.bf16.msra.mxu1 %v32800_v43  ;;  %29572 = vmatprep.subr.bf16.mxu0 %v32801_v44  ;;  %v1929_v43 = vpack.c.bf16 %v478_v39, %v478_v39  ;;  %v32849_v44 = vld [vmem:[%s35143_s27 + $0x680] sm:$0xff]  }
  0xcb   : > { %29594 = vmatprep.subr.bf16.mxu1 %v32803_v45  ;;  %v479_v45 = vcombine.high %v477_v40, %v477_v40 }
  0xcd   : > { %29573 = vmatpush3.bf16.msra.mxu0 %v32802_v46  ;;  %v32850_v46 = vld [vmem:[%s35143_s27 + $0x778] sm:$0xff]  }
  0xce   : > { %29595 = vmatpush3.bf16.msra.mxu1 %v32804_v47  ;;  %29574 = vmatprep.subr.bf16.mxu0 %v32805_v48  ;;  %v1931_v47 = vpack.c.bf16 %v479_v45, %v479_v45  ;;  %v32853_v48 = vld [vmem:[%s35143_s27 + $0x7f8] sm:$0xff]   ;;  %v32889_v45 = vld [vmem:[%s35143_s27 + $0x830] sm:$0xff]  }
  0xcf   : > { %29596 = vmatprep.subr.bf16.mxu1 %v32807_v49  ;;  %v32852_v49 = vld [vmem:[%s35143_s27 + $0x738] sm:$0xff]  }
  0xd1   : > { %29575 = vmatpush3.bf16.msra.mxu0 %v32806_v50  ;;  %v1928_v50 = vpack.c.bf16 %v470_v35, %v470_v35  ;;  %v32883_v35 = vld [vmem:[%s35143_s27 + $0x878] sm:$0xff]  }
  0xd2   : > { %29597 = vmatpush3.bf16.msra.mxu1 %v32808_v51  ;;  %29576 = vmatprep.subr.bf16.mxu0 %v32809_v52  ;;  %v1930_v51 = vpack.c.bf16 %v477_v40, %v477_v40  ;;  %v32854_v52 = vld [vmem:[%s35143_s27 + $0x7b8] sm:$0xff]  }
  0xd3   : > { %29598 = vmatprep.subr.bf16.mxu1 %v32811_v53  ;;  %v32855_v53 = vld [vmem:[%s35143_s27 + $0x770] sm:$0xff]  }
  0xd5   : > { %29577 = vmatpush3.bf16.msra.mxu0 %v32810_v55  ;;  %v32856_v55 = vld [vmem:[%s35143_s27 + $0x730] sm:$0xff]  }
  0xd6   : > { %29599 = vmatpush3.bf16.msra.mxu1 %v32812_v58  ;;  %29578 = vmatprep.subr.bf16.mxu0 %v32813_v59  ;;  %v32858_v58 = vld [vmem:[%s35143_s27 + $0x7b0] sm:$0xff]   ;;  %v32859_v59 = vld [vmem:[%s35143_s27 + $0x768] sm:$0xff]  }
  0xd7   : > { %29600 = vmatprep.subr.bf16.mxu1 %v32815_v62  ;;  %v32861_v62 = vld [vmem:[%s35143_s27 + $0x7e8] sm:$0xff]  }
  0xd9   : > { %29579 = vmatpush3.bf16.msra.mxu0 %v32814_v63 }
  0xda   : > { %29601 = vmatpush3.bf16.msra.mxu1 %v32816_v2  ;;  %29608 = vmatprep.subr.bf16.mxu0 %v32817_v3  ;;  %v32862_v3 = vld [vmem:[%s35143_s27 + $0x7a8] sm:$0xff]  }
  0xdb   : > { %29630 = vmatprep.subr.bf16.mxu1 %v32820_v5 }
  0xdc   : > { %21448 = vmatmul.mubr.bf16.vlgmr.msra.gmra.mxu0 %v1924_v7 }
  0xdd   : > { %21488 = vmatmul.mubr.bf16.vlgmr.msra.gmra.mxu1 %v1926_v8  ;;  %29609 = vmatpush3.bf16.msra.mxu0 %v32819_v6  ;;  %v32863_v6 = vld [vmem:[%s35143_s27 + $0x760] sm:$0xff]  }
  0xde   : > { %29631 = vmatpush3.bf16.msra.mxu1 %v32821_v9  ;;  %29610 = vmatprep.subr.bf16.mxu0 %v32822_v10  ;;  %v32865_v8 = vld [vmem:[%s35143_s27 + $0x7e0] sm:$0xff]  }
  0xdf   : > { %29632 = vmatprep.subr.bf16.mxu1 %v32824_v11  ;;  %21527 = vmatprep.mubr.bf16.mxu0 %v1929_v43  ;;  %v32864_v10 = vld [vmem:[%s35143_s27 + $0x720] sm:$0xff]   ;;  %v32888_v43 = vld [vmem:[%s35143_s27 + $0x870] sm:$0xff]  }
  0xe0   : > { %21567 = vmatprep.mubr.bf16.mxu1 %v1931_v47  ;;  %v32866_v11 = vld [vmem:[%s35143_s27 + $0x7a0] sm:$0xff]  }
  0xe1   : > { %29611 = vmatpush3.bf16.msra.mxu0 %v32823_v12  ;;  %v32867_v12 = vld [vmem:[%s35143_s27 + $0x758] sm:$0xff]  }
  0xe2   : > { %29633 = vmatpush3.bf16.msra.mxu1 %v32825_v13  ;;  %29612 = vmatprep.subr.bf16.mxu0 %v32826_v14  ;;  %v32869_v13 = vld [vmem:[%s35143_s27 + $0x7d8] sm:$0xff]  }
  0xe3   : > { %29634 = vmatprep.subr.bf16.mxu1 %v32828_v15  ;;  %v32868_v14 = vld [vmem:[%s35143_s27 + $0x718] sm:$0xff]  }
  0xe4   : > { %v32870_v15 = vld [vmem:[%s35143_s27 + $0x798] sm:$0xff]  }
  0xe5   : > { %29613 = vmatpush3.bf16.msra.mxu0 %v32827_v16  ;;  %v32871_v16 = vld [vmem:[%s35143_s27 + $0x750] sm:$0xff]  }
  0xe6   : > { %29635 = vmatpush3.bf16.msra.mxu1 %v32829_v17  ;;  %29614 = vmatprep.subr.bf16.mxu0 %v32830_v18  ;;  %v32873_v17 = vld [vmem:[%s35143_s27 + $0x7d0] sm:$0xff]  }
  0xe7   : > { %29636 = vmatprep.subr.bf16.mxu1 %v32832_v19  ;;  %v32872_v18 = vld [vmem:[%s35143_s27 + $0x710] sm:$0xff]  }
  0xe8   : > { %v32874_v19 = vld [vmem:[%s35143_s27 + $0x790] sm:$0xff]  }
  0xe9   : > { %29615 = vmatpush3.bf16.msra.mxu0 %v32831_v20  ;;  %v32875_v20 = vld [vmem:[%s35143_s27 + $0x748] sm:$0xff]  }
  0xea   : > { %29637 = vmatpush3.bf16.msra.mxu1 %v32833_v21  ;;  %29616 = vmatprep.subr.bf16.mxu0 %v32834_v22  ;;  %v32877_v21 = vld [vmem:[%s35143_s27 + $0x7c8] sm:$0xff]  }
  0xeb   : > { %29638 = vmatprep.subr.bf16.mxu1 %v32836_v23  ;;  %v32876_v22 = vld [vmem:[%s35143_s27 + $0x708] sm:$0xff]   ;;  %v220_v23 = vld [vmem:[%s35138_s23 + $0x38] sm:$0xff] }
  0xed   : > { %29617 = vmatpush3.bf16.msra.mxu0 %v32835_v24  ;;  %v32878_v24 = vld [vmem:[%s35143_s27 + $0x788] sm:$0xff]  }
  0xee   : > { %29639 = vmatpush3.bf16.msra.mxu1 %v32837_v25  ;;  %29618 = vmatprep.subr.bf16.mxu0 %v32838_v26  ;;  %v487_v25 = vrot.slane %v220_v23, %v35187_v42  ;;  %v480_v26 = vcombine.high %v220_v23, %v220_v23 }
  0xef   : > { %29640 = vmatprep.subr.bf16.mxu1 %v32840_v27  ;;  %v32879_v27 = vld [vmem:[%s35143_s27 + $0x740] sm:$0xff]  }
  0xf0   : > { %v1932_v39 = vpack.c.bf16 %v487_v25, %v487_v25 }
  0xf1   : > { %29619 = vmatpush3.bf16.msra.mxu0 %v32839_v28  ;;  %v32881_v28 = vld [vmem:[%s35143_s27 + $0x7c0] sm:$0xff]  }
  0xf2   : > { %29641 = vmatpush3.bf16.msra.mxu1 %v32841_v29  ;;  %29620 = vmatprep.subr.bf16.mxu0 %v32842_v30  ;;  %v495_v29 = vcombine.high %v487_v25, %v487_v25  ;;  %v494_v30 = vrot.slane %v480_v26, %v35187_v42  ;;  %v32916_v26 = vld [vmem:[%s35143_s27 + $0x978] sm:$0xff]  }
  0xf3   : > { %29642 = vmatprep.subr.bf16.mxu1 %v32844_v31  ;;  %v32880_v31 = vld [vmem:[%s35143_s27 + $0x700] sm:$0xff]  }
  0xf4   : > { %v1934_v40 = vpack.c.bf16 %v494_v30, %v494_v30 }
  0xf5   : > { %29621 = vmatpush3.bf16.msra.mxu0 %v32843_v32  ;;  %v1933_v32 = vpack.c.bf16 %v495_v29, %v495_v29  ;;  %v32918_v29 = vld [vmem:[%s35143_s27 + $0x938] sm:$0xff]  }
  0xf6   : > { %29643 = vmatpush3.bf16.msra.mxu1 %v32845_v34  ;;  %29622 = vmatprep.subr.bf16.mxu0 %v32846_v37  ;;  %v496_v34 = vcombine.high %v494_v30, %v494_v30  ;;  %v32886_v37 = vld [vmem:[%s35143_s27 + $0x8f8] sm:$0xff]  }
  0xf7   : > { %29644 = vmatprep.subr.bf16.mxu1 %v32848_v38  ;;  %v32885_v38 = vld [vmem:[%s35143_s27 + $0x838] sm:$0xff]  }
  0xf8   : > { %v1935_v36 = vpack.c.bf16 %v496_v34, %v496_v34  ;;  %v32923_v34 = vld [vmem:[%s35143_s27 + $0x9f0] sm:$0xff]  }
  0xf9   : > { %29623 = vmatpush3.bf16.msra.mxu0 %v32847_v41  ;;  %v32887_v41 = vld [vmem:[%s35143_s27 + $0x8b8] sm:$0xff]  }
  0xfa   : > { %29645 = vmatpush3.bf16.msra.mxu1 %v32849_v44  ;;  %29652 = vmatprep.subr.bf16.mxu0 %v32850_v46  ;;  %v32890_v44 = vld [vmem:[%s35143_s27 + $0x8f0] sm:$0xff]  }
  0xfb   : > { %29674 = vmatprep.subr.bf16.mxu1 %v32853_v48  ;;  %v32891_v48 = vld [vmem:[%s35143_s27 + $0x8b0] sm:$0xff]  }
  0xfc   : > { %v29360_v56 = vpop.f32.mrf.mxu0  ;;  %21528 = vmatmul.mubr.bf16.vlgmr.msra.gmra.mxu0 %v1928_v50 }
  0xfd   : > { %v29382_v57 = vpop.f32.mrf.mxu1  ;;  %21568 = vmatmul.mubr.bf16.vlgmr.msra.gmra.mxu1 %v1930_v51  ;;  %29653 = vmatpush3.bf16.msra.mxu0 %v32852_v49  ;;  %v32892_v49 = vld [vmem:[%s35143_s27 + $0x868] sm:$0xff]  }
  0xfe   : > { %29675 = vmatpush3.bf16.msra.mxu1 %v32854_v52  ;;  %v29361_v60 = vpop.f32.mrf.mxu0  ;;  %29654 = vmatprep.subr.bf16.mxu0 %v32855_v53  ;;  %v32894_v52 = vld [vmem:[%s35143_s27 + $0x8e8] sm:$0xff]  }
  0xff   : > { %v29383_v61 = vpop.f32.mrf.mxu1  ;;  %29676 = vmatprep.subr.bf16.mxu1 %v32857_v54  ;;  %v29362_v63 = vadd.f32 %v29361_v60, %v29360_v56  ;;  %21607 = vmatprep.mubr.bf16.mxu0 %v1933_v32  ;;  %v32896_v60 = vld [vmem:[%s35143_s27 + $0x860] sm:$0xff]   ;;  %v32920_v32 = vld [vmem:[%s35143_s27 + $0x9b8] sm:$0xff]  }
 0x100   : > { %v29384_v0 = vadd.f32 %v29383_v61, %v29382_v57  ;;  %v29363_v2 = vpop.f32.mrf.mxu0  ;;  %21647 = vmatprep.mubr.bf16.mxu1 %v1935_v36  ;;  %v32895_v57 = vld [vmem:[%s35143_s27 + $0x8a8] sm:$0xff]  }
 0x101   : > { %v29385_v4 = vpop.f32.mrf.mxu1  ;;  %29655 = vmatpush3.bf16.msra.mxu0 %v32856_v55  ;;  %v32893_v55 = vld [vmem:[%s35143_s27 + $0x828] sm:$0xff]   ;;  %v32899_v2 = vld [vmem:[%s35143_s27 + $0x8a0] sm:$0xff]  }
 0x102   : > { %v35411_v5 = vadd.f32 %v29384_v0, %v29362_v63  ;;  %29677 = vmatpush3.bf16.msra.mxu1 %v32858_v58  ;;  %v29364_v7 = vpop.f32.mrf.mxu0  ;;  %29656 = vmatprep.subr.bf16.mxu0 %v32859_v59  ;;  %v32902_v4 = vld [vmem:[%s35143_s27 + $0x8d8] sm:$0xff]  }
 0x103   : > { %29678 = vmatprep.subr.bf16.mxu1 %v32861_v62  ;;  %v29386_v9 = vpop.f32.mrf.mxu1  ;;  %v32898_v62 = vld [vmem:[%s35143_s27 + $0x8e0] sm:$0xff]   ;;  %v32904_v7 = vld [vmem:[%s35143_s27 + $0x850] sm:$0xff]  }
 0x104   : > { %v32905_v9 = vld [vmem:[%s35143_s27 + $0x810] sm:$0xff]  }
 0x105   : > { %29657 = vmatpush3.bf16.msra.mxu0 %v32860_v1  ;;  %v32897_v1 = vld [vmem:[%s35143_s27 + $0x820] sm:$0xff]  }
 0x106   : > { %29679 = vmatpush3.bf16.msra.mxu1 %v32862_v3  ;;  %29658 = vmatprep.subr.bf16.mxu0 %v32863_v6  ;;  %v32900_v3 = vld [vmem:[%s35143_s27 + $0x858] sm:$0xff]  }
 0x107   : > { %29680 = vmatprep.subr.bf16.mxu1 %v32865_v8  ;;  %v32903_v6 = vld [vmem:[%s35143_s27 + $0x898] sm:$0xff]   ;;  %v32906_v8 = vld [vmem:[%s35143_s27 + $0x8d0] sm:$0xff]  }
 0x109   : > { %29659 = vmatpush3.bf16.msra.mxu0 %v32864_v10  ;;  %v32907_v10 = vld [vmem:[%s35143_s27 + $0x890] sm:$0xff]  }
 0x10a   : > { %29681 = vmatpush3.bf16.msra.mxu1 %v32866_v11  ;;  %29660 = vmatprep.subr.bf16.mxu0 %v32867_v12  ;;  %v32908_v11 = vld [vmem:[%s35143_s27 + $0x848] sm:$0xff]  }
 0x10b   : > { %29682 = vmatprep.subr.bf16.mxu1 %v32869_v13  ;;  %v32910_v12 = vld [vmem:[%s35143_s27 + $0x8c8] sm:$0xff]  }
 0x10c   : > { %v32909_v13 = vld [vmem:[%s35143_s27 + $0x808] sm:$0xff]  }
 0x10d   : > { %29661 = vmatpush3.bf16.msra.mxu0 %v32868_v14  ;;  %v221_v14 = vld [vmem:[%s35138_s23 + $0x40] sm:$0xff] }
 0x10e   : > { %29683 = vmatpush3.bf16.msra.mxu1 %v32870_v15  ;;  %29662 = vmatprep.subr.bf16.mxu0 %v32871_v16  ;;  %v32911_v15 = vld [vmem:[%s35143_s27 + $0x888] sm:$0xff]   ;;  %v504_v16 = vrot.slane %v221_v14, %v35187_v42 }
 0x10f   : > { %29684 = vmatprep.subr.bf16.mxu1 %v32873_v17  ;;  %v497_v17 = vcombine.high %v221_v14, %v221_v14 }
 0x110   : > { %v1936_v30 = vpack.c.bf16 %v504_v16, %v504_v16 }
 0x111   : > { %29663 = vmatpush3.bf16.msra.mxu0 %v32872_v18  ;;  %v32912_v18 = vld [vmem:[%s35143_s27 + $0x840] sm:$0xff]  }
 0x112   : > { %29685 = vmatpush3.bf16.msra.mxu1 %v32874_v19  ;;  %29664 = vmatprep.subr.bf16.mxu0 %v32875_v20  ;;  %v32914_v19 = vld [vmem:[%s35143_s27 + $0x8c0] sm:$0xff]   ;;  %v512_v20 = vcombine.high %v504_v16, %v504_v16 }
 0x113   : > { %29686 = vmatprep.subr.bf16.mxu1 %v32877_v21  ;;  %v511_v21 = vrot.slane %v497_v17, %v35187_v42  ;;  %v32949_v17 = vld [vmem:[%s35143_s27 + $0xa78] sm:$0xff]  }
 0x114   : > { %v1937_v23 = vpack.c.bf16 %v512_v20, %v512_v20  ;;  %v32952_v20 = vld [vmem:[%s35143_s27 + $0xaf8] sm:$0xff]  }
 0x115   : > { %29665 = vmatpush3.bf16.msra.mxu0 %v32876_v22  ;;  %v32913_v22 = vld [vmem:[%s35143_s27 + $0x800] sm:$0xff]   ;;  %v513_v25 = vcombine.high %v511_v21, %v511_v21 }
 0x116   : > { %29687 = vmatpush3.bf16.msra.mxu1 %v32878_v24  ;;  %29666 = vmatprep.subr.bf16.mxu0 %v32879_v27  ;;  %v32915_v24 = vld [vmem:[%s35143_s27 + $0x880] sm:$0xff]  }
 0x117   : > { %29688 = vmatprep.subr.bf16.mxu1 %v32881_v28  ;;  %v1939_v27 = vpack.c.bf16 %v513_v25, %v513_v25  ;;  %v32919_v28 = vld [vmem:[%s35143_s27 + $0x9f8] sm:$0xff]   ;;  %v32956_v25 = vld [vmem:[%s35143_s27 + $0xaf0] sm:$0xff]  }
 0x119   : > { %29667 = vmatpush3.bf16.msra.mxu0 %v32880_v31  ;;  %v1938_v31 = vpack.c.bf16 %v511_v21, %v511_v21 }
 0x11a   : > { %29689 = vmatpush3.bf16.msra.mxu1 %v32882_v33  ;;  %29696 = vmatprep.subr.bf16.mxu0 %v32883_v35  ;;  %v32921_v33 = vld [vmem:[%s35143_s27 + $0x970] sm:$0xff]  }
 0x11b   : > { %29718 = vmatprep.subr.bf16.mxu1 %v32886_v37  ;;  %v32922_v35 = vld [vmem:[%s35143_s27 + $0x930] sm:$0xff]  }
 0x11c   : > { %v29404_v46 = vpop.f32.mrf.mxu0  ;;  %21608 = vmatmul.mubr.bf16.vlgmr.msra.gmra.mxu0 %v1932_v39  ;;  %v32925_v39 = vld [vmem:[%s35143_s27 + $0x968] sm:$0xff]  }
 0x11d   : > { %v29426_v47 = vpop.f32.mrf.mxu1  ;;  %21648 = vmatmul.mubr.bf16.vlgmr.msra.gmra.mxu1 %v1934_v40  ;;  %29697 = vmatpush3.bf16.msra.mxu0 %v32885_v38  ;;  %v32924_v38 = vld [vmem:[%s35143_s27 + $0x9b0] sm:$0xff]  }
 0x11e   : > { %29719 = vmatpush3.bf16.msra.mxu1 %v32887_v41  ;;  %v29405_v50 = vpop.f32.mrf.mxu0  ;;  %29698 = vmatprep.subr.bf16.mxu0 %v32888_v43  ;;  %v32927_v43 = vld [vmem:[%s35143_s27 + $0x9e8] sm:$0xff]  }
 0x11f   : > { %v29427_v51 = vpop.f32.mrf.mxu1  ;;  %29720 = vmatprep.subr.bf16.mxu1 %v32890_v44  ;;  %v29406_v53 = vadd.f32 %v29405_v50, %v29404_v46  ;;  %21687 = vmatprep.mubr.bf16.mxu0 %v1937_v23  ;;  %v32926_v46 = vld [vmem:[%s35143_s27 + $0x928] sm:$0xff]   ;;  %v32953_v23 = vld [vmem:[%s35143_s27 + $0xab8] sm:$0xff]  }
 0x120   : > { %v29428_v54 = vadd.f32 %v29427_v51, %v29426_v47  ;;  %v29407_v56 = vpop.f32.mrf.mxu0  ;;  %21727 = vmatprep.mubr.bf16.mxu1 %v1939_v27  ;;  %v32929_v51 = vld [vmem:[%s35143_s27 + $0x960] sm:$0xff]  }
 0x121   : > { %v29429_v58 = vpop.f32.mrf.mxu1  ;;  %v21130_v59 = vadd.f32 %v29406_v53, %v35411_v5  ;;  %29699 = vmatpush3.bf16.msra.mxu0 %v32889_v45  ;;  %v32901_v5 = vld [vmem:[%s35143_s27 + $0x818] sm:$0xff]   ;;  %v32931_v53 = vld [vmem:[%s35143_s27 + $0x9e0] sm:$0xff]  }
 0x122   : > { %29721 = vmatpush3.bf16.msra.mxu1 %v32891_v48  ;;  %v29408_v61 = vpop.f32.mrf.mxu0  ;;  %29700 = vmatprep.subr.bf16.mxu0 %v32892_v49  ;;  %v32928_v48 = vld [vmem:[%s35143_s27 + $0x9a8] sm:$0xff]   ;;  %v32930_v56 = vld [vmem:[%s35143_s27 + $0x920] sm:$0xff]   ;;  %v32933_v58 = vld [vmem:[%s35143_s27 + $0x958] sm:$0xff]  }
 0x123   : > { %29722 = vmatprep.subr.bf16.mxu1 %v32894_v52  ;;  %v29430_v63 = vpop.f32.mrf.mxu1  ;;  %v35451_v0 = vadd.f32 %v29428_v54, %v21130_v59  ;;  %v32935_v59 = vld [vmem:[%s35143_s27 + $0x9d8] sm:$0xff]  }
 0x124   : > { %v32936_v61 = vld [vmem:[%s35143_s27 + $0x998] sm:$0xff]   ;;  %v32939_v63 = vld [vmem:[%s35143_s27 + $0x9d0] sm:$0xff]  }
 0x125   : > { %29701 = vmatpush3.bf16.msra.mxu0 %v32893_v55 }
 0x126   : > { %29723 = vmatpush3.bf16.msra.mxu1 %v32895_v57  ;;  %29702 = vmatprep.subr.bf16.mxu0 %v32896_v60  ;;  %v32932_v57 = vld [vmem:[%s35143_s27 + $0x9a0] sm:$0xff]   ;;  %v32934_v60 = vld [vmem:[%s35143_s27 + $0x918] sm:$0xff]  }
 0x127   : > { %29724 = vmatprep.subr.bf16.mxu1 %v32898_v62  ;;  %v32937_v62 = vld [vmem:[%s35143_s27 + $0x950] sm:$0xff]  }
 0x129   : > { %29703 = vmatpush3.bf16.msra.mxu0 %v32897_v1  ;;  %v32940_v1 = vld [vmem:[%s35143_s27 + $0x990] sm:$0xff]  }
 0x12a   : > { %29725 = vmatpush3.bf16.msra.mxu1 %v32899_v2  ;;  %29704 = vmatprep.subr.bf16.mxu0 %v32900_v3  ;;  %v32941_v2 = vld [vmem:[%s35143_s27 + $0x948] sm:$0xff]  }
 0x12b   : > { %29726 = vmatprep.subr.bf16.mxu1 %v32902_v4  ;;  %v32943_v3 = vld [vmem:[%s35143_s27 + $0x9c8] sm:$0xff]  }
 0x12c   : > { %v32942_v4 = vld [vmem:[%s35143_s27 + $0x908] sm:$0xff]  }
 0x12d   : > { %29705 = vmatpush3.bf16.msra.mxu0 %v32901_v5  ;;  %v32944_v5 = vld [vmem:[%s35143_s27 + $0x988] sm:$0xff]  }
 0x12e   : > { %29727 = vmatpush3.bf16.msra.mxu1 %v32903_v6  ;;  %29706 = vmatprep.subr.bf16.mxu0 %v32904_v7  ;;  %v222_v6 = vld [vmem:[%s35138_s23 + $0x48] sm:$0xff]  ;;  %v32945_v7 = vld [vmem:[%s35143_s27 + $0x940] sm:$0xff]  }
 0x12f   : > { %29728 = vmatprep.subr.bf16.mxu1 %v32906_v8  ;;  %v521_v8 = vrot.slane %v222_v6, %v35187_v42 }
 0x131   : > { %29707 = vmatpush3.bf16.msra.mxu0 %v32905_v9  ;;  %v514_v9 = vcombine.high %v222_v6, %v222_v6  ;;  %v1940_v21 = vpack.c.bf16 %v521_v8, %v521_v8  ;;  %v32981_v6 = vld [vmem:[%s35143_s27 + $0xa80] sm:$0xff]  }
 0x132   : > { %29729 = vmatpush3.bf16.msra.mxu1 %v32907_v10  ;;  %29708 = vmatprep.subr.bf16.mxu0 %v32908_v11  ;;  %v32947_v10 = vld [vmem:[%s35143_s27 + $0x9c0] sm:$0xff]   ;;  %v529_v11 = vcombine.high %v521_v8, %v521_v8  ;;  %v32982_v8 = vld [vmem:[%s35143_s27 + $0xb78] sm:$0xff]  }
 0x133   : > { %29730 = vmatprep.subr.bf16.mxu1 %v32910_v12  ;;  %v528_v12 = vrot.slane %v514_v9, %v35187_v42 }
 0x134   : > { %v1941_v14 = vpack.c.bf16 %v529_v11, %v529_v11  ;;  %v32985_v11 = vld [vmem:[%s35143_s27 + $0xbf8] sm:$0xff]  }
 0x135   : > { %29709 = vmatpush3.bf16.msra.mxu0 %v32909_v13  ;;  %v32946_v13 = vld [vmem:[%s35143_s27 + $0x900] sm:$0xff]   ;;  %v530_v16 = vcombine.high %v528_v12, %v528_v12 }
 0x136   : > { %29731 = vmatpush3.bf16.msra.mxu1 %v32911_v15  ;;  %29710 = vmatprep.subr.bf16.mxu0 %v32912_v18  ;;  %v32948_v15 = vld [vmem:[%s35143_s27 + $0x980] sm:$0xff]  }
 0x137   : > { %29732 = vmatprep.subr.bf16.mxu1 %v32914_v19  ;;  %v1943_v18 = vpack.c.bf16 %v530_v16, %v530_v16  ;;  %v32951_v19 = vld [vmem:[%s35143_s27 + $0xa38] sm:$0xff]   ;;  %v32989_v16 = vld [vmem:[%s35143_s27 + $0xbf0] sm:$0xff]  }
 0x139   : > { %29711 = vmatpush3.bf16.msra.mxu0 %v32913_v22  ;;  %v1942_v22 = vpack.c.bf16 %v528_v12, %v528_v12 }
 0x13a   : > { %29733 = vmatpush3.bf16.msra.mxu1 %v32915_v24  ;;  %29740 = vmatprep.subr.bf16.mxu0 %v32916_v26  ;;  %v32954_v24 = vld [vmem:[%s35143_s27 + $0xa70] sm:$0xff]  }
 0x13b   : > { %29762 = vmatprep.subr.bf16.mxu1 %v32919_v28  ;;  %v32955_v26 = vld [vmem:[%s35143_s27 + $0xa30] sm:$0xff]  }
 0x13c   : > { %v29448_v36 = vpop.f32.mrf.mxu0  ;;  %21688 = vmatmul.mubr.bf16.vlgmr.msra.gmra.mxu0 %v1936_v30  ;;  %v32958_v30 = vld [vmem:[%s35143_s27 + $0xa68] sm:$0xff]  }
 0x13d   : > { %v29470_v37 = vpop.f32.mrf.mxu1  ;;  %21728 = vmatmul.mubr.bf16.vlgmr.msra.gmra.mxu1 %v1938_v31  ;;  %29741 = vmatpush3.bf16.msra.mxu0 %v32918_v29  ;;  %v32957_v29 = vld [vmem:[%s35143_s27 + $0xab0] sm:$0xff]  }
 0x13e   : > { %29763 = vmatpush3.bf16.msra.mxu1 %v32920_v32  ;;  %v29449_v40 = vpop.f32.mrf.mxu0  ;;  %29742 = vmatprep.subr.bf16.mxu0 %v32921_v33  ;;  %v32960_v33 = vld [vmem:[%s35143_s27 + $0xae8] sm:$0xff]  }
 0x13f   : > { %v29471_v41 = vpop.f32.mrf.mxu1  ;;  %29764 = vmatprep.subr.bf16.mxu1 %v32923_v34  ;;  %v29450_v44 = vadd.f32 %v29449_v40, %v29448_v36  ;;  %21767 = vmatprep.mubr.bf16.mxu0 %v1941_v14  ;;  %v32959_v36 = vld [vmem:[%s35143_s27 + $0xa28] sm:$0xff]   ;;  %v32986_v14 = vld [vmem:[%s35143_s27 + $0xbb8] sm:$0xff]  }
 0x140   : > { %v29472_v45 = vadd.f32 %v29471_v41, %v29470_v37  ;;  %v29451_v47 = vpop.f32.mrf.mxu0  ;;  %21807 = vmatprep.mubr.bf16.mxu1 %v1943_v18  ;;  %v32962_v41 = vld [vmem:[%s35143_s27 + $0xa60] sm:$0xff]  }
 0x141   : > { %v29473_v49 = vpop.f32.mrf.mxu1  ;;  %v21210_v50 = vadd.f32 %v29450_v44, %v35451_v0  ;;  %29743 = vmatpush3.bf16.msra.mxu0 %v32922_v35  ;;  %v32938_v0 = vld [vmem:[%s35143_s27 + $0x910] sm:$0xff]   ;;  %v32964_v44 = vld [vmem:[%s35143_s27 + $0xae0] sm:$0xff]  }
 0x142   : > { %29765 = vmatpush3.bf16.msra.mxu1 %v32924_v38  ;;  %v29452_v52 = vpop.f32.mrf.mxu0  ;;  %29744 = vmatprep.subr.bf16.mxu0 %v32925_v39  ;;  %v32961_v38 = vld [vmem:[%s35143_s27 + $0xaa8] sm:$0xff]   ;;  %v32963_v47 = vld [vmem:[%s35143_s27 + $0xa20] sm:$0xff]   ;;  %v32966_v49 = vld [vmem:[%s35143_s27 + $0xa58] sm:$0xff]  }
 0x143   : > { %29766 = vmatprep.subr.bf16.mxu1 %v32927_v43  ;;  %v29474_v54 = vpop.f32.mrf.mxu1  ;;  %v35489_v55 = vadd.f32 %v29472_v45, %v21210_v50  ;;  %v32968_v50 = vld [vmem:[%s35143_s27 + $0xad8] sm:$0xff]  }
 0x144   : > { %v32969_v52 = vld [vmem:[%s35143_s27 + $0xa98] sm:$0xff]   ;;  %v32972_v54 = vld [vmem:[%s35143_s27 + $0xad0] sm:$0xff]  }
 0x145   : > { %29745 = vmatpush3.bf16.msra.mxu0 %v32926_v46 }
 0x146   : > { %29767 = vmatpush3.bf16.msra.mxu1 %v32928_v48  ;;  %29746 = vmatprep.subr.bf16.mxu0 %v32929_v51  ;;  %v32965_v48 = vld [vmem:[%s35143_s27 + $0xaa0] sm:$0xff]   ;;  %v32967_v51 = vld [vmem:[%s35143_s27 + $0xa18] sm:$0xff]  }
 0x147   : > { %29768 = vmatprep.subr.bf16.mxu1 %v32931_v53  ;;  %v32970_v53 = vld [vmem:[%s35143_s27 + $0xa50] sm:$0xff]  }
 0x149   : > { %29747 = vmatpush3.bf16.msra.mxu0 %v32930_v56  ;;  %v32973_v56 = vld [vmem:[%s35143_s27 + $0xa90] sm:$0xff]  }
 0x14a   : > { %29769 = vmatpush3.bf16.msra.mxu1 %v32932_v57  ;;  %29748 = vmatprep.subr.bf16.mxu0 %v32933_v58  ;;  %v32974_v57 = vld [vmem:[%s35143_s27 + $0xa48] sm:$0xff]  }
 0x14b   : > { %29770 = vmatprep.subr.bf16.mxu1 %v32935_v59  ;;  %v32976_v58 = vld [vmem:[%s35143_s27 + $0xac8] sm:$0xff]  }
 0x14c   : > { %v32975_v59 = vld [vmem:[%s35143_s27 + $0xa08] sm:$0xff]  }
 0x14d   : > { %29749 = vmatpush3.bf16.msra.mxu0 %v32934_v60  ;;  %v32977_v60 = vld [vmem:[%s35143_s27 + $0xa88] sm:$0xff]  }
 0x14e   : > { %29771 = vmatpush3.bf16.msra.mxu1 %v32936_v61  ;;  %29750 = vmatprep.subr.bf16.mxu0 %v32937_v62  ;;  %v223_v61 = vld [vmem:[%s35138_s23 + $0x50] sm:$0xff]  ;;  %v32978_v62 = vld [vmem:[%s35143_s27 + $0xa40] sm:$0xff]  }
 0x14f   : > { %29772 = vmatprep.subr.bf16.mxu1 %v32939_v63  ;;  %v538_v63 = vrot.slane %v223_v61, %v35187_v42 }
 0x151   : > { %29751 = vmatpush3.bf16.msra.mxu0 %v32938_v0  ;;  %v531_v0 = vcombine.high %v223_v61, %v223_v61  ;;  %v1944_v12 = vpack.c.bf16 %v538_v63, %v538_v63  ;;  %v33014_v61 = vld [vmem:[%s35143_s27 + $0xb80] sm:$0xff]  }
 0x152   : > { %29773 = vmatpush3.bf16.msra.mxu1 %v32940_v1  ;;  %29752 = vmatprep.subr.bf16.mxu0 %v32941_v2  ;;  %v32980_v1 = vld [vmem:[%s35143_s27 + $0xac0] sm:$0xff]   ;;  %v546_v2 = vcombine.high %v538_v63, %v538_v63  ;;  %v33015_v63 = vld [vmem:[%s35143_s27 + $0xc78] sm:$0xff]  }
 0x153   : > { %29774 = vmatprep.subr.bf16.mxu1 %v32943_v3  ;;  %v545_v3 = vrot.slane %v531_v0, %v35187_v42 }
 0x155   : > { %29753 = vmatpush3.bf16.msra.mxu0 %v32942_v4  ;;  %v32979_v4 = vld [vmem:[%s35143_s27 + $0xa00] sm:$0xff]  }
 0x156   : > { %29775 = vmatpush3.bf16.msra.mxu1 %v32944_v5  ;;  %29754 = vmatprep.subr.bf16.mxu0 %v32945_v7  ;;  %v1945_v5 = vpack.c.bf16 %v546_v2, %v546_v2  ;;  %v547_v7 = vcombine.high %v545_v3, %v545_v3  ;;  %v33018_v2 = vld [vmem:[%s35143_s27 + $0xcf8] sm:$0xff]  }
 0x157   : > { %29776 = vmatprep.subr.bf16.mxu1 %v32947_v10  ;;  %v32984_v10 = vld [vmem:[%s35143_s27 + $0xb38] sm:$0xff]  }
 0x158   : > { %v1947_v9 = vpack.c.bf16 %v547_v7, %v547_v7  ;;  %v33022_v7 = vld [vmem:[%s35143_s27 + $0xcf0] sm:$0xff]  }
 0x159   : > { %29755 = vmatpush3.bf16.msra.mxu0 %v32946_v13  ;;  %v1946_v13 = vpack.c.bf16 %v545_v3, %v545_v3 }
 0x15a   : > { %29777 = vmatpush3.bf16.msra.mxu1 %v32948_v15  ;;  %29784 = vmatprep.subr.bf16.mxu0 %v32949_v17  ;;  %v32987_v15 = vld [vmem:[%s35143_s27 + $0xb70] sm:$0xff]  }
 0x15b   : > { %29806 = vmatprep.subr.bf16.mxu1 %v32952_v20  ;;  %v32988_v17 = vld [vmem:[%s35143_s27 + $0xb30] sm:$0xff]  }
 0x15c   : > { %v29492_v27 = vpop.f32.mrf.mxu0  ;;  %21768 = vmatmul.mubr.bf16.vlgmr.msra.gmra.mxu0 %v1940_v21  ;;  %v32990_v20 = vld [vmem:[%s35143_s27 + $0xbb0] sm:$0xff]   ;;  %v32991_v21 = vld [vmem:[%s35143_s27 + $0xb68] sm:$0xff]  }
 0x15d   : > { %v29514_v28 = vpop.f32.mrf.mxu1  ;;  %21808 = vmatmul.mubr.bf16.vlgmr.msra.gmra.mxu1 %v1942_v22  ;;  %29785 = vmatpush3.bf16.msra.mxu0 %v32951_v19 }
 0x15e   : > { %29807 = vmatpush3.bf16.msra.mxu1 %v32953_v23  ;;  %v29493_v31 = vpop.f32.mrf.mxu0  ;;  %29786 = vmatprep.subr.bf16.mxu0 %v32954_v24  ;;  %v32993_v24 = vld [vmem:[%s35143_s27 + $0xbe8] sm:$0xff]  }
 0x15f   : > { %v29515_v32 = vpop.f32.mrf.mxu1  ;;  %29808 = vmatprep.subr.bf16.mxu1 %v32956_v25  ;;  %v29494_v34 = vadd.f32 %v29493_v31, %v29492_v27  ;;  %21847 = vmatprep.mubr.bf16.mxu0 %v1945_v5  ;;  %v32992_v27 = vld [vmem:[%s35143_s27 + $0xb28] sm:$0xff]   ;;  %v33019_v5 = vld [vmem:[%s35143_s27 + $0xcb8] sm:$0xff]  }
 0x160   : > { %v29516_v35 = vadd.f32 %v29515_v32, %v29514_v28  ;;  %v29495_v37 = vpop.f32.mrf.mxu0  ;;  %21887 = vmatprep.mubr.bf16.mxu1 %v1947_v9  ;;  %v32995_v32 = vld [vmem:[%s35143_s27 + $0xb60] sm:$0xff]  }
 0x161   : > { %v29517_v39 = vpop.f32.mrf.mxu1  ;;  %v21290_v40 = vadd.f32 %v29494_v34, %v35489_v55  ;;  %29787 = vmatpush3.bf16.msra.mxu0 %v32955_v26  ;;  %v32971_v55 = vld [vmem:[%s35143_s27 + $0xa10] sm:$0xff]   ;;  %v32997_v34 = vld [vmem:[%s35143_s27 + $0xbe0] sm:$0xff]  }
 0x162   : > { %29809 = vmatpush3.bf16.msra.mxu1 %v32957_v29  ;;  %v29496_v43 = vpop.f32.mrf.mxu0  ;;  %29788 = vmatprep.subr.bf16.mxu0 %v32958_v30  ;;  %v32994_v29 = vld [vmem:[%s35143_s27 + $0xba8] sm:$0xff]   ;;  %v32996_v37 = vld [vmem:[%s35143_s27 + $0xb20] sm:$0xff]   ;;  %v32999_v39 = vld [vmem:[%s35143_s27 + $0xb58] sm:$0xff]  }
 0x163   : > { %29810 = vmatprep.subr.bf16.mxu1 %v32960_v33  ;;  %v29518_v45 = vpop.f32.mrf.mxu1  ;;  %v35527_v46 = vadd.f32 %v29516_v35, %v21290_v40  ;;  %v33001_v40 = vld [vmem:[%s35143_s27 + $0xbd8] sm:$0xff]  }
 0x164   : > { %v33002_v43 = vld [vmem:[%s35143_s27 + $0xb98] sm:$0xff]   ;;  %v33005_v45 = vld [vmem:[%s35143_s27 + $0xbd0] sm:$0xff]  }
 0x165   : > { %29789 = vmatpush3.bf16.msra.mxu0 %v32959_v36 }
 0x166   : > { %29811 = vmatpush3.bf16.msra.mxu1 %v32961_v38  ;;  %29790 = vmatprep.subr.bf16.mxu0 %v32962_v41  ;;  %v32998_v38 = vld [vmem:[%s35143_s27 + $0xba0] sm:$0xff]   ;;  %v33000_v41 = vld [vmem:[%s35143_s27 + $0xb18] sm:$0xff]  }
 0x167   : > { %29812 = vmatprep.subr.bf16.mxu1 %v32964_v44  ;;  %v33003_v44 = vld [vmem:[%s35143_s27 + $0xb50] sm:$0xff]  }
 0x169   : > { %29791 = vmatpush3.bf16.msra.mxu0 %v32963_v47  ;;  %v33006_v47 = vld [vmem:[%s35143_s27 + $0xb90] sm:$0xff]  }
 0x16a   : > { %29813 = vmatpush3.bf16.msra.mxu1 %v32965_v48  ;;  %29792 = vmatprep.subr.bf16.mxu0 %v32966_v49  ;;  %v33007_v48 = vld [vmem:[%s35143_s27 + $0xb48] sm:$0xff]  }
 0x16b   : > { %29814 = vmatprep.subr.bf16.mxu1 %v32968_v50  ;;  %v33009_v49 = vld [vmem:[%s35143_s27 + $0xbc8] sm:$0xff]  }
 0x16c   : > { %v33008_v50 = vld [vmem:[%s35143_s27 + $0xb08] sm:$0xff]  }
 0x16d   : > { %29793 = vmatpush3.bf16.msra.mxu0 %v32967_v51  ;;  %v33010_v51 = vld [vmem:[%s35143_s27 + $0xb88] sm:$0xff]  }
 0x16e   : > { %29815 = vmatpush3.bf16.msra.mxu1 %v32969_v52  ;;  %29794 = vmatprep.subr.bf16.mxu0 %v32970_v53  ;;  %v224_v52 = vld [vmem:[%s35138_s23 + $0x58] sm:$0xff]  ;;  %v33011_v53 = vld [vmem:[%s35143_s27 + $0xb40] sm:$0xff]  }
 0x16f   : > { %29816 = vmatprep.subr.bf16.mxu1 %v32972_v54  ;;  %v555_v54 = vrot.slane %v224_v52, %v35187_v42 }
 0x171   : > { %29795 = vmatpush3.bf16.msra.mxu0 %v32971_v55  ;;  %v548_v55 = vcombine.high %v224_v52, %v224_v52  ;;  %v1948_v3 = vpack.c.bf16 %v555_v54, %v555_v54 }
 0x172   : > { %29817 = vmatpush3.bf16.msra.mxu1 %v32973_v56  ;;  %29796 = vmatprep.subr.bf16.mxu0 %v32974_v57  ;;  %v33013_v56 = vld [vmem:[%s35143_s27 + $0xbc0] sm:$0xff]   ;;  %v563_v57 = vcombine.high %v555_v54, %v555_v54 }
 0x173   : > { %29818 = vmatprep.subr.bf16.mxu1 %v32976_v58  ;;  %v562_v58 = vrot.slane %v548_v55, %v35187_v42  ;;  %v33050_v55 = vld [vmem:[%s35143_s27 + $0xd38] sm:$0xff]  }
 0x175   : > { %29797 = vmatpush3.bf16.msra.mxu0 %v32975_v59  ;;  %v33012_v59 = vld [vmem:[%s35143_s27 + $0xb00] sm:$0xff]  }
 0x176   : > { %29819 = vmatpush3.bf16.msra.mxu1 %v32977_v60  ;;  %29798 = vmatprep.subr.bf16.mxu0 %v32978_v62  ;;  %v1949_v60 = vpack.c.bf16 %v563_v57, %v563_v57  ;;  %v564_v62 = vcombine.high %v562_v58, %v562_v58 }
 0x177   : > { %29820 = vmatprep.subr.bf16.mxu1 %v32980_v1  ;;  %v33017_v1 = vld [vmem:[%s35143_s27 + $0xc38] sm:$0xff]  }
 0x178   : > { %v1951_v0 = vpack.c.bf16 %v564_v62, %v564_v62  ;;  %v33055_v62 = vld [vmem:[%s35143_s27 + $0xdf0] sm:$0xff]  }
 0x179   : > { %29799 = vmatpush3.bf16.msra.mxu0 %v32979_v4  ;;  %v1950_v4 = vpack.c.bf16 %v562_v58, %v562_v58 }
 0x17a   : > { %29821 = vmatpush3.bf16.msra.mxu1 %v32981_v6  ;;  %29828 = vmatprep.subr.bf16.mxu0 %v32982_v8  ;;  %v33020_v6 = vld [vmem:[%s35143_s27 + $0xc70] sm:$0xff]  }
 0x17b   : > { %29850 = vmatprep.subr.bf16.mxu1 %v32985_v11  ;;  %v33021_v8 = vld [vmem:[%s35143_s27 + $0xc30] sm:$0xff]  }
 0x17c   : > { %v29536_v18 = vpop.f32.mrf.mxu0  ;;  %21848 = vmatmul.mubr.bf16.vlgmr.msra.gmra.mxu0 %v1944_v12  ;;  %v33023_v11 = vld [vmem:[%s35143_s27 + $0xcb0] sm:$0xff]   ;;  %v33024_v12 = vld [vmem:[%s35143_s27 + $0xc68] sm:$0xff]  }
 0x17d   : > { %v29558_v19 = vpop.f32.mrf.mxu1  ;;  %21888 = vmatmul.mubr.bf16.vlgmr.msra.gmra.mxu1 %v1946_v13  ;;  %29829 = vmatpush3.bf16.msra.mxu0 %v32984_v10 }
 0x17e   : > { %29851 = vmatpush3.bf16.msra.mxu1 %v32986_v14  ;;  %v29537_v22 = vpop.f32.mrf.mxu0  ;;  %29830 = vmatprep.subr.bf16.mxu0 %v32987_v15  ;;  %v33026_v15 = vld [vmem:[%s35143_s27 + $0xce8] sm:$0xff]  }
 0x17f   : > { %v29559_v23 = vpop.f32.mrf.mxu1  ;;  %29852 = vmatprep.subr.bf16.mxu1 %v32989_v16  ;;  %v29538_v25 = vadd.f32 %v29537_v22, %v29536_v18  ;;  %21927 = vmatprep.mubr.bf16.mxu0 %v1949_v60  ;;  %v33025_v18 = vld [vmem:[%s35143_s27 + $0xc28] sm:$0xff]   ;;  %v33052_v60 = vld [vmem:[%s35143_s27 + $0xdb8] sm:$0xff]  }
 0x180   : > { %v29560_v26 = vadd.f32 %v29559_v23, %v29558_v19  ;;  %v29539_v28 = vpop.f32.mrf.mxu0  ;;  %21967 = vmatprep.mubr.bf16.mxu1 %v1951_v0  ;;  %v33028_v23 = vld [vmem:[%s35143_s27 + $0xc60] sm:$0xff]  }
 0x181   : > { %v29561_v30 = vpop.f32.mrf.mxu1  ;;  %v21370_v31 = vadd.f32 %v29538_v25, %v35527_v46  ;;  %29831 = vmatpush3.bf16.msra.mxu0 %v32988_v17  ;;  %v33004_v46 = vld [vmem:[%s35143_s27 + $0xb10] sm:$0xff]   ;;  %v33030_v25 = vld [vmem:[%s35143_s27 + $0xce0] sm:$0xff]  }
 0x182   : > { %29853 = vmatpush3.bf16.msra.mxu1 %v32990_v20  ;;  %v29540_v33 = vpop.f32.mrf.mxu0  ;;  %29832 = vmatprep.subr.bf16.mxu0 %v32991_v21  ;;  %v33027_v20 = vld [vmem:[%s35143_s27 + $0xca8] sm:$0xff]   ;;  %v33029_v28 = vld [vmem:[%s35143_s27 + $0xc20] sm:$0xff]   ;;  %v33032_v30 = vld [vmem:[%s35143_s27 + $0xc58] sm:$0xff]  }
 0x183   : > { %29854 = vmatprep.subr.bf16.mxu1 %v32993_v24  ;;  %v29562_v35 = vpop.f32.mrf.mxu1  ;;  %v35565_v36 = vadd.f32 %v29560_v26, %v21370_v31  ;;  %v33034_v31 = vld [vmem:[%s35143_s27 + $0xcd8] sm:$0xff]  }
 0x184   : > { %v33035_v33 = vld [vmem:[%s35143_s27 + $0xc98] sm:$0xff]   ;;  %v33038_v35 = vld [vmem:[%s35143_s27 + $0xcd0] sm:$0xff]  }
 0x185   : > { %29833 = vmatpush3.bf16.msra.mxu0 %v32992_v27 }
 0x186   : > { %29855 = vmatpush3.bf16.msra.mxu1 %v32994_v29  ;;  %29834 = vmatprep.subr.bf16.mxu0 %v32995_v32  ;;  %v33031_v29 = vld [vmem:[%s35143_s27 + $0xca0] sm:$0xff]   ;;  %v33033_v32 = vld [vmem:[%s35143_s27 + $0xc18] sm:$0xff]  }
 0x187   : > { %29856 = vmatprep.subr.bf16.mxu1 %v32997_v34  ;;  %v33036_v34 = vld [vmem:[%s35143_s27 + $0xc50] sm:$0xff]  }
 0x189   : > { %29835 = vmatpush3.bf16.msra.mxu0 %v32996_v37  ;;  %v33039_v37 = vld [vmem:[%s35143_s27 + $0xc90] sm:$0xff]  }
 0x18a   : > { %29857 = vmatpush3.bf16.msra.mxu1 %v32998_v38  ;;  %29836 = vmatprep.subr.bf16.mxu0 %v32999_v39  ;;  %v33040_v38 = vld [vmem:[%s35143_s27 + $0xc48] sm:$0xff]  }
 0x18b   : > { %29858 = vmatprep.subr.bf16.mxu1 %v33001_v40  ;;  %v33042_v39 = vld [vmem:[%s35143_s27 + $0xcc8] sm:$0xff]  }
 0x18c   : > { %v33041_v40 = vld [vmem:[%s35143_s27 + $0xc08] sm:$0xff]  }
 0x18d   : > { %29837 = vmatpush3.bf16.msra.mxu0 %v33000_v41  ;;  %v33043_v41 = vld [vmem:[%s35143_s27 + $0xc88] sm:$0xff]  }
 0x18e   : > { %29859 = vmatpush3.bf16.msra.mxu1 %v33002_v43  ;;  %29838 = vmatprep.subr.bf16.mxu0 %v33003_v44  ;;  %v33044_v43 = vld [vmem:[%s35143_s27 + $0xc40] sm:$0xff]  }
 0x18f   : > { %29860 = vmatprep.subr.bf16.mxu1 %v33005_v45  ;;  %v225_v44 = vld [vmem:[%s35138_s23 + $0x60] sm:$0xff] }
 0x190   : > { %v33046_v45 = vld [vmem:[%s35143_s27 + $0xcc0] sm:$0xff]  }
 0x191   : > { %29839 = vmatpush3.bf16.msra.mxu0 %v33004_v46  ;;  %v572_v46 = vrot.slane %v225_v44, %v35187_v42 }
 0x192   : > { %29861 = vmatpush3.bf16.msra.mxu1 %v33006_v47  ;;  %29840 = vmatprep.subr.bf16.mxu0 %v33007_v48  ;;  %v565_v47 = vcombine.high %v225_v44, %v225_v44  ;;  %v33045_v48 = vld [vmem:[%s35143_s27 + $0xc00] sm:$0xff]   ;;  %v33081_v44 = vld [vmem:[%s35143_s27 + $0xe78] sm:$0xff]  }
 0x193   : > { %29862 = vmatprep.subr.bf16.mxu1 %v33009_v49  ;;  %v580_v49 = vcombine.high %v572_v46, %v572_v46  ;;  %v1952_v57 = vpack.c.bf16 %v572_v46, %v572_v46  ;;  %v33083_v46 = vld [vmem:[%s35143_s27 + $0xe38] sm:$0xff]  }
 0x195   : > { %29841 = vmatpush3.bf16.msra.mxu0 %v33008_v50  ;;  %v579_v50 = vrot.slane %v565_v47, %v35187_v42  ;;  %v1953_v52 = vpack.c.bf16 %v580_v49, %v580_v49  ;;  %v33084_v47 = vld [vmem:[%s35143_s27 + $0xef8] sm:$0xff]  }
 0x196   : > { %29863 = vmatpush3.bf16.msra.mxu1 %v33010_v51  ;;  %29842 = vmatprep.subr.bf16.mxu0 %v33011_v53  ;;  %v33047_v51 = vld [vmem:[%s35143_s27 + $0xc80] sm:$0xff]   ;;  %v33048_v53 = vld [vmem:[%s35143_s27 + $0xd78] sm:$0xff]  }
 0x197   : > { %29864 = vmatprep.subr.bf16.mxu1 %v33013_v56  ;;  %v581_v54 = vcombine.high %v579_v50, %v579_v50  ;;  %v33051_v56 = vld [vmem:[%s35143_s27 + $0xdf8] sm:$0xff]  }
 0x199   : > { %29843 = vmatpush3.bf16.msra.mxu0 %v33012_v59  ;;  %v1955_v58 = vpack.c.bf16 %v581_v54, %v581_v54  ;;  %v1954_v59 = vpack.c.bf16 %v579_v50, %v579_v50  ;;  %v33087_v54 = vld [vmem:[%s35143_s27 + $0xe30] sm:$0xff]  }
 0x19a   : > { %29865 = vmatpush3.bf16.msra.mxu1 %v33014_v61  ;;  %29872 = vmatprep.subr.bf16.mxu0 %v33015_v63  ;;  %v33053_v61 = vld [vmem:[%s35143_s27 + $0xd70] sm:$0xff]  }
 0x19b   : > { %29894 = vmatprep.subr.bf16.mxu1 %v33018_v2  ;;  %v33054_v63 = vld [vmem:[%s35143_s27 + $0xd30] sm:$0xff]  }
 0x19c   : > { %v29580_v9 = vpop.f32.mrf.mxu0  ;;  %21928 = vmatmul.mubr.bf16.vlgmr.msra.gmra.mxu0 %v1948_v3  ;;  %v33056_v2 = vld [vmem:[%s35143_s27 + $0xdb0] sm:$0xff]   ;;  %v33057_v3 = vld [vmem:[%s35143_s27 + $0xd68] sm:$0xff]  }
 0x19d   : > { %v29602_v10 = vpop.f32.mrf.mxu1  ;;  %21968 = vmatmul.mubr.bf16.vlgmr.msra.gmra.mxu1 %v1950_v4  ;;  %29873 = vmatpush3.bf16.msra.mxu0 %v33017_v1 }
 0x19e   : > { %29895 = vmatpush3.bf16.msra.mxu1 %v33019_v5  ;;  %v29581_v13 = vpop.f32.mrf.mxu0  ;;  %29874 = vmatprep.subr.bf16.mxu0 %v33020_v6  ;;  %v33059_v6 = vld [vmem:[%s35143_s27 + $0xde8] sm:$0xff]  }
 0x19f   : > { %v29603_v14 = vpop.f32.mrf.mxu1  ;;  %29896 = vmatprep.subr.bf16.mxu1 %v33022_v7  ;;  %v29582_v16 = vadd.f32 %v29581_v13, %v29580_v9  ;;  %22007 = vmatprep.mubr.bf16.mxu0 %v1953_v52  ;;  %v33058_v9 = vld [vmem:[%s35143_s27 + $0xd28] sm:$0xff]   ;;  %v33086_v52 = vld [vmem:[%s35143_s27 + $0xe70] sm:$0xff]  }
 0x1a0   : > { %v29604_v17 = vadd.f32 %v29603_v14, %v29602_v10  ;;  %v29583_v19 = vpop.f32.mrf.mxu0  ;;  %22047 = vmatprep.mubr.bf16.mxu1 %v1955_v58  ;;  %v33061_v14 = vld [vmem:[%s35143_s27 + $0xd60] sm:$0xff]   ;;  %v33090_v58 = vld [vmem:[%s35143_s27 + $0xe68] sm:$0xff]  }
 0x1a1   : > { %v29605_v21 = vpop.f32.mrf.mxu1  ;;  %v21450_v22 = vadd.f32 %v29582_v16, %v35565_v36  ;;  %29875 = vmatpush3.bf16.msra.mxu0 %v33021_v8  ;;  %v33037_v36 = vld [vmem:[%s35143_s27 + $0xc10] sm:$0xff]   ;;  %v33063_v16 = vld [vmem:[%s35143_s27 + $0xde0] sm:$0xff]  }
 0x1a2   : > { %29897 = vmatpush3.bf16.msra.mxu1 %v33023_v11  ;;  %v29584_v24 = vpop.f32.mrf.mxu0  ;;  %29876 = vmatprep.subr.bf16.mxu0 %v33024_v12  ;;  %v33060_v11 = vld [vmem:[%s35143_s27 + $0xda8] sm:$0xff]   ;;  %v33062_v19 = vld [vmem:[%s35143_s27 + $0xd20] sm:$0xff]   ;;  %v33065_v21 = vld [vmem:[%s35143_s27 + $0xd58] sm:$0xff]  }
 0x1a3   : > { %29898 = vmatprep.subr.bf16.mxu1 %v33026_v15  ;;  %v29606_v26 = vpop.f32.mrf.mxu1  ;;  %v35603_v27 = vadd.f32 %v29604_v17, %v21450_v22  ;;  %v33067_v22 = vld [vmem:[%s35143_s27 + $0xdd8] sm:$0xff]  }
 0x1a4   : > { %v33068_v24 = vld [vmem:[%s35143_s27 + $0xd98] sm:$0xff]   ;;  %v33071_v26 = vld [vmem:[%s35143_s27 + $0xdd0] sm:$0xff]  }
 0x1a5   : > { %29877 = vmatpush3.bf16.msra.mxu0 %v33025_v18 }
 0x1a6   : > { %29899 = vmatpush3.bf16.msra.mxu1 %v33027_v20  ;;  %29878 = vmatprep.subr.bf16.mxu0 %v33028_v23  ;;  %v33064_v20 = vld [vmem:[%s35143_s27 + $0xda0] sm:$0xff]   ;;  %v33066_v23 = vld [vmem:[%s35143_s27 + $0xd18] sm:$0xff]  }
 0x1a7   : > { %29900 = vmatprep.subr.bf16.mxu1 %v33030_v25  ;;  %v33069_v25 = vld [vmem:[%s35143_s27 + $0xd50] sm:$0xff]  }
 0x1a9   : > { %29879 = vmatpush3.bf16.msra.mxu0 %v33029_v28  ;;  %v33072_v28 = vld [vmem:[%s35143_s27 + $0xd90] sm:$0xff]  }
 0x1aa   : > { %29901 = vmatpush3.bf16.msra.mxu1 %v33031_v29  ;;  %29880 = vmatprep.subr.bf16.mxu0 %v33032_v30  ;;  %v33073_v29 = vld [vmem:[%s35143_s27 + $0xd48] sm:$0xff]  }
 0x1ab   : > { %29902 = vmatprep.subr.bf16.mxu1 %v33034_v31  ;;  %v33075_v30 = vld [vmem:[%s35143_s27 + $0xdc8] sm:$0xff]  }
 0x1ac   : > { %v33074_v31 = vld [vmem:[%s35143_s27 + $0xd08] sm:$0xff]  }
 0x1ad   : > { %29881 = vmatpush3.bf16.msra.mxu0 %v33033_v32  ;;  %v33076_v32 = vld [vmem:[%s35143_s27 + $0xd88] sm:$0xff]  }
 0x1ae   : > { %29903 = vmatpush3.bf16.msra.mxu1 %v33035_v33  ;;  %29882 = vmatprep.subr.bf16.mxu0 %v33036_v34  ;;  %v33077_v33 = vld [vmem:[%s35143_s27 + $0xd40] sm:$0xff]   ;;  %v226_v34 = vld [vmem:[%s35138_s23 + $0x68] sm:$0xff] }
 0x1af   : > { %29904 = vmatprep.subr.bf16.mxu1 %v33038_v35  ;;  %v33079_v35 = vld [vmem:[%s35143_s27 + $0xdc0] sm:$0xff]  }
 0x1b1   : > { %29883 = vmatpush3.bf16.msra.mxu0 %v33037_v36  ;;  %v589_v36 = vrot.slane %v226_v34, %v35187_v42 }
 0x1b2   : > { %29905 = vmatpush3.bf16.msra.mxu1 %v33039_v37  ;;  %29884 = vmatprep.subr.bf16.mxu0 %v33040_v38  ;;  %v582_v37 = vcombine.high %v226_v34, %v226_v34  ;;  %v33078_v38 = vld [vmem:[%s35143_s27 + $0xd00] sm:$0xff]   ;;  %v33114_v34 = vld [vmem:[%s35143_s27 + $0xf78] sm:$0xff]  }
 0x1b3   : > { %29906 = vmatprep.subr.bf16.mxu1 %v33042_v39  ;;  %v597_v39 = vcombine.high %v589_v36, %v589_v36 }
 0x1b5   : > { %29885 = vmatpush3.bf16.msra.mxu0 %v33041_v40  ;;  %v596_v40 = vrot.slane %v582_v37, %v35187_v42  ;;  %v33117_v37 = vld [vmem:[%s35143_s27 + $0xff8] sm:$0xff]  }
 0x1b6   : > { %29907 = vmatpush3.bf16.msra.mxu1 %v33043_v41  ;;  %29886 = vmatprep.subr.bf16.mxu0 %v33044_v43  ;;  %v33080_v41 = vld [vmem:[%s35143_s27 + $0xd80] sm:$0xff]   ;;  %v1957_v43 = vpack.c.bf16 %v597_v39, %v597_v39 }
 0x1b7   : > { %29908 = vmatprep.subr.bf16.mxu1 %v33046_v45  ;;  %v598_v45 = vcombine.high %v596_v40, %v596_v40  ;;  %v1958_v50 = vpack.c.bf16 %v596_v40, %v596_v40 }
 0x1b9   : > { %29887 = vmatpush3.bf16.msra.mxu0 %v33045_v48  ;;  %v1956_v48 = vpack.c.bf16 %v589_v36, %v589_v36  ;;  %v1959_v49 = vpack.c.bf16 %v598_v45, %v598_v45  ;;  %v33116_v36 = vld [vmem:[%s35143_s27 + $0xf38] sm:$0xff]   ;;  %v33120_v45 = vld [vmem:[%s35143_s27 + $0xf30] sm:$0xff]  }
 0x1ba   : > { %29909 = vmatpush3.bf16.msra.mxu1 %v33047_v51  ;;  %29916 = vmatprep.subr.bf16.mxu0 %v33048_v53  ;;  %v33085_v51 = vld [vmem:[%s35143_s27 + $0xeb8] sm:$0xff]   ;;  %v33088_v53 = vld [vmem:[%s35143_s27 + $0xef0] sm:$0xff]  }
 0x1bb   : > { %29938 = vmatprep.subr.bf16.mxu1 %v33051_v56 }
 0x1bc   : > { %v29624_v0 = vpop.f32.mrf.mxu0  ;;  %22008 = vmatmul.mubr.bf16.vlgmr.msra.gmra.mxu0 %v1952_v57  ;;  %v33089_v57 = vld [vmem:[%s35143_s27 + $0xeb0] sm:$0xff]  }
 0x1bd   : > { %v29646_v1 = vpop.f32.mrf.mxu1  ;;  %22048 = vmatmul.mubr.bf16.vlgmr.msra.gmra.mxu1 %v1954_v59  ;;  %29917 = vmatpush3.bf16.msra.mxu0 %v33050_v55 }
 0x1be   : > { %29939 = vmatpush3.bf16.msra.mxu1 %v33052_v60  ;;  %v29625_v4 = vpop.f32.mrf.mxu0  ;;  %29918 = vmatprep.subr.bf16.mxu0 %v33053_v61  ;;  %v33092_v61 = vld [vmem:[%s35143_s27 + $0xee8] sm:$0xff]  }
 0x1bf   : > { %v29647_v5 = vpop.f32.mrf.mxu1  ;;  %29940 = vmatprep.subr.bf16.mxu1 %v33055_v62  ;;  %v29626_v7 = vadd.f32 %v29625_v4, %v29624_v0  ;;  %22087 = vmatprep.mubr.bf16.mxu0 %v1957_v43  ;;  %v33091_v0 = vld [vmem:[%s35143_s27 + $0xe28] sm:$0xff]   ;;  %v33119_v43 = vld [vmem:[%s35143_s27 + $0xf70] sm:$0xff]  }
 0x1c0   : > { %v29648_v8 = vadd.f32 %v29647_v5, %v29646_v1  ;;  %v29627_v10 = vpop.f32.mrf.mxu0  ;;  %22127 = vmatprep.mubr.bf16.mxu1 %v1959_v49  ;;  %v33094_v5 = vld [vmem:[%s35143_s27 + $0xe60] sm:$0xff]   ;;  %v33123_v49 = vld [vmem:[%s35143_s27 + $0xf68] sm:$0xff]  }
 0x1c1   : > { %v29649_v12 = vpop.f32.mrf.mxu1  ;;  %v21530_v13 = vadd.f32 %v29626_v7, %v35603_v27  ;;  %29919 = vmatpush3.bf16.msra.mxu0 %v33054_v63  ;;  %v33070_v27 = vld [vmem:[%s35143_s27 + $0xd10] sm:$0xff]   ;;  %v33096_v7 = vld [vmem:[%s35143_s27 + $0xee0] sm:$0xff]  }
 0x1c2   : > { %29941 = vmatpush3.bf16.msra.mxu1 %v33056_v2  ;;  %v29628_v15 = vpop.f32.mrf.mxu0  ;;  %29920 = vmatprep.subr.bf16.mxu0 %v33057_v3  ;;  %v33093_v2 = vld [vmem:[%s35143_s27 + $0xea8] sm:$0xff]   ;;  %v33095_v10 = vld [vmem:[%s35143_s27 + $0xe20] sm:$0xff]   ;;  %v33098_v12 = vld [vmem:[%s35143_s27 + $0xe58] sm:$0xff]  }
 0x1c3   : > { %29942 = vmatprep.subr.bf16.mxu1 %v33059_v6  ;;  %v29650_v17 = vpop.f32.mrf.mxu1  ;;  %v35641_v18 = vadd.f32 %v29648_v8, %v21530_v13  ;;  %v33100_v13 = vld [vmem:[%s35143_s27 + $0xed8] sm:$0xff]  }
 0x1c4   : > { %v33101_v15 = vld [vmem:[%s35143_s27 + $0xe98] sm:$0xff]   ;;  %v33104_v17 = vld [vmem:[%s35143_s27 + $0xed0] sm:$0xff]  }
 0x1c5   : > { %29921 = vmatpush3.bf16.msra.mxu0 %v33058_v9 }
 0x1c6   : > { %29943 = vmatpush3.bf16.msra.mxu1 %v33060_v11  ;;  %29922 = vmatprep.subr.bf16.mxu0 %v33061_v14  ;;  %v33097_v11 = vld [vmem:[%s35143_s27 + $0xea0] sm:$0xff]   ;;  %v33099_v14 = vld [vmem:[%s35143_s27 + $0xe18] sm:$0xff]  }
 0x1c7   : > { %29944 = vmatprep.subr.bf16.mxu1 %v33063_v16  ;;  %v33102_v16 = vld [vmem:[%s35143_s27 + $0xe50] sm:$0xff]  }
 0x1c9   : > { %29923 = vmatpush3.bf16.msra.mxu0 %v33062_v19  ;;  %v33105_v19 = vld [vmem:[%s35143_s27 + $0xe90] sm:$0xff]  }
 0x1ca   : > { %29945 = vmatpush3.bf16.msra.mxu1 %v33064_v20  ;;  %29924 = vmatprep.subr.bf16.mxu0 %v33065_v21  ;;  %v33106_v20 = vld [vmem:[%s35143_s27 + $0xe48] sm:$0xff]  }
 0x1cb   : > { %29946 = vmatprep.subr.bf16.mxu1 %v33067_v22  ;;  %v33108_v21 = vld [vmem:[%s35143_s27 + $0xec8] sm:$0xff]  }
 0x1cc   : > { %v33107_v22 = vld [vmem:[%s35143_s27 + $0xe08] sm:$0xff]  }
 0x1cd   : > { %29925 = vmatpush3.bf16.msra.mxu0 %v33066_v23  ;;  %v33109_v23 = vld [vmem:[%s35143_s27 + $0xe88] sm:$0xff]  }
 0x1ce   : > { %29947 = vmatpush3.bf16.msra.mxu1 %v33068_v24  ;;  %29926 = vmatprep.subr.bf16.mxu0 %v33069_v25  ;;  %v33110_v24 = vld [vmem:[%s35143_s27 + $0xe40] sm:$0xff]   ;;  %v227_v25 = vld [vmem:[%s35138_s23 + $0x70] sm:$0xff] }
 0x1cf   : > { %29948 = vmatprep.subr.bf16.mxu1 %v33071_v26  ;;  %v33112_v26 = vld [vmem:[%s35143_s27 + $0xec0] sm:$0xff]  }
 0x1d1   : > { %29927 = vmatpush3.bf16.msra.mxu0 %v33070_v27  ;;  %v606_v27 = vrot.slane %v227_v25, %v35187_v42 }
 0x1d2   : > { %29949 = vmatpush3.bf16.msra.mxu1 %v33072_v28  ;;  %29928 = vmatprep.subr.bf16.mxu0 %v33073_v29  ;;  %v599_v28 = vcombine.high %v227_v25, %v227_v25  ;;  %v33111_v29 = vld [vmem:[%s35143_s27 + $0xe00] sm:$0xff]  }
 0x1d3   : > { %29950 = vmatprep.subr.bf16.mxu1 %v33075_v30  ;;  %v614_v30 = vcombine.high %v606_v27, %v606_v27 }
 0x1d5   : > { %29929 = vmatpush3.bf16.msra.mxu0 %v33074_v31  ;;  %v613_v31 = vrot.slane %v599_v28, %v35187_v42 }
 0x1d6   : > { %29951 = vmatpush3.bf16.msra.mxu1 %v33076_v32  ;;  %29930 = vmatprep.subr.bf16.mxu0 %v33077_v33  ;;  %v33113_v32 = vld [vmem:[%s35143_s27 + $0xe80] sm:$0xff]   ;;  %v1961_v33 = vpack.c.bf16 %v614_v30, %v614_v30 }
 0x1d7   : > { %29952 = vmatprep.subr.bf16.mxu1 %v33079_v35  ;;  %v615_v35 = vcombine.high %v613_v31, %v613_v31  ;;  %v1962_v40 = vpack.c.bf16 %v613_v31, %v613_v31 }
 0x1d9   : > { %29931 = vmatpush3.bf16.msra.mxu0 %v33078_v38  ;;  %v1960_v38 = vpack.c.bf16 %v606_v27, %v606_v27  ;;  %v1963_v39 = vpack.c.bf16 %v615_v35, %v615_v35  ;;  %v33150_v27 = vld [vmem:[%s35143_s27 + $0x10f8] sm:$0xff]  }
 0x1da   : > { %29953 = vmatpush3.bf16.msra.mxu1 %v33080_v41  ;;  %29960 = vmatprep.subr.bf16.mxu0 %v33081_v44  ;;  %v33118_v41 = vld [vmem:[%s35143_s27 + $0xfb8] sm:$0xff]   ;;  %v33121_v44 = vld [vmem:[%s35143_s27 + $0xff0] sm:$0xff]  }
 0x1db   : > { %29982 = vmatprep.subr.bf16.mxu1 %v33084_v47 }
 0x1dc   : > { %v29668_v55 = vpop.f32.mrf.mxu0  ;;  %22088 = vmatmul.mubr.bf16.vlgmr.msra.gmra.mxu0 %v1956_v48  ;;  %v33122_v48 = vld [vmem:[%s35143_s27 + $0xfb0] sm:$0xff]  }
 0x1dd   : > { %v29690_v56 = vpop.f32.mrf.mxu1  ;;  %22128 = vmatmul.mubr.bf16.vlgmr.msra.gmra.mxu1 %v1958_v50  ;;  %29961 = vmatpush3.bf16.msra.mxu0 %v33083_v46 }
 0x1de   : > { %29983 = vmatpush3.bf16.msra.mxu1 %v33085_v51  ;;  %v29669_v59 = vpop.f32.mrf.mxu0  ;;  %29962 = vmatprep.subr.bf16.mxu0 %v33086_v52  ;;  %v33125_v52 = vld [vmem:[%s35143_s27 + $0xfe8] sm:$0xff]  }
 0x1df   : > { %v29691_v60 = vpop.f32.mrf.mxu1  ;;  %29984 = vmatprep.subr.bf16.mxu1 %v33088_v53  ;;  %v29670_v62 = vadd.f32 %v29669_v59, %v29668_v55  ;;  %22167 = vmatprep.mubr.bf16.mxu0 %v1961_v33  ;;  %v33124_v55 = vld [vmem:[%s35143_s27 + $0xf28] sm:$0xff]   ;;  %v33152_v33 = vld [vmem:[%s35143_s27 + $0x1070] sm:$0xff]  }
 0x1e0   : > { %v29692_v63 = vadd.f32 %v29691_v60, %v29690_v56  ;;  %v29671_v1 = vpop.f32.mrf.mxu0  ;;  %22207 = vmatprep.mubr.bf16.mxu1 %v1963_v39  ;;  %v33127_v60 = vld [vmem:[%s35143_s27 + $0xf60] sm:$0xff]  }
 0x1e1   : > { %v29693_v3 = vpop.f32.mrf.mxu1  ;;  %v21610_v4 = vadd.f32 %v29670_v62, %v35641_v18  ;;  %29963 = vmatpush3.bf16.msra.mxu0 %v33087_v54  ;;  %v33103_v18 = vld [vmem:[%s35143_s27 + $0xe10] sm:$0xff]   ;;  %v33129_v62 = vld [vmem:[%s35143_s27 + $0xfe0] sm:$0xff]  }
 0x1e2   : > { %29985 = vmatpush3.bf16.msra.mxu1 %v33089_v57  ;;  %v29672_v6 = vpop.f32.mrf.mxu0  ;;  %29964 = vmatprep.subr.bf16.mxu0 %v33090_v58  ;;  %v33126_v57 = vld [vmem:[%s35143_s27 + $0xfa8] sm:$0xff]   ;;  %v33128_v1 = vld [vmem:[%s35143_s27 + $0xf20] sm:$0xff]   ;;  %v33131_v3 = vld [vmem:[%s35143_s27 + $0xf58] sm:$0xff]  }
 0x1e3   : > { %29986 = vmatprep.subr.bf16.mxu1 %v33092_v61  ;;  %v29694_v8 = vpop.f32.mrf.mxu1  ;;  %v35679_v9 = vadd.f32 %v29692_v63, %v21610_v4  ;;  %v33133_v4 = vld [vmem:[%s35143_s27 + $0xfd8] sm:$0xff]  }
 0x1e4   : > { %v33134_v6 = vld [vmem:[%s35143_s27 + $0xf98] sm:$0xff]   ;;  %v33137_v8 = vld [vmem:[%s35143_s27 + $0xfd0] sm:$0xff]  }
 0x1e5   : > { %29965 = vmatpush3.bf16.msra.mxu0 %v33091_v0 }
 0x1e6   : > { %29987 = vmatpush3.bf16.msra.mxu1 %v33093_v2  ;;  %29966 = vmatprep.subr.bf16.mxu0 %v33094_v5  ;;  %v33130_v2 = vld [vmem:[%s35143_s27 + $0xfa0] sm:$0xff]   ;;  %v33132_v5 = vld [vmem:[%s35143_s27 + $0xf18] sm:$0xff]  }
 0x1e7   : > { %29988 = vmatprep.subr.bf16.mxu1 %v33096_v7  ;;  %v33135_v7 = vld [vmem:[%s35143_s27 + $0xf50] sm:$0xff]  }
 0x1e9   : > { %29967 = vmatpush3.bf16.msra.mxu0 %v33095_v10  ;;  %v33138_v10 = vld [vmem:[%s35143_s27 + $0xf90] sm:$0xff]  }
 0x1ea   : > { %29989 = vmatpush3.bf16.msra.mxu1 %v33097_v11  ;;  %29968 = vmatprep.subr.bf16.mxu0 %v33098_v12  ;;  %v33139_v11 = vld [vmem:[%s35143_s27 + $0xf48] sm:$0xff]  }
 0x1eb   : > { %29990 = vmatprep.subr.bf16.mxu1 %v33100_v13  ;;  %v33141_v12 = vld [vmem:[%s35143_s27 + $0xfc8] sm:$0xff]  }
 0x1ec   : > { %v33140_v13 = vld [vmem:[%s35143_s27 + $0xf08] sm:$0xff]  }
 0x1ed   : > { %29969 = vmatpush3.bf16.msra.mxu0 %v33099_v14  ;;  %v33142_v14 = vld [vmem:[%s35143_s27 + $0xf88] sm:$0xff]  }
 0x1ee   : > { %29991 = vmatpush3.bf16.msra.mxu1 %v33101_v15  ;;  %29970 = vmatprep.subr.bf16.mxu0 %v33102_v16  ;;  %v33143_v15 = vld [vmem:[%s35143_s27 + $0xf40] sm:$0xff]  }
 0x1ef   : > { %29992 = vmatprep.subr.bf16.mxu1 %v33104_v17  ;;  %v33145_v16 = vld [vmem:[%s35143_s27 + $0xfc0] sm:$0xff]   ;;  %v228_v17 = vld [vmem:[%s35138_s23 + $0x78] sm:$0xff] }
 0x1f1   : > { %29971 = vmatpush3.bf16.msra.mxu0 %v33103_v18  ;;  %v623_v18 = vrot.slane %v228_v17, %v35187_v42 }
 0x1f2   : > { %29993 = vmatpush3.bf16.msra.mxu1 %v33105_v19  ;;  %29972 = vmatprep.subr.bf16.mxu0 %v33106_v20  ;;  %v616_v19 = vcombine.high %v228_v17, %v228_v17  ;;  %v33144_v20 = vld [vmem:[%s35143_s27 + $0xf00] sm:$0xff]  }
 0x1f3   : > { %29994 = vmatprep.subr.bf16.mxu1 %v33108_v21  ;;  %v631_v21 = vcombine.high %v623_v18, %v623_v18  ;;  %v1964_v28 = vpack.c.bf16 %v623_v18, %v623_v18  ;;  %v33183_v18 = vld [vmem:[%s35143_s27 + $0x11f8] sm:$0xff]  }
 0x1f5   : > { %29973 = vmatpush3.bf16.msra.mxu0 %v33107_v22  ;;  %v33146_v22 = vld [vmem:[%s35143_s27 + $0xf80] sm:$0xff]   ;;  %v1965_v25 = vpack.c.bf16 %v631_v21, %v631_v21 }
 0x1f6   : > { %29995 = vmatpush3.bf16.msra.mxu1 %v33109_v23  ;;  %29974 = vmatprep.subr.bf16.mxu0 %v33110_v24  ;;  %v630_v23 = vrot.slane %v616_v19, %v35187_v42  ;;  %v33147_v24 = vld [vmem:[%s35143_s27 + $0x1078] sm:$0xff]  }
 0x1f7   : > { %29996 = vmatprep.subr.bf16.mxu1 %v33112_v26 }
 0x1f8   : > { %v632_v26 = vcombine.high %v630_v23, %v630_v23  ;;  %v1966_v31 = vpack.c.bf16 %v630_v23, %v630_v23  ;;  %v33184_v23 = vld [vmem:[%s35143_s27 + $0x11b8] sm:$0xff]  }
 0x1f9   : > { %29975 = vmatpush3.bf16.msra.mxu0 %v33111_v29  ;;  %v33149_v29 = vld [vmem:[%s35143_s27 + $0x1038] sm:$0xff]  }
 0x1fa   : > { %29997 = vmatpush3.bf16.msra.mxu1 %v33113_v32  ;;  %30004 = vmatprep.subr.bf16.mxu0 %v33114_v34  ;;  %v1967_v30 = vpack.c.bf16 %v632_v26, %v632_v26  ;;  %v33151_v32 = vld [vmem:[%s35143_s27 + $0x10b8] sm:$0xff]   ;;  %v33154_v34 = vld [vmem:[%s35143_s27 + $0x10f0] sm:$0xff]  }
 0x1fb   : > { %30026 = vmatprep.subr.bf16.mxu1 %v33117_v37  ;;  %v33153_v37 = vld [vmem:[%s35143_s27 + $0x1030] sm:$0xff]  }
 0x1fc   : > { %v29712_v46 = vpop.f32.mrf.mxu0  ;;  %22168 = vmatmul.mubr.bf16.vlgmr.msra.gmra.mxu0 %v1960_v38  ;;  %v33155_v38 = vld [vmem:[%s35143_s27 + $0x10b0] sm:$0xff]  }
 0x1fd   : > { %v29734_v47 = vpop.f32.mrf.mxu1  ;;  %22208 = vmatmul.mubr.bf16.vlgmr.msra.gmra.mxu1 %v1962_v40  ;;  %30005 = vmatpush3.bf16.msra.mxu0 %v33116_v36 }
 0x1fe   : > { %30027 = vmatpush3.bf16.msra.mxu1 %v33118_v41  ;;  %v29713_v50 = vpop.f32.mrf.mxu0  ;;  %30006 = vmatprep.subr.bf16.mxu0 %v33119_v43  ;;  %v33156_v41 = vld [vmem:[%s35143_s27 + $0x1068] sm:$0xff]  }
 0x1ff   : > { %v29735_v51 = vpop.f32.mrf.mxu1  ;;  %30028 = vmatprep.subr.bf16.mxu1 %v33121_v44  ;;  %v29714_v53 = vadd.f32 %v29713_v50, %v29712_v46  ;;  %22247 = vmatprep.mubr.bf16.mxu0 %v1965_v25  ;;  %v33159_v50 = vld [vmem:[%s35143_s27 + $0x10a8] sm:$0xff]   ;;  %v33187_v25 = vld [vmem:[%s35143_s27 + $0x11f0] sm:$0xff]  }
 0x200   : > { %v29736_v54 = vadd.f32 %v29735_v51, %v29734_v47  ;;  %v29715_v56 = vpop.f32.mrf.mxu0  ;;  %22287 = vmatprep.mubr.bf16.mxu1 %v1967_v30  ;;  %v33157_v47 = vld [vmem:[%s35143_s27 + $0x1028] sm:$0xff]  }
 0x201   : > { %v29737_v58 = vpop.f32.mrf.mxu1  ;;  %v21690_v59 = vadd.f32 %v29714_v53, %v35679_v9  ;;  %30007 = vmatpush3.bf16.msra.mxu0 %v33120_v45  ;;  %v33136_v9 = vld [vmem:[%s35143_s27 + $0xf10] sm:$0xff]   ;;  %v33158_v45 = vld [vmem:[%s35143_s27 + $0x10e8] sm:$0xff]   ;;  %v33161_v56 = vld [vmem:[%s35143_s27 + $0x1020] sm:$0xff]  }
 0x202   : > { %30029 = vmatpush3.bf16.msra.mxu1 %v33122_v48  ;;  %v29716_v61 = vpop.f32.mrf.mxu0  ;;  %30008 = vmatprep.subr.bf16.mxu0 %v33123_v49  ;;  %v33164_v58 = vld [vmem:[%s35143_s27 + $0x1058] sm:$0xff]  }
 0x203   : > { %30030 = vmatprep.subr.bf16.mxu1 %v33125_v52  ;;  %v29738_v63 = vpop.f32.mrf.mxu1  ;;  %v35717_v0 = vadd.f32 %v29736_v54, %v21690_v59  ;;  %v33160_v52 = vld [vmem:[%s35143_s27 + $0x1060] sm:$0xff]   ;;  %v33166_v59 = vld [vmem:[%s35143_s27 + $0x10d8] sm:$0xff]  }
 0x204   : > { %v33167_v61 = vld [vmem:[%s35143_s27 + $0x1098] sm:$0xff]   ;;  %v33170_v63 = vld [vmem:[%s35143_s27 + $0x10d0] sm:$0xff]  }
 0x205   : > { %30009 = vmatpush3.bf16.msra.mxu0 %v33124_v55  ;;  %v33162_v55 = vld [vmem:[%s35143_s27 + $0x10e0] sm:$0xff]  }
 0x206   : > { %30031 = vmatpush3.bf16.msra.mxu1 %v33126_v57  ;;  %30010 = vmatprep.subr.bf16.mxu0 %v33127_v60  ;;  %v33163_v57 = vld [vmem:[%s35143_s27 + $0x10a0] sm:$0xff]   ;;  %v33165_v60 = vld [vmem:[%s35143_s27 + $0x1018] sm:$0xff]  }
 0x207   : > { %30032 = vmatprep.subr.bf16.mxu1 %v33129_v62  ;;  %v33168_v62 = vld [vmem:[%s35143_s27 + $0x1050] sm:$0xff]  }
 0x209   : > { %30011 = vmatpush3.bf16.msra.mxu0 %v33128_v1  ;;  %v33171_v1 = vld [vmem:[%s35143_s27 + $0x1090] sm:$0xff]  }
 0x20a   : > { %30033 = vmatpush3.bf16.msra.mxu1 %v33130_v2  ;;  %30012 = vmatprep.subr.bf16.mxu0 %v33131_v3  ;;  %v33172_v2 = vld [vmem:[%s35143_s27 + $0x1048] sm:$0xff]  }
 0x20b   : > { %30034 = vmatprep.subr.bf16.mxu1 %v33133_v4  ;;  %v33174_v3 = vld [vmem:[%s35143_s27 + $0x10c8] sm:$0xff]  }
 0x20c   : > { %v33173_v4 = vld [vmem:[%s35143_s27 + $0x1008] sm:$0xff]  }
 0x20d   : > { %30013 = vmatpush3.bf16.msra.mxu0 %v33132_v5  ;;  %v33175_v5 = vld [vmem:[%s35143_s27 + $0x1088] sm:$0xff]  }
 0x20e   : > { %30035 = vmatpush3.bf16.msra.mxu1 %v33134_v6  ;;  %30014 = vmatprep.subr.bf16.mxu0 %v33135_v7  ;;  %v33176_v6 = vld [vmem:[%s35143_s27 + $0x1040] sm:$0xff]  }
 0x20f   : > { %30036 = vmatprep.subr.bf16.mxu1 %v33137_v8  ;;  %v229_v7 = vld [vmem:[%s35138_s23 + $0x80] sm:$0xff] }
 0x210   : > { %v33178_v8 = vld [vmem:[%s35143_s27 + $0x10c0] sm:$0xff]  }
 0x211   : > { %30015 = vmatpush3.bf16.msra.mxu0 %v33136_v9  ;;  %v640_v9 = vrot.slane %v229_v7, %v35187_v42 }
 0x212   : > { %30037 = vmatpush3.bf16.msra.mxu1 %v33138_v10  ;;  %30016 = vmatprep.subr.bf16.mxu0 %v33139_v11  ;;  %v633_v10 = vcombine.high %v229_v7, %v229_v7  ;;  %v33177_v11 = vld [vmem:[%s35143_s27 + $0x1000] sm:$0xff]  }
 0x213   : > { %30038 = vmatprep.subr.bf16.mxu1 %v33141_v12  ;;  %v648_v12 = vcombine.high %v640_v9, %v640_v9  ;;  %v1968_v19 = vpack.c.bf16 %v640_v9, %v640_v9  ;;  %v33216_v9 = vld [vmem:[%s35143_s27 + $0x12f8] sm:$0xff]  }
 0x215   : > { %30017 = vmatpush3.bf16.msra.mxu0 %v33140_v13  ;;  %v33179_v13 = vld [vmem:[%s35143_s27 + $0x1080] sm:$0xff]  }
 0x216   : > { %30039 = vmatpush3.bf16.msra.mxu1 %v33142_v14  ;;  %30018 = vmatprep.subr.bf16.mxu0 %v33143_v15  ;;  %v647_v14 = vrot.slane %v633_v10, %v35187_v42  ;;  %v33180_v15 = vld [vmem:[%s35143_s27 + $0x1178] sm:$0xff]  }
 0x217   : > { %30040 = vmatprep.subr.bf16.mxu1 %v33145_v16  ;;  %v1969_v16 = vpack.c.bf16 %v648_v12, %v648_v12 }
 0x218   : > { %v649_v17 = vcombine.high %v647_v14, %v647_v14 }
 0x219   : > { %30019 = vmatpush3.bf16.msra.mxu0 %v33144_v20  ;;  %v33182_v20 = vld [vmem:[%s35143_s27 + $0x1138] sm:$0xff]  }
 0x21a   : > { %30041 = vmatpush3.bf16.msra.mxu1 %v33146_v22  ;;  %30048 = vmatprep.subr.bf16.mxu0 %v33147_v24  ;;  %v1971_v21 = vpack.c.bf16 %v649_v17, %v649_v17  ;;  %v1970_v22 = vpack.c.bf16 %v647_v14, %v647_v14  ;;  %v33185_v24 = vld [vmem:[%s35143_s27 + $0x1170] sm:$0xff]   ;;  %v33217_v14 = vld [vmem:[%s35143_s27 + $0x12b8] sm:$0xff]  }
 0x21b   : > { %30070 = vmatprep.subr.bf16.mxu1 %v33150_v27 }
 0x21c   : > { %v29756_v35 = vpop.f32.mrf.mxu0  ;;  %22248 = vmatmul.mubr.bf16.vlgmr.msra.gmra.mxu0 %v1964_v28  ;;  %v33186_v28 = vld [vmem:[%s35143_s27 + $0x1130] sm:$0xff]  }
 0x21d   : > { %v29778_v36 = vpop.f32.mrf.mxu1  ;;  %30049 = vmatpush3.bf16.msra.mxu0 %v33149_v29  ;;  %22288 = vmatmul.mubr.bf16.vlgmr.msra.gmra.mxu1 %v1966_v31  ;;  %v33188_v29 = vld [vmem:[%s35143_s27 + $0x11b0] sm:$0xff]  }
 0x21e   : > { %v29757_v39 = vpop.f32.mrf.mxu0  ;;  %30071 = vmatpush3.bf16.msra.mxu1 %v33151_v32  ;;  %30050 = vmatprep.subr.bf16.mxu0 %v33152_v33  ;;  %v33189_v32 = vld [vmem:[%s35143_s27 + $0x1168] sm:$0xff]  }
 0x21f   : > { %v29779_v40 = vpop.f32.mrf.mxu1  ;;  %v29758_v43 = vadd.f32 %v29757_v39, %v29756_v35  ;;  %30072 = vmatprep.subr.bf16.mxu1 %v33154_v34  ;;  %22327 = vmatprep.mubr.bf16.mxu0 %v1969_v16  ;;  %v33191_v35 = vld [vmem:[%s35143_s27 + $0x11e8] sm:$0xff]   ;;  %v33220_v16 = vld [vmem:[%s35143_s27 + $0x12f0] sm:$0xff]  }
 0x220   : > { %v29780_v44 = vadd.f32 %v29779_v40, %v29778_v36  ;;  %v29759_v46 = vpop.f32.mrf.mxu0  ;;  %22367 = vmatprep.mubr.bf16.mxu1 %v1971_v21  ;;  %v33192_v40 = vld [vmem:[%s35143_s27 + $0x11a8] sm:$0xff]  }
 0x221   : > { %v29781_v48 = vpop.f32.mrf.mxu1  ;;  %v21770_v49 = vadd.f32 %v29758_v43, %v35717_v0  ;;  %30051 = vmatpush3.bf16.msra.mxu0 %v33153_v37  ;;  %v33169_v0 = vld [vmem:[%s35143_s27 + $0x1010] sm:$0xff]   ;;  %v33190_v37 = vld [vmem:[%s35143_s27 + $0x1128] sm:$0xff]   ;;  %v33193_v43 = vld [vmem:[%s35143_s27 + $0x1160] sm:$0xff]  }
 0x222   : > { %v29760_v51 = vpop.f32.mrf.mxu0  ;;  %30073 = vmatpush3.bf16.msra.mxu1 %v33155_v38  ;;  %30052 = vmatprep.subr.bf16.mxu0 %v33156_v41  ;;  %v33195_v46 = vld [vmem:[%s35143_s27 + $0x11e0] sm:$0xff]  }
 0x223   : > { %v29782_v53 = vpop.f32.mrf.mxu1  ;;  %v35754_v54 = vadd.f32 %v29780_v44, %v21770_v49  ;;  %30074 = vmatprep.subr.bf16.mxu1 %v33158_v45  ;;  %v33196_v48 = vld [vmem:[%s35143_s27 + $0x11a0] sm:$0xff]   ;;  %v33197_v49 = vld [vmem:[%s35143_s27 + $0x1158] sm:$0xff]  }
 0x224   : > { %v33198_v51 = vld [vmem:[%s35143_s27 + $0x1118] sm:$0xff]   ;;  %v33201_v53 = vld [vmem:[%s35143_s27 + $0x1150] sm:$0xff]  }
 0x225   : > { %30053 = vmatpush3.bf16.msra.mxu0 %v33157_v47  ;;  %v33194_v47 = vld [vmem:[%s35143_s27 + $0x1120] sm:$0xff]  }
 0x226   : > { %30075 = vmatpush3.bf16.msra.mxu1 %v33159_v50  ;;  %30054 = vmatprep.subr.bf16.mxu0 %v33160_v52  ;;  %v33199_v50 = vld [vmem:[%s35143_s27 + $0x11d8] sm:$0xff]  }
 0x227   : > { %30076 = vmatprep.subr.bf16.mxu1 %v33162_v55  ;;  %v33200_v52 = vld [vmem:[%s35143_s27 + $0x1198] sm:$0xff]   ;;  %v33202_v55 = vld [vmem:[%s35143_s27 + $0x1110] sm:$0xff]  }
 0x229   : > { %30055 = vmatpush3.bf16.msra.mxu0 %v33161_v56  ;;  %v33204_v56 = vld [vmem:[%s35143_s27 + $0x1190] sm:$0xff]  }
 0x22a   : > { %30077 = vmatpush3.bf16.msra.mxu1 %v33163_v57  ;;  %30056 = vmatprep.subr.bf16.mxu0 %v33164_v58  ;;  %v33205_v57 = vld [vmem:[%s35143_s27 + $0x1148] sm:$0xff]  }
 0x22b   : > { %30078 = vmatprep.subr.bf16.mxu1 %v33166_v59  ;;  %v33207_v58 = vld [vmem:[%s35143_s27 + $0x11c8] sm:$0xff]  }
 0x22c   : > { %v33206_v59 = vld [vmem:[%s35143_s27 + $0x1108] sm:$0xff]  }
 0x22d   : > { %30057 = vmatpush3.bf16.msra.mxu0 %v33165_v60  ;;  %v33208_v60 = vld [vmem:[%s35143_s27 + $0x1188] sm:$0xff]  }
 0x22e   : > { %30079 = vmatpush3.bf16.msra.mxu1 %v33167_v61  ;;  %30058 = vmatprep.subr.bf16.mxu0 %v33168_v62  ;;  %v33209_v61 = vld [vmem:[%s35143_s27 + $0x1140] sm:$0xff]   ;;  %v230_v62 = vld [vmem:[%s35138_s23 + $0x88] sm:$0xff] }
 0x22f   : > { %30080 = vmatprep.subr.bf16.mxu1 %v33170_v63  ;;  %v33211_v63 = vld [vmem:[%s35143_s27 + $0x11c0] sm:$0xff]  }
 0x231   : > { %30059 = vmatpush3.bf16.msra.mxu0 %v33169_v0  ;;  %v657_v0 = vrot.slane %v230_v62, %v35187_v42 }
 0x232   : > { %30081 = vmatpush3.bf16.msra.mxu1 %v33171_v1  ;;  %30060 = vmatprep.subr.bf16.mxu0 %v33172_v2  ;;  %v650_v1 = vcombine.high %v230_v62, %v230_v62  ;;  %v33210_v2 = vld [vmem:[%s35143_s27 + $0x1100] sm:$0xff]   ;;  %v33249_v62 = vld [vmem:[%s35143_s27 + $0x13f8] sm:$0xff]  }
 0x233   : > { %30082 = vmatprep.subr.bf16.mxu1 %v33174_v3  ;;  %v665_v3 = vcombine.high %v657_v0, %v657_v0  ;;  %v1972_v10 = vpack.c.bf16 %v657_v0, %v657_v0 }
 0x235   : > { %30061 = vmatpush3.bf16.msra.mxu0 %v33173_v4  ;;  %v33212_v4 = vld [vmem:[%s35143_s27 + $0x1180] sm:$0xff]   ;;  %v1973_v7 = vpack.c.bf16 %v665_v3, %v665_v3 }
 0x236   : > { %30083 = vmatpush3.bf16.msra.mxu1 %v33175_v5  ;;  %30062 = vmatprep.subr.bf16.mxu0 %v33176_v6  ;;  %v664_v5 = vrot.slane %v650_v1, %v35187_v42  ;;  %v33213_v6 = vld [vmem:[%s35143_s27 + $0x1278] sm:$0xff]  }
 0x237   : > { %30084 = vmatprep.subr.bf16.mxu1 %v33178_v8 }
 0x238   : > { %v666_v8 = vcombine.high %v664_v5, %v664_v5 }
 0x239   : > { %30063 = vmatpush3.bf16.msra.mxu0 %v33177_v11  ;;  %v33215_v11 = vld [vmem:[%s35143_s27 + $0x1238] sm:$0xff]  }
 0x23a   : > { %30085 = vmatpush3.bf16.msra.mxu1 %v33179_v13  ;;  %30092 = vmatprep.subr.bf16.mxu0 %v33180_v15  ;;  %v1975_v12 = vpack.c.bf16 %v666_v8, %v666_v8  ;;  %v1974_v13 = vpack.c.bf16 %v664_v5, %v664_v5  ;;  %v33218_v15 = vld [vmem:[%s35143_s27 + $0x1270] sm:$0xff]  }
 0x23b   : > { %30114 = vmatprep.subr.bf16.mxu1 %v33183_v18 }
 0x23c   : > { %v29800_v26 = vpop.f32.mrf.mxu0  ;;  %22328 = vmatmul.mubr.bf16.vlgmr.msra.gmra.mxu0 %v1968_v19  ;;  %v33219_v19 = vld [vmem:[%s35143_s27 + $0x1230] sm:$0xff]  }
 0x23d   : > { %v29822_v27 = vpop.f32.mrf.mxu1  ;;  %30093 = vmatpush3.bf16.msra.mxu0 %v33182_v20  ;;  %22368 = vmatmul.mubr.bf16.vlgmr.msra.gmra.mxu1 %v1970_v22  ;;  %v33221_v20 = vld [vmem:[%s35143_s27 + $0x12b0] sm:$0xff]  }
 0x23e   : > { %v29801_v30 = vpop.f32.mrf.mxu0  ;;  %30115 = vmatpush3.bf16.msra.mxu1 %v33184_v23  ;;  %30094 = vmatprep.subr.bf16.mxu0 %v33185_v24  ;;  %v33222_v23 = vld [vmem:[%s35143_s27 + $0x1268] sm:$0xff]  }
 0x23f   : > { %v29823_v31 = vpop.f32.mrf.mxu1  ;;  %v29802_v33 = vadd.f32 %v29801_v30, %v29800_v26  ;;  %30116 = vmatprep.subr.bf16.mxu1 %v33187_v25  ;;  %22407 = vmatprep.mubr.bf16.mxu0 %v1973_v7  ;;  %v33224_v26 = vld [vmem:[%s35143_s27 + $0x12e8] sm:$0xff]   ;;  %v33253_v7 = vld [vmem:[%s35143_s27 + $0x13f0] sm:$0xff]  }
 0x240   : > { %v29824_v34 = vadd.f32 %v29823_v31, %v29822_v27  ;;  %v29803_v36 = vpop.f32.mrf.mxu0  ;;  %22447 = vmatprep.mubr.bf16.mxu1 %v1975_v12  ;;  %v33225_v31 = vld [vmem:[%s35143_s27 + $0x12a8] sm:$0xff]  }
 0x241   : > { %v29825_v38 = vpop.f32.mrf.mxu1  ;;  %v21850_v39 = vadd.f32 %v29802_v33, %v35754_v54  ;;  %30095 = vmatpush3.bf16.msra.mxu0 %v33186_v28  ;;  %v33203_v54 = vld [vmem:[%s35143_s27 + $0x11d0] sm:$0xff]   ;;  %v33223_v28 = vld [vmem:[%s35143_s27 + $0x1228] sm:$0xff]   ;;  %v33226_v33 = vld [vmem:[%s35143_s27 + $0x1260] sm:$0xff]  }
 0x242   : > { %v29804_v41 = vpop.f32.mrf.mxu0  ;;  %30117 = vmatpush3.bf16.msra.mxu1 %v33188_v29  ;;  %30096 = vmatprep.subr.bf16.mxu0 %v33189_v32  ;;  %v33228_v36 = vld [vmem:[%s35143_s27 + $0x12e0] sm:$0xff]  }
 0x243   : > { %v29826_v44 = vpop.f32.mrf.mxu1  ;;  %v35792_v45 = vadd.f32 %v29824_v34, %v21850_v39  ;;  %30118 = vmatprep.subr.bf16.mxu1 %v33191_v35  ;;  %v33229_v38 = vld [vmem:[%s35143_s27 + $0x12a0] sm:$0xff]   ;;  %v33230_v39 = vld [vmem:[%s35143_s27 + $0x1258] sm:$0xff]  }
 0x244   : > { %v33231_v41 = vld [vmem:[%s35143_s27 + $0x1218] sm:$0xff]   ;;  %v33234_v44 = vld [vmem:[%s35143_s27 + $0x1250] sm:$0xff]  }
 0x245   : > { %30097 = vmatpush3.bf16.msra.mxu0 %v33190_v37  ;;  %v33227_v37 = vld [vmem:[%s35143_s27 + $0x1220] sm:$0xff]  }
 0x246   : > { %30119 = vmatpush3.bf16.msra.mxu1 %v33192_v40  ;;  %30098 = vmatprep.subr.bf16.mxu0 %v33193_v43  ;;  %v33232_v40 = vld [vmem:[%s35143_s27 + $0x12d8] sm:$0xff]  }
 0x247   : > { %30120 = vmatprep.subr.bf16.mxu1 %v33195_v46  ;;  %v33233_v43 = vld [vmem:[%s35143_s27 + $0x1298] sm:$0xff]   ;;  %v33235_v46 = vld [vmem:[%s35143_s27 + $0x1210] sm:$0xff]  }
 0x249   : > { %30099 = vmatpush3.bf16.msra.mxu0 %v33194_v47  ;;  %v33237_v47 = vld [vmem:[%s35143_s27 + $0x1290] sm:$0xff]  }
 0x24a   : > { %30121 = vmatpush3.bf16.msra.mxu1 %v33196_v48  ;;  %30100 = vmatprep.subr.bf16.mxu0 %v33197_v49  ;;  %v33238_v48 = vld [vmem:[%s35143_s27 + $0x1248] sm:$0xff]  }
 0x24b   : > { %30122 = vmatprep.subr.bf16.mxu1 %v33199_v50  ;;  %v33239_v49 = vld [vmem:[%s35143_s27 + $0x1208] sm:$0xff]  }
 0x24c   : > { %v33240_v50 = vld [vmem:[%s35143_s27 + $0x12c8] sm:$0xff]  }
 0x24d   : > { %30101 = vmatpush3.bf16.msra.mxu0 %v33198_v51  ;;  %v33241_v51 = vld [vmem:[%s35143_s27 + $0x1288] sm:$0xff]  }
 0x24e   : > { %30123 = vmatpush3.bf16.msra.mxu1 %v33200_v52  ;;  %30102 = vmatprep.subr.bf16.mxu0 %v33201_v53  ;;  %v33242_v52 = vld [vmem:[%s35143_s27 + $0x1240] sm:$0xff]  }
 0x24f   : > { %30124 = vmatprep.subr.bf16.mxu1 %v33203_v54  ;;  %v33244_v53 = vld [vmem:[%s35143_s27 + $0x12c0] sm:$0xff]   ;;  %v231_v54 = vld [vmem:[%s35138_s23 + $0x90] sm:$0xff] }
 0x251   : > { %30103 = vmatpush3.bf16.msra.mxu0 %v33202_v55  ;;  %v33243_v55 = vld [vmem:[%s35143_s27 + $0x1200] sm:$0xff]  }
 0x252   : > { %30125 = vmatpush3.bf16.msra.mxu1 %v33204_v56  ;;  %30104 = vmatprep.subr.bf16.mxu0 %v33205_v57  ;;  %v674_v56 = vrot.slane %v231_v54, %v35187_v42  ;;  %v667_v57 = vcombine.high %v231_v54, %v231_v54 }
 0x253   : > { %30126 = vmatprep.subr.bf16.mxu1 %v33207_v58  ;;  %v33245_v58 = vld [vmem:[%s35143_s27 + $0x1280] sm:$0xff]  }
 0x254   : > { %v1976_v0 = vpack.c.bf16 %v674_v56, %v674_v56 }
 0x255   : > { %30105 = vmatpush3.bf16.msra.mxu0 %v33206_v59  ;;  %v682_v59 = vcombine.high %v674_v56, %v674_v56 }
 0x256   : > { %30127 = vmatpush3.bf16.msra.mxu1 %v33208_v60  ;;  %30106 = vmatprep.subr.bf16.mxu0 %v33209_v61  ;;  %v33246_v60 = vld [vmem:[%s35143_s27 + $0x1378] sm:$0xff]   ;;  %v681_v61 = vrot.slane %v667_v57, %v35187_v42 }
 0x257   : > { %30128 = vmatprep.subr.bf16.mxu1 %v33211_v63  ;;  %v1977_v63 = vpack.c.bf16 %v682_v59, %v682_v59  ;;  %v33281_v57 = vld [vmem:[%s35143_s27 + $0x1438] sm:$0xff]  }
 0x258   : > { %v683_v1 = vcombine.high %v681_v61, %v681_v61  ;;  %v1978_v3 = vpack.c.bf16 %v681_v61, %v681_v61  ;;  %v33283_v59 = vld [vmem:[%s35143_s27 + $0x14b8] sm:$0xff]   ;;  %v33284_v61 = vld [vmem:[%s35143_s27 + $0x1470] sm:$0xff]  }
 0x259   : > { %30107 = vmatpush3.bf16.msra.mxu0 %v33210_v2  ;;  %v33248_v2 = vld [vmem:[%s35143_s27 + $0x1338] sm:$0xff]  }
 0x25a   : > { %30129 = vmatpush3.bf16.msra.mxu1 %v33212_v4  ;;  %30136 = vmatprep.subr.bf16.mxu0 %v33213_v6  ;;  %v33250_v4 = vld [vmem:[%s35143_s27 + $0x13b8] sm:$0xff]   ;;  %v1979_v5 = vpack.c.bf16 %v683_v1, %v683_v1  ;;  %v33251_v6 = vld [vmem:[%s35143_s27 + $0x1370] sm:$0xff]  }
 0x25b   : > { %30158 = vmatprep.subr.bf16.mxu1 %v33216_v9  ;;  %v33285_v1 = vld [vmem:[%s35143_s27 + $0x1430] sm:$0xff]  }
 0x25c   : > { %v29844_v17 = vpop.f32.mrf.mxu0  ;;  %22408 = vmatmul.mubr.bf16.vlgmr.msra.gmra.mxu0 %v1972_v10  ;;  %v33252_v10 = vld [vmem:[%s35143_s27 + $0x1330] sm:$0xff]  }
 0x25d   : > { %v29866_v18 = vpop.f32.mrf.mxu1  ;;  %30137 = vmatpush3.bf16.msra.mxu0 %v33215_v11  ;;  %22448 = vmatmul.mubr.bf16.vlgmr.msra.gmra.mxu1 %v1974_v13  ;;  %v33254_v11 = vld [vmem:[%s35143_s27 + $0x13b0] sm:$0xff]  }
 0x25e   : > { %v29845_v21 = vpop.f32.mrf.mxu0  ;;  %30159 = vmatpush3.bf16.msra.mxu1 %v33217_v14  ;;  %30138 = vmatprep.subr.bf16.mxu0 %v33218_v15  ;;  %v33255_v14 = vld [vmem:[%s35143_s27 + $0x1368] sm:$0xff]  }
 0x25f   : > { %v29867_v22 = vpop.f32.mrf.mxu1  ;;  %v29846_v24 = vadd.f32 %v29845_v21, %v29844_v17  ;;  %30160 = vmatprep.subr.bf16.mxu1 %v33220_v16  ;;  %22487 = vmatprep.mubr.bf16.mxu0 %v1977_v63  ;;  %v33257_v17 = vld [vmem:[%s35143_s27 + $0x13e8] sm:$0xff]  }
 0x260   : > { %v29868_v25 = vadd.f32 %v29867_v22, %v29866_v18  ;;  %v29847_v27 = vpop.f32.mrf.mxu0  ;;  %22527 = vmatprep.mubr.bf16.mxu1 %v1979_v5  ;;  %v33258_v22 = vld [vmem:[%s35143_s27 + $0x13a8] sm:$0xff]  }
 0x261   : > { %v29869_v29 = vpop.f32.mrf.mxu1  ;;  %v21930_v30 = vadd.f32 %v29846_v24, %v35792_v45  ;;  %30139 = vmatpush3.bf16.msra.mxu0 %v33219_v19  ;;  %v33236_v45 = vld [vmem:[%s35143_s27 + $0x12d0] sm:$0xff]   ;;  %v33256_v19 = vld [vmem:[%s35143_s27 + $0x1328] sm:$0xff]   ;;  %v33259_v24 = vld [vmem:[%s35143_s27 + $0x1360] sm:$0xff]  }
 0x262   : > { %v29848_v32 = vpop.f32.mrf.mxu0  ;;  %30161 = vmatpush3.bf16.msra.mxu1 %v33221_v20  ;;  %30140 = vmatprep.subr.bf16.mxu0 %v33222_v23  ;;  %v33261_v27 = vld [vmem:[%s35143_s27 + $0x13e0] sm:$0xff]   ;;  %v33288_v5 = vld [vmem:[%s35143_s27 + $0x1468] sm:$0xff]  }
 0x263   : > { %v29870_v34 = vpop.f32.mrf.mxu1  ;;  %v35830_v35 = vadd.f32 %v29868_v25, %v21930_v30  ;;  %30162 = vmatprep.subr.bf16.mxu1 %v33224_v26  ;;  %v33262_v29 = vld [vmem:[%s35143_s27 + $0x13a0] sm:$0xff]   ;;  %v33263_v30 = vld [vmem:[%s35143_s27 + $0x1358] sm:$0xff]  }
 0x264   : > { %v33264_v32 = vld [vmem:[%s35143_s27 + $0x1318] sm:$0xff]   ;;  %v33267_v34 = vld [vmem:[%s35143_s27 + $0x1350] sm:$0xff]  }
 0x265   : > { %30141 = vmatpush3.bf16.msra.mxu0 %v33223_v28  ;;  %v33260_v28 = vld [vmem:[%s35143_s27 + $0x1320] sm:$0xff]  }
 0x266   : > { %30163 = vmatpush3.bf16.msra.mxu1 %v33225_v31  ;;  %30142 = vmatprep.subr.bf16.mxu0 %v33226_v33  ;;  %v33265_v31 = vld [vmem:[%s35143_s27 + $0x13d8] sm:$0xff]  }
 0x267   : > { %30164 = vmatprep.subr.bf16.mxu1 %v33228_v36  ;;  %v33266_v33 = vld [vmem:[%s35143_s27 + $0x1398] sm:$0xff]   ;;  %v33268_v36 = vld [vmem:[%s35143_s27 + $0x1310] sm:$0xff]  }
 0x269   : > { %30143 = vmatpush3.bf16.msra.mxu0 %v33227_v37  ;;  %v33270_v37 = vld [vmem:[%s35143_s27 + $0x1390] sm:$0xff]  }
 0x26a   : > { %30165 = vmatpush3.bf16.msra.mxu1 %v33229_v38  ;;  %30144 = vmatprep.subr.bf16.mxu0 %v33230_v39  ;;  %v33271_v38 = vld [vmem:[%s35143_s27 + $0x1348] sm:$0xff]  }
 0x26b   : > { %30166 = vmatprep.subr.bf16.mxu1 %v33232_v40  ;;  %v33273_v39 = vld [vmem:[%s35143_s27 + $0x13c8] sm:$0xff]  }
 0x26c   : > { %v33272_v40 = vld [vmem:[%s35143_s27 + $0x1308] sm:$0xff]  }
 0x26d   : > { %30145 = vmatpush3.bf16.msra.mxu0 %v33231_v41  ;;  %v33274_v41 = vld [vmem:[%s35143_s27 + $0x1388] sm:$0xff]  }
 0x26e   : > { %30167 = vmatpush3.bf16.msra.mxu1 %v33233_v43  ;;  %30146 = vmatprep.subr.bf16.mxu0 %v33234_v44  ;;  %v33275_v43 = vld [vmem:[%s35143_s27 + $0x1340] sm:$0xff]  }
 0x26f   : > { %30168 = vmatprep.subr.bf16.mxu1 %v33236_v45  ;;  %v33277_v44 = vld [vmem:[%s35143_s27 + $0x13c0] sm:$0xff]   ;;  %v232_v45 = vld [vmem:[%s35138_s23 + $0x98] sm:$0xff] }
 0x271   : > { %30147 = vmatpush3.bf16.msra.mxu0 %v33235_v46  ;;  %v33276_v46 = vld [vmem:[%s35143_s27 + $0x1300] sm:$0xff]  }
 0x272   : > { %30169 = vmatpush3.bf16.msra.mxu1 %v33237_v47  ;;  %30148 = vmatprep.subr.bf16.mxu0 %v33238_v48  ;;  %v691_v47 = vrot.slane %v232_v45, %v35187_v42  ;;  %v684_v48 = vcombine.high %v232_v45, %v232_v45 }
 0x273   : > { %30170 = vmatprep.subr.bf16.mxu1 %v33240_v50 }
 0x274   : > { %v699_v50 = vcombine.high %v691_v47, %v691_v47 }
 0x275   : > { %30149 = vmatpush3.bf16.msra.mxu0 %v33239_v49  ;;  %v33278_v49 = vld [vmem:[%s35143_s27 + $0x1380] sm:$0xff]  }
 0x276   : > { %30171 = vmatpush3.bf16.msra.mxu1 %v33241_v51  ;;  %30150 = vmatprep.subr.bf16.mxu0 %v33242_v52  ;;  %v33279_v51 = vld [vmem:[%s35143_s27 + $0x1478] sm:$0xff]   ;;  %v698_v52 = vrot.slane %v684_v48, %v35187_v42  ;;  %v1981_v54 = vpack.c.bf16 %v699_v50, %v699_v50 }
 0x277   : > { %30172 = vmatprep.subr.bf16.mxu1 %v33244_v53  ;;  %v33282_v53 = vld [vmem:[%s35143_s27 + $0x14f8] sm:$0xff]  }
 0x278   : > { %v700_v56 = vcombine.high %v698_v52, %v698_v52  ;;  %v33314_v48 = vld [vmem:[%s35143_s27 + $0x1538] sm:$0xff]  }
 0x279   : > { %30151 = vmatpush3.bf16.msra.mxu0 %v33243_v55  ;;  %v1980_v55 = vpack.c.bf16 %v691_v47, %v691_v47  ;;  %v33316_v50 = vld [vmem:[%s35143_s27 + $0x15b8] sm:$0xff]  }
 0x27a   : > { %30173 = vmatpush3.bf16.msra.mxu1 %v33245_v58  ;;  %30180 = vmatprep.subr.bf16.mxu0 %v33246_v60  ;;  %v1982_v58 = vpack.c.bf16 %v698_v52, %v698_v52  ;;  %v1983_v60 = vpack.c.bf16 %v700_v56, %v700_v56  ;;  %v33317_v52 = vld [vmem:[%s35143_s27 + $0x1570] sm:$0xff]  }
 0x27b   : > { %30202 = vmatprep.subr.bf16.mxu1 %v33249_v62  ;;  %v33286_v62 = vld [vmem:[%s35143_s27 + $0x14f0] sm:$0xff]  }
 0x27c   : > { %v29888_v8 = vpop.f32.mrf.mxu0  ;;  %22488 = vmatmul.mubr.bf16.vlgmr.msra.gmra.mxu0 %v1976_v0  ;;  %v33318_v56 = vld [vmem:[%s35143_s27 + $0x1530] sm:$0xff]  }
 0x27d   : > { %v29910_v9 = vpop.f32.mrf.mxu1  ;;  %30181 = vmatpush3.bf16.msra.mxu0 %v33248_v2  ;;  %22528 = vmatmul.mubr.bf16.vlgmr.msra.gmra.mxu1 %v1978_v3  ;;  %v33287_v2 = vld [vmem:[%s35143_s27 + $0x14b0] sm:$0xff]  }
 0x27e   : > { %v29889_v12 = vpop.f32.mrf.mxu0  ;;  %30203 = vmatpush3.bf16.msra.mxu1 %v33250_v4  ;;  %30182 = vmatprep.subr.bf16.mxu0 %v33251_v6 }
 0x27f   : > { %v29911_v13 = vpop.f32.mrf.mxu1  ;;  %v29890_v15 = vadd.f32 %v29889_v12, %v29888_v8  ;;  %30204 = vmatprep.subr.bf16.mxu1 %v33253_v7  ;;  %22567 = vmatprep.mubr.bf16.mxu0 %v1981_v54  ;;  %v33290_v8 = vld [vmem:[%s35143_s27 + $0x14e8] sm:$0xff]  }
 0x280   : > { %v29912_v16 = vadd.f32 %v29911_v13, %v29910_v9  ;;  %v29891_v18 = vpop.f32.mrf.mxu0  ;;  %22607 = vmatprep.mubr.bf16.mxu1 %v1983_v60  ;;  %v33291_v13 = vld [vmem:[%s35143_s27 + $0x14a8] sm:$0xff]  }
 0x281   : > { %v29913_v20 = vpop.f32.mrf.mxu1  ;;  %v22010_v21 = vadd.f32 %v29890_v15, %v35830_v35  ;;  %30183 = vmatpush3.bf16.msra.mxu0 %v33252_v10  ;;  %v33269_v35 = vld [vmem:[%s35143_s27 + $0x13d0] sm:$0xff]   ;;  %v33289_v10 = vld [vmem:[%s35143_s27 + $0x1428] sm:$0xff]   ;;  %v33292_v15 = vld [vmem:[%s35143_s27 + $0x1460] sm:$0xff]  }
 0x282   : > { %v29892_v23 = vpop.f32.mrf.mxu0  ;;  %30205 = vmatpush3.bf16.msra.mxu1 %v33254_v11  ;;  %30184 = vmatprep.subr.bf16.mxu0 %v33255_v14  ;;  %v33294_v18 = vld [vmem:[%s35143_s27 + $0x14e0] sm:$0xff]   ;;  %v33321_v60 = vld [vmem:[%s35143_s27 + $0x1568] sm:$0xff]  }
 0x283   : > { %v29914_v25 = vpop.f32.mrf.mxu1  ;;  %v35868_v26 = vadd.f32 %v29912_v16, %v22010_v21  ;;  %30206 = vmatprep.subr.bf16.mxu1 %v33257_v17  ;;  %v33295_v20 = vld [vmem:[%s35143_s27 + $0x14a0] sm:$0xff]   ;;  %v33296_v21 = vld [vmem:[%s35143_s27 + $0x1458] sm:$0xff]  }
 0x284   : > { %v33297_v23 = vld [vmem:[%s35143_s27 + $0x1418] sm:$0xff]   ;;  %v33300_v25 = vld [vmem:[%s35143_s27 + $0x1450] sm:$0xff]  }
 0x285   : > { %30185 = vmatpush3.bf16.msra.mxu0 %v33256_v19  ;;  %v33293_v19 = vld [vmem:[%s35143_s27 + $0x1420] sm:$0xff]  }
 0x286   : > { %30207 = vmatpush3.bf16.msra.mxu1 %v33258_v22  ;;  %30186 = vmatprep.subr.bf16.mxu0 %v33259_v24  ;;  %v33298_v22 = vld [vmem:[%s35143_s27 + $0x14d8] sm:$0xff]  }
 0x287   : > { %30208 = vmatprep.subr.bf16.mxu1 %v33261_v27  ;;  %v33299_v24 = vld [vmem:[%s35143_s27 + $0x1498] sm:$0xff]   ;;  %v33301_v27 = vld [vmem:[%s35143_s27 + $0x1410] sm:$0xff]  }
 0x289   : > { %30187 = vmatpush3.bf16.msra.mxu0 %v33260_v28  ;;  %v33303_v28 = vld [vmem:[%s35143_s27 + $0x1490] sm:$0xff]  }
 0x28a   : > { %30209 = vmatpush3.bf16.msra.mxu1 %v33262_v29  ;;  %30188 = vmatprep.subr.bf16.mxu0 %v33263_v30  ;;  %v33304_v29 = vld [vmem:[%s35143_s27 + $0x1448] sm:$0xff]  }
 0x28b   : > { %30210 = vmatprep.subr.bf16.mxu1 %v33265_v31  ;;  %v33306_v30 = vld [vmem:[%s35143_s27 + $0x14c8] sm:$0xff]  }
 0x28c   : > { %v33305_v31 = vld [vmem:[%s35143_s27 + $0x1408] sm:$0xff]  }
 0x28d   : > { %30189 = vmatpush3.bf16.msra.mxu0 %v33264_v32  ;;  %v33307_v32 = vld [vmem:[%s35143_s27 + $0x1488] sm:$0xff]  }
 0x28e   : > { %30211 = vmatpush3.bf16.msra.mxu1 %v33266_v33  ;;  %30190 = vmatprep.subr.bf16.mxu0 %v33267_v34  ;;  %v33308_v33 = vld [vmem:[%s35143_s27 + $0x1440] sm:$0xff]  }
 0x28f   : > { %30212 = vmatprep.subr.bf16.mxu1 %v33269_v35  ;;  %v33310_v34 = vld [vmem:[%s35143_s27 + $0x14c0] sm:$0xff]  }
 0x290   : > { %v233_v35 = vld [vmem:[%s35138_s23 + $0xa0] sm:$0xff] }
 0x291   : > { %30191 = vmatpush3.bf16.msra.mxu0 %v33268_v36  ;;  %v33309_v36 = vld [vmem:[%s35143_s27 + $0x1400] sm:$0xff]  }
 0x292   : > { %30213 = vmatpush3.bf16.msra.mxu1 %v33270_v37  ;;  %30192 = vmatprep.subr.bf16.mxu0 %v33271_v38  ;;  %v708_v37 = vrot.slane %v233_v35, %v35187_v42  ;;  %v701_v38 = vcombine.high %v233_v35, %v233_v35 }
 0x293   : > { %30214 = vmatprep.subr.bf16.mxu1 %v33273_v39  ;;  %v33311_v39 = vld [vmem:[%s35143_s27 + $0x1480] sm:$0xff]  }
 0x295   : > { %30193 = vmatpush3.bf16.msra.mxu0 %v33272_v40  ;;  %v716_v40 = vcombine.high %v708_v37, %v708_v37 }
 0x296   : > { %30215 = vmatpush3.bf16.msra.mxu1 %v33274_v41  ;;  %30194 = vmatprep.subr.bf16.mxu0 %v33275_v43  ;;  %v33312_v41 = vld [vmem:[%s35143_s27 + $0x1578] sm:$0xff]   ;;  %v715_v43 = vrot.slane %v701_v38, %v35187_v42 }
 0x297   : > { %30216 = vmatprep.subr.bf16.mxu1 %v33277_v44  ;;  %v33315_v44 = vld [vmem:[%s35143_s27 + $0x15f8] sm:$0xff]   ;;  %v1985_v45 = vpack.c.bf16 %v716_v40, %v716_v40 }
 0x298   : > { %v717_v47 = vcombine.high %v715_v43, %v715_v43 }
 0x299   : > { %30195 = vmatpush3.bf16.msra.mxu0 %v33276_v46  ;;  %v1984_v46 = vpack.c.bf16 %v708_v37, %v708_v37 }
 0x29a   : > { %30217 = vmatpush3.bf16.msra.mxu1 %v33278_v49  ;;  %30224 = vmatprep.subr.bf16.mxu0 %v33279_v51  ;;  %v1986_v49 = vpack.c.bf16 %v715_v43, %v715_v43  ;;  %v1987_v51 = vpack.c.bf16 %v717_v47, %v717_v47 }
 0x29b   : > { %30246 = vmatprep.subr.bf16.mxu1 %v33282_v53  ;;  %v33319_v53 = vld [vmem:[%s35143_s27 + $0x15f0] sm:$0xff]  }
 0x29c   : > { %v29932_v63 = vpop.f32.mrf.mxu0  ;;  %22568 = vmatmul.mubr.bf16.vlgmr.msra.gmra.mxu0 %v1980_v55 }
 0x29d   : > { %v29954_v0 = vpop.f32.mrf.mxu1  ;;  %30225 = vmatpush3.bf16.msra.mxu0 %v33281_v57  ;;  %22608 = vmatmul.mubr.bf16.vlgmr.msra.gmra.mxu1 %v1982_v58  ;;  %v33320_v57 = vld [vmem:[%s35143_s27 + $0x15b0] sm:$0xff]  }
 0x29e   : > { %v29933_v3 = vpop.f32.mrf.mxu0  ;;  %30247 = vmatpush3.bf16.msra.mxu1 %v33283_v59  ;;  %30226 = vmatprep.subr.bf16.mxu0 %v33284_v61 }
 0x29f   : > { %v29955_v4 = vpop.f32.mrf.mxu1  ;;  %v29934_v6 = vadd.f32 %v29933_v3, %v29932_v63  ;;  %30248 = vmatprep.subr.bf16.mxu1 %v33286_v62  ;;  %22647 = vmatprep.mubr.bf16.mxu0 %v1985_v45  ;;  %v33323_v63 = vld [vmem:[%s35143_s27 + $0x15e8] sm:$0xff]  }
 0x2a0   : > { %v29956_v7 = vadd.f32 %v29955_v4, %v29954_v0  ;;  %v29935_v9 = vpop.f32.mrf.mxu0  ;;  %22687 = vmatprep.mubr.bf16.mxu1 %v1987_v51  ;;  %v33324_v4 = vld [vmem:[%s35143_s27 + $0x15a8] sm:$0xff]  }
 0x2a1   : > { %v29957_v11 = vpop.f32.mrf.mxu1  ;;  %v22090_v12 = vadd.f32 %v29934_v6, %v35868_v26  ;;  %30227 = vmatpush3.bf16.msra.mxu0 %v33285_v1  ;;  %v33302_v26 = vld [vmem:[%s35143_s27 + $0x14d0] sm:$0xff]   ;;  %v33322_v1 = vld [vmem:[%s35143_s27 + $0x1528] sm:$0xff]   ;;  %v33325_v6 = vld [vmem:[%s35143_s27 + $0x1560] sm:$0xff]  }
 0x2a2   : > { %v29936_v14 = vpop.f32.mrf.mxu0  ;;  %30249 = vmatpush3.bf16.msra.mxu1 %v33287_v2  ;;  %30228 = vmatprep.subr.bf16.mxu0 %v33288_v5  ;;  %v33327_v9 = vld [vmem:[%s35143_s27 + $0x15e0] sm:$0xff]  }
 0x2a3   : > { %v29958_v16 = vpop.f32.mrf.mxu1  ;;  %v35906_v17 = vadd.f32 %v29956_v7, %v22090_v12  ;;  %30250 = vmatprep.subr.bf16.mxu1 %v33290_v8  ;;  %v33328_v11 = vld [vmem:[%s35143_s27 + $0x15a0] sm:$0xff]   ;;  %v33329_v12 = vld [vmem:[%s35143_s27 + $0x1558] sm:$0xff]  }
 0x2a4   : > { %v33330_v14 = vld [vmem:[%s35143_s27 + $0x1518] sm:$0xff]   ;;  %v33333_v16 = vld [vmem:[%s35143_s27 + $0x1550] sm:$0xff]  }
 0x2a5   : > { %30229 = vmatpush3.bf16.msra.mxu0 %v33289_v10  ;;  %v33326_v10 = vld [vmem:[%s35143_s27 + $0x1520] sm:$0xff]  }
 0x2a6   : > { %30251 = vmatpush3.bf16.msra.mxu1 %v33291_v13  ;;  %30230 = vmatprep.subr.bf16.mxu0 %v33292_v15  ;;  %v33331_v13 = vld [vmem:[%s35143_s27 + $0x15d8] sm:$0xff]  }
 0x2a7   : > { %30252 = vmatprep.subr.bf16.mxu1 %v33294_v18  ;;  %v33332_v15 = vld [vmem:[%s35143_s27 + $0x1598] sm:$0xff]   ;;  %v33334_v18 = vld [vmem:[%s35143_s27 + $0x1510] sm:$0xff]  }
 0x2a9   : > { %30231 = vmatpush3.bf16.msra.mxu0 %v33293_v19  ;;  %v33336_v19 = vld [vmem:[%s35143_s27 + $0x1590] sm:$0xff]  }
 0x2aa   : > { %30253 = vmatpush3.bf16.msra.mxu1 %v33295_v20  ;;  %30232 = vmatprep.subr.bf16.mxu0 %v33296_v21  ;;  %v33337_v20 = vld [vmem:[%s35143_s27 + $0x1548] sm:$0xff]  }
 0x2ab   : > { %30254 = vmatprep.subr.bf16.mxu1 %v33298_v22  ;;  %v33339_v21 = vld [vmem:[%s35143_s27 + $0x15c8] sm:$0xff]  }
 0x2ac   : > { %v33338_v22 = vld [vmem:[%s35143_s27 + $0x1508] sm:$0xff]  }
 0x2ad   : > { %30233 = vmatpush3.bf16.msra.mxu0 %v33297_v23  ;;  %v33340_v23 = vld [vmem:[%s35143_s27 + $0x1588] sm:$0xff]  }
 0x2ae   : > { %30255 = vmatpush3.bf16.msra.mxu1 %v33299_v24  ;;  %30234 = vmatprep.subr.bf16.mxu0 %v33300_v25  ;;  %v33341_v24 = vld [vmem:[%s35143_s27 + $0x1540] sm:$0xff]  }
 0x2af   : > { %30256 = vmatprep.subr.bf16.mxu1 %v33302_v26  ;;  %v33342_v25 = vld [vmem:[%s35143_s27 + $0x1500] sm:$0xff]  }
 0x2b0   : > { %v33343_v26 = vld [vmem:[%s35143_s27 + $0x15c0] sm:$0xff]  }
 0x2b1   : > { %30235 = vmatpush3.bf16.msra.mxu0 %v33301_v27  ;;  %v234_v27 = vld [vmem:[%s35138_s23 + $0xa8] sm:$0xff] }
 0x2b2   : > { %30257 = vmatpush3.bf16.msra.mxu1 %v33303_v28  ;;  %30236 = vmatprep.subr.bf16.mxu0 %v33304_v29  ;;  %v725_v28 = vrot.slane %v234_v27, %v35187_v42  ;;  %v33344_v29 = vld [vmem:[%s35143_s27 + $0x1580] sm:$0xff]  }
 0x2b3   : > { %30258 = vmatprep.subr.bf16.mxu1 %v33306_v30  ;;  %v718_v30 = vcombine.high %v234_v27, %v234_v27  ;;  %v33381_v27 = vld [vmem:[%s35143_s27 + $0x17f8] sm:$0xff]  }
 0x2b4   : > { %v1988_v35 = vpack.c.bf16 %v725_v28, %v725_v28 }
 0x2b5   : > { %30237 = vmatpush3.bf16.msra.mxu0 %v33305_v31  ;;  %v33345_v31 = vld [vmem:[%s35143_s27 + $0x1678] sm:$0xff]  }
 0x2b6   : > { %30259 = vmatpush3.bf16.msra.mxu1 %v33307_v32  ;;  %30238 = vmatprep.subr.bf16.mxu0 %v33308_v33  ;;  %v733_v32 = vcombine.high %v725_v28, %v725_v28  ;;  %v732_v33 = vrot.slane %v718_v30, %v35187_v42  ;;  %v33382_v30 = vld [vmem:[%s35143_s27 + $0x17b8] sm:$0xff]  }
 0x2b7   : > { %30260 = vmatprep.subr.bf16.mxu1 %v33310_v34  ;;  %v33347_v34 = vld [vmem:[%s35143_s27 + $0x1638] sm:$0xff]  }
 0x2b8   : > { %v1989_v37 = vpack.c.bf16 %v733_v32, %v733_v32  ;;  %v734_v38 = vcombine.high %v732_v33, %v732_v33  ;;  %v1990_v40 = vpack.c.bf16 %v732_v33, %v732_v33  ;;  %v33383_v32 = vld [vmem:[%s35143_s27 + $0x1770] sm:$0xff]  }
 0x2b9   : > { %30239 = vmatpush3.bf16.msra.mxu0 %v33309_v36  ;;  %v33348_v36 = vld [vmem:[%s35143_s27 + $0x16f8] sm:$0xff]  }
 0x2ba   : > { %30261 = vmatpush3.bf16.msra.mxu1 %v33311_v39  ;;  %30268 = vmatprep.subr.bf16.mxu0 %v33312_v41  ;;  %v33349_v39 = vld [vmem:[%s35143_s27 + $0x16b8] sm:$0xff]   ;;  %v33350_v41 = vld [vmem:[%s35143_s27 + $0x1670] sm:$0xff]   ;;  %v1991_v43 = vpack.c.bf16 %v734_v38, %v734_v38 }
 0x2bb   : > { %30290 = vmatprep.subr.bf16.mxu1 %v33315_v44  ;;  %v33351_v44 = vld [vmem:[%s35143_s27 + $0x1630] sm:$0xff]  }
 0x2bc   : > { %v29976_v54 = vpop.f32.mrf.mxu0  ;;  %22648 = vmatmul.mubr.bf16.vlgmr.msra.gmra.mxu0 %v1984_v46  ;;  %v33352_v46 = vld [vmem:[%s35143_s27 + $0x16f0] sm:$0xff]  }
 0x2bd   : > { %v29998_v55 = vpop.f32.mrf.mxu1  ;;  %30269 = vmatpush3.bf16.msra.mxu0 %v33314_v48  ;;  %22688 = vmatmul.mubr.bf16.vlgmr.msra.gmra.mxu1 %v1986_v49  ;;  %v33353_v48 = vld [vmem:[%s35143_s27 + $0x16b0] sm:$0xff]  }
 0x2be   : > { %v29977_v58 = vpop.f32.mrf.mxu0  ;;  %30291 = vmatpush3.bf16.msra.mxu1 %v33316_v50  ;;  %30270 = vmatprep.subr.bf16.mxu0 %v33317_v52  ;;  %v33354_v50 = vld [vmem:[%s35143_s27 + $0x1668] sm:$0xff]   ;;  %v33386_v38 = vld [vmem:[%s35143_s27 + $0x17b0] sm:$0xff]  }
 0x2bf   : > { %v29999_v59 = vpop.f32.mrf.mxu1  ;;  %v29978_v61 = vadd.f32 %v29977_v58, %v29976_v54  ;;  %30292 = vmatprep.subr.bf16.mxu1 %v33319_v53  ;;  %22727 = vmatprep.mubr.bf16.mxu0 %v1989_v37  ;;  %v33355_v53 = vld [vmem:[%s35143_s27 + $0x1628] sm:$0xff]  }
 0x2c0   : > { %v30000_v62 = vadd.f32 %v29999_v59, %v29998_v55  ;;  %v29979_v0 = vpop.f32.mrf.mxu0  ;;  %22767 = vmatprep.mubr.bf16.mxu1 %v1991_v43  ;;  %v33357_v58 = vld [vmem:[%s35143_s27 + $0x16a8] sm:$0xff]  }
 0x2c1   : > { %v30001_v2 = vpop.f32.mrf.mxu1  ;;  %v22170_v3 = vadd.f32 %v29978_v61, %v35906_v17  ;;  %30271 = vmatpush3.bf16.msra.mxu0 %v33318_v56  ;;  %v33335_v17 = vld [vmem:[%s35143_s27 + $0x15d0] sm:$0xff]   ;;  %v33356_v56 = vld [vmem:[%s35143_s27 + $0x16e8] sm:$0xff]   ;;  %v33358_v61 = vld [vmem:[%s35143_s27 + $0x1660] sm:$0xff]  }
 0x2c2   : > { %v29980_v5 = vpop.f32.mrf.mxu0  ;;  %30293 = vmatpush3.bf16.msra.mxu1 %v33320_v57  ;;  %30272 = vmatprep.subr.bf16.mxu0 %v33321_v60  ;;  %v33361_v2 = vld [vmem:[%s35143_s27 + $0x16a0] sm:$0xff]  }
 0x2c3   : > { %v30002_v7 = vpop.f32.mrf.mxu1  ;;  %v35944_v8 = vadd.f32 %v30000_v62, %v22170_v3  ;;  %30294 = vmatprep.subr.bf16.mxu1 %v33323_v63  ;;  %v33359_v63 = vld [vmem:[%s35143_s27 + $0x1620] sm:$0xff]   ;;  %v33362_v3 = vld [vmem:[%s35143_s27 + $0x1658] sm:$0xff]  }
 0x2c4   : > { %v33364_v5 = vld [vmem:[%s35143_s27 + $0x16d8] sm:$0xff]   ;;  %v33366_v7 = vld [vmem:[%s35143_s27 + $0x1650] sm:$0xff]  }
 0x2c5   : > { %30273 = vmatpush3.bf16.msra.mxu0 %v33322_v1  ;;  %v33360_v1 = vld [vmem:[%s35143_s27 + $0x16e0] sm:$0xff]  }
 0x2c6   : > { %30295 = vmatpush3.bf16.msra.mxu1 %v33324_v4  ;;  %30274 = vmatprep.subr.bf16.mxu0 %v33325_v6  ;;  %v33363_v4 = vld [vmem:[%s35143_s27 + $0x1618] sm:$0xff]  }
 0x2c7   : > { %30296 = vmatprep.subr.bf16.mxu1 %v33327_v9  ;;  %v33365_v6 = vld [vmem:[%s35143_s27 + $0x1698] sm:$0xff]   ;;  %v33368_v9 = vld [vmem:[%s35143_s27 + $0x16d0] sm:$0xff]  }
 0x2c9   : > { %30275 = vmatpush3.bf16.msra.mxu0 %v33326_v10  ;;  %v33369_v10 = vld [vmem:[%s35143_s27 + $0x1690] sm:$0xff]  }
 0x2ca   : > { %30297 = vmatpush3.bf16.msra.mxu1 %v33328_v11  ;;  %30276 = vmatprep.subr.bf16.mxu0 %v33329_v12  ;;  %v33370_v11 = vld [vmem:[%s35143_s27 + $0x1648] sm:$0xff]  }
 0x2cb   : > { %30298 = vmatprep.subr.bf16.mxu1 %v33331_v13  ;;  %v33371_v12 = vld [vmem:[%s35143_s27 + $0x1608] sm:$0xff]  }
 0x2cc   : > { %v33372_v13 = vld [vmem:[%s35143_s27 + $0x16c8] sm:$0xff]  }
 0x2cd   : > { %30277 = vmatpush3.bf16.msra.mxu0 %v33330_v14  ;;  %v33373_v14 = vld [vmem:[%s35143_s27 + $0x1688] sm:$0xff]  }
 0x2ce   : > { %30299 = vmatpush3.bf16.msra.mxu1 %v33332_v15  ;;  %30278 = vmatprep.subr.bf16.mxu0 %v33333_v16  ;;  %v33374_v15 = vld [vmem:[%s35143_s27 + $0x1640] sm:$0xff]  }
 0x2cf   : > { %30300 = vmatprep.subr.bf16.mxu1 %v33335_v17  ;;  %v33375_v16 = vld [vmem:[%s35143_s27 + $0x1600] sm:$0xff]  }
 0x2d0   : > { %v33376_v17 = vld [vmem:[%s35143_s27 + $0x16c0] sm:$0xff]  }
 0x2d1   : > { %30279 = vmatpush3.bf16.msra.mxu0 %v33334_v18  ;;  %v235_v18 = vld [vmem:[%s35138_s23 + $0xb0] sm:$0xff] }
 0x2d2   : > { %30301 = vmatpush3.bf16.msra.mxu1 %v33336_v19  ;;  %30280 = vmatprep.subr.bf16.mxu0 %v33337_v20  ;;  %v742_v19 = vrot.slane %v235_v18, %v35187_v42  ;;  %v33377_v20 = vld [vmem:[%s35143_s27 + $0x1680] sm:$0xff]  }
 0x2d3   : > { %30302 = vmatprep.subr.bf16.mxu1 %v33339_v21  ;;  %v735_v21 = vcombine.high %v235_v18, %v235_v18  ;;  %v33414_v18 = vld [vmem:[%s35143_s27 + $0x18f8] sm:$0xff]  }
 0x2d5   : > { %30281 = vmatpush3.bf16.msra.mxu0 %v33338_v22  ;;  %v33378_v22 = vld [vmem:[%s35143_s27 + $0x1778] sm:$0xff]  }
 0x2d6   : > { %30303 = vmatpush3.bf16.msra.mxu1 %v33340_v23  ;;  %30282 = vmatprep.subr.bf16.mxu0 %v33341_v24  ;;  %v750_v23 = vcombine.high %v742_v19, %v742_v19  ;;  %v749_v24 = vrot.slane %v735_v21, %v35187_v42  ;;  %v33415_v21 = vld [vmem:[%s35143_s27 + $0x18b8] sm:$0xff]  }
 0x2d7   : > { %30304 = vmatprep.subr.bf16.mxu1 %v33343_v26  ;;  %v1992_v26 = vpack.c.bf16 %v742_v19, %v742_v19 }
 0x2d8   : > { %v1993_v28 = vpack.c.bf16 %v750_v23, %v750_v23  ;;  %v33416_v23 = vld [vmem:[%s35143_s27 + $0x1870] sm:$0xff]  }
 0x2d9   : > { %30283 = vmatpush3.bf16.msra.mxu0 %v33342_v25  ;;  %v33380_v25 = vld [vmem:[%s35143_s27 + $0x1738] sm:$0xff]  }
 0x2da   : > { %30305 = vmatpush3.bf16.msra.mxu1 %v33344_v29  ;;  %30312 = vmatprep.subr.bf16.mxu0 %v33345_v31  ;;  %v751_v29 = vcombine.high %v749_v24, %v749_v24  ;;  %v1994_v31 = vpack.c.bf16 %v749_v24, %v749_v24 }
 0x2db   : > { %30334 = vmatprep.subr.bf16.mxu1 %v33348_v36  ;;  %v33385_v36 = vld [vmem:[%s35143_s27 + $0x17f0] sm:$0xff]  }
 0x2dc   : > { %v30020_v45 = vpop.f32.mrf.mxu0  ;;  %22728 = vmatmul.mubr.bf16.vlgmr.msra.gmra.mxu0 %v1988_v35  ;;  %v1995_v33 = vpack.c.bf16 %v751_v29, %v751_v29  ;;  %v33419_v29 = vld [vmem:[%s35143_s27 + $0x18b0] sm:$0xff]  }
 0x2dd   : > { %30313 = vmatpush3.bf16.msra.mxu0 %v33347_v34  ;;  %v30042_v47 = vpop.f32.mrf.mxu1  ;;  %22768 = vmatmul.mubr.bf16.vlgmr.msra.gmra.mxu1 %v1990_v40  ;;  %v33384_v34 = vld [vmem:[%s35143_s27 + $0x1730] sm:$0xff]   ;;  %v33387_v40 = vld [vmem:[%s35143_s27 + $0x1768] sm:$0xff]  }
 0x2de   : > { %v30021_v49 = vpop.f32.mrf.mxu0  ;;  %30314 = vmatprep.subr.bf16.mxu0 %v33350_v41  ;;  %30335 = vmatpush3.bf16.msra.mxu1 %v33349_v39 }
 0x2df   : > { %v30022_v51 = vadd.f32 %v30021_v49, %v30020_v45  ;;  %v30043_v52 = vpop.f32.mrf.mxu1  ;;  %30336 = vmatprep.subr.bf16.mxu1 %v33352_v46  ;;  %22807 = vmatprep.mubr.bf16.mxu0 %v1993_v28  ;;  %v33390_v49 = vld [vmem:[%s35143_s27 + $0x17a8] sm:$0xff]  }
 0x2e0   : > { %v30023_v54 = vpop.f32.mrf.mxu0  ;;  %v30044_v55 = vadd.f32 %v30043_v52, %v30042_v47  ;;  %22847 = vmatprep.mubr.bf16.mxu1 %v1995_v33  ;;  %v33389_v47 = vld [vmem:[%s35143_s27 + $0x17e8] sm:$0xff]   ;;  %v33391_v52 = vld [vmem:[%s35143_s27 + $0x1760] sm:$0xff]  }
 0x2e1   : > { %v22250_v57 = vadd.f32 %v30022_v51, %v35944_v8  ;;  %30315 = vmatpush3.bf16.msra.mxu0 %v33351_v44  ;;  %v30045_v59 = vpop.f32.mrf.mxu1  ;;  %v33367_v8 = vld [vmem:[%s35143_s27 + $0x1610] sm:$0xff]   ;;  %v33388_v44 = vld [vmem:[%s35143_s27 + $0x1728] sm:$0xff]   ;;  %v33392_v54 = vld [vmem:[%s35143_s27 + $0x1720] sm:$0xff]  }
 0x2e2   : > { %v30024_v60 = vpop.f32.mrf.mxu0  ;;  %30316 = vmatprep.subr.bf16.mxu0 %v33354_v50  ;;  %30337 = vmatpush3.bf16.msra.mxu1 %v33353_v48  ;;  %v33396_v59 = vld [vmem:[%s35143_s27 + $0x1718] sm:$0xff]  }
 0x2e3   : > { %v35982_v62 = vadd.f32 %v30044_v55, %v22250_v57  ;;  %v30046_v0 = vpop.f32.mrf.mxu1  ;;  %30338 = vmatprep.subr.bf16.mxu1 %v33356_v56  ;;  %v33393_v56 = vld [vmem:[%s35143_s27 + $0x17e0] sm:$0xff]   ;;  %v33397_v60 = vld [vmem:[%s35143_s27 + $0x17d8] sm:$0xff]  }
 0x2e4   : > { %v33394_v57 = vld [vmem:[%s35143_s27 + $0x17a0] sm:$0xff]   ;;  %v33401_v0 = vld [vmem:[%s35143_s27 + $0x17d0] sm:$0xff]  }
 0x2e5   : > { %30317 = vmatpush3.bf16.msra.mxu0 %v33355_v53 }
 0x2e6   : > { %30318 = vmatprep.subr.bf16.mxu0 %v33358_v61  ;;  %30339 = vmatpush3.bf16.msra.mxu1 %v33357_v58  ;;  %v33395_v58 = vld [vmem:[%s35143_s27 + $0x1758] sm:$0xff]  }
 0x2e7   : > { %30340 = vmatprep.subr.bf16.mxu1 %v33360_v1  ;;  %v33398_v61 = vld [vmem:[%s35143_s27 + $0x1798] sm:$0xff]   ;;  %v33402_v1 = vld [vmem:[%s35143_s27 + $0x1790] sm:$0xff]  }
 0x2e9   : > { %30319 = vmatpush3.bf16.msra.mxu0 %v33359_v63  ;;  %v33400_v63 = vld [vmem:[%s35143_s27 + $0x1710] sm:$0xff]  }
 0x2ea   : > { %30320 = vmatprep.subr.bf16.mxu0 %v33362_v3  ;;  %30341 = vmatpush3.bf16.msra.mxu1 %v33361_v2  ;;  %v33403_v2 = vld [vmem:[%s35143_s27 + $0x1748] sm:$0xff]  }
 0x2eb   : > { %30342 = vmatprep.subr.bf16.mxu1 %v33364_v5  ;;  %v33404_v3 = vld [vmem:[%s35143_s27 + $0x1708] sm:$0xff]  }
 0x2ec   : > { %v33406_v5 = vld [vmem:[%s35143_s27 + $0x1788] sm:$0xff]  }
 0x2ed   : > { %30321 = vmatpush3.bf16.msra.mxu0 %v33363_v4  ;;  %v33405_v4 = vld [vmem:[%s35143_s27 + $0x17c8] sm:$0xff]  }
 0x2ee   : > { %30322 = vmatprep.subr.bf16.mxu0 %v33366_v7  ;;  %30343 = vmatpush3.bf16.msra.mxu1 %v33365_v6  ;;  %v33407_v6 = vld [vmem:[%s35143_s27 + $0x1740] sm:$0xff]  }
 0x2ef   : > { %30344 = vmatprep.subr.bf16.mxu1 %v33368_v9  ;;  %v33408_v7 = vld [vmem:[%s35143_s27 + $0x1700] sm:$0xff]   ;;  %v236_v9 = vld [vmem:[%s35138_s23 + $0xb8] sm:$0xff] }
 0x2f1   : > { %30323 = vmatpush3.bf16.msra.mxu0 %v33367_v8  ;;  %v33409_v8 = vld [vmem:[%s35143_s27 + $0x17c0] sm:$0xff]  }
 0x2f2   : > { %30324 = vmatprep.subr.bf16.mxu0 %v33370_v11  ;;  %30345 = vmatpush3.bf16.msra.mxu1 %v33369_v10  ;;  %v759_v10 = vrot.slane %v236_v9, %v35187_v42  ;;  %v33410_v11 = vld [vmem:[%s35143_s27 + $0x1780] sm:$0xff]  }
 0x2f3   : > { %30346 = vmatprep.subr.bf16.mxu1 %v33372_v13  ;;  %v33411_v13 = vld [vmem:[%s35143_s27 + $0x1878] sm:$0xff]  }
 0x2f5   : > { %30325 = vmatpush3.bf16.msra.mxu0 %v33371_v12  ;;  %v752_v12 = vcombine.high %v236_v9, %v236_v9  ;;  %v33447_v9 = vld [vmem:[%s35143_s27 + $0x19f8] sm:$0xff]  }
 0x2f6   : > { %30326 = vmatprep.subr.bf16.mxu0 %v33374_v15  ;;  %30347 = vmatpush3.bf16.msra.mxu1 %v33373_v14  ;;  %v767_v14 = vcombine.high %v759_v10, %v759_v10 }
 0x2f7   : > { %30348 = vmatprep.subr.bf16.mxu1 %v33376_v17  ;;  %v766_v15 = vrot.slane %v752_v12, %v35187_v42  ;;  %v1996_v17 = vpack.c.bf16 %v759_v10, %v759_v10  ;;  %v33448_v12 = vld [vmem:[%s35143_s27 + $0x19b8] sm:$0xff]  }
 0x2f8   : > { %v1997_v19 = vpack.c.bf16 %v767_v14, %v767_v14  ;;  %v33449_v14 = vld [vmem:[%s35143_s27 + $0x1970] sm:$0xff]  }
 0x2f9   : > { %30327 = vmatpush3.bf16.msra.mxu0 %v33375_v16  ;;  %v33413_v16 = vld [vmem:[%s35143_s27 + $0x1838] sm:$0xff]  }
 0x2fa   : > { %30356 = vmatprep.subr.bf16.mxu0 %v33378_v22  ;;  %30349 = vmatpush3.bf16.msra.mxu1 %v33377_v20  ;;  %v768_v20 = vcombine.high %v766_v15, %v766_v15  ;;  %v1998_v22 = vpack.c.bf16 %v766_v15, %v766_v15 }
 0x2fb   : > { %30378 = vmatprep.subr.bf16.mxu1 %v33381_v27  ;;  %v33418_v27 = vld [vmem:[%s35143_s27 + $0x18f0] sm:$0xff]  }
 0x2fc   : > { %v30064_v35 = vpop.f32.mrf.mxu0  ;;  %22808 = vmatmul.mubr.bf16.vlgmr.msra.gmra.mxu0 %v1992_v26  ;;  %v1999_v24 = vpack.c.bf16 %v768_v20, %v768_v20 }
 0x2fd   : > { %30357 = vmatpush3.bf16.msra.mxu0 %v33380_v25  ;;  %v30086_v37 = vpop.f32.mrf.mxu1  ;;  %22848 = vmatmul.mubr.bf16.vlgmr.msra.gmra.mxu1 %v1994_v31  ;;  %v33417_v25 = vld [vmem:[%s35143_s27 + $0x1830] sm:$0xff]   ;;  %v33420_v31 = vld [vmem:[%s35143_s27 + $0x1868] sm:$0xff]  }
 0x2fe   : > { %v30065_v39 = vpop.f32.mrf.mxu0  ;;  %30358 = vmatprep.subr.bf16.mxu0 %v33383_v32  ;;  %30379 = vmatpush3.bf16.msra.mxu1 %v33382_v30 }
 0x2ff   : > { %v30066_v41 = vadd.f32 %v30065_v39, %v30064_v35  ;;  %v30087_v43 = vpop.f32.mrf.mxu1  ;;  %30380 = vmatprep.subr.bf16.mxu1 %v33385_v36  ;;  %22887 = vmatprep.mubr.bf16.mxu0 %v1997_v19  ;;  %v33423_v39 = vld [vmem:[%s35143_s27 + $0x18a8] sm:$0xff]   ;;  %v33451_v19 = vld [vmem:[%s35143_s27 + $0x19f0] sm:$0xff]  }
 0x300   : > { %v30067_v45 = vpop.f32.mrf.mxu0  ;;  %v30088_v46 = vadd.f32 %v30087_v43, %v30086_v37  ;;  %22927 = vmatprep.mubr.bf16.mxu1 %v1999_v24  ;;  %v33422_v37 = vld [vmem:[%s35143_s27 + $0x18e8] sm:$0xff]   ;;  %v33424_v43 = vld [vmem:[%s35143_s27 + $0x1860] sm:$0xff]  }
 0x301   : > { %v22330_v48 = vadd.f32 %v30066_v41, %v35982_v62  ;;  %30359 = vmatpush3.bf16.msra.mxu0 %v33384_v34  ;;  %v30089_v50 = vpop.f32.mrf.mxu1  ;;  %v33399_v62 = vld [vmem:[%s35143_s27 + $0x1750] sm:$0xff]   ;;  %v33421_v34 = vld [vmem:[%s35143_s27 + $0x1828] sm:$0xff]   ;;  %v33425_v45 = vld [vmem:[%s35143_s27 + $0x1820] sm:$0xff]  }
 0x302   : > { %v30068_v51 = vpop.f32.mrf.mxu0  ;;  %30360 = vmatprep.subr.bf16.mxu0 %v33387_v40  ;;  %30381 = vmatpush3.bf16.msra.mxu1 %v33386_v38  ;;  %v33429_v50 = vld [vmem:[%s35143_s27 + $0x1818] sm:$0xff]   ;;  %v33453_v24 = vld [vmem:[%s35143_s27 + $0x1968] sm:$0xff]  }
 0x303   : > { %v36020_v53 = vadd.f32 %v30088_v46, %v22330_v48  ;;  %v30090_v55 = vpop.f32.mrf.mxu1  ;;  %30382 = vmatprep.subr.bf16.mxu1 %v33389_v47  ;;  %v33426_v47 = vld [vmem:[%s35143_s27 + $0x18e0] sm:$0xff]   ;;  %v33430_v51 = vld [vmem:[%s35143_s27 + $0x18d8] sm:$0xff]  }
 0x304   : > { %v33427_v48 = vld [vmem:[%s35143_s27 + $0x18a0] sm:$0xff]   ;;  %v33434_v55 = vld [vmem:[%s35143_s27 + $0x18d0] sm:$0xff]  }
 0x305   : > { %30361 = vmatpush3.bf16.msra.mxu0 %v33388_v44 }
 0x306   : > { %30362 = vmatprep.subr.bf16.mxu0 %v33391_v52  ;;  %30383 = vmatpush3.bf16.msra.mxu1 %v33390_v49  ;;  %v33428_v49 = vld [vmem:[%s35143_s27 + $0x1858] sm:$0xff]  }
 0x307   : > { %30384 = vmatprep.subr.bf16.mxu1 %v33393_v56  ;;  %v33431_v52 = vld [vmem:[%s35143_s27 + $0x1898] sm:$0xff]   ;;  %v33435_v56 = vld [vmem:[%s35143_s27 + $0x1890] sm:$0xff]  }
 0x309   : > { %30363 = vmatpush3.bf16.msra.mxu0 %v33392_v54  ;;  %v33433_v54 = vld [vmem:[%s35143_s27 + $0x1810] sm:$0xff]  }
 0x30a   : > { %30364 = vmatprep.subr.bf16.mxu0 %v33395_v58  ;;  %30385 = vmatpush3.bf16.msra.mxu1 %v33394_v57  ;;  %v33436_v57 = vld [vmem:[%s35143_s27 + $0x1848] sm:$0xff]  }
 0x30b   : > { %30386 = vmatprep.subr.bf16.mxu1 %v33397_v60  ;;  %v33437_v58 = vld [vmem:[%s35143_s27 + $0x1808] sm:$0xff]  }
 0x30c   : > { %v33439_v60 = vld [vmem:[%s35143_s27 + $0x1888] sm:$0xff]  }
 0x30d   : > { %30365 = vmatpush3.bf16.msra.mxu0 %v33396_v59  ;;  %v33438_v59 = vld [vmem:[%s35143_s27 + $0x18c8] sm:$0xff]  }
 0x30e   : > { %30366 = vmatprep.subr.bf16.mxu0 %v33399_v62  ;;  %30387 = vmatpush3.bf16.msra.mxu1 %v33398_v61  ;;  %v33440_v61 = vld [vmem:[%s35143_s27 + $0x1840] sm:$0xff]  }
 0x30f   : > { %30388 = vmatprep.subr.bf16.mxu1 %v33401_v0  ;;  %v33441_v62 = vld [vmem:[%s35143_s27 + $0x1800] sm:$0xff]  }
 0x310   : > { %v237_v0 = vld [vmem:[%s35138_s23 + $0xc0] sm:$0xff] }
 0x311   : > { %30367 = vmatpush3.bf16.msra.mxu0 %v33400_v63  ;;  %v33442_v63 = vld [vmem:[%s35143_s27 + $0x18c0] sm:$0xff]  }
 0x312   : > { %30368 = vmatprep.subr.bf16.mxu0 %v33403_v2  ;;  %30389 = vmatpush3.bf16.msra.mxu1 %v33402_v1  ;;  %v776_v1 = vrot.slane %v237_v0, %v35187_v42  ;;  %v33443_v2 = vld [vmem:[%s35143_s27 + $0x1880] sm:$0xff]  }
 0x313   : > { %30390 = vmatprep.subr.bf16.mxu1 %v33405_v4  ;;  %v33444_v4 = vld [vmem:[%s35143_s27 + $0x1978] sm:$0xff]  }
 0x315   : > { %30369 = vmatpush3.bf16.msra.mxu0 %v33404_v3  ;;  %v769_v3 = vcombine.high %v237_v0, %v237_v0  ;;  %v33480_v0 = vld [vmem:[%s35143_s27 + $0x1af8] sm:$0xff]  }
 0x316   : > { %30370 = vmatprep.subr.bf16.mxu0 %v33407_v6  ;;  %30391 = vmatpush3.bf16.msra.mxu1 %v33406_v5  ;;  %v784_v5 = vcombine.high %v776_v1, %v776_v1 }
 0x317   : > { %30392 = vmatprep.subr.bf16.mxu1 %v33409_v8  ;;  %v783_v6 = vrot.slane %v769_v3, %v35187_v42  ;;  %v2000_v8 = vpack.c.bf16 %v776_v1, %v776_v1  ;;  %v33481_v3 = vld [vmem:[%s35143_s27 + $0x1ab8] sm:$0xff]  }
 0x318   : > { %v2001_v10 = vpack.c.bf16 %v784_v5, %v784_v5  ;;  %v33482_v5 = vld [vmem:[%s35143_s27 + $0x1a70] sm:$0xff]  }
 0x319   : > { %30371 = vmatpush3.bf16.msra.mxu0 %v33408_v7  ;;  %v33446_v7 = vld [vmem:[%s35143_s27 + $0x1938] sm:$0xff]  }
 0x31a   : > { %30400 = vmatprep.subr.bf16.mxu0 %v33411_v13  ;;  %30393 = vmatpush3.bf16.msra.mxu1 %v33410_v11  ;;  %v785_v11 = vcombine.high %v783_v6, %v783_v6  ;;  %v2002_v13 = vpack.c.bf16 %v783_v6, %v783_v6 }
 0x31b   : > { %30422 = vmatprep.subr.bf16.mxu1 %v33414_v18 }
 0x31c   : > { %v30108_v26 = vpop.f32.mrf.mxu0  ;;  %22888 = vmatmul.mubr.bf16.vlgmr.msra.gmra.mxu0 %v1996_v17  ;;  %v33450_v17 = vld [vmem:[%s35143_s27 + $0x1930] sm:$0xff]  }
 0x31d   : > { %30401 = vmatpush3.bf16.msra.mxu0 %v33413_v16  ;;  %v30130_v28 = vpop.f32.mrf.mxu1  ;;  %22928 = vmatmul.mubr.bf16.vlgmr.msra.gmra.mxu1 %v1998_v22  ;;  %v2003_v16 = vpack.c.bf16 %v785_v11, %v785_v11 }
 0x31e   : > { %v30109_v30 = vpop.f32.mrf.mxu0  ;;  %30402 = vmatprep.subr.bf16.mxu0 %v33416_v23  ;;  %30423 = vmatpush3.bf16.msra.mxu1 %v33415_v21  ;;  %v33452_v21 = vld [vmem:[%s35143_s27 + $0x19b0] sm:$0xff]  }
 0x31f   : > { %v30110_v32 = vadd.f32 %v30109_v30, %v30108_v26  ;;  %v30131_v33 = vpop.f32.mrf.mxu1  ;;  %30424 = vmatprep.subr.bf16.mxu1 %v33418_v27  ;;  %22967 = vmatprep.mubr.bf16.mxu0 %v2001_v10  ;;  %v33454_v27 = vld [vmem:[%s35143_s27 + $0x1928] sm:$0xff]   ;;  %v33484_v10 = vld [vmem:[%s35143_s27 + $0x1af0] sm:$0xff]  }
 0x320   : > { %v30111_v35 = vpop.f32.mrf.mxu0  ;;  %v30132_v36 = vadd.f32 %v30131_v33, %v30130_v28  ;;  %23007 = vmatprep.mubr.bf16.mxu1 %v2003_v16 }
 0x321   : > { %v22410_v38 = vadd.f32 %v30110_v32, %v36020_v53  ;;  %30403 = vmatpush3.bf16.msra.mxu0 %v33417_v25  ;;  %v30133_v40 = vpop.f32.mrf.mxu1  ;;  %v33432_v53 = vld [vmem:[%s35143_s27 + $0x1850] sm:$0xff]   ;;  %v33456_v32 = vld [vmem:[%s35143_s27 + $0x19a8] sm:$0xff]  }
 0x322   : > { %v30112_v41 = vpop.f32.mrf.mxu0  ;;  %30404 = vmatprep.subr.bf16.mxu0 %v33420_v31  ;;  %30425 = vmatpush3.bf16.msra.mxu1 %v33419_v29  ;;  %v33455_v29 = vld [vmem:[%s35143_s27 + $0x19e8] sm:$0xff]   ;;  %v33462_v40 = vld [vmem:[%s35143_s27 + $0x1918] sm:$0xff]  }
 0x323   : > { %v36058_v44 = vadd.f32 %v30132_v36, %v22410_v38  ;;  %v30134_v46 = vpop.f32.mrf.mxu1  ;;  %30426 = vmatprep.subr.bf16.mxu1 %v33422_v37  ;;  %v33458_v36 = vld [vmem:[%s35143_s27 + $0x1920] sm:$0xff]   ;;  %v33463_v41 = vld [vmem:[%s35143_s27 + $0x19d8] sm:$0xff]  }
 0x324   : > { %v33459_v37 = vld [vmem:[%s35143_s27 + $0x19e0] sm:$0xff]   ;;  %v33467_v46 = vld [vmem:[%s35143_s27 + $0x19d0] sm:$0xff]  }
 0x325   : > { %30405 = vmatpush3.bf16.msra.mxu0 %v33421_v34  ;;  %v33457_v34 = vld [vmem:[%s35143_s27 + $0x1960] sm:$0xff]  }
 0x326   : > { %30406 = vmatprep.subr.bf16.mxu0 %v33424_v43  ;;  %30427 = vmatpush3.bf16.msra.mxu1 %v33423_v39  ;;  %v33460_v38 = vld [vmem:[%s35143_s27 + $0x19a0] sm:$0xff]   ;;  %v33461_v39 = vld [vmem:[%s35143_s27 + $0x1958] sm:$0xff]  }
 0x327   : > { %30428 = vmatprep.subr.bf16.mxu1 %v33426_v47  ;;  %v33464_v43 = vld [vmem:[%s35143_s27 + $0x1998] sm:$0xff]   ;;  %v33468_v47 = vld [vmem:[%s35143_s27 + $0x1990] sm:$0xff]  }
 0x329   : > { %30407 = vmatpush3.bf16.msra.mxu0 %v33425_v45  ;;  %v33466_v45 = vld [vmem:[%s35143_s27 + $0x1910] sm:$0xff]  }
 0x32a   : > { %30408 = vmatprep.subr.bf16.mxu0 %v33428_v49  ;;  %30429 = vmatpush3.bf16.msra.mxu1 %v33427_v48  ;;  %v33469_v48 = vld [vmem:[%s35143_s27 + $0x1948] sm:$0xff]  }
 0x32b   : > { %30430 = vmatprep.subr.bf16.mxu1 %v33430_v51  ;;  %v33470_v49 = vld [vmem:[%s35143_s27 + $0x1908] sm:$0xff]  }
 0x32c   : > { %v33472_v51 = vld [vmem:[%s35143_s27 + $0x1988] sm:$0xff]  }
 0x32d   : > { %30409 = vmatpush3.bf16.msra.mxu0 %v33429_v50  ;;  %v33471_v50 = vld [vmem:[%s35143_s27 + $0x19c8] sm:$0xff]  }
 0x32e   : > { %30410 = vmatprep.subr.bf16.mxu0 %v33432_v53  ;;  %30431 = vmatpush3.bf16.msra.mxu1 %v33431_v52  ;;  %v33473_v52 = vld [vmem:[%s35143_s27 + $0x1940] sm:$0xff]  }
 0x32f   : > { %30432 = vmatprep.subr.bf16.mxu1 %v33434_v55  ;;  %v33474_v53 = vld [vmem:[%s35143_s27 + $0x1900] sm:$0xff]   ;;  %v238_v55 = vld [vmem:[%s35138_s23 + $0xc8] sm:$0xff] }
 0x331   : > { %30411 = vmatpush3.bf16.msra.mxu0 %v33433_v54  ;;  %v33475_v54 = vld [vmem:[%s35143_s27 + $0x19c0] sm:$0xff]  }
 0x332   : > { %30412 = vmatprep.subr.bf16.mxu0 %v33436_v57  ;;  %30433 = vmatpush3.bf16.msra.mxu1 %v33435_v56  ;;  %v793_v56 = vrot.slane %v238_v55, %v35187_v42  ;;  %v33476_v57 = vld [vmem:[%s35143_s27 + $0x1980] sm:$0xff]  }
 0x333   : > { %30434 = vmatprep.subr.bf16.mxu1 %v33438_v59  ;;  %v33477_v59 = vld [vmem:[%s35143_s27 + $0x1a78] sm:$0xff]  }
 0x335   : > { %30413 = vmatpush3.bf16.msra.mxu0 %v33437_v58  ;;  %v786_v58 = vcombine.high %v238_v55, %v238_v55  ;;  %v33513_v55 = vld [vmem:[%s35143_s27 + $0x1bf8] sm:$0xff]  }
 0x336   : > { %30414 = vmatprep.subr.bf16.mxu0 %v33440_v61  ;;  %30435 = vmatpush3.bf16.msra.mxu1 %v33439_v60  ;;  %v801_v60 = vcombine.high %v793_v56, %v793_v56 }
 0x337   : > { %30436 = vmatprep.subr.bf16.mxu1 %v33442_v63  ;;  %v800_v61 = vrot.slane %v786_v58, %v35187_v42  ;;  %v2004_v63 = vpack.c.bf16 %v793_v56, %v793_v56  ;;  %v33514_v58 = vld [vmem:[%s35143_s27 + $0x1bb8] sm:$0xff]  }
 0x338   : > { %v2005_v1 = vpack.c.bf16 %v801_v60, %v801_v60  ;;  %v33515_v60 = vld [vmem:[%s35143_s27 + $0x1b70] sm:$0xff]  }
 0x339   : > { %30415 = vmatpush3.bf16.msra.mxu0 %v33441_v62  ;;  %v33479_v62 = vld [vmem:[%s35143_s27 + $0x1a38] sm:$0xff]  }
 0x33a   : > { %30444 = vmatprep.subr.bf16.mxu0 %v33444_v4  ;;  %30437 = vmatpush3.bf16.msra.mxu1 %v33443_v2  ;;  %v802_v2 = vcombine.high %v800_v61, %v800_v61  ;;  %v2006_v4 = vpack.c.bf16 %v800_v61, %v800_v61 }
 0x33b   : > { %30466 = vmatprep.subr.bf16.mxu1 %v33447_v9 }
 0x33c   : > { %v30152_v15 = vpop.f32.mrf.mxu0  ;;  %22968 = vmatmul.mubr.bf16.vlgmr.msra.gmra.mxu0 %v2000_v8  ;;  %v33483_v8 = vld [vmem:[%s35143_s27 + $0x1a30] sm:$0xff]  }
 0x33d   : > { %v30174_v18 = vpop.f32.mrf.mxu1  ;;  %30445 = vmatpush3.bf16.msra.mxu0 %v33446_v7  ;;  %23008 = vmatmul.mubr.bf16.vlgmr.msra.gmra.mxu1 %v2002_v13  ;;  %v2007_v7 = vpack.c.bf16 %v802_v2, %v802_v2 }
 0x33e   : > { %v30153_v20 = vpop.f32.mrf.mxu0  ;;  %30446 = vmatprep.subr.bf16.mxu0 %v33449_v14  ;;  %30467 = vmatpush3.bf16.msra.mxu1 %v33448_v12  ;;  %v33485_v12 = vld [vmem:[%s35143_s27 + $0x1ab0] sm:$0xff]  }
 0x33f   : > { %v30154_v22 = vadd.f32 %v30153_v20, %v30152_v15  ;;  %v30175_v23 = vpop.f32.mrf.mxu1  ;;  %30468 = vmatprep.subr.bf16.mxu1 %v33451_v19  ;;  %23047 = vmatprep.mubr.bf16.mxu0 %v2005_v1  ;;  %v33486_v15 = vld [vmem:[%s35143_s27 + $0x1a68] sm:$0xff]   ;;  %v33517_v1 = vld [vmem:[%s35143_s27 + $0x1bf0] sm:$0xff]  }
 0x340   : > { %v30155_v25 = vpop.f32.mrf.mxu0  ;;  %v30176_v26 = vadd.f32 %v30175_v23, %v30174_v18  ;;  %23087 = vmatprep.mubr.bf16.mxu1 %v2007_v7  ;;  %v33487_v18 = vld [vmem:[%s35143_s27 + $0x1a28] sm:$0xff]  }
 0x341   : > { %v22490_v28 = vadd.f32 %v30154_v22, %v36058_v44  ;;  %v30177_v30 = vpop.f32.mrf.mxu1  ;;  %30447 = vmatpush3.bf16.msra.mxu0 %v33450_v17  ;;  %v33465_v44 = vld [vmem:[%s35143_s27 + $0x1950] sm:$0xff]   ;;  %v33488_v20 = vld [vmem:[%s35143_s27 + $0x1ae8] sm:$0xff]   ;;  %v33490_v25 = vld [vmem:[%s35143_s27 + $0x1a60] sm:$0xff]  }
 0x342   : > { %v30156_v31 = vpop.f32.mrf.mxu0  ;;  %30448 = vmatprep.subr.bf16.mxu0 %v33453_v24  ;;  %30469 = vmatpush3.bf16.msra.mxu1 %v33452_v21  ;;  %v33489_v23 = vld [vmem:[%s35143_s27 + $0x1aa8] sm:$0xff]   ;;  %v33494_v30 = vld [vmem:[%s35143_s27 + $0x1a58] sm:$0xff]  }
 0x343   : > { %v36095_v33 = vadd.f32 %v30176_v26, %v22490_v28  ;;  %v30178_v35 = vpop.f32.mrf.mxu1  ;;  %30470 = vmatprep.subr.bf16.mxu1 %v33455_v29  ;;  %v33492_v28 = vld [vmem:[%s35143_s27 + $0x1ae0] sm:$0xff]   ;;  %v33495_v31 = vld [vmem:[%s35143_s27 + $0x1a18] sm:$0xff]  }
 0x344   : > { %v33493_v29 = vld [vmem:[%s35143_s27 + $0x1aa0] sm:$0xff]   ;;  %v33499_v35 = vld [vmem:[%s35143_s27 + $0x1a10] sm:$0xff]  }
 0x345   : > { %30449 = vmatpush3.bf16.msra.mxu0 %v33454_v27  ;;  %v33491_v27 = vld [vmem:[%s35143_s27 + $0x1a20] sm:$0xff]  }
 0x346   : > { %30450 = vmatprep.subr.bf16.mxu0 %v33457_v34  ;;  %30471 = vmatpush3.bf16.msra.mxu1 %v33456_v32  ;;  %v33496_v32 = vld [vmem:[%s35143_s27 + $0x1ad8] sm:$0xff]   ;;  %v33498_v34 = vld [vmem:[%s35143_s27 + $0x1a50] sm:$0xff]  }
 0x347   : > { %30472 = vmatprep.subr.bf16.mxu1 %v33459_v37  ;;  %v33501_v37 = vld [vmem:[%s35143_s27 + $0x1a90] sm:$0xff]  }
 0x349   : > { %30451 = vmatpush3.bf16.msra.mxu0 %v33458_v36  ;;  %v33500_v36 = vld [vmem:[%s35143_s27 + $0x1ad0] sm:$0xff]  }
 0x34a   : > { %30452 = vmatprep.subr.bf16.mxu0 %v33461_v39  ;;  %30473 = vmatpush3.bf16.msra.mxu1 %v33460_v38  ;;  %v33502_v38 = vld [vmem:[%s35143_s27 + $0x1a48] sm:$0xff]  }
 0x34b   : > { %30474 = vmatprep.subr.bf16.mxu1 %v33463_v41  ;;  %v33503_v39 = vld [vmem:[%s35143_s27 + $0x1a08] sm:$0xff]  }
 0x34c   : > { %v33505_v41 = vld [vmem:[%s35143_s27 + $0x1a88] sm:$0xff]  }
 0x34d   : > { %30453 = vmatpush3.bf16.msra.mxu0 %v33462_v40  ;;  %v33504_v40 = vld [vmem:[%s35143_s27 + $0x1ac8] sm:$0xff]  }
 0x34e   : > { %30454 = vmatprep.subr.bf16.mxu0 %v33465_v44  ;;  %30475 = vmatpush3.bf16.msra.mxu1 %v33464_v43  ;;  %v33506_v43 = vld [vmem:[%s35143_s27 + $0x1a40] sm:$0xff]  }
 0x34f   : > { %30476 = vmatprep.subr.bf16.mxu1 %v33467_v46  ;;  %v33507_v44 = vld [vmem:[%s35143_s27 + $0x1a00] sm:$0xff]   ;;  %v239_v46 = vld [vmem:[%s35138_s23 + $0xd0] sm:$0xff] }
 0x351   : > { %30455 = vmatpush3.bf16.msra.mxu0 %v33466_v45  ;;  %v33508_v45 = vld [vmem:[%s35143_s27 + $0x1ac0] sm:$0xff]  }
 0x352   : > { %30456 = vmatprep.subr.bf16.mxu0 %v33469_v48  ;;  %30477 = vmatpush3.bf16.msra.mxu1 %v33468_v47  ;;  %v810_v47 = vrot.slane %v239_v46, %v35187_v42  ;;  %v33509_v48 = vld [vmem:[%s35143_s27 + $0x1a80] sm:$0xff]  }
 0x353   : > { %30478 = vmatprep.subr.bf16.mxu1 %v33471_v50  ;;  %v33510_v50 = vld [vmem:[%s35143_s27 + $0x1b78] sm:$0xff]  }
 0x355   : > { %30457 = vmatpush3.bf16.msra.mxu0 %v33470_v49  ;;  %v803_v49 = vcombine.high %v239_v46, %v239_v46  ;;  %v33546_v46 = vld [vmem:[%s35143_s27 + $0x1cf8] sm:$0xff]  }
 0x356   : > { %30458 = vmatprep.subr.bf16.mxu0 %v33473_v52  ;;  %30479 = vmatpush3.bf16.msra.mxu1 %v33472_v51  ;;  %v818_v51 = vcombine.high %v810_v47, %v810_v47 }
 0x357   : > { %30480 = vmatprep.subr.bf16.mxu1 %v33475_v54  ;;  %v817_v52 = vrot.slane %v803_v49, %v35187_v42  ;;  %v2008_v54 = vpack.c.bf16 %v810_v47, %v810_v47  ;;  %v33547_v49 = vld [vmem:[%s35143_s27 + $0x1cb8] sm:$0xff]  }
 0x358   : > { %v2009_v56 = vpack.c.bf16 %v818_v51, %v818_v51 }
 0x359   : > { %30459 = vmatpush3.bf16.msra.mxu0 %v33474_v53  ;;  %v33512_v53 = vld [vmem:[%s35143_s27 + $0x1b38] sm:$0xff]  }
 0x35a   : > { %30488 = vmatprep.subr.bf16.mxu0 %v33477_v59  ;;  %30481 = vmatpush3.bf16.msra.mxu1 %v33476_v57  ;;  %v819_v57 = vcombine.high %v817_v52, %v817_v52  ;;  %v2010_v59 = vpack.c.bf16 %v817_v52, %v817_v52  ;;  %v33548_v52 = vld [vmem:[%s35143_s27 + $0x1c70] sm:$0xff]  }
 0x35b   : > { %30510 = vmatprep.subr.bf16.mxu1 %v33480_v0 }
 0x35c   : > { %v30196_v6 = vpop.f32.mrf.mxu0  ;;  %23048 = vmatmul.mubr.bf16.vlgmr.msra.gmra.mxu0 %v2004_v63  ;;  %v33516_v63 = vld [vmem:[%s35143_s27 + $0x1b30] sm:$0xff]  }
 0x35d   : > { %v30218_v9 = vpop.f32.mrf.mxu1  ;;  %30489 = vmatpush3.bf16.msra.mxu0 %v33479_v62  ;;  %23088 = vmatmul.mubr.bf16.vlgmr.msra.gmra.mxu1 %v2006_v4  ;;  %v2011_v62 = vpack.c.bf16 %v819_v57, %v819_v57  ;;  %v33550_v57 = vld [vmem:[%s35143_s27 + $0x1cf0] sm:$0xff]  }
 0x35e   : > { %v30197_v11 = vpop.f32.mrf.mxu0  ;;  %30490 = vmatprep.subr.bf16.mxu0 %v33482_v5  ;;  %30511 = vmatpush3.bf16.msra.mxu1 %v33481_v3  ;;  %v33518_v3 = vld [vmem:[%s35143_s27 + $0x1bb0] sm:$0xff]  }
 0x35f   : > { %v30198_v13 = vadd.f32 %v30197_v11, %v30196_v6  ;;  %v30219_v14 = vpop.f32.mrf.mxu1  ;;  %30512 = vmatprep.subr.bf16.mxu1 %v33484_v10  ;;  %23127 = vmatprep.mubr.bf16.mxu0 %v2009_v56  ;;  %v33519_v6 = vld [vmem:[%s35143_s27 + $0x1b68] sm:$0xff]  }
 0x360   : > { %v30199_v16 = vpop.f32.mrf.mxu0  ;;  %v30220_v17 = vadd.f32 %v30219_v14, %v30218_v9  ;;  %23167 = vmatprep.mubr.bf16.mxu1 %v2011_v62  ;;  %v33520_v9 = vld [vmem:[%s35143_s27 + $0x1b28] sm:$0xff]  }
 0x361   : > { %v22570_v19 = vadd.f32 %v30198_v13, %v36095_v33  ;;  %v30221_v21 = vpop.f32.mrf.mxu1  ;;  %30491 = vmatpush3.bf16.msra.mxu0 %v33483_v8  ;;  %v33497_v33 = vld [vmem:[%s35143_s27 + $0x1a98] sm:$0xff]   ;;  %v33521_v11 = vld [vmem:[%s35143_s27 + $0x1be8] sm:$0xff]   ;;  %v33523_v16 = vld [vmem:[%s35143_s27 + $0x1b60] sm:$0xff]  }
 0x362   : > { %v30200_v22 = vpop.f32.mrf.mxu0  ;;  %30492 = vmatprep.subr.bf16.mxu0 %v33486_v15  ;;  %30513 = vmatpush3.bf16.msra.mxu1 %v33485_v12  ;;  %v33522_v14 = vld [vmem:[%s35143_s27 + $0x1ba8] sm:$0xff]   ;;  %v33527_v21 = vld [vmem:[%s35143_s27 + $0x1b58] sm:$0xff]  }
 0x363   : > { %v36133_v24 = vadd.f32 %v30220_v17, %v22570_v19  ;;  %v30222_v26 = vpop.f32.mrf.mxu1  ;;  %30514 = vmatprep.subr.bf16.mxu1 %v33488_v20  ;;  %v33525_v19 = vld [vmem:[%s35143_s27 + $0x1be0] sm:$0xff]   ;;  %v33528_v22 = vld [vmem:[%s35143_s27 + $0x1b18] sm:$0xff]   ;;  %v33552_v62 = vld [vmem:[%s35143_s27 + $0x1c68] sm:$0xff]  }
 0x364   : > { %v33526_v20 = vld [vmem:[%s35143_s27 + $0x1ba0] sm:$0xff]   ;;  %v33532_v26 = vld [vmem:[%s35143_s27 + $0x1b10] sm:$0xff]  }
 0x365   : > { %30493 = vmatpush3.bf16.msra.mxu0 %v33487_v18  ;;  %v33524_v18 = vld [vmem:[%s35143_s27 + $0x1b20] sm:$0xff]  }
 0x366   : > { %30494 = vmatprep.subr.bf16.mxu0 %v33490_v25  ;;  %30515 = vmatpush3.bf16.msra.mxu1 %v33489_v23  ;;  %v33529_v23 = vld [vmem:[%s35143_s27 + $0x1bd8] sm:$0xff]   ;;  %v33531_v25 = vld [vmem:[%s35143_s27 + $0x1b50] sm:$0xff]  }
 0x367   : > { %30516 = vmatprep.subr.bf16.mxu1 %v33492_v28  ;;  %v33534_v28 = vld [vmem:[%s35143_s27 + $0x1b90] sm:$0xff]  }
 0x369   : > { %30495 = vmatpush3.bf16.msra.mxu0 %v33491_v27  ;;  %v33533_v27 = vld [vmem:[%s35143_s27 + $0x1bd0] sm:$0xff]  }
 0x36a   : > { %30496 = vmatprep.subr.bf16.mxu0 %v33494_v30  ;;  %30517 = vmatpush3.bf16.msra.mxu1 %v33493_v29  ;;  %v33535_v29 = vld [vmem:[%s35143_s27 + $0x1b48] sm:$0xff]  }
 0x36b   : > { %30518 = vmatprep.subr.bf16.mxu1 %v33496_v32  ;;  %v33536_v30 = vld [vmem:[%s35143_s27 + $0x1b08] sm:$0xff]  }
 0x36c   : > { %v33538_v32 = vld [vmem:[%s35143_s27 + $0x1b88] sm:$0xff]  }
 0x36d   : > { %30497 = vmatpush3.bf16.msra.mxu0 %v33495_v31  ;;  %v33537_v31 = vld [vmem:[%s35143_s27 + $0x1bc8] sm:$0xff]  }
 0x36e   : > { %30498 = vmatprep.subr.bf16.mxu0 %v33498_v34  ;;  %30519 = vmatpush3.bf16.msra.mxu1 %v33497_v33  ;;  %v33539_v33 = vld [vmem:[%s35143_s27 + $0x1b40] sm:$0xff]  }
 0x36f   : > { %30520 = vmatprep.subr.bf16.mxu1 %v33500_v36  ;;  %v33540_v34 = vld [vmem:[%s35143_s27 + $0x1b00] sm:$0xff]   ;;  %v240_v36 = vld [vmem:[%s35138_s23 + $0xd8] sm:$0xff] }
 0x371   : > { %30499 = vmatpush3.bf16.msra.mxu0 %v33499_v35  ;;  %v33541_v35 = vld [vmem:[%s35143_s27 + $0x1bc0] sm:$0xff]  }
 0x372   : > { %30500 = vmatprep.subr.bf16.mxu0 %v33502_v38  ;;  %30521 = vmatpush3.bf16.msra.mxu1 %v33501_v37  ;;  %v827_v37 = vrot.slane %v240_v36, %v35187_v42  ;;  %v33542_v38 = vld [vmem:[%s35143_s27 + $0x1b80] sm:$0xff]  }
 0x373   : > { %30522 = vmatprep.subr.bf16.mxu1 %v33504_v40  ;;  %v33543_v40 = vld [vmem:[%s35143_s27 + $0x1c78] sm:$0xff]  }
 0x375   : > { %30501 = vmatpush3.bf16.msra.mxu0 %v33503_v39  ;;  %v820_v39 = vcombine.high %v240_v36, %v240_v36  ;;  %v33579_v36 = vld [vmem:[%s35143_s27 + $0x1df8] sm:$0xff]  }
 0x376   : > { %30502 = vmatprep.subr.bf16.mxu0 %v33506_v43  ;;  %30523 = vmatpush3.bf16.msra.mxu1 %v33505_v41  ;;  %v835_v41 = vcombine.high %v827_v37, %v827_v37 }
 0x377   : > { %30524 = vmatprep.subr.bf16.mxu1 %v33508_v45  ;;  %v834_v43 = vrot.slane %v820_v39, %v35187_v42  ;;  %v2012_v45 = vpack.c.bf16 %v827_v37, %v827_v37  ;;  %v33580_v39 = vld [vmem:[%s35143_s27 + $0x1db8] sm:$0xff]  }
 0x378   : > { %v2013_v47 = vpack.c.bf16 %v835_v41, %v835_v41 }
 0x379   : > { %30503 = vmatpush3.bf16.msra.mxu0 %v33507_v44  ;;  %v33545_v44 = vld [vmem:[%s35143_s27 + $0x1c38] sm:$0xff]   ;;  %v2014_v51 = vpack.c.bf16 %v834_v43, %v834_v43 }
 0x37a   : > { %30532 = vmatprep.subr.bf16.mxu0 %v33510_v50  ;;  %30525 = vmatpush3.bf16.msra.mxu1 %v33509_v48  ;;  %v836_v48 = vcombine.high %v834_v43, %v834_v43  ;;  %v33581_v43 = vld [vmem:[%s35143_s27 + $0x1d70] sm:$0xff]  }
 0x37b   : > { %30554 = vmatprep.subr.bf16.mxu1 %v33513_v55 }
 0x37c   : > { %v30240_v61 = vpop.f32.mrf.mxu0  ;;  %23128 = vmatmul.mubr.bf16.vlgmr.msra.gmra.mxu0 %v2008_v54  ;;  %v33549_v54 = vld [vmem:[%s35143_s27 + $0x1c30] sm:$0xff]  }
 0x37d   : > { %v30262_v0 = vpop.f32.mrf.mxu1  ;;  %30533 = vmatpush3.bf16.msra.mxu0 %v33512_v53  ;;  %23168 = vmatmul.mubr.bf16.vlgmr.msra.gmra.mxu1 %v2010_v59  ;;  %v2015_v53 = vpack.c.bf16 %v836_v48, %v836_v48  ;;  %v33551_v59 = vld [vmem:[%s35143_s27 + $0x1cb0] sm:$0xff]  }
 0x37e   : > { %v30241_v2 = vpop.f32.mrf.mxu0  ;;  %30534 = vmatprep.subr.bf16.mxu0 %v33515_v60  ;;  %30555 = vmatpush3.bf16.msra.mxu1 %v33514_v58  ;;  %v33583_v48 = vld [vmem:[%s35143_s27 + $0x1df0] sm:$0xff]  }
 0x37f   : > { %v30242_v4 = vadd.f32 %v30241_v2, %v30240_v61  ;;  %v30263_v5 = vpop.f32.mrf.mxu1  ;;  %30556 = vmatprep.subr.bf16.mxu1 %v33517_v1  ;;  %23207 = vmatprep.mubr.bf16.mxu0 %v2013_v47  ;;  %v33553_v1 = vld [vmem:[%s35143_s27 + $0x1c28] sm:$0xff]  }
 0x380   : > { %v30243_v7 = vpop.f32.mrf.mxu0  ;;  %v30264_v8 = vadd.f32 %v30263_v5, %v30262_v0  ;;  %23247 = vmatprep.mubr.bf16.mxu1 %v2015_v53  ;;  %v33585_v53 = vld [vmem:[%s35143_s27 + $0x1d68] sm:$0xff]  }
 0x381   : > { %v22650_v10 = vadd.f32 %v30242_v4, %v36133_v24  ;;  %v30265_v12 = vpop.f32.mrf.mxu1  ;;  %30535 = vmatpush3.bf16.msra.mxu0 %v33516_v63  ;;  %v33530_v24 = vld [vmem:[%s35143_s27 + $0x1b98] sm:$0xff]   ;;  %v33556_v7 = vld [vmem:[%s35143_s27 + $0x1c60] sm:$0xff]  }
 0x382   : > { %v30244_v13 = vpop.f32.mrf.mxu0  ;;  %30536 = vmatprep.subr.bf16.mxu0 %v33519_v6  ;;  %30557 = vmatpush3.bf16.msra.mxu1 %v33518_v3  ;;  %v33554_v3 = vld [vmem:[%s35143_s27 + $0x1ce8] sm:$0xff]   ;;  %v33560_v12 = vld [vmem:[%s35143_s27 + $0x1c58] sm:$0xff]  }
 0x383   : > { %v36171_v15 = vadd.f32 %v30264_v8, %v22650_v10  ;;  %v30266_v17 = vpop.f32.mrf.mxu1  ;;  %30558 = vmatprep.subr.bf16.mxu1 %v33521_v11  ;;  %v33555_v6 = vld [vmem:[%s35143_s27 + $0x1ca8] sm:$0xff]   ;;  %v33558_v10 = vld [vmem:[%s35143_s27 + $0x1ce0] sm:$0xff]   ;;  %v33561_v13 = vld [vmem:[%s35143_s27 + $0x1c18] sm:$0xff]  }
 0x384   : > { %v33559_v11 = vld [vmem:[%s35143_s27 + $0x1ca0] sm:$0xff]   ;;  %v33565_v17 = vld [vmem:[%s35143_s27 + $0x1c10] sm:$0xff]  }
 0x385   : > { %30537 = vmatpush3.bf16.msra.mxu0 %v33520_v9  ;;  %v33557_v9 = vld [vmem:[%s35143_s27 + $0x1c20] sm:$0xff]  }
 0x386   : > { %30538 = vmatprep.subr.bf16.mxu0 %v33523_v16  ;;  %30559 = vmatpush3.bf16.msra.mxu1 %v33522_v14  ;;  %v33562_v14 = vld [vmem:[%s35143_s27 + $0x1cd8] sm:$0xff]   ;;  %v33564_v16 = vld [vmem:[%s35143_s27 + $0x1c50] sm:$0xff]  }
 0x387   : > { %30560 = vmatprep.subr.bf16.mxu1 %v33525_v19  ;;  %v33567_v19 = vld [vmem:[%s35143_s27 + $0x1c90] sm:$0xff]  }
 0x389   : > { %30539 = vmatpush3.bf16.msra.mxu0 %v33524_v18  ;;  %v33566_v18 = vld [vmem:[%s35143_s27 + $0x1cd0] sm:$0xff]  }
 0x38a   : > { %30540 = vmatprep.subr.bf16.mxu0 %v33527_v21  ;;  %30561 = vmatpush3.bf16.msra.mxu1 %v33526_v20  ;;  %v33568_v20 = vld [vmem:[%s35143_s27 + $0x1c48] sm:$0xff]  }
 0x38b   : > { %30562 = vmatprep.subr.bf16.mxu1 %v33529_v23  ;;  %v33569_v21 = vld [vmem:[%s35143_s27 + $0x1c08] sm:$0xff]  }
 0x38c   : > { %v33571_v23 = vld [vmem:[%s35143_s27 + $0x1c88] sm:$0xff]  }
 0x38d   : > { %30541 = vmatpush3.bf16.msra.mxu0 %v33528_v22  ;;  %v33570_v22 = vld [vmem:[%s35143_s27 + $0x1cc8] sm:$0xff]  }
 0x38e   : > { %30542 = vmatprep.subr.bf16.mxu0 %v33531_v25  ;;  %30563 = vmatpush3.bf16.msra.mxu1 %v33530_v24  ;;  %v33572_v24 = vld [vmem:[%s35143_s27 + $0x1c40] sm:$0xff]  }
 0x38f   : > { %30564 = vmatprep.subr.bf16.mxu1 %v33533_v27  ;;  %v33573_v25 = vld [vmem:[%s35143_s27 + $0x1c00] sm:$0xff]  }
 0x390   : > { %v241_v27 = vld [vmem:[%s35138_s23 + $0xe0] sm:$0xff] }
 0x391   : > { %30543 = vmatpush3.bf16.msra.mxu0 %v33532_v26  ;;  %v33574_v26 = vld [vmem:[%s35143_s27 + $0x1cc0] sm:$0xff]  }
 0x392   : > { %30544 = vmatprep.subr.bf16.mxu0 %v33535_v29  ;;  %30565 = vmatpush3.bf16.msra.mxu1 %v33534_v28  ;;  %v844_v28 = vrot.slane %v241_v27, %v35187_v42  ;;  %v33575_v29 = vld [vmem:[%s35143_s27 + $0x1c80] sm:$0xff]  }
 0x393   : > { %30566 = vmatprep.subr.bf16.mxu1 %v33537_v31  ;;  %v33576_v31 = vld [vmem:[%s35143_s27 + $0x1d78] sm:$0xff]  }
 0x395   : > { %30545 = vmatpush3.bf16.msra.mxu0 %v33536_v30  ;;  %v837_v30 = vcombine.high %v241_v27, %v241_v27  ;;  %v33612_v27 = vld [vmem:[%s35143_s27 + $0x1ef8] sm:$0xff]  }
 0x396   : > { %30546 = vmatprep.subr.bf16.mxu0 %v33539_v33  ;;  %30567 = vmatpush3.bf16.msra.mxu1 %v33538_v32  ;;  %v852_v32 = vcombine.high %v844_v28, %v844_v28 }
 0x397   : > { %30568 = vmatprep.subr.bf16.mxu1 %v33541_v35  ;;  %v851_v33 = vrot.slane %v837_v30, %v35187_v42  ;;  %v2016_v35 = vpack.c.bf16 %v844_v28, %v844_v28  ;;  %v33613_v30 = vld [vmem:[%s35143_s27 + $0x1eb8] sm:$0xff]  }
 0x398   : > { %v2017_v37 = vpack.c.bf16 %v852_v32, %v852_v32 }
 0x399   : > { %30547 = vmatpush3.bf16.msra.mxu0 %v33540_v34  ;;  %v33578_v34 = vld [vmem:[%s35143_s27 + $0x1d38] sm:$0xff]   ;;  %v2018_v41 = vpack.c.bf16 %v851_v33, %v851_v33 }
 0x39a   : > { %30576 = vmatprep.subr.bf16.mxu0 %v33543_v40  ;;  %30569 = vmatpush3.bf16.msra.mxu1 %v33542_v38  ;;  %v853_v38 = vcombine.high %v851_v33, %v851_v33  ;;  %v33614_v33 = vld [vmem:[%s35143_s27 + $0x1e70] sm:$0xff]  }
 0x39b   : > { %30598 = vmatprep.subr.bf16.mxu1 %v33546_v46 }
 0x39c   : > { %v30284_v50 = vpop.f32.mrf.mxu0  ;;  %23208 = vmatmul.mubr.bf16.vlgmr.msra.gmra.mxu0 %v2012_v45  ;;  %v33582_v45 = vld [vmem:[%s35143_s27 + $0x1d30] sm:$0xff]  }
 0x39d   : > { %v30306_v56 = vpop.f32.mrf.mxu1  ;;  %30577 = vmatpush3.bf16.msra.mxu0 %v33545_v44  ;;  %23248 = vmatmul.mubr.bf16.vlgmr.msra.gmra.mxu1 %v2014_v51  ;;  %v2019_v44 = vpack.c.bf16 %v853_v38, %v853_v38  ;;  %v33616_v38 = vld [vmem:[%s35143_s27 + $0x1ef0] sm:$0xff]  }
 0x39e   : > { %v30285_v55 = vpop.f32.mrf.mxu0  ;;  %30578 = vmatprep.subr.bf16.mxu0 %v33548_v52  ;;  %30599 = vmatpush3.bf16.msra.mxu1 %v33547_v49 }
 0x39f   : > { %v30286_v58 = vadd.f32 %v30285_v55, %v30284_v50  ;;  %v30307_v61 = vpop.f32.mrf.mxu1  ;;  %30600 = vmatprep.subr.bf16.mxu1 %v33550_v57  ;;  %23287 = vmatprep.mubr.bf16.mxu0 %v2017_v37  ;;  %v33584_v50 = vld [vmem:[%s35143_s27 + $0x1db0] sm:$0xff]  }
 0x3a0   : > { %v30287_v60 = vpop.f32.mrf.mxu0  ;;  %v30308_v0 = vadd.f32 %v30307_v61, %v30306_v56  ;;  %23327 = vmatprep.mubr.bf16.mxu1 %v2019_v44  ;;  %v33586_v56 = vld [vmem:[%s35143_s27 + $0x1d28] sm:$0xff]  }
 0x3a1   : > { %v22730_v63 = vadd.f32 %v30286_v58, %v36171_v15  ;;  %v30309_v4 = vpop.f32.mrf.mxu1  ;;  %30579 = vmatpush3.bf16.msra.mxu0 %v33549_v54  ;;  %v33563_v15 = vld [vmem:[%s35143_s27 + $0x1c98] sm:$0xff]   ;;  %v33587_v58 = vld [vmem:[%s35143_s27 + $0x1de8] sm:$0xff]  }
 0x3a2   : > { %v30288_v2 = vpop.f32.mrf.mxu0  ;;  %30580 = vmatprep.subr.bf16.mxu0 %v33552_v62  ;;  %30601 = vmatpush3.bf16.msra.mxu1 %v33551_v59  ;;  %v33588_v61 = vld [vmem:[%s35143_s27 + $0x1da8] sm:$0xff]   ;;  %v33589_v62 = vld [vmem:[%s35143_s27 + $0x1d60] sm:$0xff]   ;;  %v33594_v4 = vld [vmem:[%s35143_s27 + $0x1d18] sm:$0xff]  }
 0x3a3   : > { %v36208_v5 = vadd.f32 %v30308_v0, %v22730_v63  ;;  %v30310_v8 = vpop.f32.mrf.mxu1  ;;  %30602 = vmatprep.subr.bf16.mxu1 %v33554_v3  ;;  %v33590_v0 = vld [vmem:[%s35143_s27 + $0x1d20] sm:$0xff]   ;;  %v33593_v3 = vld [vmem:[%s35143_s27 + $0x1d58] sm:$0xff]   ;;  %v33618_v44 = vld [vmem:[%s35143_s27 + $0x1e68] sm:$0xff]  }
 0x3a4   : > { %v33592_v2 = vld [vmem:[%s35143_s27 + $0x1da0] sm:$0xff]   ;;  %v33598_v8 = vld [vmem:[%s35143_s27 + $0x1d10] sm:$0xff]  }
 0x3a5   : > { %30581 = vmatpush3.bf16.msra.mxu0 %v33553_v1  ;;  %v33591_v1 = vld [vmem:[%s35143_s27 + $0x1de0] sm:$0xff]  }
 0x3a6   : > { %30582 = vmatprep.subr.bf16.mxu0 %v33556_v7  ;;  %30603 = vmatpush3.bf16.msra.mxu1 %v33555_v6  ;;  %v33596_v6 = vld [vmem:[%s35143_s27 + $0x1d98] sm:$0xff]   ;;  %v33597_v7 = vld [vmem:[%s35143_s27 + $0x1d50] sm:$0xff]  }
 0x3a7   : > { %30604 = vmatprep.subr.bf16.mxu1 %v33558_v10  ;;  %v33600_v10 = vld [vmem:[%s35143_s27 + $0x1d90] sm:$0xff]  }
 0x3a9   : > { %30583 = vmatpush3.bf16.msra.mxu0 %v33557_v9  ;;  %v33599_v9 = vld [vmem:[%s35143_s27 + $0x1dd0] sm:$0xff]  }
 0x3aa   : > { %30584 = vmatprep.subr.bf16.mxu0 %v33560_v12  ;;  %30605 = vmatpush3.bf16.msra.mxu1 %v33559_v11  ;;  %v33601_v11 = vld [vmem:[%s35143_s27 + $0x1d48] sm:$0xff]  }
 0x3ab   : > { %30606 = vmatprep.subr.bf16.mxu1 %v33562_v14  ;;  %v33602_v12 = vld [vmem:[%s35143_s27 + $0x1d08] sm:$0xff]  }
 0x3ac   : > { %v33604_v14 = vld [vmem:[%s35143_s27 + $0x1d88] sm:$0xff]  }
 0x3ad   : > { %30585 = vmatpush3.bf16.msra.mxu0 %v33561_v13  ;;  %v33603_v13 = vld [vmem:[%s35143_s27 + $0x1dc8] sm:$0xff]  }
 0x3ae   : > { %30586 = vmatprep.subr.bf16.mxu0 %v33564_v16  ;;  %30607 = vmatpush3.bf16.msra.mxu1 %v33563_v15  ;;  %v33605_v15 = vld [vmem:[%s35143_s27 + $0x1d40] sm:$0xff]  }
 0x3af   : > { %30608 = vmatprep.subr.bf16.mxu1 %v33566_v18  ;;  %v33606_v16 = vld [vmem:[%s35143_s27 + $0x1d00] sm:$0xff]   ;;  %v242_v18 = vld [vmem:[%s35138_s23 + $0xe8] sm:$0xff] }
 0x3b1   : > { %30587 = vmatpush3.bf16.msra.mxu0 %v33565_v17  ;;  %v33607_v17 = vld [vmem:[%s35143_s27 + $0x1dc0] sm:$0xff]  }
 0x3b2   : > { %30588 = vmatprep.subr.bf16.mxu0 %v33568_v20  ;;  %30609 = vmatpush3.bf16.msra.mxu1 %v33567_v19  ;;  %v861_v19 = vrot.slane %v242_v18, %v35187_v42  ;;  %v33608_v20 = vld [vmem:[%s35143_s27 + $0x1d80] sm:$0xff]  }
 0x3b3   : > { %30610 = vmatprep.subr.bf16.mxu1 %v33570_v22  ;;  %v33609_v22 = vld [vmem:[%s35143_s27 + $0x1e78] sm:$0xff]  }
 0x3b5   : > { %30589 = vmatpush3.bf16.msra.mxu0 %v33569_v21  ;;  %v854_v21 = vcombine.high %v242_v18, %v242_v18  ;;  %v33645_v18 = vld [vmem:[%s35143_s27 + $0x1ff8] sm:$0xff]  }
 0x3b6   : > { %30590 = vmatprep.subr.bf16.mxu0 %v33572_v24  ;;  %30611 = vmatpush3.bf16.msra.mxu1 %v33571_v23  ;;  %v869_v23 = vcombine.high %v861_v19, %v861_v19 }
 0x3b7   : > { %30612 = vmatprep.subr.bf16.mxu1 %v33574_v26  ;;  %v868_v24 = vrot.slane %v854_v21, %v35187_v42  ;;  %v2020_v26 = vpack.c.bf16 %v861_v19, %v861_v19  ;;  %v33646_v21 = vld [vmem:[%s35143_s27 + $0x1fb8] sm:$0xff]  }
 0x3b8   : > { %v2021_v28 = vpack.c.bf16 %v869_v23, %v869_v23 }
 0x3b9   : > { %30591 = vmatpush3.bf16.msra.mxu0 %v33573_v25  ;;  %v33611_v25 = vld [vmem:[%s35143_s27 + $0x1e38] sm:$0xff]   ;;  %v2022_v32 = vpack.c.bf16 %v868_v24, %v868_v24 }
 0x3ba   : > { %30620 = vmatprep.subr.bf16.mxu0 %v33576_v31  ;;  %30613 = vmatpush3.bf16.msra.mxu1 %v33575_v29  ;;  %v870_v29 = vcombine.high %v868_v24, %v868_v24  ;;  %v33647_v24 = vld [vmem:[%s35143_s27 + $0x1f70] sm:$0xff]  }
 0x3bb   : > { %30642 = vmatprep.subr.bf16.mxu1 %v33579_v36 }
 0x3bc   : > { %v30328_v40 = vpop.f32.mrf.mxu0  ;;  %23288 = vmatmul.mubr.bf16.vlgmr.msra.gmra.mxu0 %v2016_v35  ;;  %v33615_v35 = vld [vmem:[%s35143_s27 + $0x1e30] sm:$0xff]  }
 0x3bd   : > { %v30350_v47 = vpop.f32.mrf.mxu1  ;;  %30621 = vmatpush3.bf16.msra.mxu0 %v33578_v34  ;;  %23328 = vmatmul.mubr.bf16.vlgmr.msra.gmra.mxu1 %v2018_v41  ;;  %v2023_v34 = vpack.c.bf16 %v870_v29, %v870_v29  ;;  %v33649_v29 = vld [vmem:[%s35143_s27 + $0x1ff0] sm:$0xff]  }
 0x3be   : > { %v30329_v46 = vpop.f32.mrf.mxu0  ;;  %30622 = vmatprep.subr.bf16.mxu0 %v33581_v43  ;;  %30643 = vmatpush3.bf16.msra.mxu1 %v33580_v39 }
 0x3bf   : > { %v30330_v49 = vadd.f32 %v30329_v46, %v30328_v40  ;;  %v30351_v52 = vpop.f32.mrf.mxu1  ;;  %30644 = vmatprep.subr.bf16.mxu1 %v33583_v48  ;;  %23367 = vmatprep.mubr.bf16.mxu0 %v2021_v28  ;;  %v33617_v40 = vld [vmem:[%s35143_s27 + $0x1eb0] sm:$0xff]  }
 0x3c0   : > { %v30331_v51 = vpop.f32.mrf.mxu0  ;;  %v30352_v55 = vadd.f32 %v30351_v52, %v30350_v47  ;;  %23407 = vmatprep.mubr.bf16.mxu1 %v2023_v34  ;;  %v33619_v47 = vld [vmem:[%s35143_s27 + $0x1e28] sm:$0xff]  }
 0x3c1   : > { %v22810_v54 = vadd.f32 %v30330_v49, %v36208_v5  ;;  %v30353_v59 = vpop.f32.mrf.mxu1  ;;  %30623 = vmatpush3.bf16.msra.mxu0 %v33582_v45  ;;  %v33595_v5 = vld [vmem:[%s35143_s27 + $0x1dd8] sm:$0xff]   ;;  %v33620_v49 = vld [vmem:[%s35143_s27 + $0x1ee8] sm:$0xff]  }
 0x3c2   : > { %v30332_v57 = vpop.f32.mrf.mxu0  ;;  %30624 = vmatprep.subr.bf16.mxu0 %v33585_v53  ;;  %30645 = vmatpush3.bf16.msra.mxu1 %v33584_v50  ;;  %v33621_v52 = vld [vmem:[%s35143_s27 + $0x1ea8] sm:$0xff]   ;;  %v33622_v53 = vld [vmem:[%s35143_s27 + $0x1e60] sm:$0xff]   ;;  %v33627_v59 = vld [vmem:[%s35143_s27 + $0x1e18] sm:$0xff]  }
 0x3c3   : > { %v36246_v60 = vadd.f32 %v30352_v55, %v22810_v54  ;;  %v30354_v63 = vpop.f32.mrf.mxu1  ;;  %30646 = vmatprep.subr.bf16.mxu1 %v33587_v58  ;;  %v33623_v55 = vld [vmem:[%s35143_s27 + $0x1e20] sm:$0xff]   ;;  %v33626_v58 = vld [vmem:[%s35143_s27 + $0x1e58] sm:$0xff]   ;;  %v33651_v34 = vld [vmem:[%s35143_s27 + $0x1f68] sm:$0xff]  }
 0x3c4   : > { %v33625_v57 = vld [vmem:[%s35143_s27 + $0x1ea0] sm:$0xff]   ;;  %v33631_v63 = vld [vmem:[%s35143_s27 + $0x1e10] sm:$0xff]  }
 0x3c5   : > { %30625 = vmatpush3.bf16.msra.mxu0 %v33586_v56  ;;  %v33624_v56 = vld [vmem:[%s35143_s27 + $0x1ee0] sm:$0xff]  }
 0x3c6   : > { %30626 = vmatprep.subr.bf16.mxu0 %v33589_v62  ;;  %30647 = vmatpush3.bf16.msra.mxu1 %v33588_v61  ;;  %v33629_v61 = vld [vmem:[%s35143_s27 + $0x1e98] sm:$0xff]   ;;  %v33630_v62 = vld [vmem:[%s35143_s27 + $0x1e50] sm:$0xff]  }
 0x3c7   : > { %30648 = vmatprep.subr.bf16.mxu1 %v33591_v1  ;;  %v33633_v1 = vld [vmem:[%s35143_s27 + $0x1e90] sm:$0xff]  }
 0x3c9   : > { %30627 = vmatpush3.bf16.msra.mxu0 %v33590_v0  ;;  %v33632_v0 = vld [vmem:[%s35143_s27 + $0x1ed0] sm:$0xff]  }
 0x3ca   : > { %30628 = vmatprep.subr.bf16.mxu0 %v33593_v3  ;;  %30649 = vmatpush3.bf16.msra.mxu1 %v33592_v2  ;;  %v33634_v2 = vld [vmem:[%s35143_s27 + $0x1e48] sm:$0xff]  }
 0x3cb   : > { %30650 = vmatprep.subr.bf16.mxu1 %v33595_v5  ;;  %v33635_v3 = vld [vmem:[%s35143_s27 + $0x1e08] sm:$0xff]  }
 0x3cc   : > { %v33637_v5 = vld [vmem:[%s35143_s27 + $0x1e88] sm:$0xff]  }
 0x3cd   : > { %30629 = vmatpush3.bf16.msra.mxu0 %v33594_v4  ;;  %v33636_v4 = vld [vmem:[%s35143_s27 + $0x1ec8] sm:$0xff]  }
 0x3ce   : > { %30630 = vmatprep.subr.bf16.mxu0 %v33597_v7  ;;  %30651 = vmatpush3.bf16.msra.mxu1 %v33596_v6  ;;  %v33638_v6 = vld [vmem:[%s35143_s27 + $0x1e40] sm:$0xff]  }
 0x3cf   : > { %30652 = vmatprep.subr.bf16.mxu1 %v33599_v9  ;;  %v33639_v7 = vld [vmem:[%s35143_s27 + $0x1e00] sm:$0xff]   ;;  %v243_v9 = vld [vmem:[%s35138_s23 + $0xf0] sm:$0xff] }
 0x3d1   : > { %30631 = vmatpush3.bf16.msra.mxu0 %v33598_v8  ;;  %v33640_v8 = vld [vmem:[%s35143_s27 + $0x1ec0] sm:$0xff]  }
 0x3d2   : > { %30632 = vmatprep.subr.bf16.mxu0 %v33601_v11  ;;  %30653 = vmatpush3.bf16.msra.mxu1 %v33600_v10  ;;  %v878_v10 = vrot.slane %v243_v9, %v35187_v42  ;;  %v33641_v11 = vld [vmem:[%s35143_s27 + $0x1e80] sm:$0xff]  }
 0x3d3   : > { %30654 = vmatprep.subr.bf16.mxu1 %v33603_v13  ;;  %v33642_v13 = vld [vmem:[%s35143_s27 + $0x1f78] sm:$0xff]  }
 0x3d5   : > { %30633 = vmatpush3.bf16.msra.mxu0 %v33602_v12  ;;  %v871_v12 = vcombine.high %v243_v9, %v243_v9  ;;  %v33678_v9 = vld [vmem:[%s35143_s27 + $0x20f8] sm:$0xff]  }
 0x3d6   : > { %30634 = vmatprep.subr.bf16.mxu0 %v33605_v15  ;;  %30655 = vmatpush3.bf16.msra.mxu1 %v33604_v14  ;;  %v886_v14 = vcombine.high %v878_v10, %v878_v10 }
 0x3d7   : > { %30656 = vmatprep.subr.bf16.mxu1 %v33607_v17  ;;  %v885_v15 = vrot.slane %v871_v12, %v35187_v42  ;;  %v2024_v17 = vpack.c.bf16 %v878_v10, %v878_v10  ;;  %v33679_v12 = vld [vmem:[%s35143_s27 + $0x20b8] sm:$0xff]  }
 0x3d8   : > { %v2025_v19 = vpack.c.bf16 %v886_v14, %v886_v14 }
 0x3d9   : > { %30635 = vmatpush3.bf16.msra.mxu0 %v33606_v16  ;;  %v33644_v16 = vld [vmem:[%s35143_s27 + $0x1f38] sm:$0xff]   ;;  %v2026_v23 = vpack.c.bf16 %v885_v15, %v885_v15 }
 0x3da   : > { %30664 = vmatprep.subr.bf16.mxu0 %v33609_v22  ;;  %30657 = vmatpush3.bf16.msra.mxu1 %v33608_v20  ;;  %v887_v20 = vcombine.high %v885_v15, %v885_v15  ;;  %v33680_v15 = vld [vmem:[%s35143_s27 + $0x2070] sm:$0xff]  }
 0x3db   : > { %30686 = vmatprep.subr.bf16.mxu1 %v33612_v27 }
 0x3dc   : > { %v30372_v31 = vpop.f32.mrf.mxu0  ;;  %23368 = vmatmul.mubr.bf16.vlgmr.msra.gmra.mxu0 %v2020_v26  ;;  %v33648_v26 = vld [vmem:[%s35143_s27 + $0x1f30] sm:$0xff]  }
 0x3dd   : > { %v30394_v37 = vpop.f32.mrf.mxu1  ;;  %30665 = vmatpush3.bf16.msra.mxu0 %v33611_v25  ;;  %23408 = vmatmul.mubr.bf16.vlgmr.msra.gmra.mxu1 %v2022_v32  ;;  %v2027_v25 = vpack.c.bf16 %v887_v20, %v887_v20  ;;  %v33682_v20 = vld [vmem:[%s35143_s27 + $0x20f0] sm:$0xff]  }
 0x3de   : > { %v30373_v36 = vpop.f32.mrf.mxu0  ;;  %30666 = vmatprep.subr.bf16.mxu0 %v33614_v33  ;;  %30687 = vmatpush3.bf16.msra.mxu1 %v33613_v30 }
 0x3df   : > { %v30374_v39 = vadd.f32 %v30373_v36, %v30372_v31  ;;  %v30395_v43 = vpop.f32.mrf.mxu1  ;;  %30688 = vmatprep.subr.bf16.mxu1 %v33616_v38  ;;  %23447 = vmatprep.mubr.bf16.mxu0 %v2025_v19  ;;  %v33650_v31 = vld [vmem:[%s35143_s27 + $0x1fb0] sm:$0xff]  }
 0x3e0   : > { %v30375_v41 = vpop.f32.mrf.mxu0  ;;  %v30396_v46 = vadd.f32 %v30395_v43, %v30394_v37  ;;  %23487 = vmatprep.mubr.bf16.mxu1 %v2027_v25  ;;  %v33652_v37 = vld [vmem:[%s35143_s27 + $0x1f28] sm:$0xff]  }
 0x3e1   : > { %v22890_v45 = vadd.f32 %v30374_v39, %v36246_v60  ;;  %v30397_v50 = vpop.f32.mrf.mxu1  ;;  %30667 = vmatpush3.bf16.msra.mxu0 %v33615_v35  ;;  %v33628_v60 = vld [vmem:[%s35143_s27 + $0x1ed8] sm:$0xff]   ;;  %v33653_v39 = vld [vmem:[%s35143_s27 + $0x1fe8] sm:$0xff]  }
 0x3e2   : > { %v30376_v48 = vpop.f32.mrf.mxu0  ;;  %30668 = vmatprep.subr.bf16.mxu0 %v33618_v44  ;;  %30689 = vmatpush3.bf16.msra.mxu1 %v33617_v40  ;;  %v33654_v43 = vld [vmem:[%s35143_s27 + $0x1fa8] sm:$0xff]   ;;  %v33655_v44 = vld [vmem:[%s35143_s27 + $0x1f60] sm:$0xff]   ;;  %v33660_v50 = vld [vmem:[%s35143_s27 + $0x1f18] sm:$0xff]  }
 0x3e3   : > { %v36284_v51 = vadd.f32 %v30396_v46, %v22890_v45  ;;  %v30398_v54 = vpop.f32.mrf.mxu1  ;;  %30690 = vmatprep.subr.bf16.mxu1 %v33620_v49  ;;  %v33656_v46 = vld [vmem:[%s35143_s27 + $0x1f20] sm:$0xff]   ;;  %v33659_v49 = vld [vmem:[%s35143_s27 + $0x1f58] sm:$0xff]   ;;  %v33684_v25 = vld [vmem:[%s35143_s27 + $0x2068] sm:$0xff]  }
 0x3e4   : > { %v33658_v48 = vld [vmem:[%s35143_s27 + $0x1fa0] sm:$0xff]   ;;  %v33664_v54 = vld [vmem:[%s35143_s27 + $0x1f10] sm:$0xff]  }
 0x3e5   : > { %30669 = vmatpush3.bf16.msra.mxu0 %v33619_v47  ;;  %v33657_v47 = vld [vmem:[%s35143_s27 + $0x1fe0] sm:$0xff]  }
 0x3e6   : > { %30670 = vmatprep.subr.bf16.mxu0 %v33622_v53  ;;  %30691 = vmatpush3.bf16.msra.mxu1 %v33621_v52  ;;  %v33662_v52 = vld [vmem:[%s35143_s27 + $0x1f98] sm:$0xff]   ;;  %v33663_v53 = vld [vmem:[%s35143_s27 + $0x1f50] sm:$0xff]  }
 0x3e7   : > { %30692 = vmatprep.subr.bf16.mxu1 %v33624_v56  ;;  %v33666_v56 = vld [vmem:[%s35143_s27 + $0x1f90] sm:$0xff]  }
 0x3e9   : > { %30671 = vmatpush3.bf16.msra.mxu0 %v33623_v55  ;;  %v33665_v55 = vld [vmem:[%s35143_s27 + $0x1fd0] sm:$0xff]  }
 0x3ea   : > { %30672 = vmatprep.subr.bf16.mxu0 %v33626_v58  ;;  %30693 = vmatpush3.bf16.msra.mxu1 %v33625_v57  ;;  %v33667_v57 = vld [vmem:[%s35143_s27 + $0x1f48] sm:$0xff]  }
 0x3eb   : > { %30694 = vmatprep.subr.bf16.mxu1 %v33628_v60  ;;  %v33668_v58 = vld [vmem:[%s35143_s27 + $0x1f08] sm:$0xff]  }
 0x3ec   : > { %v33670_v60 = vld [vmem:[%s35143_s27 + $0x1f88] sm:$0xff]  }
 0x3ed   : > { %30673 = vmatpush3.bf16.msra.mxu0 %v33627_v59  ;;  %v33669_v59 = vld [vmem:[%s35143_s27 + $0x1fc8] sm:$0xff]  }
 0x3ee   : > { %30674 = vmatprep.subr.bf16.mxu0 %v33630_v62  ;;  %30695 = vmatpush3.bf16.msra.mxu1 %v33629_v61  ;;  %v33671_v61 = vld [vmem:[%s35143_s27 + $0x1f40] sm:$0xff]  }
 0x3ef   : > { %30696 = vmatprep.subr.bf16.mxu1 %v33632_v0  ;;  %v33672_v62 = vld [vmem:[%s35143_s27 + $0x1f00] sm:$0xff]   ;;  %v244_v0 = vld [vmem:[%s35138_s23 + $0xf8] sm:$0xff] }
 0x3f1   : > { %30675 = vmatpush3.bf16.msra.mxu0 %v33631_v63  ;;  %v33673_v63 = vld [vmem:[%s35143_s27 + $0x1fc0] sm:$0xff]  }
 0x3f2   : > { %30676 = vmatprep.subr.bf16.mxu0 %v33634_v2  ;;  %30697 = vmatpush3.bf16.msra.mxu1 %v33633_v1  ;;  %v895_v1 = vrot.slane %v244_v0, %v35187_v42  ;;  %v33674_v2 = vld [vmem:[%s35143_s27 + $0x1f80] sm:$0xff]  }
 0x3f3   : > { %30698 = vmatprep.subr.bf16.mxu1 %v33636_v4  ;;  %v33675_v4 = vld [vmem:[%s35143_s27 + $0x2078] sm:$0xff]  }
 0x3f5   : > { %30677 = vmatpush3.bf16.msra.mxu0 %v33635_v3  ;;  %v888_v3 = vcombine.high %v244_v0, %v244_v0  ;;  %v33711_v0 = vld [vmem:[%s35143_s27 + $0x21f8] sm:$0xff]  }
 0x3f6   : > { %30678 = vmatprep.subr.bf16.mxu0 %v33638_v6  ;;  %30699 = vmatpush3.bf16.msra.mxu1 %v33637_v5  ;;  %v903_v5 = vcombine.high %v895_v1, %v895_v1 }
 0x3f7   : > { %30700 = vmatprep.subr.bf16.mxu1 %v33640_v8  ;;  %v902_v6 = vrot.slane %v888_v3, %v35187_v42  ;;  %v2028_v8 = vpack.c.bf16 %v895_v1, %v895_v1  ;;  %v33712_v3 = vld [vmem:[%s35143_s27 + $0x21b8] sm:$0xff]  }
 0x3f8   : > { %v2029_v10 = vpack.c.bf16 %v903_v5, %v903_v5 }
 0x3f9   : > { %30679 = vmatpush3.bf16.msra.mxu0 %v33639_v7  ;;  %v33677_v7 = vld [vmem:[%s35143_s27 + $0x2038] sm:$0xff]   ;;  %v2030_v14 = vpack.c.bf16 %v902_v6, %v902_v6 }
 0x3fa   : > { %30708 = vmatprep.subr.bf16.mxu0 %v33642_v13  ;;  %30701 = vmatpush3.bf16.msra.mxu1 %v33641_v11  ;;  %v904_v11 = vcombine.high %v902_v6, %v902_v6  ;;  %v33713_v6 = vld [vmem:[%s35143_s27 + $0x2170] sm:$0xff]  }
 0x3fb   : > { %30730 = vmatprep.subr.bf16.mxu1 %v33645_v18 }
 0x3fc   : > { %v30416_v22 = vpop.f32.mrf.mxu0  ;;  %23448 = vmatmul.mubr.bf16.vlgmr.msra.gmra.mxu0 %v2024_v17  ;;  %v33681_v17 = vld [vmem:[%s35143_s27 + $0x2030] sm:$0xff]  }
 0x3fd   : > { %v30438_v28 = vpop.f32.mrf.mxu1  ;;  %30709 = vmatpush3.bf16.msra.mxu0 %v33644_v16  ;;  %23488 = vmatmul.mubr.bf16.vlgmr.msra.gmra.mxu1 %v2026_v23  ;;  %v2031_v16 = vpack.c.bf16 %v904_v11, %v904_v11  ;;  %v33715_v11 = vld [vmem:[%s35143_s27 + $0x21f0] sm:$0xff]  }
 0x3fe   : > { %v30417_v27 = vpop.f32.mrf.mxu0  ;;  %30710 = vmatprep.subr.bf16.mxu0 %v33647_v24  ;;  %30731 = vmatpush3.bf16.msra.mxu1 %v33646_v21 }
 0x3ff   : > { %v30418_v30 = vadd.f32 %v30417_v27, %v30416_v22  ;;  %v30439_v33 = vpop.f32.mrf.mxu1  ;;  %30732 = vmatprep.subr.bf16.mxu1 %v33649_v29  ;;  %23527 = vmatprep.mubr.bf16.mxu0 %v2029_v10  ;;  %v33683_v22 = vld [vmem:[%s35143_s27 + $0x20b0] sm:$0xff]  }
 0x400   : > { %v30419_v32 = vpop.f32.mrf.mxu0  ;;  %v30440_v36 = vadd.f32 %v30439_v33, %v30438_v28  ;;  %23567 = vmatprep.mubr.bf16.mxu1 %v2031_v16  ;;  %v33685_v28 = vld [vmem:[%s35143_s27 + $0x2028] sm:$0xff]  }
 0x401   : > { %v22970_v35 = vadd.f32 %v30418_v30, %v36284_v51  ;;  %v30441_v40 = vpop.f32.mrf.mxu1  ;;  %30711 = vmatpush3.bf16.msra.mxu0 %v33648_v26  ;;  %v33661_v51 = vld [vmem:[%s35143_s27 + $0x1fd8] sm:$0xff]   ;;  %v33686_v30 = vld [vmem:[%s35143_s27 + $0x20e8] sm:$0xff]  }
 0x402   : > { %v30420_v38 = vpop.f32.mrf.mxu0  ;;  %30712 = vmatprep.subr.bf16.mxu0 %v33651_v34  ;;  %30733 = vmatpush3.bf16.msra.mxu1 %v33650_v31  ;;  %v33687_v33 = vld [vmem:[%s35143_s27 + $0x20a8] sm:$0xff]   ;;  %v33688_v34 = vld [vmem:[%s35143_s27 + $0x2060] sm:$0xff]   ;;  %v33693_v40 = vld [vmem:[%s35143_s27 + $0x2018] sm:$0xff]  }
 0x403   : > { %v36322_v41 = vadd.f32 %v30440_v36, %v22970_v35  ;;  %v30442_v45 = vpop.f32.mrf.mxu1  ;;  %30734 = vmatprep.subr.bf16.mxu1 %v33653_v39  ;;  %v33689_v36 = vld [vmem:[%s35143_s27 + $0x2020] sm:$0xff]   ;;  %v33692_v39 = vld [vmem:[%s35143_s27 + $0x2058] sm:$0xff]   ;;  %v33717_v16 = vld [vmem:[%s35143_s27 + $0x2168] sm:$0xff]  }
 0x404   : > { %v33691_v38 = vld [vmem:[%s35143_s27 + $0x20a0] sm:$0xff]   ;;  %v33697_v45 = vld [vmem:[%s35143_s27 + $0x2010] sm:$0xff]  }
 0x405   : > { %30713 = vmatpush3.bf16.msra.mxu0 %v33652_v37  ;;  %v33690_v37 = vld [vmem:[%s35143_s27 + $0x20e0] sm:$0xff]  }
 0x406   : > { %30714 = vmatprep.subr.bf16.mxu0 %v33655_v44  ;;  %30735 = vmatpush3.bf16.msra.mxu1 %v33654_v43  ;;  %v33695_v43 = vld [vmem:[%s35143_s27 + $0x2098] sm:$0xff]   ;;  %v33696_v44 = vld [vmem:[%s35143_s27 + $0x2050] sm:$0xff]  }
 0x407   : > { %30736 = vmatprep.subr.bf16.mxu1 %v33657_v47  ;;  %v33699_v47 = vld [vmem:[%s35143_s27 + $0x2090] sm:$0xff]  }
 0x409   : > { %30715 = vmatpush3.bf16.msra.mxu0 %v33656_v46  ;;  %v33698_v46 = vld [vmem:[%s35143_s27 + $0x20d0] sm:$0xff]  }
 0x40a   : > { %30716 = vmatprep.subr.bf16.mxu0 %v33659_v49  ;;  %30737 = vmatpush3.bf16.msra.mxu1 %v33658_v48  ;;  %v33700_v48 = vld [vmem:[%s35143_s27 + $0x2048] sm:$0xff]  }
 0x40b   : > { %30738 = vmatprep.subr.bf16.mxu1 %v33661_v51  ;;  %v33701_v49 = vld [vmem:[%s35143_s27 + $0x2008] sm:$0xff]  }
 0x40c   : > { %v33703_v51 = vld [vmem:[%s35143_s27 + $0x2088] sm:$0xff]  }
 0x40d   : > { %30717 = vmatpush3.bf16.msra.mxu0 %v33660_v50  ;;  %v33702_v50 = vld [vmem:[%s35143_s27 + $0x20c8] sm:$0xff]  }
 0x40e   : > { %30718 = vmatprep.subr.bf16.mxu0 %v33663_v53  ;;  %30739 = vmatpush3.bf16.msra.mxu1 %v33662_v52  ;;  %v33704_v52 = vld [vmem:[%s35143_s27 + $0x2040] sm:$0xff]  }
 0x40f   : > { %30740 = vmatprep.subr.bf16.mxu1 %v33665_v55  ;;  %v33705_v53 = vld [vmem:[%s35143_s27 + $0x2000] sm:$0xff]  }
 0x410   : > { %v245_v55 = vld [vmem:[%s35138_s23 + $0x100] sm:$0xff] }
 0x411   : > { %30719 = vmatpush3.bf16.msra.mxu0 %v33664_v54  ;;  %v33706_v54 = vld [vmem:[%s35143_s27 + $0x20c0] sm:$0xff]  }
 0x412   : > { %30720 = vmatprep.subr.bf16.mxu0 %v33667_v57  ;;  %30741 = vmatpush3.bf16.msra.mxu1 %v33666_v56  ;;  %v912_v56 = vrot.slane %v245_v55, %v35187_v42  ;;  %v33707_v57 = vld [vmem:[%s35143_s27 + $0x2080] sm:$0xff]  }
 0x413   : > { %30742 = vmatprep.subr.bf16.mxu1 %v33669_v59  ;;  %v33708_v59 = vld [vmem:[%s35143_s27 + $0x2178] sm:$0xff]  }
 0x415   : > { %30721 = vmatpush3.bf16.msra.mxu0 %v33668_v58  ;;  %v905_v58 = vcombine.high %v245_v55, %v245_v55  ;;  %v33744_v55 = vld [vmem:[%s35143_s27 + $0x22f8] sm:$0xff]  }
 0x416   : > { %30722 = vmatprep.subr.bf16.mxu0 %v33671_v61  ;;  %30743 = vmatpush3.bf16.msra.mxu1 %v33670_v60  ;;  %v920_v60 = vcombine.high %v912_v56, %v912_v56 }
 0x417   : > { %30744 = vmatprep.subr.bf16.mxu1 %v33673_v63  ;;  %v919_v61 = vrot.slane %v905_v58, %v35187_v42  ;;  %v2032_v63 = vpack.c.bf16 %v912_v56, %v912_v56  ;;  %v33745_v58 = vld [vmem:[%s35143_s27 + $0x22b8] sm:$0xff]  }
 0x418   : > { %v2033_v1 = vpack.c.bf16 %v920_v60, %v920_v60 }
 0x419   : > { %30723 = vmatpush3.bf16.msra.mxu0 %v33672_v62  ;;  %v33710_v62 = vld [vmem:[%s35143_s27 + $0x2138] sm:$0xff]   ;;  %v2034_v5 = vpack.c.bf16 %v919_v61, %v919_v61 }
 0x41a   : > { %30752 = vmatprep.subr.bf16.mxu0 %v33675_v4  ;;  %30745 = vmatpush3.bf16.msra.mxu1 %v33674_v2  ;;  %v921_v2 = vcombine.high %v919_v61, %v919_v61  ;;  %v33746_v61 = vld [vmem:[%s35143_s27 + $0x2270] sm:$0xff]  }
 0x41b   : > { %30774 = vmatprep.subr.bf16.mxu1 %v33678_v9 }
 0x41c   : > { %v30460_v13 = vpop.f32.mrf.mxu0  ;;  %23528 = vmatmul.mubr.bf16.vlgmr.msra.gmra.mxu0 %v2028_v8  ;;  %v33714_v8 = vld [vmem:[%s35143_s27 + $0x2130] sm:$0xff]  }
 0x41d   : > { %v30482_v19 = vpop.f32.mrf.mxu1  ;;  %30753 = vmatpush3.bf16.msra.mxu0 %v33677_v7  ;;  %23568 = vmatmul.mubr.bf16.vlgmr.msra.gmra.mxu1 %v2030_v14  ;;  %v2035_v7 = vpack.c.bf16 %v921_v2, %v921_v2  ;;  %v33748_v2 = vld [vmem:[%s35143_s27 + $0x22f0] sm:$0xff]  }
 0x41e   : > { %v30461_v18 = vpop.f32.mrf.mxu0  ;;  %30754 = vmatprep.subr.bf16.mxu0 %v33680_v15  ;;  %30775 = vmatpush3.bf16.msra.mxu1 %v33679_v12 }
 0x41f   : > { %v30462_v21 = vadd.f32 %v30461_v18, %v30460_v13  ;;  %v30483_v24 = vpop.f32.mrf.mxu1  ;;  %30776 = vmatprep.subr.bf16.mxu1 %v33682_v20  ;;  %23607 = vmatprep.mubr.bf16.mxu0 %v2033_v1  ;;  %v33716_v13 = vld [vmem:[%s35143_s27 + $0x21b0] sm:$0xff]  }
 0x420   : > { %v30463_v23 = vpop.f32.mrf.mxu0  ;;  %v30484_v27 = vadd.f32 %v30483_v24, %v30482_v19  ;;  %23647 = vmatprep.mubr.bf16.mxu1 %v2035_v7  ;;  %v33718_v19 = vld [vmem:[%s35143_s27 + $0x2128] sm:$0xff]  }
 0x421   : > { %v23050_v26 = vadd.f32 %v30462_v21, %v36322_v41  ;;  %v30485_v31 = vpop.f32.mrf.mxu1  ;;  %30755 = vmatpush3.bf16.msra.mxu0 %v33681_v17  ;;  %v33694_v41 = vld [vmem:[%s35143_s27 + $0x20d8] sm:$0xff]   ;;  %v33719_v21 = vld [vmem:[%s35143_s27 + $0x21e8] sm:$0xff]  }
 0x422   : > { %v30464_v29 = vpop.f32.mrf.mxu0  ;;  %30756 = vmatprep.subr.bf16.mxu0 %v33684_v25  ;;  %30777 = vmatpush3.bf16.msra.mxu1 %v33683_v22  ;;  %v33720_v24 = vld [vmem:[%s35143_s27 + $0x21a8] sm:$0xff]   ;;  %v33721_v25 = vld [vmem:[%s35143_s27 + $0x2160] sm:$0xff]   ;;  %v33726_v31 = vld [vmem:[%s35143_s27 + $0x2118] sm:$0xff]  }
 0x423   : > { %v36360_v32 = vadd.f32 %v30484_v27, %v23050_v26  ;;  %v30486_v35 = vpop.f32.mrf.mxu1  ;;  %30778 = vmatprep.subr.bf16.mxu1 %v33686_v30  ;;  %v33722_v27 = vld [vmem:[%s35143_s27 + $0x2120] sm:$0xff]   ;;  %v33725_v30 = vld [vmem:[%s35143_s27 + $0x2158] sm:$0xff]   ;;  %v33750_v7 = vld [vmem:[%s35143_s27 + $0x2268] sm:$0xff]  }
 0x424   : > { %v33724_v29 = vld [vmem:[%s35143_s27 + $0x21a0] sm:$0xff]   ;;  %v33730_v35 = vld [vmem:[%s35143_s27 + $0x2110] sm:$0xff]  }
 0x425   : > { %30757 = vmatpush3.bf16.msra.mxu0 %v33685_v28  ;;  %v33723_v28 = vld [vmem:[%s35143_s27 + $0x21e0] sm:$0xff]  }
 0x426   : > { %30758 = vmatprep.subr.bf16.mxu0 %v33688_v34  ;;  %30779 = vmatpush3.bf16.msra.mxu1 %v33687_v33  ;;  %v33728_v33 = vld [vmem:[%s35143_s27 + $0x2198] sm:$0xff]   ;;  %v33729_v34 = vld [vmem:[%s35143_s27 + $0x2150] sm:$0xff]  }
 0x427   : > { %30780 = vmatprep.subr.bf16.mxu1 %v33690_v37  ;;  %v33732_v37 = vld [vmem:[%s35143_s27 + $0x2190] sm:$0xff]  }
 0x429   : > { %30759 = vmatpush3.bf16.msra.mxu0 %v33689_v36  ;;  %v33731_v36 = vld [vmem:[%s35143_s27 + $0x21d0] sm:$0xff]  }
 0x42a   : > { %30760 = vmatprep.subr.bf16.mxu0 %v33692_v39  ;;  %30781 = vmatpush3.bf16.msra.mxu1 %v33691_v38  ;;  %v33733_v38 = vld [vmem:[%s35143_s27 + $0x2148] sm:$0xff]  }
 0x42b   : > { %30782 = vmatprep.subr.bf16.mxu1 %v33694_v41  ;;  %v33734_v39 = vld [vmem:[%s35143_s27 + $0x2108] sm:$0xff]  }
 0x42c   : > { %v33736_v41 = vld [vmem:[%s35143_s27 + $0x2188] sm:$0xff]  }
 0x42d   : > { %30761 = vmatpush3.bf16.msra.mxu0 %v33693_v40  ;;  %v33735_v40 = vld [vmem:[%s35143_s27 + $0x21c8] sm:$0xff]  }
 0x42e   : > { %30762 = vmatprep.subr.bf16.mxu0 %v33696_v44  ;;  %30783 = vmatpush3.bf16.msra.mxu1 %v33695_v43  ;;  %v33737_v43 = vld [vmem:[%s35143_s27 + $0x2140] sm:$0xff]  }
 0x42f   : > { %30784 = vmatprep.subr.bf16.mxu1 %v33698_v46  ;;  %v33738_v44 = vld [vmem:[%s35143_s27 + $0x2100] sm:$0xff]   ;;  %v246_v46 = vld [vmem:[%s35138_s23 + $0x108] sm:$0xff] }
 0x431   : > { %30763 = vmatpush3.bf16.msra.mxu0 %v33697_v45  ;;  %v33739_v45 = vld [vmem:[%s35143_s27 + $0x21c0] sm:$0xff]  }
 0x432   : > { %30764 = vmatprep.subr.bf16.mxu0 %v33700_v48  ;;  %30785 = vmatpush3.bf16.msra.mxu1 %v33699_v47  ;;  %v929_v47 = vrot.slane %v246_v46, %v35187_v42  ;;  %v33740_v48 = vld [vmem:[%s35143_s27 + $0x2180] sm:$0xff]  }
 0x433   : > { %30786 = vmatprep.subr.bf16.mxu1 %v33702_v50  ;;  %v33741_v50 = vld [vmem:[%s35143_s27 + $0x2278] sm:$0xff]  }
 0x435   : > { %30765 = vmatpush3.bf16.msra.mxu0 %v33701_v49  ;;  %v922_v49 = vcombine.high %v246_v46, %v246_v46  ;;  %v33777_v46 = vld [vmem:[%s35143_s27 + $0x23f8] sm:$0xff]  }
 0x436   : > { %30766 = vmatprep.subr.bf16.mxu0 %v33704_v52  ;;  %30787 = vmatpush3.bf16.msra.mxu1 %v33703_v51  ;;  %v937_v51 = vcombine.high %v929_v47, %v929_v47 }
 0x437   : > { %30788 = vmatprep.subr.bf16.mxu1 %v33706_v54  ;;  %v936_v52 = vrot.slane %v922_v49, %v35187_v42  ;;  %v2036_v54 = vpack.c.bf16 %v929_v47, %v929_v47  ;;  %v33778_v49 = vld [vmem:[%s35143_s27 + $0x23b8] sm:$0xff]  }
 0x438   : > { %v2037_v56 = vpack.c.bf16 %v937_v51, %v937_v51 }
 0x439   : > { %30767 = vmatpush3.bf16.msra.mxu0 %v33705_v53  ;;  %v33743_v53 = vld [vmem:[%s35143_s27 + $0x2238] sm:$0xff]   ;;  %v2038_v60 = vpack.c.bf16 %v936_v52, %v936_v52 }
 0x43a   : > { %30796 = vmatprep.subr.bf16.mxu0 %v33708_v59  ;;  %30789 = vmatpush3.bf16.msra.mxu1 %v33707_v57  ;;  %v938_v57 = vcombine.high %v936_v52, %v936_v52  ;;  %v33779_v52 = vld [vmem:[%s35143_s27 + $0x2370] sm:$0xff]  }
 0x43b   : > { %30818 = vmatprep.subr.bf16.mxu1 %v33711_v0 }
 0x43c   : > { %v30504_v4 = vpop.f32.mrf.mxu0  ;;  %23608 = vmatmul.mubr.bf16.vlgmr.msra.gmra.mxu0 %v2032_v63  ;;  %v33747_v63 = vld [vmem:[%s35143_s27 + $0x2230] sm:$0xff]  }
 0x43d   : > { %v30526_v10 = vpop.f32.mrf.mxu1  ;;  %30797 = vmatpush3.bf16.msra.mxu0 %v33710_v62  ;;  %23648 = vmatmul.mubr.bf16.vlgmr.msra.gmra.mxu1 %v2034_v5  ;;  %v2039_v62 = vpack.c.bf16 %v938_v57, %v938_v57  ;;  %v33781_v57 = vld [vmem:[%s35143_s27 + $0x23f0] sm:$0xff]  }
 0x43e   : > { %v30505_v9 = vpop.f32.mrf.mxu0  ;;  %30798 = vmatprep.subr.bf16.mxu0 %v33713_v6  ;;  %30819 = vmatpush3.bf16.msra.mxu1 %v33712_v3 }
 0x43f   : > { %v30506_v12 = vadd.f32 %v30505_v9, %v30504_v4  ;;  %v30527_v15 = vpop.f32.mrf.mxu1  ;;  %30820 = vmatprep.subr.bf16.mxu1 %v33715_v11  ;;  %23687 = vmatprep.mubr.bf16.mxu0 %v2037_v56  ;;  %v33749_v4 = vld [vmem:[%s35143_s27 + $0x22b0] sm:$0xff]  }
 0x440   : > { %v30507_v14 = vpop.f32.mrf.mxu0  ;;  %v30528_v18 = vadd.f32 %v30527_v15, %v30526_v10  ;;  %23727 = vmatprep.mubr.bf16.mxu1 %v2039_v62  ;;  %v33751_v10 = vld [vmem:[%s35143_s27 + $0x2228] sm:$0xff]  }
 0x441   : > { %v23130_v17 = vadd.f32 %v30506_v12, %v36360_v32  ;;  %v30529_v22 = vpop.f32.mrf.mxu1  ;;  %30799 = vmatpush3.bf16.msra.mxu0 %v33714_v8  ;;  %v33727_v32 = vld [vmem:[%s35143_s27 + $0x21d8] sm:$0xff]   ;;  %v33752_v12 = vld [vmem:[%s35143_s27 + $0x22e8] sm:$0xff]  }
 0x442   : > { %v30508_v20 = vpop.f32.mrf.mxu0  ;;  %30800 = vmatprep.subr.bf16.mxu0 %v33717_v16  ;;  %30821 = vmatpush3.bf16.msra.mxu1 %v33716_v13  ;;  %v33753_v15 = vld [vmem:[%s35143_s27 + $0x22a8] sm:$0xff]   ;;  %v33754_v16 = vld [vmem:[%s35143_s27 + $0x2260] sm:$0xff]   ;;  %v33759_v22 = vld [vmem:[%s35143_s27 + $0x2218] sm:$0xff]  }
 0x443   : > { %v36398_v23 = vadd.f32 %v30528_v18, %v23130_v17  ;;  %v30530_v26 = vpop.f32.mrf.mxu1  ;;  %30822 = vmatprep.subr.bf16.mxu1 %v33719_v21  ;;  %v33755_v18 = vld [vmem:[%s35143_s27 + $0x2220] sm:$0xff]   ;;  %v33758_v21 = vld [vmem:[%s35143_s27 + $0x2258] sm:$0xff]   ;;  %v33783_v62 = vld [vmem:[%s35143_s27 + $0x2368] sm:$0xff]  }
 0x444   : > { %v33757_v20 = vld [vmem:[%s35143_s27 + $0x22a0] sm:$0xff]   ;;  %v33763_v26 = vld [vmem:[%s35143_s27 + $0x2210] sm:$0xff]  }
 0x445   : > { %30801 = vmatpush3.bf16.msra.mxu0 %v33718_v19  ;;  %v33756_v19 = vld [vmem:[%s35143_s27 + $0x22e0] sm:$0xff]  }
 0x446   : > { %30802 = vmatprep.subr.bf16.mxu0 %v33721_v25  ;;  %30823 = vmatpush3.bf16.msra.mxu1 %v33720_v24  ;;  %v33761_v24 = vld [vmem:[%s35143_s27 + $0x2298] sm:$0xff]   ;;  %v33762_v25 = vld [vmem:[%s35143_s27 + $0x2250] sm:$0xff]  }
 0x447   : > { %30824 = vmatprep.subr.bf16.mxu1 %v33723_v28  ;;  %v33765_v28 = vld [vmem:[%s35143_s27 + $0x2290] sm:$0xff]  }
 0x449   : > { %30803 = vmatpush3.bf16.msra.mxu0 %v33722_v27  ;;  %v33764_v27 = vld [vmem:[%s35143_s27 + $0x22d0] sm:$0xff]  }
 0x44a   : > { %30804 = vmatprep.subr.bf16.mxu0 %v33725_v30  ;;  %30825 = vmatpush3.bf16.msra.mxu1 %v33724_v29  ;;  %v33766_v29 = vld [vmem:[%s35143_s27 + $0x2248] sm:$0xff]  }
 0x44b   : > { %30826 = vmatprep.subr.bf16.mxu1 %v33727_v32  ;;  %v33767_v30 = vld [vmem:[%s35143_s27 + $0x2208] sm:$0xff]  }
 0x44c   : > { %v33769_v32 = vld [vmem:[%s35143_s27 + $0x2288] sm:$0xff]  }
 0x44d   : > { %30805 = vmatpush3.bf16.msra.mxu0 %v33726_v31  ;;  %v33768_v31 = vld [vmem:[%s35143_s27 + $0x22c8] sm:$0xff]  }
 0x44e   : > { %30806 = vmatprep.subr.bf16.mxu0 %v33729_v34  ;;  %30827 = vmatpush3.bf16.msra.mxu1 %v33728_v33  ;;  %v33770_v33 = vld [vmem:[%s35143_s27 + $0x2240] sm:$0xff]  }
 0x44f   : > { %30828 = vmatprep.subr.bf16.mxu1 %v33731_v36  ;;  %v33771_v34 = vld [vmem:[%s35143_s27 + $0x2200] sm:$0xff]   ;;  %v247_v36 = vld [vmem:[%s35138_s23 + $0x110] sm:$0xff] }
 0x451   : > { %30807 = vmatpush3.bf16.msra.mxu0 %v33730_v35  ;;  %v33772_v35 = vld [vmem:[%s35143_s27 + $0x22c0] sm:$0xff]  }
 0x452   : > { %30808 = vmatprep.subr.bf16.mxu0 %v33733_v38  ;;  %30829 = vmatpush3.bf16.msra.mxu1 %v33732_v37  ;;  %v946_v37 = vrot.slane %v247_v36, %v35187_v42  ;;  %v33773_v38 = vld [vmem:[%s35143_s27 + $0x2280] sm:$0xff]  }
 0x453   : > { %30830 = vmatprep.subr.bf16.mxu1 %v33735_v40  ;;  %v33774_v40 = vld [vmem:[%s35143_s27 + $0x2378] sm:$0xff]  }
 0x455   : > { %30809 = vmatpush3.bf16.msra.mxu0 %v33734_v39  ;;  %v939_v39 = vcombine.high %v247_v36, %v247_v36  ;;  %v33810_v36 = vld [vmem:[%s35143_s27 + $0x24f8] sm:$0xff]  }
 0x456   : > { %30810 = vmatprep.subr.bf16.mxu0 %v33737_v43  ;;  %30831 = vmatpush3.bf16.msra.mxu1 %v33736_v41  ;;  %v954_v41 = vcombine.high %v946_v37, %v946_v37 }
 0x457   : > { %30832 = vmatprep.subr.bf16.mxu1 %v33739_v45  ;;  %v953_v43 = vrot.slane %v939_v39, %v35187_v42  ;;  %v2040_v45 = vpack.c.bf16 %v946_v37, %v946_v37  ;;  %v33811_v39 = vld [vmem:[%s35143_s27 + $0x24b8] sm:$0xff]  }
 0x458   : > { %v2041_v47 = vpack.c.bf16 %v954_v41, %v954_v41 }
 0x459   : > { %30811 = vmatpush3.bf16.msra.mxu0 %v33738_v44  ;;  %v33776_v44 = vld [vmem:[%s35143_s27 + $0x2338] sm:$0xff]   ;;  %v2042_v51 = vpack.c.bf16 %v953_v43, %v953_v43 }
 0x45a   : > { %30840 = vmatprep.subr.bf16.mxu0 %v33741_v50  ;;  %30833 = vmatpush3.bf16.msra.mxu1 %v33740_v48  ;;  %v955_v48 = vcombine.high %v953_v43, %v953_v43  ;;  %v33812_v43 = vld [vmem:[%s35143_s27 + $0x2470] sm:$0xff]  }
 0x45b   : > { %30862 = vmatprep.subr.bf16.mxu1 %v33744_v55 }
 0x45c   : > { %v30548_v59 = vpop.f32.mrf.mxu0  ;;  %23688 = vmatmul.mubr.bf16.vlgmr.msra.gmra.mxu0 %v2036_v54  ;;  %v33780_v54 = vld [vmem:[%s35143_s27 + $0x2330] sm:$0xff]  }
 0x45d   : > { %v30570_v1 = vpop.f32.mrf.mxu1  ;;  %30841 = vmatpush3.bf16.msra.mxu0 %v33743_v53  ;;  %23728 = vmatmul.mubr.bf16.vlgmr.msra.gmra.mxu1 %v2038_v60  ;;  %v2043_v53 = vpack.c.bf16 %v955_v48, %v955_v48  ;;  %v33814_v48 = vld [vmem:[%s35143_s27 + $0x24f0] sm:$0xff]  }
 0x45e   : > { %v30549_v0 = vpop.f32.mrf.mxu0  ;;  %30842 = vmatprep.subr.bf16.mxu0 %v33746_v61  ;;  %30863 = vmatpush3.bf16.msra.mxu1 %v33745_v58 }
 0x45f   : > { %v30550_v3 = vadd.f32 %v30549_v0, %v30548_v59  ;;  %v30571_v6 = vpop.f32.mrf.mxu1  ;;  %30864 = vmatprep.subr.bf16.mxu1 %v33748_v2  ;;  %23767 = vmatprep.mubr.bf16.mxu0 %v2041_v47  ;;  %v33782_v59 = vld [vmem:[%s35143_s27 + $0x23b0] sm:$0xff]  }
 0x460   : > { %v30551_v5 = vpop.f32.mrf.mxu0  ;;  %v30572_v9 = vadd.f32 %v30571_v6, %v30570_v1  ;;  %23807 = vmatprep.mubr.bf16.mxu1 %v2043_v53  ;;  %v33784_v1 = vld [vmem:[%s35143_s27 + $0x2328] sm:$0xff]  }
 0x461   : > { %v23210_v8 = vadd.f32 %v30550_v3, %v36398_v23  ;;  %v30573_v13 = vpop.f32.mrf.mxu1  ;;  %30843 = vmatpush3.bf16.msra.mxu0 %v33747_v63  ;;  %v33760_v23 = vld [vmem:[%s35143_s27 + $0x22d8] sm:$0xff]   ;;  %v33785_v3 = vld [vmem:[%s35143_s27 + $0x23e8] sm:$0xff]  }
 0x462   : > { %v30552_v11 = vpop.f32.mrf.mxu0  ;;  %30844 = vmatprep.subr.bf16.mxu0 %v33750_v7  ;;  %30865 = vmatpush3.bf16.msra.mxu1 %v33749_v4  ;;  %v33786_v6 = vld [vmem:[%s35143_s27 + $0x23a8] sm:$0xff]   ;;  %v33787_v7 = vld [vmem:[%s35143_s27 + $0x2360] sm:$0xff]   ;;  %v33792_v13 = vld [vmem:[%s35143_s27 + $0x2318] sm:$0xff]  }
 0x463   : > { %v36436_v14 = vadd.f32 %v30572_v9, %v23210_v8  ;;  %v30574_v17 = vpop.f32.mrf.mxu1  ;;  %30866 = vmatprep.subr.bf16.mxu1 %v33752_v12  ;;  %v33788_v9 = vld [vmem:[%s35143_s27 + $0x2320] sm:$0xff]   ;;  %v33791_v12 = vld [vmem:[%s35143_s27 + $0x2358] sm:$0xff]   ;;  %v33816_v53 = vld [vmem:[%s35143_s27 + $0x2468] sm:$0xff]  }
 0x464   : > { %v33790_v11 = vld [vmem:[%s35143_s27 + $0x23a0] sm:$0xff]   ;;  %v33796_v17 = vld [vmem:[%s35143_s27 + $0x2310] sm:$0xff]  }
 0x465   : > { %30845 = vmatpush3.bf16.msra.mxu0 %v33751_v10  ;;  %v33789_v10 = vld [vmem:[%s35143_s27 + $0x23e0] sm:$0xff]  }
 0x466   : > { %30846 = vmatprep.subr.bf16.mxu0 %v33754_v16  ;;  %30867 = vmatpush3.bf16.msra.mxu1 %v33753_v15  ;;  %v33794_v15 = vld [vmem:[%s35143_s27 + $0x2398] sm:$0xff]   ;;  %v33795_v16 = vld [vmem:[%s35143_s27 + $0x2350] sm:$0xff]  }
 0x467   : > { %30868 = vmatprep.subr.bf16.mxu1 %v33756_v19  ;;  %v33798_v19 = vld [vmem:[%s35143_s27 + $0x2390] sm:$0xff]  }
 0x469   : > { %30847 = vmatpush3.bf16.msra.mxu0 %v33755_v18  ;;  %v33797_v18 = vld [vmem:[%s35143_s27 + $0x23d0] sm:$0xff]  }
 0x46a   : > { %30848 = vmatprep.subr.bf16.mxu0 %v33758_v21  ;;  %30869 = vmatpush3.bf16.msra.mxu1 %v33757_v20  ;;  %v33799_v20 = vld [vmem:[%s35143_s27 + $0x2348] sm:$0xff]  }
 0x46b   : > { %30870 = vmatprep.subr.bf16.mxu1 %v33760_v23  ;;  %v33800_v21 = vld [vmem:[%s35143_s27 + $0x2308] sm:$0xff]  }
 0x46c   : > { %v33802_v23 = vld [vmem:[%s35143_s27 + $0x2388] sm:$0xff]  }
 0x46d   : > { %30849 = vmatpush3.bf16.msra.mxu0 %v33759_v22  ;;  %v33801_v22 = vld [vmem:[%s35143_s27 + $0x23c8] sm:$0xff]  }
 0x46e   : > { %30850 = vmatprep.subr.bf16.mxu0 %v33762_v25  ;;  %30871 = vmatpush3.bf16.msra.mxu1 %v33761_v24  ;;  %v33803_v24 = vld [vmem:[%s35143_s27 + $0x2340] sm:$0xff]  }
 0x46f   : > { %30872 = vmatprep.subr.bf16.mxu1 %v33764_v27  ;;  %v33804_v25 = vld [vmem:[%s35143_s27 + $0x2300] sm:$0xff]   ;;  %v248_v27 = vld [vmem:[%s35138_s23 + $0x118] sm:$0xff] }
 0x471   : > { %30851 = vmatpush3.bf16.msra.mxu0 %v33763_v26  ;;  %v33805_v26 = vld [vmem:[%s35143_s27 + $0x23c0] sm:$0xff]  }
 0x472   : > { %30852 = vmatprep.subr.bf16.mxu0 %v33766_v29  ;;  %30873 = vmatpush3.bf16.msra.mxu1 %v33765_v28  ;;  %v963_v28 = vrot.slane %v248_v27, %v35187_v42  ;;  %v33806_v29 = vld [vmem:[%s35143_s27 + $0x2380] sm:$0xff]  }
 0x473   : > { %30874 = vmatprep.subr.bf16.mxu1 %v33768_v31  ;;  %v33807_v31 = vld [vmem:[%s35143_s27 + $0x2478] sm:$0xff]  }
 0x475   : > { %30853 = vmatpush3.bf16.msra.mxu0 %v33767_v30  ;;  %v956_v30 = vcombine.high %v248_v27, %v248_v27  ;;  %v33843_v27 = vld [vmem:[%s35143_s27 + $0x25f8] sm:$0xff]  }
 0x476   : > { %30854 = vmatprep.subr.bf16.mxu0 %v33770_v33  ;;  %30875 = vmatpush3.bf16.msra.mxu1 %v33769_v32  ;;  %v971_v32 = vcombine.high %v963_v28, %v963_v28 }
 0x477   : > { %30876 = vmatprep.subr.bf16.mxu1 %v33772_v35  ;;  %v970_v33 = vrot.slane %v956_v30, %v35187_v42  ;;  %v2044_v35 = vpack.c.bf16 %v963_v28, %v963_v28  ;;  %v33844_v30 = vld [vmem:[%s35143_s27 + $0x25b8] sm:$0xff]  }
 0x478   : > { %v2045_v37 = vpack.c.bf16 %v971_v32, %v971_v32 }
 0x479   : > { %30855 = vmatpush3.bf16.msra.mxu0 %v33771_v34  ;;  %v33809_v34 = vld [vmem:[%s35143_s27 + $0x2438] sm:$0xff]   ;;  %v2046_v41 = vpack.c.bf16 %v970_v33, %v970_v33 }
 0x47a   : > { %30884 = vmatprep.subr.bf16.mxu0 %v33774_v40  ;;  %30877 = vmatpush3.bf16.msra.mxu1 %v33773_v38  ;;  %v972_v38 = vcombine.high %v970_v33, %v970_v33  ;;  %v33845_v33 = vld [vmem:[%s35143_s27 + $0x2570] sm:$0xff]  }
 0x47b   : > { %30906 = vmatprep.subr.bf16.mxu1 %v33777_v46 }
 0x47c   : > { %v30592_v50 = vpop.f32.mrf.mxu0  ;;  %23768 = vmatmul.mubr.bf16.vlgmr.msra.gmra.mxu0 %v2040_v45  ;;  %v33813_v45 = vld [vmem:[%s35143_s27 + $0x2430] sm:$0xff]  }
 0x47d   : > { %v30614_v56 = vpop.f32.mrf.mxu1  ;;  %30885 = vmatpush3.bf16.msra.mxu0 %v33776_v44  ;;  %23808 = vmatmul.mubr.bf16.vlgmr.msra.gmra.mxu1 %v2042_v51  ;;  %v2047_v44 = vpack.c.bf16 %v972_v38, %v972_v38  ;;  %v33847_v38 = vld [vmem:[%s35143_s27 + $0x25f0] sm:$0xff]  }
 0x47e   : > { %v30593_v55 = vpop.f32.mrf.mxu0  ;;  %30886 = vmatprep.subr.bf16.mxu0 %v33779_v52  ;;  %30907 = vmatpush3.bf16.msra.mxu1 %v33778_v49 }
 0x47f   : > { %v30594_v58 = vadd.f32 %v30593_v55, %v30592_v50  ;;  %v30615_v61 = vpop.f32.mrf.mxu1  ;;  %30908 = vmatprep.subr.bf16.mxu1 %v33781_v57  ;;  %23847 = vmatprep.mubr.bf16.mxu0 %v2045_v37  ;;  %v33815_v50 = vld [vmem:[%s35143_s27 + $0x24b0] sm:$0xff]  }
 0x480   : > { %v30595_v60 = vpop.f32.mrf.mxu0  ;;  %v30616_v0 = vadd.f32 %v30615_v61, %v30614_v56  ;;  %23887 = vmatprep.mubr.bf16.mxu1 %v2047_v44  ;;  %v33817_v56 = vld [vmem:[%s35143_s27 + $0x2428] sm:$0xff]  }
 0x481   : > { %v23290_v63 = vadd.f32 %v30594_v58, %v36436_v14  ;;  %v30617_v4 = vpop.f32.mrf.mxu1  ;;  %30887 = vmatpush3.bf16.msra.mxu0 %v33780_v54  ;;  %v33793_v14 = vld [vmem:[%s35143_s27 + $0x23d8] sm:$0xff]   ;;  %v33818_v58 = vld [vmem:[%s35143_s27 + $0x24e8] sm:$0xff]  }
 0x482   : > { %v30596_v2 = vpop.f32.mrf.mxu0  ;;  %30888 = vmatprep.subr.bf16.mxu0 %v33783_v62  ;;  %30909 = vmatpush3.bf16.msra.mxu1 %v33782_v59  ;;  %v33819_v61 = vld [vmem:[%s35143_s27 + $0x24a8] sm:$0xff]   ;;  %v33820_v62 = vld [vmem:[%s35143_s27 + $0x2460] sm:$0xff]   ;;  %v33825_v4 = vld [vmem:[%s35143_s27 + $0x2418] sm:$0xff]  }
 0x483   : > { %v36474_v5 = vadd.f32 %v30616_v0, %v23290_v63  ;;  %v30618_v8 = vpop.f32.mrf.mxu1  ;;  %30910 = vmatprep.subr.bf16.mxu1 %v33785_v3  ;;  %v33821_v0 = vld [vmem:[%s35143_s27 + $0x2420] sm:$0xff]   ;;  %v33824_v3 = vld [vmem:[%s35143_s27 + $0x2458] sm:$0xff]   ;;  %v33849_v44 = vld [vmem:[%s35143_s27 + $0x2568] sm:$0xff]  }
 0x484   : > { %v33823_v2 = vld [vmem:[%s35143_s27 + $0x24a0] sm:$0xff]   ;;  %v33829_v8 = vld [vmem:[%s35143_s27 + $0x2410] sm:$0xff]  }
 0x485   : > { %30889 = vmatpush3.bf16.msra.mxu0 %v33784_v1  ;;  %v33822_v1 = vld [vmem:[%s35143_s27 + $0x24e0] sm:$0xff]  }
 0x486   : > { %30890 = vmatprep.subr.bf16.mxu0 %v33787_v7  ;;  %30911 = vmatpush3.bf16.msra.mxu1 %v33786_v6  ;;  %v33827_v6 = vld [vmem:[%s35143_s27 + $0x2498] sm:$0xff]   ;;  %v33828_v7 = vld [vmem:[%s35143_s27 + $0x2450] sm:$0xff]  }
 0x487   : > { %30912 = vmatprep.subr.bf16.mxu1 %v33789_v10  ;;  %v33831_v10 = vld [vmem:[%s35143_s27 + $0x2490] sm:$0xff]  }
 0x489   : > { %30891 = vmatpush3.bf16.msra.mxu0 %v33788_v9  ;;  %v33830_v9 = vld [vmem:[%s35143_s27 + $0x24d0] sm:$0xff]  }
 0x48a   : > { %30892 = vmatprep.subr.bf16.mxu0 %v33791_v12  ;;  %30913 = vmatpush3.bf16.msra.mxu1 %v33790_v11  ;;  %v33832_v11 = vld [vmem:[%s35143_s27 + $0x2448] sm:$0xff]  }
 0x48b   : > { %30914 = vmatprep.subr.bf16.mxu1 %v33793_v14  ;;  %v33833_v12 = vld [vmem:[%s35143_s27 + $0x2408] sm:$0xff]  }
 0x48c   : > { %v33835_v14 = vld [vmem:[%s35143_s27 + $0x2488] sm:$0xff]  }
 0x48d   : > { %30893 = vmatpush3.bf16.msra.mxu0 %v33792_v13  ;;  %v33834_v13 = vld [vmem:[%s35143_s27 + $0x24c8] sm:$0xff]  }
 0x48e   : > { %30894 = vmatprep.subr.bf16.mxu0 %v33795_v16  ;;  %30915 = vmatpush3.bf16.msra.mxu1 %v33794_v15  ;;  %v33836_v15 = vld [vmem:[%s35143_s27 + $0x2440] sm:$0xff]  }
 0x48f   : > { %30916 = vmatprep.subr.bf16.mxu1 %v33797_v18  ;;  %v33837_v16 = vld [vmem:[%s35143_s27 + $0x2400] sm:$0xff]  }
 0x490   : > { %v249_v18 = vld [vmem:[%s35138_s23 + $0x120] sm:$0xff] }
 0x491   : > { %30895 = vmatpush3.bf16.msra.mxu0 %v33796_v17  ;;  %v33838_v17 = vld [vmem:[%s35143_s27 + $0x24c0] sm:$0xff]  }
 0x492   : > { %30896 = vmatprep.subr.bf16.mxu0 %v33799_v20  ;;  %30917 = vmatpush3.bf16.msra.mxu1 %v33798_v19  ;;  %v980_v19 = vrot.slane %v249_v18, %v35187_v42  ;;  %v33839_v20 = vld [vmem:[%s35143_s27 + $0x2480] sm:$0xff]  }
 0x493   : > { %30918 = vmatprep.subr.bf16.mxu1 %v33801_v22  ;;  %v33840_v22 = vld [vmem:[%s35143_s27 + $0x2578] sm:$0xff]  }
 0x495   : > { %30897 = vmatpush3.bf16.msra.mxu0 %v33800_v21  ;;  %v973_v21 = vcombine.high %v249_v18, %v249_v18  ;;  %v33876_v18 = vld [vmem:[%s35143_s27 + $0x26f8] sm:$0xff]  }
 0x496   : > { %30898 = vmatprep.subr.bf16.mxu0 %v33803_v24  ;;  %30919 = vmatpush3.bf16.msra.mxu1 %v33802_v23  ;;  %v988_v23 = vcombine.high %v980_v19, %v980_v19 }
 0x497   : > { %30920 = vmatprep.subr.bf16.mxu1 %v33805_v26  ;;  %v987_v24 = vrot.slane %v973_v21, %v35187_v42  ;;  %v2048_v26 = vpack.c.bf16 %v980_v19, %v980_v19  ;;  %v33877_v21 = vld [vmem:[%s35143_s27 + $0x26b8] sm:$0xff]  }
 0x498   : > { %v2049_v28 = vpack.c.bf16 %v988_v23, %v988_v23 }
 0x499   : > { %30899 = vmatpush3.bf16.msra.mxu0 %v33804_v25  ;;  %v33842_v25 = vld [vmem:[%s35143_s27 + $0x2538] sm:$0xff]   ;;  %v2050_v32 = vpack.c.bf16 %v987_v24, %v987_v24 }
 0x49a   : > { %30928 = vmatprep.subr.bf16.mxu0 %v33807_v31  ;;  %30921 = vmatpush3.bf16.msra.mxu1 %v33806_v29  ;;  %v989_v29 = vcombine.high %v987_v24, %v987_v24  ;;  %v33878_v24 = vld [vmem:[%s35143_s27 + $0x2670] sm:$0xff]  }
 0x49b   : > { %30950 = vmatprep.subr.bf16.mxu1 %v33810_v36 }
 0x49c   : > { %v30636_v40 = vpop.f32.mrf.mxu0  ;;  %23848 = vmatmul.mubr.bf16.vlgmr.msra.gmra.mxu0 %v2044_v35  ;;  %v33846_v35 = vld [vmem:[%s35143_s27 + $0x2530] sm:$0xff]  }
 0x49d   : > { %v30658_v47 = vpop.f32.mrf.mxu1  ;;  %30929 = vmatpush3.bf16.msra.mxu0 %v33809_v34  ;;  %23888 = vmatmul.mubr.bf16.vlgmr.msra.gmra.mxu1 %v2046_v41  ;;  %v2051_v34 = vpack.c.bf16 %v989_v29, %v989_v29  ;;  %v33880_v29 = vld [vmem:[%s35143_s27 + $0x26f0] sm:$0xff]  }
 0x49e   : > { %v30637_v46 = vpop.f32.mrf.mxu0  ;;  %30930 = vmatprep.subr.bf16.mxu0 %v33812_v43  ;;  %30951 = vmatpush3.bf16.msra.mxu1 %v33811_v39 }
 0x49f   : > { %v30638_v49 = vadd.f32 %v30637_v46, %v30636_v40  ;;  %v30659_v52 = vpop.f32.mrf.mxu1  ;;  %30952 = vmatprep.subr.bf16.mxu1 %v33814_v48  ;;  %23927 = vmatprep.mubr.bf16.mxu0 %v2049_v28  ;;  %v33848_v40 = vld [vmem:[%s35143_s27 + $0x25b0] sm:$0xff]  }
 0x4a0   : > { %v30639_v51 = vpop.f32.mrf.mxu0  ;;  %v30660_v55 = vadd.f32 %v30659_v52, %v30658_v47  ;;  %23967 = vmatprep.mubr.bf16.mxu1 %v2051_v34  ;;  %v33850_v47 = vld [vmem:[%s35143_s27 + $0x2528] sm:$0xff]  }
 0x4a1   : > { %v23370_v54 = vadd.f32 %v30638_v49, %v36474_v5  ;;  %v30661_v59 = vpop.f32.mrf.mxu1  ;;  %30931 = vmatpush3.bf16.msra.mxu0 %v33813_v45  ;;  %v33826_v5 = vld [vmem:[%s35143_s27 + $0x24d8] sm:$0xff]   ;;  %v33851_v49 = vld [vmem:[%s35143_s27 + $0x25e8] sm:$0xff]  }
 0x4a2   : > { %v30640_v57 = vpop.f32.mrf.mxu0  ;;  %30932 = vmatprep.subr.bf16.mxu0 %v33816_v53  ;;  %30953 = vmatpush3.bf16.msra.mxu1 %v33815_v50  ;;  %v33852_v52 = vld [vmem:[%s35143_s27 + $0x25a8] sm:$0xff]   ;;  %v33853_v53 = vld [vmem:[%s35143_s27 + $0x2560] sm:$0xff]   ;;  %v33858_v59 = vld [vmem:[%s35143_s27 + $0x2518] sm:$0xff]  }
 0x4a3   : > { %v36512_v60 = vadd.f32 %v30660_v55, %v23370_v54  ;;  %v30662_v63 = vpop.f32.mrf.mxu1  ;;  %30954 = vmatprep.subr.bf16.mxu1 %v33818_v58  ;;  %v33854_v55 = vld [vmem:[%s35143_s27 + $0x2520] sm:$0xff]   ;;  %v33857_v58 = vld [vmem:[%s35143_s27 + $0x2558] sm:$0xff]   ;;  %v33882_v34 = vld [vmem:[%s35143_s27 + $0x2668] sm:$0xff]  }
 0x4a4   : > { %v33856_v57 = vld [vmem:[%s35143_s27 + $0x25a0] sm:$0xff]   ;;  %v33862_v63 = vld [vmem:[%s35143_s27 + $0x2510] sm:$0xff]  }
 0x4a5   : > { %30933 = vmatpush3.bf16.msra.mxu0 %v33817_v56  ;;  %v33855_v56 = vld [vmem:[%s35143_s27 + $0x25e0] sm:$0xff]  }
 0x4a6   : > { %30934 = vmatprep.subr.bf16.mxu0 %v33820_v62  ;;  %30955 = vmatpush3.bf16.msra.mxu1 %v33819_v61  ;;  %v33860_v61 = vld [vmem:[%s35143_s27 + $0x2598] sm:$0xff]   ;;  %v33861_v62 = vld [vmem:[%s35143_s27 + $0x2550] sm:$0xff]  }
 0x4a7   : > { %30956 = vmatprep.subr.bf16.mxu1 %v33822_v1  ;;  %v33864_v1 = vld [vmem:[%s35143_s27 + $0x2590] sm:$0xff]  }
 0x4a9   : > { %30935 = vmatpush3.bf16.msra.mxu0 %v33821_v0  ;;  %v33863_v0 = vld [vmem:[%s35143_s27 + $0x25d0] sm:$0xff]  }
 0x4aa   : > { %30936 = vmatprep.subr.bf16.mxu0 %v33824_v3  ;;  %30957 = vmatpush3.bf16.msra.mxu1 %v33823_v2  ;;  %v33865_v2 = vld [vmem:[%s35143_s27 + $0x2548] sm:$0xff]  }
 0x4ab   : > { %30958 = vmatprep.subr.bf16.mxu1 %v33826_v5  ;;  %v33866_v3 = vld [vmem:[%s35143_s27 + $0x2508] sm:$0xff]  }
 0x4ac   : > { %v33868_v5 = vld [vmem:[%s35143_s27 + $0x2588] sm:$0xff]  }
 0x4ad   : > { %30937 = vmatpush3.bf16.msra.mxu0 %v33825_v4  ;;  %v33867_v4 = vld [vmem:[%s35143_s27 + $0x25c8] sm:$0xff]  }
 0x4ae   : > { %30938 = vmatprep.subr.bf16.mxu0 %v33828_v7  ;;  %30959 = vmatpush3.bf16.msra.mxu1 %v33827_v6  ;;  %v33869_v6 = vld [vmem:[%s35143_s27 + $0x2540] sm:$0xff]  }
 0x4af   : > { %30960 = vmatprep.subr.bf16.mxu1 %v33830_v9  ;;  %v33870_v7 = vld [vmem:[%s35143_s27 + $0x2500] sm:$0xff]   ;;  %v250_v9 = vld [vmem:[%s35138_s23 + $0x128] sm:$0xff] }
 0x4b1   : > { %30939 = vmatpush3.bf16.msra.mxu0 %v33829_v8  ;;  %v33871_v8 = vld [vmem:[%s35143_s27 + $0x25c0] sm:$0xff]  }
 0x4b2   : > { %30940 = vmatprep.subr.bf16.mxu0 %v33832_v11  ;;  %30961 = vmatpush3.bf16.msra.mxu1 %v33831_v10  ;;  %v997_v10 = vrot.slane %v250_v9, %v35187_v42  ;;  %v33872_v11 = vld [vmem:[%s35143_s27 + $0x2580] sm:$0xff]  }
 0x4b3   : > { %30962 = vmatprep.subr.bf16.mxu1 %v33834_v13  ;;  %v33873_v13 = vld [vmem:[%s35143_s27 + $0x2678] sm:$0xff]  }
 0x4b5   : > { %30941 = vmatpush3.bf16.msra.mxu0 %v33833_v12  ;;  %v990_v12 = vcombine.high %v250_v9, %v250_v9  ;;  %v33909_v9 = vld [vmem:[%s35143_s27 + $0x27f8] sm:$0xff]  }
 0x4b6   : > { %30942 = vmatprep.subr.bf16.mxu0 %v33836_v15  ;;  %30963 = vmatpush3.bf16.msra.mxu1 %v33835_v14  ;;  %v1005_v14 = vcombine.high %v997_v10, %v997_v10 }
 0x4b7   : > { %30964 = vmatprep.subr.bf16.mxu1 %v33838_v17  ;;  %v1004_v15 = vrot.slane %v990_v12, %v35187_v42  ;;  %v2052_v17 = vpack.c.bf16 %v997_v10, %v997_v10  ;;  %v33910_v12 = vld [vmem:[%s35143_s27 + $0x27b8] sm:$0xff]  }
 0x4b8   : > { %v2053_v19 = vpack.c.bf16 %v1005_v14, %v1005_v14 }
 0x4b9   : > { %30943 = vmatpush3.bf16.msra.mxu0 %v33837_v16  ;;  %v33875_v16 = vld [vmem:[%s35143_s27 + $0x2638] sm:$0xff]   ;;  %v2054_v23 = vpack.c.bf16 %v1004_v15, %v1004_v15 }
 0x4ba   : > { %30972 = vmatprep.subr.bf16.mxu0 %v33840_v22  ;;  %30965 = vmatpush3.bf16.msra.mxu1 %v33839_v20  ;;  %v1006_v20 = vcombine.high %v1004_v15, %v1004_v15  ;;  %v33911_v15 = vld [vmem:[%s35143_s27 + $0x2770] sm:$0xff]  }
 0x4bb   : > { %30994 = vmatprep.subr.bf16.mxu1 %v33843_v27 }
 0x4bc   : > { %v30680_v31 = vpop.f32.mrf.mxu0  ;;  %23928 = vmatmul.mubr.bf16.vlgmr.msra.gmra.mxu0 %v2048_v26  ;;  %v33879_v26 = vld [vmem:[%s35143_s27 + $0x2630] sm:$0xff]  }
 0x4bd   : > { %v30702_v37 = vpop.f32.mrf.mxu1  ;;  %30973 = vmatpush3.bf16.msra.mxu0 %v33842_v25  ;;  %23968 = vmatmul.mubr.bf16.vlgmr.msra.gmra.mxu1 %v2050_v32  ;;  %v2055_v25 = vpack.c.bf16 %v1006_v20, %v1006_v20  ;;  %v33913_v20 = vld [vmem:[%s35143_s27 + $0x27f0] sm:$0xff]  }
 0x4be   : > { %v30681_v36 = vpop.f32.mrf.mxu0  ;;  %30974 = vmatprep.subr.bf16.mxu0 %v33845_v33  ;;  %30995 = vmatpush3.bf16.msra.mxu1 %v33844_v30 }
 0x4bf   : > { %v30682_v39 = vadd.f32 %v30681_v36, %v30680_v31  ;;  %v30703_v43 = vpop.f32.mrf.mxu1  ;;  %30996 = vmatprep.subr.bf16.mxu1 %v33847_v38  ;;  %24007 = vmatprep.mubr.bf16.mxu0 %v2053_v19  ;;  %v33881_v31 = vld [vmem:[%s35143_s27 + $0x26b0] sm:$0xff]  }
 0x4c0   : > { %v30683_v41 = vpop.f32.mrf.mxu0  ;;  %v30704_v46 = vadd.f32 %v30703_v43, %v30702_v37  ;;  %24047 = vmatprep.mubr.bf16.mxu1 %v2055_v25  ;;  %v33883_v37 = vld [vmem:[%s35143_s27 + $0x2628] sm:$0xff]  }
 0x4c1   : > { %v23450_v45 = vadd.f32 %v30682_v39, %v36512_v60  ;;  %v30705_v50 = vpop.f32.mrf.mxu1  ;;  %30975 = vmatpush3.bf16.msra.mxu0 %v33846_v35  ;;  %v33859_v60 = vld [vmem:[%s35143_s27 + $0x25d8] sm:$0xff]   ;;  %v33884_v39 = vld [vmem:[%s35143_s27 + $0x26e8] sm:$0xff]  }
 0x4c2   : > { %v30684_v48 = vpop.f32.mrf.mxu0  ;;  %30976 = vmatprep.subr.bf16.mxu0 %v33849_v44  ;;  %30997 = vmatpush3.bf16.msra.mxu1 %v33848_v40  ;;  %v33885_v43 = vld [vmem:[%s35143_s27 + $0x26a8] sm:$0xff]   ;;  %v33886_v44 = vld [vmem:[%s35143_s27 + $0x2660] sm:$0xff]   ;;  %v33891_v50 = vld [vmem:[%s35143_s27 + $0x2618] sm:$0xff]  }
 0x4c3   : > { %v36550_v51 = vadd.f32 %v30704_v46, %v23450_v45  ;;  %v30706_v54 = vpop.f32.mrf.mxu1  ;;  %30998 = vmatprep.subr.bf16.mxu1 %v33851_v49  ;;  %v33887_v46 = vld [vmem:[%s35143_s27 + $0x2620] sm:$0xff]   ;;  %v33890_v49 = vld [vmem:[%s35143_s27 + $0x2658] sm:$0xff]   ;;  %v33915_v25 = vld [vmem:[%s35143_s27 + $0x2768] sm:$0xff]  }
 0x4c4   : > { %v33889_v48 = vld [vmem:[%s35143_s27 + $0x26a0] sm:$0xff]   ;;  %v33895_v54 = vld [vmem:[%s35143_s27 + $0x2610] sm:$0xff]  }
 0x4c5   : > { %30977 = vmatpush3.bf16.msra.mxu0 %v33850_v47  ;;  %v33888_v47 = vld [vmem:[%s35143_s27 + $0x26e0] sm:$0xff]  }
 0x4c6   : > { %30978 = vmatprep.subr.bf16.mxu0 %v33853_v53  ;;  %30999 = vmatpush3.bf16.msra.mxu1 %v33852_v52  ;;  %v33893_v52 = vld [vmem:[%s35143_s27 + $0x2698] sm:$0xff]   ;;  %v33894_v53 = vld [vmem:[%s35143_s27 + $0x2650] sm:$0xff]  }
 0x4c7   : > { %31000 = vmatprep.subr.bf16.mxu1 %v33855_v56  ;;  %v33897_v56 = vld [vmem:[%s35143_s27 + $0x2690] sm:$0xff]  }
 0x4c9   : > { %30979 = vmatpush3.bf16.msra.mxu0 %v33854_v55  ;;  %v33896_v55 = vld [vmem:[%s35143_s27 + $0x26d0] sm:$0xff]  }
 0x4ca   : > { %30980 = vmatprep.subr.bf16.mxu0 %v33857_v58  ;;  %31001 = vmatpush3.bf16.msra.mxu1 %v33856_v57  ;;  %v33898_v57 = vld [vmem:[%s35143_s27 + $0x2648] sm:$0xff]  }
 0x4cb   : > { %31002 = vmatprep.subr.bf16.mxu1 %v33859_v60  ;;  %v33899_v58 = vld [vmem:[%s35143_s27 + $0x2608] sm:$0xff]  }
 0x4cc   : > { %v33901_v60 = vld [vmem:[%s35143_s27 + $0x2688] sm:$0xff]  }
 0x4cd   : > { %30981 = vmatpush3.bf16.msra.mxu0 %v33858_v59  ;;  %v33900_v59 = vld [vmem:[%s35143_s27 + $0x26c8] sm:$0xff]  }
 0x4ce   : > { %30982 = vmatprep.subr.bf16.mxu0 %v33861_v62  ;;  %31003 = vmatpush3.bf16.msra.mxu1 %v33860_v61  ;;  %v33902_v61 = vld [vmem:[%s35143_s27 + $0x2640] sm:$0xff]  }
 0x4cf   : > { %31004 = vmatprep.subr.bf16.mxu1 %v33863_v0  ;;  %v33903_v62 = vld [vmem:[%s35143_s27 + $0x2600] sm:$0xff]   ;;  %v251_v0 = vld [vmem:[%s35138_s23 + $0x130] sm:$0xff] }
 0x4d1   : > { %30983 = vmatpush3.bf16.msra.mxu0 %v33862_v63  ;;  %v33904_v63 = vld [vmem:[%s35143_s27 + $0x26c0] sm:$0xff]  }
 0x4d2   : > { %30984 = vmatprep.subr.bf16.mxu0 %v33865_v2  ;;  %31005 = vmatpush3.bf16.msra.mxu1 %v33864_v1  ;;  %v1014_v1 = vrot.slane %v251_v0, %v35187_v42  ;;  %v33905_v2 = vld [vmem:[%s35143_s27 + $0x2680] sm:$0xff]  }
 0x4d3   : > { %31006 = vmatprep.subr.bf16.mxu1 %v33867_v4  ;;  %v33906_v4 = vld [vmem:[%s35143_s27 + $0x2778] sm:$0xff]  }
 0x4d5   : > { %30985 = vmatpush3.bf16.msra.mxu0 %v33866_v3  ;;  %v1007_v3 = vcombine.high %v251_v0, %v251_v0  ;;  %v33942_v0 = vld [vmem:[%s35143_s27 + $0x28f8] sm:$0xff]  }
 0x4d6   : > { %30986 = vmatprep.subr.bf16.mxu0 %v33869_v6  ;;  %31007 = vmatpush3.bf16.msra.mxu1 %v33868_v5  ;;  %v1022_v5 = vcombine.high %v1014_v1, %v1014_v1 }
 0x4d7   : > { %31008 = vmatprep.subr.bf16.mxu1 %v33871_v8  ;;  %v1021_v6 = vrot.slane %v1007_v3, %v35187_v42  ;;  %v2056_v8 = vpack.c.bf16 %v1014_v1, %v1014_v1  ;;  %v33943_v3 = vld [vmem:[%s35143_s27 + $0x28b8] sm:$0xff]  }
 0x4d8   : > { %v2057_v10 = vpack.c.bf16 %v1022_v5, %v1022_v5 }
 0x4d9   : > { %30987 = vmatpush3.bf16.msra.mxu0 %v33870_v7  ;;  %v33908_v7 = vld [vmem:[%s35143_s27 + $0x2738] sm:$0xff]   ;;  %v2058_v14 = vpack.c.bf16 %v1021_v6, %v1021_v6 }
 0x4da   : > { %31016 = vmatprep.subr.bf16.mxu0 %v33873_v13  ;;  %31009 = vmatpush3.bf16.msra.mxu1 %v33872_v11  ;;  %v1023_v11 = vcombine.high %v1021_v6, %v1021_v6  ;;  %v33944_v6 = vld [vmem:[%s35143_s27 + $0x2870] sm:$0xff]  }
 0x4db   : > { %31038 = vmatprep.subr.bf16.mxu1 %v33876_v18 }
 0x4dc   : > { %v30724_v22 = vpop.f32.mrf.mxu0  ;;  %24008 = vmatmul.mubr.bf16.vlgmr.msra.gmra.mxu0 %v2052_v17  ;;  %v33912_v17 = vld [vmem:[%s35143_s27 + $0x2730] sm:$0xff]  }
 0x4dd   : > { %v30746_v28 = vpop.f32.mrf.mxu1  ;;  %31017 = vmatpush3.bf16.msra.mxu0 %v33875_v16  ;;  %24048 = vmatmul.mubr.bf16.vlgmr.msra.gmra.mxu1 %v2054_v23  ;;  %v2059_v16 = vpack.c.bf16 %v1023_v11, %v1023_v11  ;;  %v33946_v11 = vld [vmem:[%s35143_s27 + $0x28f0] sm:$0xff]  }
 0x4de   : > { %v30725_v27 = vpop.f32.mrf.mxu0  ;;  %31018 = vmatprep.subr.bf16.mxu0 %v33878_v24  ;;  %31039 = vmatpush3.bf16.msra.mxu1 %v33877_v21 }
 0x4df   : > { %v30726_v30 = vadd.f32 %v30725_v27, %v30724_v22  ;;  %v30747_v33 = vpop.f32.mrf.mxu1  ;;  %31040 = vmatprep.subr.bf16.mxu1 %v33880_v29  ;;  %24087 = vmatprep.mubr.bf16.mxu0 %v2057_v10  ;;  %v33914_v22 = vld [vmem:[%s35143_s27 + $0x27b0] sm:$0xff]  }
 0x4e0   : > { %v30727_v32 = vpop.f32.mrf.mxu0  ;;  %v30748_v36 = vadd.f32 %v30747_v33, %v30746_v28  ;;  %24127 = vmatprep.mubr.bf16.mxu1 %v2059_v16  ;;  %v33916_v28 = vld [vmem:[%s35143_s27 + $0x2728] sm:$0xff]  }
 0x4e1   : > { %v23530_v35 = vadd.f32 %v30726_v30, %v36550_v51  ;;  %v30749_v40 = vpop.f32.mrf.mxu1  ;;  %31019 = vmatpush3.bf16.msra.mxu0 %v33879_v26  ;;  %v33892_v51 = vld [vmem:[%s35143_s27 + $0x26d8] sm:$0xff]   ;;  %v33917_v30 = vld [vmem:[%s35143_s27 + $0x27e8] sm:$0xff]  }
 0x4e2   : > { %v30728_v38 = vpop.f32.mrf.mxu0  ;;  %31020 = vmatprep.subr.bf16.mxu0 %v33882_v34  ;;  %31041 = vmatpush3.bf16.msra.mxu1 %v33881_v31  ;;  %v33918_v33 = vld [vmem:[%s35143_s27 + $0x27a8] sm:$0xff]   ;;  %v33919_v34 = vld [vmem:[%s35143_s27 + $0x2760] sm:$0xff]   ;;  %v33924_v40 = vld [vmem:[%s35143_s27 + $0x2718] sm:$0xff]  }
 0x4e3   : > { %v36588_v41 = vadd.f32 %v30748_v36, %v23530_v35  ;;  %v30750_v45 = vpop.f32.mrf.mxu1  ;;  %31042 = vmatprep.subr.bf16.mxu1 %v33884_v39  ;;  %v33920_v36 = vld [vmem:[%s35143_s27 + $0x2720] sm:$0xff]   ;;  %v33923_v39 = vld [vmem:[%s35143_s27 + $0x2758] sm:$0xff]   ;;  %v33948_v16 = vld [vmem:[%s35143_s27 + $0x2868] sm:$0xff]  }
 0x4e4   : > { %v33922_v38 = vld [vmem:[%s35143_s27 + $0x27a0] sm:$0xff]   ;;  %v33928_v45 = vld [vmem:[%s35143_s27 + $0x2710] sm:$0xff]  }
 0x4e5   : > { %31021 = vmatpush3.bf16.msra.mxu0 %v33883_v37  ;;  %v33921_v37 = vld [vmem:[%s35143_s27 + $0x27e0] sm:$0xff]  }
 0x4e6   : > { %31022 = vmatprep.subr.bf16.mxu0 %v33886_v44  ;;  %31043 = vmatpush3.bf16.msra.mxu1 %v33885_v43  ;;  %v33926_v43 = vld [vmem:[%s35143_s27 + $0x2798] sm:$0xff]   ;;  %v33927_v44 = vld [vmem:[%s35143_s27 + $0x2750] sm:$0xff]  }
 0x4e7   : > { %31044 = vmatprep.subr.bf16.mxu1 %v33888_v47  ;;  %v33930_v47 = vld [vmem:[%s35143_s27 + $0x2790] sm:$0xff]  }
 0x4e9   : > { %31023 = vmatpush3.bf16.msra.mxu0 %v33887_v46  ;;  %v33929_v46 = vld [vmem:[%s35143_s27 + $0x27d0] sm:$0xff]  }
 0x4ea   : > { %31024 = vmatprep.subr.bf16.mxu0 %v33890_v49  ;;  %31045 = vmatpush3.bf16.msra.mxu1 %v33889_v48  ;;  %v33931_v48 = vld [vmem:[%s35143_s27 + $0x2748] sm:$0xff]  }
 0x4eb   : > { %31046 = vmatprep.subr.bf16.mxu1 %v33892_v51  ;;  %v33932_v49 = vld [vmem:[%s35143_s27 + $0x2708] sm:$0xff]  }
 0x4ec   : > { %v33934_v51 = vld [vmem:[%s35143_s27 + $0x2788] sm:$0xff]  }
 0x4ed   : > { %31025 = vmatpush3.bf16.msra.mxu0 %v33891_v50  ;;  %v33933_v50 = vld [vmem:[%s35143_s27 + $0x27c8] sm:$0xff]  }
 0x4ee   : > { %31026 = vmatprep.subr.bf16.mxu0 %v33894_v53  ;;  %31047 = vmatpush3.bf16.msra.mxu1 %v33893_v52  ;;  %v33935_v52 = vld [vmem:[%s35143_s27 + $0x2740] sm:$0xff]  }
 0x4ef   : > { %31048 = vmatprep.subr.bf16.mxu1 %v33896_v55  ;;  %v33936_v53 = vld [vmem:[%s35143_s27 + $0x2700] sm:$0xff]   ;;  %v252_v55 = vld [vmem:[%s35138_s23 + $0x138] sm:$0xff] }
 0x4f1   : > { %31027 = vmatpush3.bf16.msra.mxu0 %v33895_v54  ;;  %v33937_v54 = vld [vmem:[%s35143_s27 + $0x27c0] sm:$0xff]  }
 0x4f2   : > { %31028 = vmatprep.subr.bf16.mxu0 %v33898_v57  ;;  %31049 = vmatpush3.bf16.msra.mxu1 %v33897_v56  ;;  %v1031_v56 = vrot.slane %v252_v55, %v35187_v42  ;;  %v33938_v57 = vld [vmem:[%s35143_s27 + $0x2780] sm:$0xff]  }
 0x4f3   : > { %31050 = vmatprep.subr.bf16.mxu1 %v33900_v59  ;;  %v33939_v59 = vld [vmem:[%s35143_s27 + $0x2878] sm:$0xff]  }
 0x4f5   : > { %31029 = vmatpush3.bf16.msra.mxu0 %v33899_v58  ;;  %v1024_v58 = vcombine.high %v252_v55, %v252_v55  ;;  %v33975_v55 = vld [vmem:[%s35143_s27 + $0x29f8] sm:$0xff]  }
 0x4f6   : > { %31030 = vmatprep.subr.bf16.mxu0 %v33902_v61  ;;  %31051 = vmatpush3.bf16.msra.mxu1 %v33901_v60  ;;  %v1039_v60 = vcombine.high %v1031_v56, %v1031_v56 }
 0x4f7   : > { %31052 = vmatprep.subr.bf16.mxu1 %v33904_v63  ;;  %v1038_v61 = vrot.slane %v1024_v58, %v35187_v42  ;;  %v2060_v63 = vpack.c.bf16 %v1031_v56, %v1031_v56  ;;  %v33976_v58 = vld [vmem:[%s35143_s27 + $0x29b8] sm:$0xff]  }
 0x4f8   : > { %v2061_v1 = vpack.c.bf16 %v1039_v60, %v1039_v60 }
 0x4f9   : > { %31031 = vmatpush3.bf16.msra.mxu0 %v33903_v62  ;;  %v33941_v62 = vld [vmem:[%s35143_s27 + $0x2838] sm:$0xff]   ;;  %v2062_v5 = vpack.c.bf16 %v1038_v61, %v1038_v61 }
 0x4fa   : > { %31060 = vmatprep.subr.bf16.mxu0 %v33906_v4  ;;  %31053 = vmatpush3.bf16.msra.mxu1 %v33905_v2  ;;  %v1040_v2 = vcombine.high %v1038_v61, %v1038_v61  ;;  %v33977_v61 = vld [vmem:[%s35143_s27 + $0x2970] sm:$0xff]  }
 0x4fb   : > { %31082 = vmatprep.subr.bf16.mxu1 %v33909_v9 }
 0x4fc   : > { %v30768_v13 = vpop.f32.mrf.mxu0  ;;  %24088 = vmatmul.mubr.bf16.vlgmr.msra.gmra.mxu0 %v2056_v8  ;;  %v33945_v8 = vld [vmem:[%s35143_s27 + $0x2830] sm:$0xff]  }
 0x4fd   : > { %v30790_v19 = vpop.f32.mrf.mxu1  ;;  %31061 = vmatpush3.bf16.msra.mxu0 %v33908_v7  ;;  %24128 = vmatmul.mubr.bf16.vlgmr.msra.gmra.mxu1 %v2058_v14  ;;  %v2063_v7 = vpack.c.bf16 %v1040_v2, %v1040_v2  ;;  %v33979_v2 = vld [vmem:[%s35143_s27 + $0x29f0] sm:$0xff]  }
 0x4fe   : > { %v30769_v18 = vpop.f32.mrf.mxu0  ;;  %31062 = vmatprep.subr.bf16.mxu0 %v33911_v15  ;;  %31083 = vmatpush3.bf16.msra.mxu1 %v33910_v12 }
 0x4ff   : > { %v30770_v21 = vadd.f32 %v30769_v18, %v30768_v13  ;;  %v30791_v24 = vpop.f32.mrf.mxu1  ;;  %31084 = vmatprep.subr.bf16.mxu1 %v33913_v20  ;;  %24167 = vmatprep.mubr.bf16.mxu0 %v2061_v1  ;;  %v33947_v13 = vld [vmem:[%s35143_s27 + $0x28b0] sm:$0xff]  }
 0x500   : > { %v30771_v23 = vpop.f32.mrf.mxu0  ;;  %v30792_v27 = vadd.f32 %v30791_v24, %v30790_v19  ;;  %24207 = vmatprep.mubr.bf16.mxu1 %v2063_v7  ;;  %v33949_v19 = vld [vmem:[%s35143_s27 + $0x2828] sm:$0xff]  }
 0x501   : > { %v23610_v26 = vadd.f32 %v30770_v21, %v36588_v41  ;;  %v30793_v31 = vpop.f32.mrf.mxu1  ;;  %31063 = vmatpush3.bf16.msra.mxu0 %v33912_v17  ;;  %v33925_v41 = vld [vmem:[%s35143_s27 + $0x27d8] sm:$0xff]   ;;  %v33950_v21 = vld [vmem:[%s35143_s27 + $0x28e8] sm:$0xff]  }
 0x502   : > { %v30772_v29 = vpop.f32.mrf.mxu0  ;;  %31064 = vmatprep.subr.bf16.mxu0 %v33915_v25  ;;  %31085 = vmatpush3.bf16.msra.mxu1 %v33914_v22  ;;  %v33951_v24 = vld [vmem:[%s35143_s27 + $0x28a8] sm:$0xff]   ;;  %v33952_v25 = vld [vmem:[%s35143_s27 + $0x2860] sm:$0xff]   ;;  %v33957_v31 = vld [vmem:[%s35143_s27 + $0x2818] sm:$0xff]  }
 0x503   : > { %v36626_v32 = vadd.f32 %v30792_v27, %v23610_v26  ;;  %v30794_v35 = vpop.f32.mrf.mxu1  ;;  %31086 = vmatprep.subr.bf16.mxu1 %v33917_v30  ;;  %v33953_v27 = vld [vmem:[%s35143_s27 + $0x2820] sm:$0xff]   ;;  %v33956_v30 = vld [vmem:[%s35143_s27 + $0x2858] sm:$0xff]   ;;  %v33981_v7 = vld [vmem:[%s35143_s27 + $0x2968] sm:$0xff]  }
 0x504   : > { %v33955_v29 = vld [vmem:[%s35143_s27 + $0x28a0] sm:$0xff]   ;;  %v33961_v35 = vld [vmem:[%s35143_s27 + $0x2810] sm:$0xff]  }
 0x505   : > { %31065 = vmatpush3.bf16.msra.mxu0 %v33916_v28  ;;  %v33954_v28 = vld [vmem:[%s35143_s27 + $0x28e0] sm:$0xff]  }
 0x506   : > { %31066 = vmatprep.subr.bf16.mxu0 %v33919_v34  ;;  %31087 = vmatpush3.bf16.msra.mxu1 %v33918_v33  ;;  %v33959_v33 = vld [vmem:[%s35143_s27 + $0x2898] sm:$0xff]   ;;  %v33960_v34 = vld [vmem:[%s35143_s27 + $0x2850] sm:$0xff]  }
 0x507   : > { %31088 = vmatprep.subr.bf16.mxu1 %v33921_v37  ;;  %v33963_v37 = vld [vmem:[%s35143_s27 + $0x2890] sm:$0xff]  }
 0x509   : > { %31067 = vmatpush3.bf16.msra.mxu0 %v33920_v36  ;;  %v33962_v36 = vld [vmem:[%s35143_s27 + $0x28d0] sm:$0xff]  }
 0x50a   : > { %31068 = vmatprep.subr.bf16.mxu0 %v33923_v39  ;;  %31089 = vmatpush3.bf16.msra.mxu1 %v33922_v38  ;;  %v33964_v38 = vld [vmem:[%s35143_s27 + $0x2848] sm:$0xff]  }
 0x50b   : > { %31090 = vmatprep.subr.bf16.mxu1 %v33925_v41  ;;  %v33965_v39 = vld [vmem:[%s35143_s27 + $0x2808] sm:$0xff]  }
 0x50c   : > { %v33967_v41 = vld [vmem:[%s35143_s27 + $0x2888] sm:$0xff]  }
 0x50d   : > { %31069 = vmatpush3.bf16.msra.mxu0 %v33924_v40  ;;  %v33966_v40 = vld [vmem:[%s35143_s27 + $0x28c8] sm:$0xff]  }
 0x50e   : > { %31070 = vmatprep.subr.bf16.mxu0 %v33927_v44  ;;  %31091 = vmatpush3.bf16.msra.mxu1 %v33926_v43  ;;  %v33968_v43 = vld [vmem:[%s35143_s27 + $0x2840] sm:$0xff]  }
 0x50f   : > { %31092 = vmatprep.subr.bf16.mxu1 %v33929_v46  ;;  %v33969_v44 = vld [vmem:[%s35143_s27 + $0x2800] sm:$0xff]  }
 0x510   : > { %v253_v46 = vld [vmem:[%s35138_s23 + $0x140] sm:$0xff] }
 0x511   : > { %31071 = vmatpush3.bf16.msra.mxu0 %v33928_v45  ;;  %v33970_v45 = vld [vmem:[%s35143_s27 + $0x28c0] sm:$0xff]  }
 0x512   : > { %31072 = vmatprep.subr.bf16.mxu0 %v33931_v48  ;;  %31093 = vmatpush3.bf16.msra.mxu1 %v33930_v47  ;;  %v1048_v47 = vrot.slane %v253_v46, %v35187_v42  ;;  %v33971_v48 = vld [vmem:[%s35143_s27 + $0x2880] sm:$0xff]  }
 0x513   : > { %31094 = vmatprep.subr.bf16.mxu1 %v33933_v50  ;;  %v33972_v50 = vld [vmem:[%s35143_s27 + $0x2978] sm:$0xff]  }
 0x515   : > { %31073 = vmatpush3.bf16.msra.mxu0 %v33932_v49  ;;  %v1041_v49 = vcombine.high %v253_v46, %v253_v46  ;;  %v34008_v46 = vld [vmem:[%s35143_s27 + $0x2af8] sm:$0xff]  }
 0x516   : > { %31074 = vmatprep.subr.bf16.mxu0 %v33935_v52  ;;  %31095 = vmatpush3.bf16.msra.mxu1 %v33934_v51  ;;  %v1056_v51 = vcombine.high %v1048_v47, %v1048_v47 }
 0x517   : > { %31096 = vmatprep.subr.bf16.mxu1 %v33937_v54  ;;  %v1055_v52 = vrot.slane %v1041_v49, %v35187_v42  ;;  %v2064_v54 = vpack.c.bf16 %v1048_v47, %v1048_v47  ;;  %v34009_v49 = vld [vmem:[%s35143_s27 + $0x2ab8] sm:$0xff]  }
 0x518   : > { %v2065_v56 = vpack.c.bf16 %v1056_v51, %v1056_v51 }
 0x519   : > { %31075 = vmatpush3.bf16.msra.mxu0 %v33936_v53  ;;  %v33974_v53 = vld [vmem:[%s35143_s27 + $0x2938] sm:$0xff]   ;;  %v2066_v60 = vpack.c.bf16 %v1055_v52, %v1055_v52 }
 0x51a   : > { %31104 = vmatprep.subr.bf16.mxu0 %v33939_v59  ;;  %31097 = vmatpush3.bf16.msra.mxu1 %v33938_v57  ;;  %v1057_v57 = vcombine.high %v1055_v52, %v1055_v52  ;;  %v34010_v52 = vld [vmem:[%s35143_s27 + $0x2a70] sm:$0xff]  }
 0x51b   : > { %31126 = vmatprep.subr.bf16.mxu1 %v33942_v0 }
 0x51c   : > { %v30812_v4 = vpop.f32.mrf.mxu0  ;;  %24168 = vmatmul.mubr.bf16.vlgmr.msra.gmra.mxu0 %v2060_v63  ;;  %v33978_v63 = vld [vmem:[%s35143_s27 + $0x2930] sm:$0xff]  }
 0x51d   : > { %v30834_v10 = vpop.f32.mrf.mxu1  ;;  %31105 = vmatpush3.bf16.msra.mxu0 %v33941_v62  ;;  %24208 = vmatmul.mubr.bf16.vlgmr.msra.gmra.mxu1 %v2062_v5  ;;  %v2067_v62 = vpack.c.bf16 %v1057_v57, %v1057_v57  ;;  %v34012_v57 = vld [vmem:[%s35143_s27 + $0x2af0] sm:$0xff]  }
 0x51e   : > { %v30813_v9 = vpop.f32.mrf.mxu0  ;;  %31106 = vmatprep.subr.bf16.mxu0 %v33944_v6  ;;  %31127 = vmatpush3.bf16.msra.mxu1 %v33943_v3 }
 0x51f   : > { %v30814_v12 = vadd.f32 %v30813_v9, %v30812_v4  ;;  %v30835_v15 = vpop.f32.mrf.mxu1  ;;  %31128 = vmatprep.subr.bf16.mxu1 %v33946_v11  ;;  %24247 = vmatprep.mubr.bf16.mxu0 %v2065_v56  ;;  %v33980_v4 = vld [vmem:[%s35143_s27 + $0x29b0] sm:$0xff]  }
 0x520   : > { %v30815_v14 = vpop.f32.mrf.mxu0  ;;  %v30836_v18 = vadd.f32 %v30835_v15, %v30834_v10  ;;  %24287 = vmatprep.mubr.bf16.mxu1 %v2067_v62  ;;  %v33982_v10 = vld [vmem:[%s35143_s27 + $0x2928] sm:$0xff]  }
 0x521   : > { %v23690_v17 = vadd.f32 %v30814_v12, %v36626_v32  ;;  %v30837_v22 = vpop.f32.mrf.mxu1  ;;  %31107 = vmatpush3.bf16.msra.mxu0 %v33945_v8  ;;  %v33958_v32 = vld [vmem:[%s35143_s27 + $0x28d8] sm:$0xff]   ;;  %v33983_v12 = vld [vmem:[%s35143_s27 + $0x29e8] sm:$0xff]  }
 0x522   : > { %v30816_v20 = vpop.f32.mrf.mxu0  ;;  %31108 = vmatprep.subr.bf16.mxu0 %v33948_v16  ;;  %31129 = vmatpush3.bf16.msra.mxu1 %v33947_v13  ;;  %v33984_v15 = vld [vmem:[%s35143_s27 + $0x29a8] sm:$0xff]   ;;  %v33985_v16 = vld [vmem:[%s35143_s27 + $0x2960] sm:$0xff]   ;;  %v33990_v22 = vld [vmem:[%s35143_s27 + $0x2918] sm:$0xff]  }
 0x523   : > { %v36664_v23 = vadd.f32 %v30836_v18, %v23690_v17  ;;  %v30838_v26 = vpop.f32.mrf.mxu1  ;;  %31130 = vmatprep.subr.bf16.mxu1 %v33950_v21  ;;  %v33986_v18 = vld [vmem:[%s35143_s27 + $0x2920] sm:$0xff]   ;;  %v33989_v21 = vld [vmem:[%s35143_s27 + $0x2958] sm:$0xff]   ;;  %v34014_v62 = vld [vmem:[%s35143_s27 + $0x2a68] sm:$0xff]  }
 0x524   : > { %v33988_v20 = vld [vmem:[%s35143_s27 + $0x29a0] sm:$0xff]   ;;  %v33994_v26 = vld [vmem:[%s35143_s27 + $0x2910] sm:$0xff]  }
 0x525   : > { %31109 = vmatpush3.bf16.msra.mxu0 %v33949_v19  ;;  %v33987_v19 = vld [vmem:[%s35143_s27 + $0x29e0] sm:$0xff]  }
 0x526   : > { %31110 = vmatprep.subr.bf16.mxu0 %v33952_v25  ;;  %31131 = vmatpush3.bf16.msra.mxu1 %v33951_v24  ;;  %v33992_v24 = vld [vmem:[%s35143_s27 + $0x2998] sm:$0xff]   ;;  %v33993_v25 = vld [vmem:[%s35143_s27 + $0x2950] sm:$0xff]  }
 0x527   : > { %31132 = vmatprep.subr.bf16.mxu1 %v33954_v28  ;;  %v33996_v28 = vld [vmem:[%s35143_s27 + $0x2990] sm:$0xff]  }
 0x529   : > { %31111 = vmatpush3.bf16.msra.mxu0 %v33953_v27  ;;  %v33995_v27 = vld [vmem:[%s35143_s27 + $0x29d0] sm:$0xff]  }
 0x52a   : > { %31112 = vmatprep.subr.bf16.mxu0 %v33956_v30  ;;  %31133 = vmatpush3.bf16.msra.mxu1 %v33955_v29  ;;  %v33997_v29 = vld [vmem:[%s35143_s27 + $0x2948] sm:$0xff]  }
 0x52b   : > { %31134 = vmatprep.subr.bf16.mxu1 %v33958_v32  ;;  %v33998_v30 = vld [vmem:[%s35143_s27 + $0x2908] sm:$0xff]  }
 0x52c   : > { %v34000_v32 = vld [vmem:[%s35143_s27 + $0x2988] sm:$0xff]  }
 0x52d   : > { %31113 = vmatpush3.bf16.msra.mxu0 %v33957_v31  ;;  %v33999_v31 = vld [vmem:[%s35143_s27 + $0x29c8] sm:$0xff]  }
 0x52e   : > { %31114 = vmatprep.subr.bf16.mxu0 %v33960_v34  ;;  %31135 = vmatpush3.bf16.msra.mxu1 %v33959_v33  ;;  %v34001_v33 = vld [vmem:[%s35143_s27 + $0x2940] sm:$0xff]  }
 0x52f   : > { %31136 = vmatprep.subr.bf16.mxu1 %v33962_v36  ;;  %v34002_v34 = vld [vmem:[%s35143_s27 + $0x2900] sm:$0xff]   ;;  %v254_v36 = vld [vmem:[%s35138_s23 + $0x148] sm:$0xff] }
 0x531   : > { %31115 = vmatpush3.bf16.msra.mxu0 %v33961_v35  ;;  %v34003_v35 = vld [vmem:[%s35143_s27 + $0x29c0] sm:$0xff]  }
 0x532   : > { %31116 = vmatprep.subr.bf16.mxu0 %v33964_v38  ;;  %31137 = vmatpush3.bf16.msra.mxu1 %v33963_v37  ;;  %v1065_v37 = vrot.slane %v254_v36, %v35187_v42  ;;  %v34004_v38 = vld [vmem:[%s35143_s27 + $0x2980] sm:$0xff]  }
 0x533   : > { %31138 = vmatprep.subr.bf16.mxu1 %v33966_v40  ;;  %v34005_v40 = vld [vmem:[%s35143_s27 + $0x2a78] sm:$0xff]  }
 0x535   : > { %31117 = vmatpush3.bf16.msra.mxu0 %v33965_v39  ;;  %v1058_v39 = vcombine.high %v254_v36, %v254_v36  ;;  %v34041_v36 = vld [vmem:[%s35143_s27 + $0x2bf8] sm:$0xff]  }
 0x536   : > { %31118 = vmatprep.subr.bf16.mxu0 %v33968_v43  ;;  %31139 = vmatpush3.bf16.msra.mxu1 %v33967_v41  ;;  %v1073_v41 = vcombine.high %v1065_v37, %v1065_v37 }
 0x537   : > { %31140 = vmatprep.subr.bf16.mxu1 %v33970_v45  ;;  %v1072_v43 = vrot.slane %v1058_v39, %v35187_v42  ;;  %v2068_v45 = vpack.c.bf16 %v1065_v37, %v1065_v37  ;;  %v34042_v39 = vld [vmem:[%s35143_s27 + $0x2bb8] sm:$0xff]  }
 0x538   : > { %v2069_v47 = vpack.c.bf16 %v1073_v41, %v1073_v41 }
 0x539   : > { %31119 = vmatpush3.bf16.msra.mxu0 %v33969_v44  ;;  %v34007_v44 = vld [vmem:[%s35143_s27 + $0x2a38] sm:$0xff]   ;;  %v2070_v51 = vpack.c.bf16 %v1072_v43, %v1072_v43 }
 0x53a   : > { %31148 = vmatprep.subr.bf16.mxu0 %v33972_v50  ;;  %31141 = vmatpush3.bf16.msra.mxu1 %v33971_v48  ;;  %v1074_v48 = vcombine.high %v1072_v43, %v1072_v43  ;;  %v34043_v43 = vld [vmem:[%s35143_s27 + $0x2b70] sm:$0xff]  }
 0x53b   : > { %31170 = vmatprep.subr.bf16.mxu1 %v33975_v55 }
 0x53c   : > { %v30856_v59 = vpop.f32.mrf.mxu0  ;;  %24248 = vmatmul.mubr.bf16.vlgmr.msra.gmra.mxu0 %v2064_v54  ;;  %v34011_v54 = vld [vmem:[%s35143_s27 + $0x2a30] sm:$0xff]  }
 0x53d   : > { %v30878_v1 = vpop.f32.mrf.mxu1  ;;  %31149 = vmatpush3.bf16.msra.mxu0 %v33974_v53  ;;  %24288 = vmatmul.mubr.bf16.vlgmr.msra.gmra.mxu1 %v2066_v60  ;;  %v2071_v53 = vpack.c.bf16 %v1074_v48, %v1074_v48  ;;  %v34045_v48 = vld [vmem:[%s35143_s27 + $0x2bf0] sm:$0xff]  }
 0x53e   : > { %v30857_v0 = vpop.f32.mrf.mxu0  ;;  %31150 = vmatprep.subr.bf16.mxu0 %v33977_v61  ;;  %31171 = vmatpush3.bf16.msra.mxu1 %v33976_v58 }
 0x53f   : > { %v30858_v3 = vadd.f32 %v30857_v0, %v30856_v59  ;;  %v30879_v6 = vpop.f32.mrf.mxu1  ;;  %31172 = vmatprep.subr.bf16.mxu1 %v33979_v2  ;;  %24327 = vmatprep.mubr.bf16.mxu0 %v2069_v47  ;;  %v34013_v59 = vld [vmem:[%s35143_s27 + $0x2ab0] sm:$0xff]  }
 0x540   : > { %v30859_v5 = vpop.f32.mrf.mxu0  ;;  %v30880_v9 = vadd.f32 %v30879_v6, %v30878_v1  ;;  %24367 = vmatprep.mubr.bf16.mxu1 %v2071_v53  ;;  %v34015_v1 = vld [vmem:[%s35143_s27 + $0x2a28] sm:$0xff]  }
 0x541   : > { %v23770_v8 = vadd.f32 %v30858_v3, %v36664_v23  ;;  %v30881_v13 = vpop.f32.mrf.mxu1  ;;  %31151 = vmatpush3.bf16.msra.mxu0 %v33978_v63  ;;  %v33991_v23 = vld [vmem:[%s35143_s27 + $0x29d8] sm:$0xff]   ;;  %v34016_v3 = vld [vmem:[%s35143_s27 + $0x2ae8] sm:$0xff]  }
 0x542   : > { %v30860_v11 = vpop.f32.mrf.mxu0  ;;  %31152 = vmatprep.subr.bf16.mxu0 %v33981_v7  ;;  %31173 = vmatpush3.bf16.msra.mxu1 %v33980_v4  ;;  %v34017_v6 = vld [vmem:[%s35143_s27 + $0x2aa8] sm:$0xff]   ;;  %v34018_v7 = vld [vmem:[%s35143_s27 + $0x2a60] sm:$0xff]   ;;  %v34023_v13 = vld [vmem:[%s35143_s27 + $0x2a18] sm:$0xff]  }
 0x543   : > { %v36702_v14 = vadd.f32 %v30880_v9, %v23770_v8  ;;  %v30882_v17 = vpop.f32.mrf.mxu1  ;;  %31174 = vmatprep.subr.bf16.mxu1 %v33983_v12  ;;  %v34019_v9 = vld [vmem:[%s35143_s27 + $0x2a20] sm:$0xff]   ;;  %v34022_v12 = vld [vmem:[%s35143_s27 + $0x2a58] sm:$0xff]   ;;  %v34047_v53 = vld [vmem:[%s35143_s27 + $0x2b68] sm:$0xff]  }
 0x544   : > { %v34021_v11 = vld [vmem:[%s35143_s27 + $0x2aa0] sm:$0xff]   ;;  %v34027_v17 = vld [vmem:[%s35143_s27 + $0x2a10] sm:$0xff]  }
 0x545   : > { %31153 = vmatpush3.bf16.msra.mxu0 %v33982_v10  ;;  %v34020_v10 = vld [vmem:[%s35143_s27 + $0x2ae0] sm:$0xff]  }
 0x546   : > { %31154 = vmatprep.subr.bf16.mxu0 %v33985_v16  ;;  %31175 = vmatpush3.bf16.msra.mxu1 %v33984_v15  ;;  %v34025_v15 = vld [vmem:[%s35143_s27 + $0x2a98] sm:$0xff]   ;;  %v34026_v16 = vld [vmem:[%s35143_s27 + $0x2a50] sm:$0xff]  }
 0x547   : > { %31176 = vmatprep.subr.bf16.mxu1 %v33987_v19  ;;  %v34029_v19 = vld [vmem:[%s35143_s27 + $0x2a90] sm:$0xff]  }
 0x549   : > { %31155 = vmatpush3.bf16.msra.mxu0 %v33986_v18  ;;  %v34028_v18 = vld [vmem:[%s35143_s27 + $0x2ad0] sm:$0xff]  }
 0x54a   : > { %31156 = vmatprep.subr.bf16.mxu0 %v33989_v21  ;;  %31177 = vmatpush3.bf16.msra.mxu1 %v33988_v20  ;;  %v34030_v20 = vld [vmem:[%s35143_s27 + $0x2a48] sm:$0xff]  }
 0x54b   : > { %31178 = vmatprep.subr.bf16.mxu1 %v33991_v23  ;;  %v34031_v21 = vld [vmem:[%s35143_s27 + $0x2a08] sm:$0xff]  }
 0x54c   : > { %v34033_v23 = vld [vmem:[%s35143_s27 + $0x2a88] sm:$0xff]  }
 0x54d   : > { %31157 = vmatpush3.bf16.msra.mxu0 %v33990_v22  ;;  %v34032_v22 = vld [vmem:[%s35143_s27 + $0x2ac8] sm:$0xff]  }
 0x54e   : > { %31158 = vmatprep.subr.bf16.mxu0 %v33993_v25  ;;  %31179 = vmatpush3.bf16.msra.mxu1 %v33992_v24  ;;  %v34034_v24 = vld [vmem:[%s35143_s27 + $0x2a40] sm:$0xff]  }
 0x54f   : > { %31180 = vmatprep.subr.bf16.mxu1 %v33995_v27  ;;  %v34035_v25 = vld [vmem:[%s35143_s27 + $0x2a00] sm:$0xff]   ;;  %v255_v27 = vld [vmem:[%s35138_s23 + $0x150] sm:$0xff] }
 0x551   : > { %31159 = vmatpush3.bf16.msra.mxu0 %v33994_v26  ;;  %v34036_v26 = vld [vmem:[%s35143_s27 + $0x2ac0] sm:$0xff]  }
 0x552   : > { %31160 = vmatprep.subr.bf16.mxu0 %v33997_v29  ;;  %31181 = vmatpush3.bf16.msra.mxu1 %v33996_v28  ;;  %v1082_v28 = vrot.slane %v255_v27, %v35187_v42  ;;  %v34037_v29 = vld [vmem:[%s35143_s27 + $0x2a80] sm:$0xff]  }
 0x553   : > { %31182 = vmatprep.subr.bf16.mxu1 %v33999_v31  ;;  %v34038_v31 = vld [vmem:[%s35143_s27 + $0x2b78] sm:$0xff]  }
 0x555   : > { %31161 = vmatpush3.bf16.msra.mxu0 %v33998_v30  ;;  %v1075_v30 = vcombine.high %v255_v27, %v255_v27  ;;  %v34074_v27 = vld [vmem:[%s35143_s27 + $0x2cf8] sm:$0xff]  }
 0x556   : > { %31162 = vmatprep.subr.bf16.mxu0 %v34001_v33  ;;  %31183 = vmatpush3.bf16.msra.mxu1 %v34000_v32  ;;  %v1090_v32 = vcombine.high %v1082_v28, %v1082_v28 }
 0x557   : > { %31184 = vmatprep.subr.bf16.mxu1 %v34003_v35  ;;  %v1089_v33 = vrot.slane %v1075_v30, %v35187_v42  ;;  %v2072_v35 = vpack.c.bf16 %v1082_v28, %v1082_v28  ;;  %v34075_v30 = vld [vmem:[%s35143_s27 + $0x2cb8] sm:$0xff]  }
 0x558   : > { %v2073_v37 = vpack.c.bf16 %v1090_v32, %v1090_v32 }
 0x559   : > { %31163 = vmatpush3.bf16.msra.mxu0 %v34002_v34  ;;  %v34040_v34 = vld [vmem:[%s35143_s27 + $0x2b38] sm:$0xff]   ;;  %v2074_v41 = vpack.c.bf16 %v1089_v33, %v1089_v33 }
 0x55a   : > { %31192 = vmatprep.subr.bf16.mxu0 %v34005_v40  ;;  %31185 = vmatpush3.bf16.msra.mxu1 %v34004_v38  ;;  %v1091_v38 = vcombine.high %v1089_v33, %v1089_v33  ;;  %v34076_v33 = vld [vmem:[%s35143_s27 + $0x2c70] sm:$0xff]  }
 0x55b   : > { %31214 = vmatprep.subr.bf16.mxu1 %v34008_v46 }
 0x55c   : > { %v30900_v50 = vpop.f32.mrf.mxu0  ;;  %24328 = vmatmul.mubr.bf16.vlgmr.msra.gmra.mxu0 %v2068_v45  ;;  %v34044_v45 = vld [vmem:[%s35143_s27 + $0x2b30] sm:$0xff]  }
 0x55d   : > { %v30922_v56 = vpop.f32.mrf.mxu1  ;;  %31193 = vmatpush3.bf16.msra.mxu0 %v34007_v44  ;;  %24368 = vmatmul.mubr.bf16.vlgmr.msra.gmra.mxu1 %v2070_v51  ;;  %v2075_v44 = vpack.c.bf16 %v1091_v38, %v1091_v38  ;;  %v34078_v38 = vld [vmem:[%s35143_s27 + $0x2cf0] sm:$0xff]  }
 0x55e   : > { %v30901_v55 = vpop.f32.mrf.mxu0  ;;  %31194 = vmatprep.subr.bf16.mxu0 %v34010_v52  ;;  %31215 = vmatpush3.bf16.msra.mxu1 %v34009_v49 }
 0x55f   : > { %v30902_v58 = vadd.f32 %v30901_v55, %v30900_v50  ;;  %v30923_v61 = vpop.f32.mrf.mxu1  ;;  %31216 = vmatprep.subr.bf16.mxu1 %v34012_v57  ;;  %24407 = vmatprep.mubr.bf16.mxu0 %v2073_v37  ;;  %v34046_v50 = vld [vmem:[%s35143_s27 + $0x2bb0] sm:$0xff]  }
 0x560   : > { %v30903_v60 = vpop.f32.mrf.mxu0  ;;  %v30924_v0 = vadd.f32 %v30923_v61, %v30922_v56  ;;  %24447 = vmatprep.mubr.bf16.mxu1 %v2075_v44  ;;  %v34048_v56 = vld [vmem:[%s35143_s27 + $0x2b28] sm:$0xff]  }
 0x561   : > { %v23850_v63 = vadd.f32 %v30902_v58, %v36702_v14  ;;  %v30925_v4 = vpop.f32.mrf.mxu1  ;;  %31195 = vmatpush3.bf16.msra.mxu0 %v34011_v54  ;;  %v34024_v14 = vld [vmem:[%s35143_s27 + $0x2ad8] sm:$0xff]   ;;  %v34049_v58 = vld [vmem:[%s35143_s27 + $0x2be8] sm:$0xff]  }
 0x562   : > { %v30904_v2 = vpop.f32.mrf.mxu0  ;;  %31196 = vmatprep.subr.bf16.mxu0 %v34014_v62  ;;  %31217 = vmatpush3.bf16.msra.mxu1 %v34013_v59  ;;  %v34050_v61 = vld [vmem:[%s35143_s27 + $0x2ba8] sm:$0xff]   ;;  %v34051_v62 = vld [vmem:[%s35143_s27 + $0x2b60] sm:$0xff]   ;;  %v34056_v4 = vld [vmem:[%s35143_s27 + $0x2b18] sm:$0xff]  }
 0x563   : > { %v36740_v5 = vadd.f32 %v30924_v0, %v23850_v63  ;;  %v30926_v8 = vpop.f32.mrf.mxu1  ;;  %31218 = vmatprep.subr.bf16.mxu1 %v34016_v3  ;;  %v34052_v0 = vld [vmem:[%s35143_s27 + $0x2b20] sm:$0xff]   ;;  %v34055_v3 = vld [vmem:[%s35143_s27 + $0x2b58] sm:$0xff]   ;;  %v34080_v44 = vld [vmem:[%s35143_s27 + $0x2c68] sm:$0xff]  }
 0x564   : > { %v34054_v2 = vld [vmem:[%s35143_s27 + $0x2ba0] sm:$0xff]   ;;  %v34060_v8 = vld [vmem:[%s35143_s27 + $0x2b10] sm:$0xff]  }
 0x565   : > { %31197 = vmatpush3.bf16.msra.mxu0 %v34015_v1  ;;  %v34053_v1 = vld [vmem:[%s35143_s27 + $0x2be0] sm:$0xff]  }
 0x566   : > { %31198 = vmatprep.subr.bf16.mxu0 %v34018_v7  ;;  %31219 = vmatpush3.bf16.msra.mxu1 %v34017_v6  ;;  %v34058_v6 = vld [vmem:[%s35143_s27 + $0x2b98] sm:$0xff]   ;;  %v34059_v7 = vld [vmem:[%s35143_s27 + $0x2b50] sm:$0xff]  }
 0x567   : > { %31220 = vmatprep.subr.bf16.mxu1 %v34020_v10  ;;  %v34062_v10 = vld [vmem:[%s35143_s27 + $0x2b90] sm:$0xff]  }
 0x569   : > { %31199 = vmatpush3.bf16.msra.mxu0 %v34019_v9  ;;  %v34061_v9 = vld [vmem:[%s35143_s27 + $0x2bd0] sm:$0xff]  }
 0x56a   : > { %31200 = vmatprep.subr.bf16.mxu0 %v34022_v12  ;;  %31221 = vmatpush3.bf16.msra.mxu1 %v34021_v11  ;;  %v34063_v11 = vld [vmem:[%s35143_s27 + $0x2b48] sm:$0xff]  }
 0x56b   : > { %31222 = vmatprep.subr.bf16.mxu1 %v34024_v14  ;;  %v34064_v12 = vld [vmem:[%s35143_s27 + $0x2b08] sm:$0xff]  }
 0x56c   : > { %v34066_v14 = vld [vmem:[%s35143_s27 + $0x2b88] sm:$0xff]  }
 0x56d   : > { %31201 = vmatpush3.bf16.msra.mxu0 %v34023_v13  ;;  %v34065_v13 = vld [vmem:[%s35143_s27 + $0x2bc8] sm:$0xff]  }
 0x56e   : > { %31202 = vmatprep.subr.bf16.mxu0 %v34026_v16  ;;  %31223 = vmatpush3.bf16.msra.mxu1 %v34025_v15  ;;  %v34067_v15 = vld [vmem:[%s35143_s27 + $0x2b40] sm:$0xff]  }
 0x56f   : > { %31224 = vmatprep.subr.bf16.mxu1 %v34028_v18  ;;  %v34068_v16 = vld [vmem:[%s35143_s27 + $0x2b00] sm:$0xff]   ;;  %v256_v18 = vld [vmem:[%s35138_s23 + $0x158] sm:$0xff] }
 0x571   : > { %31203 = vmatpush3.bf16.msra.mxu0 %v34027_v17  ;;  %v34069_v17 = vld [vmem:[%s35143_s27 + $0x2bc0] sm:$0xff]  }
 0x572   : > { %31204 = vmatprep.subr.bf16.mxu0 %v34030_v20  ;;  %31225 = vmatpush3.bf16.msra.mxu1 %v34029_v19  ;;  %v1099_v19 = vrot.slane %v256_v18, %v35187_v42  ;;  %v34070_v20 = vld [vmem:[%s35143_s27 + $0x2b80] sm:$0xff]  }
 0x573   : > { %31226 = vmatprep.subr.bf16.mxu1 %v34032_v22  ;;  %v34071_v22 = vld [vmem:[%s35143_s27 + $0x2c78] sm:$0xff]  }
 0x575   : > { %31205 = vmatpush3.bf16.msra.mxu0 %v34031_v21  ;;  %v1092_v21 = vcombine.high %v256_v18, %v256_v18  ;;  %v34107_v18 = vld [vmem:[%s35143_s27 + $0x2df8] sm:$0xff]  }
 0x576   : > { %31206 = vmatprep.subr.bf16.mxu0 %v34034_v24  ;;  %31227 = vmatpush3.bf16.msra.mxu1 %v34033_v23  ;;  %v1107_v23 = vcombine.high %v1099_v19, %v1099_v19 }
 0x577   : > { %31228 = vmatprep.subr.bf16.mxu1 %v34036_v26  ;;  %v1106_v24 = vrot.slane %v1092_v21, %v35187_v42  ;;  %v2076_v26 = vpack.c.bf16 %v1099_v19, %v1099_v19  ;;  %v34108_v21 = vld [vmem:[%s35143_s27 + $0x2db8] sm:$0xff]  }
 0x578   : > { %v2077_v28 = vpack.c.bf16 %v1107_v23, %v1107_v23 }
 0x579   : > { %31207 = vmatpush3.bf16.msra.mxu0 %v34035_v25  ;;  %v34073_v25 = vld [vmem:[%s35143_s27 + $0x2c38] sm:$0xff]   ;;  %v2078_v32 = vpack.c.bf16 %v1106_v24, %v1106_v24 }
 0x57a   : > { %31236 = vmatprep.subr.bf16.mxu0 %v34038_v31  ;;  %31229 = vmatpush3.bf16.msra.mxu1 %v34037_v29  ;;  %v1108_v29 = vcombine.high %v1106_v24, %v1106_v24  ;;  %v34109_v24 = vld [vmem:[%s35143_s27 + $0x2d70] sm:$0xff]  }
 0x57b   : > { %31258 = vmatprep.subr.bf16.mxu1 %v34041_v36 }
 0x57c   : > { %v30944_v40 = vpop.f32.mrf.mxu0  ;;  %24408 = vmatmul.mubr.bf16.vlgmr.msra.gmra.mxu0 %v2072_v35  ;;  %v34077_v35 = vld [vmem:[%s35143_s27 + $0x2c30] sm:$0xff]  }
 0x57d   : > { %v30966_v47 = vpop.f32.mrf.mxu1  ;;  %31237 = vmatpush3.bf16.msra.mxu0 %v34040_v34  ;;  %24448 = vmatmul.mubr.bf16.vlgmr.msra.gmra.mxu1 %v2074_v41  ;;  %v2079_v34 = vpack.c.bf16 %v1108_v29, %v1108_v29  ;;  %v34111_v29 = vld [vmem:[%s35143_s27 + $0x2df0] sm:$0xff]  }
 0x57e   : > { %v30945_v46 = vpop.f32.mrf.mxu0  ;;  %31238 = vmatprep.subr.bf16.mxu0 %v34043_v43  ;;  %31259 = vmatpush3.bf16.msra.mxu1 %v34042_v39 }
 0x57f   : > { %v30946_v49 = vadd.f32 %v30945_v46, %v30944_v40  ;;  %v30967_v52 = vpop.f32.mrf.mxu1  ;;  %31260 = vmatprep.subr.bf16.mxu1 %v34045_v48  ;;  %24487 = vmatprep.mubr.bf16.mxu0 %v2077_v28  ;;  %v34079_v40 = vld [vmem:[%s35143_s27 + $0x2cb0] sm:$0xff]  }
 0x580   : > { %v30947_v51 = vpop.f32.mrf.mxu0  ;;  %v30968_v55 = vadd.f32 %v30967_v52, %v30966_v47  ;;  %24527 = vmatprep.mubr.bf16.mxu1 %v2079_v34  ;;  %v34081_v47 = vld [vmem:[%s35143_s27 + $0x2c28] sm:$0xff]  }
 0x581   : > { %v23930_v54 = vadd.f32 %v30946_v49, %v36740_v5  ;;  %v30969_v59 = vpop.f32.mrf.mxu1  ;;  %31239 = vmatpush3.bf16.msra.mxu0 %v34044_v45  ;;  %v34057_v5 = vld [vmem:[%s35143_s27 + $0x2bd8] sm:$0xff]   ;;  %v34082_v49 = vld [vmem:[%s35143_s27 + $0x2ce8] sm:$0xff]  }
 0x582   : > { %v30948_v57 = vpop.f32.mrf.mxu0  ;;  %31240 = vmatprep.subr.bf16.mxu0 %v34047_v53  ;;  %31261 = vmatpush3.bf16.msra.mxu1 %v34046_v50  ;;  %v34083_v52 = vld [vmem:[%s35143_s27 + $0x2ca8] sm:$0xff]   ;;  %v34084_v53 = vld [vmem:[%s35143_s27 + $0x2c60] sm:$0xff]   ;;  %v34089_v59 = vld [vmem:[%s35143_s27 + $0x2c18] sm:$0xff]  }
 0x583   : > { %v36778_v60 = vadd.f32 %v30968_v55, %v23930_v54  ;;  %v30970_v63 = vpop.f32.mrf.mxu1  ;;  %31262 = vmatprep.subr.bf16.mxu1 %v34049_v58  ;;  %v34085_v55 = vld [vmem:[%s35143_s27 + $0x2c20] sm:$0xff]   ;;  %v34088_v58 = vld [vmem:[%s35143_s27 + $0x2c58] sm:$0xff]   ;;  %v34113_v34 = vld [vmem:[%s35143_s27 + $0x2d68] sm:$0xff]  }
 0x584   : > { %v34087_v57 = vld [vmem:[%s35143_s27 + $0x2ca0] sm:$0xff]   ;;  %v34093_v63 = vld [vmem:[%s35143_s27 + $0x2c10] sm:$0xff]  }
 0x585   : > { %31241 = vmatpush3.bf16.msra.mxu0 %v34048_v56  ;;  %v34086_v56 = vld [vmem:[%s35143_s27 + $0x2ce0] sm:$0xff]  }
 0x586   : > { %31242 = vmatprep.subr.bf16.mxu0 %v34051_v62  ;;  %31263 = vmatpush3.bf16.msra.mxu1 %v34050_v61  ;;  %v34091_v61 = vld [vmem:[%s35143_s27 + $0x2c98] sm:$0xff]   ;;  %v34092_v62 = vld [vmem:[%s35143_s27 + $0x2c50] sm:$0xff]  }
 0x587   : > { %31264 = vmatprep.subr.bf16.mxu1 %v34053_v1  ;;  %v34095_v1 = vld [vmem:[%s35143_s27 + $0x2c90] sm:$0xff]  }
 0x589   : > { %31243 = vmatpush3.bf16.msra.mxu0 %v34052_v0  ;;  %v34094_v0 = vld [vmem:[%s35143_s27 + $0x2cd0] sm:$0xff]  }
 0x58a   : > { %31244 = vmatprep.subr.bf16.mxu0 %v34055_v3  ;;  %31265 = vmatpush3.bf16.msra.mxu1 %v34054_v2  ;;  %v34096_v2 = vld [vmem:[%s35143_s27 + $0x2c48] sm:$0xff]  }
 0x58b   : > { %31266 = vmatprep.subr.bf16.mxu1 %v34057_v5  ;;  %v34097_v3 = vld [vmem:[%s35143_s27 + $0x2c08] sm:$0xff]  }
 0x58c   : > { %v34099_v5 = vld [vmem:[%s35143_s27 + $0x2c88] sm:$0xff]  }
 0x58d   : > { %31245 = vmatpush3.bf16.msra.mxu0 %v34056_v4  ;;  %v34098_v4 = vld [vmem:[%s35143_s27 + $0x2cc8] sm:$0xff]  }
 0x58e   : > { %31246 = vmatprep.subr.bf16.mxu0 %v34059_v7  ;;  %31267 = vmatpush3.bf16.msra.mxu1 %v34058_v6  ;;  %v34100_v6 = vld [vmem:[%s35143_s27 + $0x2c40] sm:$0xff]  }
 0x58f   : > { %31268 = vmatprep.subr.bf16.mxu1 %v34061_v9  ;;  %v34101_v7 = vld [vmem:[%s35143_s27 + $0x2c00] sm:$0xff]  }
 0x590   : > { %v257_v9 = vld [vmem:[%s35138_s23 + $0x160] sm:$0xff] }
 0x591   : > { %31247 = vmatpush3.bf16.msra.mxu0 %v34060_v8  ;;  %v34102_v8 = vld [vmem:[%s35143_s27 + $0x2cc0] sm:$0xff]  }
 0x592   : > { %31248 = vmatprep.subr.bf16.mxu0 %v34063_v11  ;;  %31269 = vmatpush3.bf16.msra.mxu1 %v34062_v10  ;;  %v1116_v10 = vrot.slane %v257_v9, %v35187_v42  ;;  %v34103_v11 = vld [vmem:[%s35143_s27 + $0x2c80] sm:$0xff]  }
 0x593   : > { %31270 = vmatprep.subr.bf16.mxu1 %v34065_v13  ;;  %v34104_v13 = vld [vmem:[%s35143_s27 + $0x2d78] sm:$0xff]  }
 0x595   : > { %31249 = vmatpush3.bf16.msra.mxu0 %v34064_v12  ;;  %v1109_v12 = vcombine.high %v257_v9, %v257_v9  ;;  %v34140_v9 = vld [vmem:[%s35143_s27 + $0x2ef8] sm:$0xff]  }
 0x596   : > { %31250 = vmatprep.subr.bf16.mxu0 %v34067_v15  ;;  %31271 = vmatpush3.bf16.msra.mxu1 %v34066_v14  ;;  %v1124_v14 = vcombine.high %v1116_v10, %v1116_v10 }
 0x597   : > { %31272 = vmatprep.subr.bf16.mxu1 %v34069_v17  ;;  %v1123_v15 = vrot.slane %v1109_v12, %v35187_v42  ;;  %v2080_v17 = vpack.c.bf16 %v1116_v10, %v1116_v10  ;;  %v34141_v12 = vld [vmem:[%s35143_s27 + $0x2eb8] sm:$0xff]  }
 0x598   : > { %v2081_v19 = vpack.c.bf16 %v1124_v14, %v1124_v14 }
 0x599   : > { %31251 = vmatpush3.bf16.msra.mxu0 %v34068_v16  ;;  %v34106_v16 = vld [vmem:[%s35143_s27 + $0x2d38] sm:$0xff]   ;;  %v2082_v23 = vpack.c.bf16 %v1123_v15, %v1123_v15 }
 0x59a   : > { %31280 = vmatprep.subr.bf16.mxu0 %v34071_v22  ;;  %31273 = vmatpush3.bf16.msra.mxu1 %v34070_v20  ;;  %v1125_v20 = vcombine.high %v1123_v15, %v1123_v15  ;;  %v34142_v15 = vld [vmem:[%s35143_s27 + $0x2e70] sm:$0xff]  }
 0x59b   : > { %31302 = vmatprep.subr.bf16.mxu1 %v34074_v27 }
 0x59c   : > { %v30988_v31 = vpop.f32.mrf.mxu0  ;;  %24488 = vmatmul.mubr.bf16.vlgmr.msra.gmra.mxu0 %v2076_v26  ;;  %v34110_v26 = vld [vmem:[%s35143_s27 + $0x2d30] sm:$0xff]  }
 0x59d   : > { %v31010_v37 = vpop.f32.mrf.mxu1  ;;  %31281 = vmatpush3.bf16.msra.mxu0 %v34073_v25  ;;  %24528 = vmatmul.mubr.bf16.vlgmr.msra.gmra.mxu1 %v2078_v32  ;;  %v2083_v25 = vpack.c.bf16 %v1125_v20, %v1125_v20  ;;  %v34144_v20 = vld [vmem:[%s35143_s27 + $0x2ef0] sm:$0xff]  }
 0x59e   : > { %v30989_v36 = vpop.f32.mrf.mxu0  ;;  %31282 = vmatprep.subr.bf16.mxu0 %v34076_v33  ;;  %31303 = vmatpush3.bf16.msra.mxu1 %v34075_v30 }
 0x59f   : > { %v30990_v39 = vadd.f32 %v30989_v36, %v30988_v31  ;;  %v31011_v43 = vpop.f32.mrf.mxu1  ;;  %31304 = vmatprep.subr.bf16.mxu1 %v34078_v38  ;;  %24567 = vmatprep.mubr.bf16.mxu0 %v2081_v19  ;;  %v34112_v31 = vld [vmem:[%s35143_s27 + $0x2db0] sm:$0xff]  }
 0x5a0   : > { %v30991_v41 = vpop.f32.mrf.mxu0  ;;  %v31012_v46 = vadd.f32 %v31011_v43, %v31010_v37  ;;  %24607 = vmatprep.mubr.bf16.mxu1 %v2083_v25  ;;  %v34114_v37 = vld [vmem:[%s35143_s27 + $0x2d28] sm:$0xff]  }
 0x5a1   : > { %v24010_v45 = vadd.f32 %v30990_v39, %v36778_v60  ;;  %v31013_v50 = vpop.f32.mrf.mxu1  ;;  %31283 = vmatpush3.bf16.msra.mxu0 %v34077_v35  ;;  %v34090_v60 = vld [vmem:[%s35143_s27 + $0x2cd8] sm:$0xff]   ;;  %v34115_v39 = vld [vmem:[%s35143_s27 + $0x2de8] sm:$0xff]  }
 0x5a2   : > { %v30992_v48 = vpop.f32.mrf.mxu0  ;;  %31284 = vmatprep.subr.bf16.mxu0 %v34080_v44  ;;  %31305 = vmatpush3.bf16.msra.mxu1 %v34079_v40  ;;  %v34116_v43 = vld [vmem:[%s35143_s27 + $0x2da8] sm:$0xff]   ;;  %v34117_v44 = vld [vmem:[%s35143_s27 + $0x2d60] sm:$0xff]   ;;  %v34122_v50 = vld [vmem:[%s35143_s27 + $0x2d18] sm:$0xff]  }
 0x5a3   : > { %v36816_v51 = vadd.f32 %v31012_v46, %v24010_v45  ;;  %v31014_v54 = vpop.f32.mrf.mxu1  ;;  %31306 = vmatprep.subr.bf16.mxu1 %v34082_v49  ;;  %v34118_v46 = vld [vmem:[%s35143_s27 + $0x2d20] sm:$0xff]   ;;  %v34121_v49 = vld [vmem:[%s35143_s27 + $0x2d58] sm:$0xff]   ;;  %v34146_v25 = vld [vmem:[%s35143_s27 + $0x2e68] sm:$0xff]  }
 0x5a4   : > { %v34120_v48 = vld [vmem:[%s35143_s27 + $0x2da0] sm:$0xff]   ;;  %v34126_v54 = vld [vmem:[%s35143_s27 + $0x2d10] sm:$0xff]  }
 0x5a5   : > { %31285 = vmatpush3.bf16.msra.mxu0 %v34081_v47  ;;  %v34119_v47 = vld [vmem:[%s35143_s27 + $0x2de0] sm:$0xff]  }
 0x5a6   : > { %31286 = vmatprep.subr.bf16.mxu0 %v34084_v53  ;;  %31307 = vmatpush3.bf16.msra.mxu1 %v34083_v52  ;;  %v34124_v52 = vld [vmem:[%s35143_s27 + $0x2d98] sm:$0xff]   ;;  %v34125_v53 = vld [vmem:[%s35143_s27 + $0x2d50] sm:$0xff]  }
 0x5a7   : > { %31308 = vmatprep.subr.bf16.mxu1 %v34086_v56  ;;  %v34128_v56 = vld [vmem:[%s35143_s27 + $0x2d90] sm:$0xff]  }
 0x5a9   : > { %31287 = vmatpush3.bf16.msra.mxu0 %v34085_v55  ;;  %v34127_v55 = vld [vmem:[%s35143_s27 + $0x2dd0] sm:$0xff]  }
 0x5aa   : > { %31288 = vmatprep.subr.bf16.mxu0 %v34088_v58  ;;  %31309 = vmatpush3.bf16.msra.mxu1 %v34087_v57  ;;  %v34129_v57 = vld [vmem:[%s35143_s27 + $0x2d48] sm:$0xff]  }
 0x5ab   : > { %31310 = vmatprep.subr.bf16.mxu1 %v34090_v60  ;;  %v34130_v58 = vld [vmem:[%s35143_s27 + $0x2d08] sm:$0xff]  }
 0x5ac   : > { %v34132_v60 = vld [vmem:[%s35143_s27 + $0x2d88] sm:$0xff]  }
 0x5ad   : > { %31289 = vmatpush3.bf16.msra.mxu0 %v34089_v59  ;;  %v34131_v59 = vld [vmem:[%s35143_s27 + $0x2dc8] sm:$0xff]  }
 0x5ae   : > { %31290 = vmatprep.subr.bf16.mxu0 %v34092_v62  ;;  %31311 = vmatpush3.bf16.msra.mxu1 %v34091_v61  ;;  %v34133_v61 = vld [vmem:[%s35143_s27 + $0x2d40] sm:$0xff]  }
 0x5af   : > { %31312 = vmatprep.subr.bf16.mxu1 %v34094_v0  ;;  %v34134_v62 = vld [vmem:[%s35143_s27 + $0x2d00] sm:$0xff]   ;;  %v258_v0 = vld [vmem:[%s35138_s23 + $0x168] sm:$0xff] }
 0x5b1   : > { %31291 = vmatpush3.bf16.msra.mxu0 %v34093_v63  ;;  %v34135_v63 = vld [vmem:[%s35143_s27 + $0x2dc0] sm:$0xff]  }
 0x5b2   : > { %31292 = vmatprep.subr.bf16.mxu0 %v34096_v2  ;;  %31313 = vmatpush3.bf16.msra.mxu1 %v34095_v1  ;;  %v1133_v1 = vrot.slane %v258_v0, %v35187_v42  ;;  %v34136_v2 = vld [vmem:[%s35143_s27 + $0x2d80] sm:$0xff]  }
 0x5b3   : > { %31314 = vmatprep.subr.bf16.mxu1 %v34098_v4  ;;  %v34137_v4 = vld [vmem:[%s35143_s27 + $0x2e78] sm:$0xff]  }
 0x5b5   : > { %31293 = vmatpush3.bf16.msra.mxu0 %v34097_v3  ;;  %v1126_v3 = vcombine.high %v258_v0, %v258_v0  ;;  %v34173_v0 = vld [vmem:[%s35143_s27 + $0x2ff8] sm:$0xff]  }
 0x5b6   : > { %31294 = vmatprep.subr.bf16.mxu0 %v34100_v6  ;;  %31315 = vmatpush3.bf16.msra.mxu1 %v34099_v5  ;;  %v1141_v5 = vcombine.high %v1133_v1, %v1133_v1 }
 0x5b7   : > { %31316 = vmatprep.subr.bf16.mxu1 %v34102_v8  ;;  %v1140_v6 = vrot.slane %v1126_v3, %v35187_v42  ;;  %v2084_v8 = vpack.c.bf16 %v1133_v1, %v1133_v1  ;;  %v34174_v3 = vld [vmem:[%s35143_s27 + $0x2fb8] sm:$0xff]  }
 0x5b8   : > { %v2085_v10 = vpack.c.bf16 %v1141_v5, %v1141_v5 }
 0x5b9   : > { %31295 = vmatpush3.bf16.msra.mxu0 %v34101_v7  ;;  %v34139_v7 = vld [vmem:[%s35143_s27 + $0x2e38] sm:$0xff]   ;;  %v2086_v14 = vpack.c.bf16 %v1140_v6, %v1140_v6 }
 0x5ba   : > { %31324 = vmatprep.subr.bf16.mxu0 %v34104_v13  ;;  %31317 = vmatpush3.bf16.msra.mxu1 %v34103_v11  ;;  %v1142_v11 = vcombine.high %v1140_v6, %v1140_v6  ;;  %v34175_v6 = vld [vmem:[%s35143_s27 + $0x2f70] sm:$0xff]  }
 0x5bb   : > { %31346 = vmatprep.subr.bf16.mxu1 %v34107_v18 }
 0x5bc   : > { %v31032_v22 = vpop.f32.mrf.mxu0  ;;  %24568 = vmatmul.mubr.bf16.vlgmr.msra.gmra.mxu0 %v2080_v17  ;;  %v34143_v17 = vld [vmem:[%s35143_s27 + $0x2e30] sm:$0xff]  }
 0x5bd   : > { %v31054_v28 = vpop.f32.mrf.mxu1  ;;  %31325 = vmatpush3.bf16.msra.mxu0 %v34106_v16  ;;  %24608 = vmatmul.mubr.bf16.vlgmr.msra.gmra.mxu1 %v2082_v23  ;;  %v2087_v16 = vpack.c.bf16 %v1142_v11, %v1142_v11  ;;  %v34177_v11 = vld [vmem:[%s35143_s27 + $0x2ff0] sm:$0xff]  }
 0x5be   : > { %v31033_v27 = vpop.f32.mrf.mxu0  ;;  %31326 = vmatprep.subr.bf16.mxu0 %v34109_v24  ;;  %31347 = vmatpush3.bf16.msra.mxu1 %v34108_v21 }
 0x5bf   : > { %v31034_v30 = vadd.f32 %v31033_v27, %v31032_v22  ;;  %v31055_v33 = vpop.f32.mrf.mxu1  ;;  %31348 = vmatprep.subr.bf16.mxu1 %v34111_v29  ;;  %24647 = vmatprep.mubr.bf16.mxu0 %v2085_v10  ;;  %v34145_v22 = vld [vmem:[%s35143_s27 + $0x2eb0] sm:$0xff]  }
 0x5c0   : > { %v31035_v32 = vpop.f32.mrf.mxu0  ;;  %v31056_v36 = vadd.f32 %v31055_v33, %v31054_v28  ;;  %24687 = vmatprep.mubr.bf16.mxu1 %v2087_v16  ;;  %v34147_v28 = vld [vmem:[%s35143_s27 + $0x2e28] sm:$0xff]  }
 0x5c1   : > { %v24090_v35 = vadd.f32 %v31034_v30, %v36816_v51  ;;  %v31057_v40 = vpop.f32.mrf.mxu1  ;;  %31327 = vmatpush3.bf16.msra.mxu0 %v34110_v26  ;;  %v34123_v51 = vld [vmem:[%s35143_s27 + $0x2dd8] sm:$0xff]   ;;  %v34148_v30 = vld [vmem:[%s35143_s27 + $0x2ee8] sm:$0xff]  }
 0x5c2   : > { %v31036_v38 = vpop.f32.mrf.mxu0  ;;  %31328 = vmatprep.subr.bf16.mxu0 %v34113_v34  ;;  %31349 = vmatpush3.bf16.msra.mxu1 %v34112_v31  ;;  %v34149_v33 = vld [vmem:[%s35143_s27 + $0x2ea8] sm:$0xff]   ;;  %v34150_v34 = vld [vmem:[%s35143_s27 + $0x2e60] sm:$0xff]   ;;  %v34155_v40 = vld [vmem:[%s35143_s27 + $0x2e18] sm:$0xff]  }
 0x5c3   : > { %v36854_v41 = vadd.f32 %v31056_v36, %v24090_v35  ;;  %v31058_v45 = vpop.f32.mrf.mxu1  ;;  %31350 = vmatprep.subr.bf16.mxu1 %v34115_v39  ;;  %v34151_v36 = vld [vmem:[%s35143_s27 + $0x2e20] sm:$0xff]   ;;  %v34154_v39 = vld [vmem:[%s35143_s27 + $0x2e58] sm:$0xff]   ;;  %v34179_v16 = vld [vmem:[%s35143_s27 + $0x2f68] sm:$0xff]  }
 0x5c4   : > { %v34153_v38 = vld [vmem:[%s35143_s27 + $0x2ea0] sm:$0xff]   ;;  %v34159_v45 = vld [vmem:[%s35143_s27 + $0x2e10] sm:$0xff]  }
 0x5c5   : > { %31329 = vmatpush3.bf16.msra.mxu0 %v34114_v37  ;;  %v34152_v37 = vld [vmem:[%s35143_s27 + $0x2ee0] sm:$0xff]  }
 0x5c6   : > { %31330 = vmatprep.subr.bf16.mxu0 %v34117_v44  ;;  %31351 = vmatpush3.bf16.msra.mxu1 %v34116_v43  ;;  %v34157_v43 = vld [vmem:[%s35143_s27 + $0x2e98] sm:$0xff]   ;;  %v34158_v44 = vld [vmem:[%s35143_s27 + $0x2e50] sm:$0xff]  }
 0x5c7   : > { %31352 = vmatprep.subr.bf16.mxu1 %v34119_v47  ;;  %v34161_v47 = vld [vmem:[%s35143_s27 + $0x2e90] sm:$0xff]  }
 0x5c9   : > { %31331 = vmatpush3.bf16.msra.mxu0 %v34118_v46  ;;  %v34160_v46 = vld [vmem:[%s35143_s27 + $0x2ed0] sm:$0xff]  }
 0x5ca   : > { %31332 = vmatprep.subr.bf16.mxu0 %v34121_v49  ;;  %31353 = vmatpush3.bf16.msra.mxu1 %v34120_v48  ;;  %v34162_v48 = vld [vmem:[%s35143_s27 + $0x2e48] sm:$0xff]  }
 0x5cb   : > { %31354 = vmatprep.subr.bf16.mxu1 %v34123_v51  ;;  %v34163_v49 = vld [vmem:[%s35143_s27 + $0x2e08] sm:$0xff]  }
 0x5cc   : > { %v34165_v51 = vld [vmem:[%s35143_s27 + $0x2e88] sm:$0xff]  }
 0x5cd   : > { %31333 = vmatpush3.bf16.msra.mxu0 %v34122_v50  ;;  %v34164_v50 = vld [vmem:[%s35143_s27 + $0x2ec8] sm:$0xff]  }
 0x5ce   : > { %31334 = vmatprep.subr.bf16.mxu0 %v34125_v53  ;;  %31355 = vmatpush3.bf16.msra.mxu1 %v34124_v52  ;;  %v34166_v52 = vld [vmem:[%s35143_s27 + $0x2e40] sm:$0xff]  }
 0x5cf   : > { %31356 = vmatprep.subr.bf16.mxu1 %v34127_v55  ;;  %v34167_v53 = vld [vmem:[%s35143_s27 + $0x2e00] sm:$0xff]   ;;  %v259_v55 = vld [vmem:[%s35138_s23 + $0x170] sm:$0xff] }
 0x5d1   : > { %31335 = vmatpush3.bf16.msra.mxu0 %v34126_v54  ;;  %v34168_v54 = vld [vmem:[%s35143_s27 + $0x2ec0] sm:$0xff]  }
 0x5d2   : > { %31336 = vmatprep.subr.bf16.mxu0 %v34129_v57  ;;  %31357 = vmatpush3.bf16.msra.mxu1 %v34128_v56  ;;  %v1150_v56 = vrot.slane %v259_v55, %v35187_v42  ;;  %v34169_v57 = vld [vmem:[%s35143_s27 + $0x2e80] sm:$0xff]  }
 0x5d3   : > { %31358 = vmatprep.subr.bf16.mxu1 %v34131_v59  ;;  %v34170_v59 = vld [vmem:[%s35143_s27 + $0x2f78] sm:$0xff]  }
 0x5d5   : > { %31337 = vmatpush3.bf16.msra.mxu0 %v34130_v58  ;;  %v1143_v58 = vcombine.high %v259_v55, %v259_v55  ;;  %v34206_v55 = vld [vmem:[%s35143_s27 + $0x30f8] sm:$0xff]  }
 0x5d6   : > { %31338 = vmatprep.subr.bf16.mxu0 %v34133_v61  ;;  %31359 = vmatpush3.bf16.msra.mxu1 %v34132_v60  ;;  %v1158_v60 = vcombine.high %v1150_v56, %v1150_v56 }
 0x5d7   : > { %31360 = vmatprep.subr.bf16.mxu1 %v34135_v63  ;;  %v1157_v61 = vrot.slane %v1143_v58, %v35187_v42  ;;  %v2088_v63 = vpack.c.bf16 %v1150_v56, %v1150_v56  ;;  %v34207_v58 = vld [vmem:[%s35143_s27 + $0x30b8] sm:$0xff]  }
 0x5d8   : > { %v2089_v1 = vpack.c.bf16 %v1158_v60, %v1158_v60 }
 0x5d9   : > { %31339 = vmatpush3.bf16.msra.mxu0 %v34134_v62  ;;  %v34172_v62 = vld [vmem:[%s35143_s27 + $0x2f38] sm:$0xff]   ;;  %v2090_v5 = vpack.c.bf16 %v1157_v61, %v1157_v61 }
 0x5da   : > { %31368 = vmatprep.subr.bf16.mxu0 %v34137_v4  ;;  %31361 = vmatpush3.bf16.msra.mxu1 %v34136_v2  ;;  %v1159_v2 = vcombine.high %v1157_v61, %v1157_v61  ;;  %v34208_v61 = vld [vmem:[%s35143_s27 + $0x3070] sm:$0xff]  }
 0x5db   : > { %31390 = vmatprep.subr.bf16.mxu1 %v34140_v9 }
 0x5dc   : > { %v31076_v13 = vpop.f32.mrf.mxu0  ;;  %24648 = vmatmul.mubr.bf16.vlgmr.msra.gmra.mxu0 %v2084_v8  ;;  %v34176_v8 = vld [vmem:[%s35143_s27 + $0x2f30] sm:$0xff]  }
 0x5dd   : > { %v31098_v19 = vpop.f32.mrf.mxu1  ;;  %31369 = vmatpush3.bf16.msra.mxu0 %v34139_v7  ;;  %24688 = vmatmul.mubr.bf16.vlgmr.msra.gmra.mxu1 %v2086_v14  ;;  %v2091_v7 = vpack.c.bf16 %v1159_v2, %v1159_v2  ;;  %v34210_v2 = vld [vmem:[%s35143_s27 + $0x30f0] sm:$0xff]  }
 0x5de   : > { %v31077_v18 = vpop.f32.mrf.mxu0  ;;  %31370 = vmatprep.subr.bf16.mxu0 %v34142_v15  ;;  %31391 = vmatpush3.bf16.msra.mxu1 %v34141_v12 }
 0x5df   : > { %v31078_v21 = vadd.f32 %v31077_v18, %v31076_v13  ;;  %v31099_v24 = vpop.f32.mrf.mxu1  ;;  %31392 = vmatprep.subr.bf16.mxu1 %v34144_v20  ;;  %24727 = vmatprep.mubr.bf16.mxu0 %v2089_v1  ;;  %v34178_v13 = vld [vmem:[%s35143_s27 + $0x2fb0] sm:$0xff]  }
 0x5e0   : > { %v31079_v23 = vpop.f32.mrf.mxu0  ;;  %v31100_v27 = vadd.f32 %v31099_v24, %v31098_v19  ;;  %24767 = vmatprep.mubr.bf16.mxu1 %v2091_v7  ;;  %v34180_v19 = vld [vmem:[%s35143_s27 + $0x2f28] sm:$0xff]  }
 0x5e1   : > { %v24170_v26 = vadd.f32 %v31078_v21, %v36854_v41  ;;  %v31101_v31 = vpop.f32.mrf.mxu1  ;;  %31371 = vmatpush3.bf16.msra.mxu0 %v34143_v17  ;;  %v34156_v41 = vld [vmem:[%s35143_s27 + $0x2ed8] sm:$0xff]   ;;  %v34181_v21 = vld [vmem:[%s35143_s27 + $0x2fe8] sm:$0xff]  }
 0x5e2   : > { %v31080_v29 = vpop.f32.mrf.mxu0  ;;  %31372 = vmatprep.subr.bf16.mxu0 %v34146_v25  ;;  %31393 = vmatpush3.bf16.msra.mxu1 %v34145_v22  ;;  %v34182_v24 = vld [vmem:[%s35143_s27 + $0x2fa8] sm:$0xff]   ;;  %v34183_v25 = vld [vmem:[%s35143_s27 + $0x2f60] sm:$0xff]   ;;  %v34188_v31 = vld [vmem:[%s35143_s27 + $0x2f18] sm:$0xff]  }
 0x5e3   : > { %v36892_v32 = vadd.f32 %v31100_v27, %v24170_v26  ;;  %v31102_v35 = vpop.f32.mrf.mxu1  ;;  %31394 = vmatprep.subr.bf16.mxu1 %v34148_v30  ;;  %v34184_v27 = vld [vmem:[%s35143_s27 + $0x2f20] sm:$0xff]   ;;  %v34187_v30 = vld [vmem:[%s35143_s27 + $0x2f58] sm:$0xff]   ;;  %v34212_v7 = vld [vmem:[%s35143_s27 + $0x3068] sm:$0xff]  }
 0x5e4   : > { %v34186_v29 = vld [vmem:[%s35143_s27 + $0x2fa0] sm:$0xff]   ;;  %v34192_v35 = vld [vmem:[%s35143_s27 + $0x2f10] sm:$0xff]  }
 0x5e5   : > { %31373 = vmatpush3.bf16.msra.mxu0 %v34147_v28  ;;  %v34185_v28 = vld [vmem:[%s35143_s27 + $0x2fe0] sm:$0xff]  }
 0x5e6   : > { %31374 = vmatprep.subr.bf16.mxu0 %v34150_v34  ;;  %31395 = vmatpush3.bf16.msra.mxu1 %v34149_v33  ;;  %v34190_v33 = vld [vmem:[%s35143_s27 + $0x2f98] sm:$0xff]   ;;  %v34191_v34 = vld [vmem:[%s35143_s27 + $0x2f50] sm:$0xff]  }
 0x5e7   : > { %31396 = vmatprep.subr.bf16.mxu1 %v34152_v37  ;;  %v34194_v37 = vld [vmem:[%s35143_s27 + $0x2f90] sm:$0xff]  }
 0x5e9   : > { %31375 = vmatpush3.bf16.msra.mxu0 %v34151_v36  ;;  %v34193_v36 = vld [vmem:[%s35143_s27 + $0x2fd0] sm:$0xff]  }
 0x5ea   : > { %31376 = vmatprep.subr.bf16.mxu0 %v34154_v39  ;;  %31397 = vmatpush3.bf16.msra.mxu1 %v34153_v38  ;;  %v34195_v38 = vld [vmem:[%s35143_s27 + $0x2f48] sm:$0xff]  }
 0x5eb   : > { %31398 = vmatprep.subr.bf16.mxu1 %v34156_v41  ;;  %v34196_v39 = vld [vmem:[%s35143_s27 + $0x2f08] sm:$0xff]  }
 0x5ec   : > { %v34198_v41 = vld [vmem:[%s35143_s27 + $0x2f88] sm:$0xff]  }
 0x5ed   : > { %31377 = vmatpush3.bf16.msra.mxu0 %v34155_v40  ;;  %v34197_v40 = vld [vmem:[%s35143_s27 + $0x2fc8] sm:$0xff]  }
 0x5ee   : > { %31378 = vmatprep.subr.bf16.mxu0 %v34158_v44  ;;  %31399 = vmatpush3.bf16.msra.mxu1 %v34157_v43  ;;  %v34199_v43 = vld [vmem:[%s35143_s27 + $0x2f40] sm:$0xff]  }
 0x5ef   : > { %31400 = vmatprep.subr.bf16.mxu1 %v34160_v46  ;;  %v34200_v44 = vld [vmem:[%s35143_s27 + $0x2f00] sm:$0xff]   ;;  %v260_v46 = vld [vmem:[%s35138_s23 + $0x178] sm:$0xff] }
 0x5f1   : > { %31379 = vmatpush3.bf16.msra.mxu0 %v34159_v45  ;;  %v34201_v45 = vld [vmem:[%s35143_s27 + $0x2fc0] sm:$0xff]  }
 0x5f2   : > { %31380 = vmatprep.subr.bf16.mxu0 %v34162_v48  ;;  %31401 = vmatpush3.bf16.msra.mxu1 %v34161_v47  ;;  %v1167_v47 = vrot.slane %v260_v46, %v35187_v42  ;;  %v34202_v48 = vld [vmem:[%s35143_s27 + $0x2f80] sm:$0xff]  }
 0x5f3   : > { %31402 = vmatprep.subr.bf16.mxu1 %v34164_v50  ;;  %v34203_v50 = vld [vmem:[%s35143_s27 + $0x3078] sm:$0xff]  }
 0x5f5   : > { %31381 = vmatpush3.bf16.msra.mxu0 %v34163_v49  ;;  %v1160_v49 = vcombine.high %v260_v46, %v260_v46  ;;  %v34239_v46 = vld [vmem:[%s35143_s27 + $0x31f8] sm:$0xff]  }
 0x5f6   : > { %31382 = vmatprep.subr.bf16.mxu0 %v34166_v52  ;;  %31403 = vmatpush3.bf16.msra.mxu1 %v34165_v51  ;;  %v1175_v51 = vcombine.high %v1167_v47, %v1167_v47 }
 0x5f7   : > { %31404 = vmatprep.subr.bf16.mxu1 %v34168_v54  ;;  %v1174_v52 = vrot.slane %v1160_v49, %v35187_v42  ;;  %v2092_v54 = vpack.c.bf16 %v1167_v47, %v1167_v47  ;;  %v34240_v49 = vld [vmem:[%s35143_s27 + $0x31b8] sm:$0xff]  }
 0x5f8   : > { %v2093_v56 = vpack.c.bf16 %v1175_v51, %v1175_v51 }
 0x5f9   : > { %31383 = vmatpush3.bf16.msra.mxu0 %v34167_v53  ;;  %v34205_v53 = vld [vmem:[%s35143_s27 + $0x3038] sm:$0xff]   ;;  %v2094_v60 = vpack.c.bf16 %v1174_v52, %v1174_v52 }
 0x5fa   : > { %31412 = vmatprep.subr.bf16.mxu0 %v34170_v59  ;;  %31405 = vmatpush3.bf16.msra.mxu1 %v34169_v57  ;;  %v1176_v57 = vcombine.high %v1174_v52, %v1174_v52  ;;  %v34241_v52 = vld [vmem:[%s35143_s27 + $0x3170] sm:$0xff]  }
 0x5fb   : > { %31434 = vmatprep.subr.bf16.mxu1 %v34173_v0 }
 0x5fc   : > { %v31120_v4 = vpop.f32.mrf.mxu0  ;;  %24728 = vmatmul.mubr.bf16.vlgmr.msra.gmra.mxu0 %v2088_v63  ;;  %v34209_v63 = vld [vmem:[%s35143_s27 + $0x3030] sm:$0xff]  }
 0x5fd   : > { %v31142_v10 = vpop.f32.mrf.mxu1  ;;  %31413 = vmatpush3.bf16.msra.mxu0 %v34172_v62  ;;  %24768 = vmatmul.mubr.bf16.vlgmr.msra.gmra.mxu1 %v2090_v5  ;;  %v2095_v62 = vpack.c.bf16 %v1176_v57, %v1176_v57  ;;  %v34243_v57 = vld [vmem:[%s35143_s27 + $0x31f0] sm:$0xff]  }
 0x5fe   : > { %v31121_v9 = vpop.f32.mrf.mxu0  ;;  %31414 = vmatprep.subr.bf16.mxu0 %v34175_v6  ;;  %31435 = vmatpush3.bf16.msra.mxu1 %v34174_v3 }
 0x5ff   : > { %v31122_v12 = vadd.f32 %v31121_v9, %v31120_v4  ;;  %v31143_v15 = vpop.f32.mrf.mxu1  ;;  %31436 = vmatprep.subr.bf16.mxu1 %v34177_v11  ;;  %24807 = vmatprep.mubr.bf16.mxu0 %v2093_v56  ;;  %v34211_v4 = vld [vmem:[%s35143_s27 + $0x30b0] sm:$0xff]  }
 0x600   : > { %v31123_v14 = vpop.f32.mrf.mxu0  ;;  %v31144_v18 = vadd.f32 %v31143_v15, %v31142_v10  ;;  %24847 = vmatprep.mubr.bf16.mxu1 %v2095_v62  ;;  %v34213_v10 = vld [vmem:[%s35143_s27 + $0x3028] sm:$0xff]  }
 0x601   : > { %v24250_v17 = vadd.f32 %v31122_v12, %v36892_v32  ;;  %v31145_v22 = vpop.f32.mrf.mxu1  ;;  %31415 = vmatpush3.bf16.msra.mxu0 %v34176_v8  ;;  %v34189_v32 = vld [vmem:[%s35143_s27 + $0x2fd8] sm:$0xff]   ;;  %v34214_v12 = vld [vmem:[%s35143_s27 + $0x30e8] sm:$0xff]  }
 0x602   : > { %v31124_v20 = vpop.f32.mrf.mxu0  ;;  %31416 = vmatprep.subr.bf16.mxu0 %v34179_v16  ;;  %31437 = vmatpush3.bf16.msra.mxu1 %v34178_v13  ;;  %v34215_v15 = vld [vmem:[%s35143_s27 + $0x30a8] sm:$0xff]   ;;  %v34216_v16 = vld [vmem:[%s35143_s27 + $0x3060] sm:$0xff]   ;;  %v34221_v22 = vld [vmem:[%s35143_s27 + $0x3018] sm:$0xff]  }
 0x603   : > { %v36930_v23 = vadd.f32 %v31144_v18, %v24250_v17  ;;  %v31146_v26 = vpop.f32.mrf.mxu1  ;;  %31438 = vmatprep.subr.bf16.mxu1 %v34181_v21  ;;  %v34217_v18 = vld [vmem:[%s35143_s27 + $0x3020] sm:$0xff]   ;;  %v34220_v21 = vld [vmem:[%s35143_s27 + $0x3058] sm:$0xff]   ;;  %v34245_v62 = vld [vmem:[%s35143_s27 + $0x3168] sm:$0xff]  }
 0x604   : > { %v34219_v20 = vld [vmem:[%s35143_s27 + $0x30a0] sm:$0xff]   ;;  %v34225_v26 = vld [vmem:[%s35143_s27 + $0x3010] sm:$0xff]  }
 0x605   : > { %31417 = vmatpush3.bf16.msra.mxu0 %v34180_v19  ;;  %v34218_v19 = vld [vmem:[%s35143_s27 + $0x30e0] sm:$0xff]  }
 0x606   : > { %31418 = vmatprep.subr.bf16.mxu0 %v34183_v25  ;;  %31439 = vmatpush3.bf16.msra.mxu1 %v34182_v24  ;;  %v34223_v24 = vld [vmem:[%s35143_s27 + $0x3098] sm:$0xff]   ;;  %v34224_v25 = vld [vmem:[%s35143_s27 + $0x3050] sm:$0xff]  }
 0x607   : > { %31440 = vmatprep.subr.bf16.mxu1 %v34185_v28  ;;  %v34227_v28 = vld [vmem:[%s35143_s27 + $0x3090] sm:$0xff]  }
 0x609   : > { %31419 = vmatpush3.bf16.msra.mxu0 %v34184_v27  ;;  %v34226_v27 = vld [vmem:[%s35143_s27 + $0x30d0] sm:$0xff]  }
 0x60a   : > { %31420 = vmatprep.subr.bf16.mxu0 %v34187_v30  ;;  %31441 = vmatpush3.bf16.msra.mxu1 %v34186_v29  ;;  %v34228_v29 = vld [vmem:[%s35143_s27 + $0x3048] sm:$0xff]  }
 0x60b   : > { %31442 = vmatprep.subr.bf16.mxu1 %v34189_v32  ;;  %v34229_v30 = vld [vmem:[%s35143_s27 + $0x3008] sm:$0xff]  }
 0x60c   : > { %v34231_v32 = vld [vmem:[%s35143_s27 + $0x3088] sm:$0xff]  }
 0x60d   : > { %31421 = vmatpush3.bf16.msra.mxu0 %v34188_v31  ;;  %v34230_v31 = vld [vmem:[%s35143_s27 + $0x30c8] sm:$0xff]  }
 0x60e   : > { %31422 = vmatprep.subr.bf16.mxu0 %v34191_v34  ;;  %31443 = vmatpush3.bf16.msra.mxu1 %v34190_v33  ;;  %v34232_v33 = vld [vmem:[%s35143_s27 + $0x3040] sm:$0xff]  }
 0x60f   : > { %31444 = vmatprep.subr.bf16.mxu1 %v34193_v36  ;;  %v34233_v34 = vld [vmem:[%s35143_s27 + $0x3000] sm:$0xff]  }
 0x610   : > { %v261_v36 = vld [vmem:[%s35138_s23 + $0x180] sm:$0xff] }
 0x611   : > { %31423 = vmatpush3.bf16.msra.mxu0 %v34192_v35  ;;  %v34234_v35 = vld [vmem:[%s35143_s27 + $0x30c0] sm:$0xff]  }
 0x612   : > { %31424 = vmatprep.subr.bf16.mxu0 %v34195_v38  ;;  %31445 = vmatpush3.bf16.msra.mxu1 %v34194_v37  ;;  %v1184_v37 = vrot.slane %v261_v36, %v35187_v42  ;;  %v34235_v38 = vld [vmem:[%s35143_s27 + $0x3080] sm:$0xff]  }
 0x613   : > { %31446 = vmatprep.subr.bf16.mxu1 %v34197_v40  ;;  %v34236_v40 = vld [vmem:[%s35143_s27 + $0x3178] sm:$0xff]  }
 0x615   : > { %31425 = vmatpush3.bf16.msra.mxu0 %v34196_v39  ;;  %v1177_v39 = vcombine.high %v261_v36, %v261_v36  ;;  %v34272_v36 = vld [vmem:[%s35143_s27 + $0x32f8] sm:$0xff]  }
 0x616   : > { %31426 = vmatprep.subr.bf16.mxu0 %v34199_v43  ;;  %31447 = vmatpush3.bf16.msra.mxu1 %v34198_v41  ;;  %v1192_v41 = vcombine.high %v1184_v37, %v1184_v37 }
 0x617   : > { %31448 = vmatprep.subr.bf16.mxu1 %v34201_v45  ;;  %v1191_v43 = vrot.slane %v1177_v39, %v35187_v42  ;;  %v2096_v45 = vpack.c.bf16 %v1184_v37, %v1184_v37  ;;  %v34273_v39 = vld [vmem:[%s35143_s27 + $0x32b8] sm:$0xff]  }
 0x618   : > { %v2097_v47 = vpack.c.bf16 %v1192_v41, %v1192_v41 }
 0x619   : > { %31427 = vmatpush3.bf16.msra.mxu0 %v34200_v44  ;;  %v34238_v44 = vld [vmem:[%s35143_s27 + $0x3138] sm:$0xff]   ;;  %v2098_v51 = vpack.c.bf16 %v1191_v43, %v1191_v43 }
 0x61a   : > { %31456 = vmatprep.subr.bf16.mxu0 %v34203_v50  ;;  %31449 = vmatpush3.bf16.msra.mxu1 %v34202_v48  ;;  %v1193_v48 = vcombine.high %v1191_v43, %v1191_v43  ;;  %v34274_v43 = vld [vmem:[%s35143_s27 + $0x3270] sm:$0xff]  }
 0x61b   : > { %31478 = vmatprep.subr.bf16.mxu1 %v34206_v55 }
 0x61c   : > { %v31164_v59 = vpop.f32.mrf.mxu0  ;;  %24808 = vmatmul.mubr.bf16.vlgmr.msra.gmra.mxu0 %v2092_v54  ;;  %v34242_v54 = vld [vmem:[%s35143_s27 + $0x3130] sm:$0xff]  }
 0x61d   : > { %v31186_v1 = vpop.f32.mrf.mxu1  ;;  %31457 = vmatpush3.bf16.msra.mxu0 %v34205_v53  ;;  %24848 = vmatmul.mubr.bf16.vlgmr.msra.gmra.mxu1 %v2094_v60  ;;  %v2099_v53 = vpack.c.bf16 %v1193_v48, %v1193_v48  ;;  %v34276_v48 = vld [vmem:[%s35143_s27 + $0x32f0] sm:$0xff]  }
 0x61e   : > { %v31165_v0 = vpop.f32.mrf.mxu0  ;;  %31458 = vmatprep.subr.bf16.mxu0 %v34208_v61  ;;  %31479 = vmatpush3.bf16.msra.mxu1 %v34207_v58 }
 0x61f   : > { %v31166_v3 = vadd.f32 %v31165_v0, %v31164_v59  ;;  %v31187_v6 = vpop.f32.mrf.mxu1  ;;  %31480 = vmatprep.subr.bf16.mxu1 %v34210_v2  ;;  %24887 = vmatprep.mubr.bf16.mxu0 %v2097_v47  ;;  %v34244_v59 = vld [vmem:[%s35143_s27 + $0x31b0] sm:$0xff]  }
 0x620   : > { %v31167_v5 = vpop.f32.mrf.mxu0  ;;  %v31188_v9 = vadd.f32 %v31187_v6, %v31186_v1  ;;  %24927 = vmatprep.mubr.bf16.mxu1 %v2099_v53  ;;  %v34246_v1 = vld [vmem:[%s35143_s27 + $0x3128] sm:$0xff]  }
 0x621   : > { %v24330_v8 = vadd.f32 %v31166_v3, %v36930_v23  ;;  %v31189_v13 = vpop.f32.mrf.mxu1  ;;  %31459 = vmatpush3.bf16.msra.mxu0 %v34209_v63  ;;  %v34222_v23 = vld [vmem:[%s35143_s27 + $0x30d8] sm:$0xff]   ;;  %v34247_v3 = vld [vmem:[%s35143_s27 + $0x31e8] sm:$0xff]  }
 0x622   : > { %v31168_v11 = vpop.f32.mrf.mxu0  ;;  %31460 = vmatprep.subr.bf16.mxu0 %v34212_v7  ;;  %31481 = vmatpush3.bf16.msra.mxu1 %v34211_v4  ;;  %v34248_v6 = vld [vmem:[%s35143_s27 + $0x31a8] sm:$0xff]   ;;  %v34249_v7 = vld [vmem:[%s35143_s27 + $0x3160] sm:$0xff]   ;;  %v34254_v13 = vld [vmem:[%s35143_s27 + $0x3118] sm:$0xff]  }
 0x623   : > { %v36968_v14 = vadd.f32 %v31188_v9, %v24330_v8  ;;  %v31190_v17 = vpop.f32.mrf.mxu1  ;;  %31482 = vmatprep.subr.bf16.mxu1 %v34214_v12  ;;  %v34250_v9 = vld [vmem:[%s35143_s27 + $0x3120] sm:$0xff]   ;;  %v34253_v12 = vld [vmem:[%s35143_s27 + $0x3158] sm:$0xff]   ;;  %v34278_v53 = vld [vmem:[%s35143_s27 + $0x3268] sm:$0xff]  }
 0x624   : > { %v34252_v11 = vld [vmem:[%s35143_s27 + $0x31a0] sm:$0xff]   ;;  %v34258_v17 = vld [vmem:[%s35143_s27 + $0x3110] sm:$0xff]  }
 0x625   : > { %31461 = vmatpush3.bf16.msra.mxu0 %v34213_v10  ;;  %v34251_v10 = vld [vmem:[%s35143_s27 + $0x31e0] sm:$0xff]  }
 0x626   : > { %31462 = vmatprep.subr.bf16.mxu0 %v34216_v16  ;;  %31483 = vmatpush3.bf16.msra.mxu1 %v34215_v15  ;;  %v34256_v15 = vld [vmem:[%s35143_s27 + $0x3198] sm:$0xff]   ;;  %v34257_v16 = vld [vmem:[%s35143_s27 + $0x3150] sm:$0xff]  }
 0x627   : > { %31484 = vmatprep.subr.bf16.mxu1 %v34218_v19  ;;  %v34260_v19 = vld [vmem:[%s35143_s27 + $0x3190] sm:$0xff]  }
 0x629   : > { %31463 = vmatpush3.bf16.msra.mxu0 %v34217_v18  ;;  %v34259_v18 = vld [vmem:[%s35143_s27 + $0x31d0] sm:$0xff]  }
 0x62a   : > { %31464 = vmatprep.subr.bf16.mxu0 %v34220_v21  ;;  %31485 = vmatpush3.bf16.msra.mxu1 %v34219_v20  ;;  %v34261_v20 = vld [vmem:[%s35143_s27 + $0x3148] sm:$0xff]  }
 0x62b   : > { %31486 = vmatprep.subr.bf16.mxu1 %v34222_v23  ;;  %v34262_v21 = vld [vmem:[%s35143_s27 + $0x3108] sm:$0xff]  }
 0x62c   : > { %v34264_v23 = vld [vmem:[%s35143_s27 + $0x3188] sm:$0xff]  }
 0x62d   : > { %31465 = vmatpush3.bf16.msra.mxu0 %v34221_v22  ;;  %v34263_v22 = vld [vmem:[%s35143_s27 + $0x31c8] sm:$0xff]  }
 0x62e   : > { %31466 = vmatprep.subr.bf16.mxu0 %v34224_v25  ;;  %31487 = vmatpush3.bf16.msra.mxu1 %v34223_v24  ;;  %v34265_v24 = vld [vmem:[%s35143_s27 + $0x3140] sm:$0xff]  }
 0x62f   : > { %31488 = vmatprep.subr.bf16.mxu1 %v34226_v27  ;;  %v34266_v25 = vld [vmem:[%s35143_s27 + $0x3100] sm:$0xff]   ;;  %v262_v27 = vld [vmem:[%s35138_s23 + $0x188] sm:$0xff] }
 0x631   : > { %31467 = vmatpush3.bf16.msra.mxu0 %v34225_v26  ;;  %v34267_v26 = vld [vmem:[%s35143_s27 + $0x31c0] sm:$0xff]  }
 0x632   : > { %31468 = vmatprep.subr.bf16.mxu0 %v34228_v29  ;;  %31489 = vmatpush3.bf16.msra.mxu1 %v34227_v28  ;;  %v1201_v28 = vrot.slane %v262_v27, %v35187_v42  ;;  %v34268_v29 = vld [vmem:[%s35143_s27 + $0x3180] sm:$0xff]  }
 0x633   : > { %31490 = vmatprep.subr.bf16.mxu1 %v34230_v31  ;;  %v34269_v31 = vld [vmem:[%s35143_s27 + $0x3278] sm:$0xff]  }
 0x635   : > { %31469 = vmatpush3.bf16.msra.mxu0 %v34229_v30  ;;  %v1194_v30 = vcombine.high %v262_v27, %v262_v27  ;;  %v34305_v27 = vld [vmem:[%s35143_s27 + $0x33f8] sm:$0xff]  }
 0x636   : > { %31470 = vmatprep.subr.bf16.mxu0 %v34232_v33  ;;  %31491 = vmatpush3.bf16.msra.mxu1 %v34231_v32  ;;  %v1209_v32 = vcombine.high %v1201_v28, %v1201_v28 }
 0x637   : > { %31492 = vmatprep.subr.bf16.mxu1 %v34234_v35  ;;  %v1208_v33 = vrot.slane %v1194_v30, %v35187_v42  ;;  %v2100_v35 = vpack.c.bf16 %v1201_v28, %v1201_v28  ;;  %v34306_v30 = vld [vmem:[%s35143_s27 + $0x33b8] sm:$0xff]  }
 0x638   : > { %v2101_v37 = vpack.c.bf16 %v1209_v32, %v1209_v32 }
 0x639   : > { %31471 = vmatpush3.bf16.msra.mxu0 %v34233_v34  ;;  %v34271_v34 = vld [vmem:[%s35143_s27 + $0x3238] sm:$0xff]   ;;  %v2102_v41 = vpack.c.bf16 %v1208_v33, %v1208_v33 }
 0x63a   : > { %31500 = vmatprep.subr.bf16.mxu0 %v34236_v40  ;;  %31493 = vmatpush3.bf16.msra.mxu1 %v34235_v38  ;;  %v1210_v38 = vcombine.high %v1208_v33, %v1208_v33  ;;  %v34307_v33 = vld [vmem:[%s35143_s27 + $0x3370] sm:$0xff]  }
 0x63b   : > { %31522 = vmatprep.subr.bf16.mxu1 %v34239_v46 }
 0x63c   : > { %v31208_v50 = vpop.f32.mrf.mxu0  ;;  %24888 = vmatmul.mubr.bf16.vlgmr.msra.gmra.mxu0 %v2096_v45  ;;  %v34275_v45 = vld [vmem:[%s35143_s27 + $0x3230] sm:$0xff]  }
 0x63d   : > { %v31230_v56 = vpop.f32.mrf.mxu1  ;;  %31501 = vmatpush3.bf16.msra.mxu0 %v34238_v44  ;;  %24928 = vmatmul.mubr.bf16.vlgmr.msra.gmra.mxu1 %v2098_v51  ;;  %v2103_v44 = vpack.c.bf16 %v1210_v38, %v1210_v38  ;;  %v34309_v38 = vld [vmem:[%s35143_s27 + $0x33f0] sm:$0xff]  }
 0x63e   : > { %v31209_v55 = vpop.f32.mrf.mxu0  ;;  %31502 = vmatprep.subr.bf16.mxu0 %v34241_v52  ;;  %31523 = vmatpush3.bf16.msra.mxu1 %v34240_v49 }
 0x63f   : > { %v31210_v58 = vadd.f32 %v31209_v55, %v31208_v50  ;;  %v31231_v61 = vpop.f32.mrf.mxu1  ;;  %31524 = vmatprep.subr.bf16.mxu1 %v34243_v57  ;;  %24967 = vmatprep.mubr.bf16.mxu0 %v2101_v37  ;;  %v34277_v50 = vld [vmem:[%s35143_s27 + $0x32b0] sm:$0xff]  }
 0x640   : > { %v31211_v60 = vpop.f32.mrf.mxu0  ;;  %v31232_v0 = vadd.f32 %v31231_v61, %v31230_v56  ;;  %25007 = vmatprep.mubr.bf16.mxu1 %v2103_v44  ;;  %v34279_v56 = vld [vmem:[%s35143_s27 + $0x3228] sm:$0xff]  }
 0x641   : > { %v24410_v63 = vadd.f32 %v31210_v58, %v36968_v14  ;;  %v31233_v4 = vpop.f32.mrf.mxu1  ;;  %31503 = vmatpush3.bf16.msra.mxu0 %v34242_v54  ;;  %v34255_v14 = vld [vmem:[%s35143_s27 + $0x31d8] sm:$0xff]   ;;  %v34280_v58 = vld [vmem:[%s35143_s27 + $0x32e8] sm:$0xff]  }
 0x642   : > { %v31212_v2 = vpop.f32.mrf.mxu0  ;;  %31504 = vmatprep.subr.bf16.mxu0 %v34245_v62  ;;  %31525 = vmatpush3.bf16.msra.mxu1 %v34244_v59  ;;  %v34281_v61 = vld [vmem:[%s35143_s27 + $0x32a8] sm:$0xff]   ;;  %v34282_v62 = vld [vmem:[%s35143_s27 + $0x3260] sm:$0xff]   ;;  %v34287_v4 = vld [vmem:[%s35143_s27 + $0x3218] sm:$0xff]  }
 0x643   : > { %v37006_v5 = vadd.f32 %v31232_v0, %v24410_v63  ;;  %v31234_v8 = vpop.f32.mrf.mxu1  ;;  %31526 = vmatprep.subr.bf16.mxu1 %v34247_v3  ;;  %v34283_v0 = vld [vmem:[%s35143_s27 + $0x3220] sm:$0xff]   ;;  %v34286_v3 = vld [vmem:[%s35143_s27 + $0x3258] sm:$0xff]   ;;  %v34311_v44 = vld [vmem:[%s35143_s27 + $0x3368] sm:$0xff]  }
 0x644   : > { %v34285_v2 = vld [vmem:[%s35143_s27 + $0x32a0] sm:$0xff]   ;;  %v34291_v8 = vld [vmem:[%s35143_s27 + $0x3210] sm:$0xff]  }
 0x645   : > { %31505 = vmatpush3.bf16.msra.mxu0 %v34246_v1  ;;  %v34284_v1 = vld [vmem:[%s35143_s27 + $0x32e0] sm:$0xff]  }
 0x646   : > { %31506 = vmatprep.subr.bf16.mxu0 %v34249_v7  ;;  %31527 = vmatpush3.bf16.msra.mxu1 %v34248_v6  ;;  %v34289_v6 = vld [vmem:[%s35143_s27 + $0x3298] sm:$0xff]   ;;  %v34290_v7 = vld [vmem:[%s35143_s27 + $0x3250] sm:$0xff]  }
 0x647   : > { %31528 = vmatprep.subr.bf16.mxu1 %v34251_v10  ;;  %v34293_v10 = vld [vmem:[%s35143_s27 + $0x3290] sm:$0xff]  }
 0x649   : > { %31507 = vmatpush3.bf16.msra.mxu0 %v34250_v9  ;;  %v34292_v9 = vld [vmem:[%s35143_s27 + $0x32d0] sm:$0xff]  }
 0x64a   : > { %31508 = vmatprep.subr.bf16.mxu0 %v34253_v12  ;;  %31529 = vmatpush3.bf16.msra.mxu1 %v34252_v11  ;;  %v34294_v11 = vld [vmem:[%s35143_s27 + $0x3248] sm:$0xff]  }
 0x64b   : > { %31530 = vmatprep.subr.bf16.mxu1 %v34255_v14  ;;  %v34295_v12 = vld [vmem:[%s35143_s27 + $0x3208] sm:$0xff]  }
 0x64c   : > { %v34297_v14 = vld [vmem:[%s35143_s27 + $0x3288] sm:$0xff]  }
 0x64d   : > { %31509 = vmatpush3.bf16.msra.mxu0 %v34254_v13  ;;  %v34296_v13 = vld [vmem:[%s35143_s27 + $0x32c8] sm:$0xff]  }
 0x64e   : > { %31510 = vmatprep.subr.bf16.mxu0 %v34257_v16  ;;  %31531 = vmatpush3.bf16.msra.mxu1 %v34256_v15  ;;  %v34298_v15 = vld [vmem:[%s35143_s27 + $0x3240] sm:$0xff]  }
 0x64f   : > { %31532 = vmatprep.subr.bf16.mxu1 %v34259_v18  ;;  %v34299_v16 = vld [vmem:[%s35143_s27 + $0x3200] sm:$0xff]   ;;  %v263_v18 = vld [vmem:[%s35138_s23 + $0x190] sm:$0xff] }
 0x651   : > { %31511 = vmatpush3.bf16.msra.mxu0 %v34258_v17  ;;  %v34300_v17 = vld [vmem:[%s35143_s27 + $0x32c0] sm:$0xff]  }
 0x652   : > { %31512 = vmatprep.subr.bf16.mxu0 %v34261_v20  ;;  %31533 = vmatpush3.bf16.msra.mxu1 %v34260_v19  ;;  %v1218_v19 = vrot.slane %v263_v18, %v35187_v42  ;;  %v34301_v20 = vld [vmem:[%s35143_s27 + $0x3280] sm:$0xff]  }
 0x653   : > { %31534 = vmatprep.subr.bf16.mxu1 %v34263_v22  ;;  %v34302_v22 = vld [vmem:[%s35143_s27 + $0x3378] sm:$0xff]  }
 0x655   : > { %31513 = vmatpush3.bf16.msra.mxu0 %v34262_v21  ;;  %v1211_v21 = vcombine.high %v263_v18, %v263_v18  ;;  %v34338_v18 = vld [vmem:[%s35143_s27 + $0x34f8] sm:$0xff]  }
 0x656   : > { %31514 = vmatprep.subr.bf16.mxu0 %v34265_v24  ;;  %31535 = vmatpush3.bf16.msra.mxu1 %v34264_v23  ;;  %v1226_v23 = vcombine.high %v1218_v19, %v1218_v19 }
 0x657   : > { %31536 = vmatprep.subr.bf16.mxu1 %v34267_v26  ;;  %v1225_v24 = vrot.slane %v1211_v21, %v35187_v42  ;;  %v2104_v26 = vpack.c.bf16 %v1218_v19, %v1218_v19  ;;  %v34339_v21 = vld [vmem:[%s35143_s27 + $0x34b8] sm:$0xff]  }
 0x658   : > { %v2105_v28 = vpack.c.bf16 %v1226_v23, %v1226_v23 }
 0x659   : > { %31515 = vmatpush3.bf16.msra.mxu0 %v34266_v25  ;;  %v34304_v25 = vld [vmem:[%s35143_s27 + $0x3338] sm:$0xff]   ;;  %v2106_v32 = vpack.c.bf16 %v1225_v24, %v1225_v24 }
 0x65a   : > { %31544 = vmatprep.subr.bf16.mxu0 %v34269_v31  ;;  %31537 = vmatpush3.bf16.msra.mxu1 %v34268_v29  ;;  %v1227_v29 = vcombine.high %v1225_v24, %v1225_v24  ;;  %v34340_v24 = vld [vmem:[%s35143_s27 + $0x3470] sm:$0xff]  }
 0x65b   : > { %31566 = vmatprep.subr.bf16.mxu1 %v34272_v36 }
 0x65c   : > { %v31252_v40 = vpop.f32.mrf.mxu0  ;;  %24968 = vmatmul.mubr.bf16.vlgmr.msra.gmra.mxu0 %v2100_v35  ;;  %v34308_v35 = vld [vmem:[%s35143_s27 + $0x3330] sm:$0xff]  }
 0x65d   : > { %v31274_v47 = vpop.f32.mrf.mxu1  ;;  %31545 = vmatpush3.bf16.msra.mxu0 %v34271_v34  ;;  %25008 = vmatmul.mubr.bf16.vlgmr.msra.gmra.mxu1 %v2102_v41  ;;  %v2107_v34 = vpack.c.bf16 %v1227_v29, %v1227_v29  ;;  %v34342_v29 = vld [vmem:[%s35143_s27 + $0x34f0] sm:$0xff]  }
 0x65e   : > { %v31253_v46 = vpop.f32.mrf.mxu0  ;;  %31546 = vmatprep.subr.bf16.mxu0 %v34274_v43  ;;  %31567 = vmatpush3.bf16.msra.mxu1 %v34273_v39 }
 0x65f   : > { %v31254_v49 = vadd.f32 %v31253_v46, %v31252_v40  ;;  %v31275_v52 = vpop.f32.mrf.mxu1  ;;  %31568 = vmatprep.subr.bf16.mxu1 %v34276_v48  ;;  %25047 = vmatprep.mubr.bf16.mxu0 %v2105_v28  ;;  %v34310_v40 = vld [vmem:[%s35143_s27 + $0x33b0] sm:$0xff]  }
 0x660   : > { %v31255_v51 = vpop.f32.mrf.mxu0  ;;  %v31276_v55 = vadd.f32 %v31275_v52, %v31274_v47  ;;  %25087 = vmatprep.mubr.bf16.mxu1 %v2107_v34  ;;  %v34312_v47 = vld [vmem:[%s35143_s27 + $0x3328] sm:$0xff]  }
 0x661   : > { %v24490_v54 = vadd.f32 %v31254_v49, %v37006_v5  ;;  %v31277_v59 = vpop.f32.mrf.mxu1  ;;  %31547 = vmatpush3.bf16.msra.mxu0 %v34275_v45  ;;  %v34288_v5 = vld [vmem:[%s35143_s27 + $0x32d8] sm:$0xff]   ;;  %v34313_v49 = vld [vmem:[%s35143_s27 + $0x33e8] sm:$0xff]  }
 0x662   : > { %v31256_v57 = vpop.f32.mrf.mxu0  ;;  %31548 = vmatprep.subr.bf16.mxu0 %v34278_v53  ;;  %31569 = vmatpush3.bf16.msra.mxu1 %v34277_v50  ;;  %v34314_v52 = vld [vmem:[%s35143_s27 + $0x33a8] sm:$0xff]   ;;  %v34315_v53 = vld [vmem:[%s35143_s27 + $0x3360] sm:$0xff]   ;;  %v34320_v59 = vld [vmem:[%s35143_s27 + $0x3318] sm:$0xff]  }
 0x663   : > { %v37044_v60 = vadd.f32 %v31276_v55, %v24490_v54  ;;  %v31278_v63 = vpop.f32.mrf.mxu1  ;;  %31570 = vmatprep.subr.bf16.mxu1 %v34280_v58  ;;  %v34316_v55 = vld [vmem:[%s35143_s27 + $0x3320] sm:$0xff]   ;;  %v34319_v58 = vld [vmem:[%s35143_s27 + $0x3358] sm:$0xff]   ;;  %v34344_v34 = vld [vmem:[%s35143_s27 + $0x3468] sm:$0xff]  }
 0x664   : > { %v34318_v57 = vld [vmem:[%s35143_s27 + $0x33a0] sm:$0xff]   ;;  %v34324_v63 = vld [vmem:[%s35143_s27 + $0x3310] sm:$0xff]  }
 0x665   : > { %31549 = vmatpush3.bf16.msra.mxu0 %v34279_v56  ;;  %v34317_v56 = vld [vmem:[%s35143_s27 + $0x33e0] sm:$0xff]  }
 0x666   : > { %31550 = vmatprep.subr.bf16.mxu0 %v34282_v62  ;;  %31571 = vmatpush3.bf16.msra.mxu1 %v34281_v61  ;;  %v34322_v61 = vld [vmem:[%s35143_s27 + $0x3398] sm:$0xff]   ;;  %v34323_v62 = vld [vmem:[%s35143_s27 + $0x3350] sm:$0xff]  }
 0x667   : > { %31572 = vmatprep.subr.bf16.mxu1 %v34284_v1  ;;  %v34326_v1 = vld [vmem:[%s35143_s27 + $0x3390] sm:$0xff]  }
 0x669   : > { %31551 = vmatpush3.bf16.msra.mxu0 %v34283_v0  ;;  %v34325_v0 = vld [vmem:[%s35143_s27 + $0x33d0] sm:$0xff]  }
 0x66a   : > { %31552 = vmatprep.subr.bf16.mxu0 %v34286_v3  ;;  %31573 = vmatpush3.bf16.msra.mxu1 %v34285_v2  ;;  %v34327_v2 = vld [vmem:[%s35143_s27 + $0x3348] sm:$0xff]  }
 0x66b   : > { %31574 = vmatprep.subr.bf16.mxu1 %v34288_v5  ;;  %v34328_v3 = vld [vmem:[%s35143_s27 + $0x3308] sm:$0xff]  }
 0x66c   : > { %v34330_v5 = vld [vmem:[%s35143_s27 + $0x3388] sm:$0xff]  }
 0x66d   : > { %31553 = vmatpush3.bf16.msra.mxu0 %v34287_v4  ;;  %v34329_v4 = vld [vmem:[%s35143_s27 + $0x33c8] sm:$0xff]  }
 0x66e   : > { %31554 = vmatprep.subr.bf16.mxu0 %v34290_v7  ;;  %31575 = vmatpush3.bf16.msra.mxu1 %v34289_v6  ;;  %v34331_v6 = vld [vmem:[%s35143_s27 + $0x3340] sm:$0xff]  }
 0x66f   : > { %31576 = vmatprep.subr.bf16.mxu1 %v34292_v9  ;;  %v34332_v7 = vld [vmem:[%s35143_s27 + $0x3300] sm:$0xff]   ;;  %v264_v9 = vld [vmem:[%s35138_s23 + $0x198] sm:$0xff] }
 0x671   : > { %31555 = vmatpush3.bf16.msra.mxu0 %v34291_v8  ;;  %v34333_v8 = vld [vmem:[%s35143_s27 + $0x33c0] sm:$0xff]  }
 0x672   : > { %31556 = vmatprep.subr.bf16.mxu0 %v34294_v11  ;;  %31577 = vmatpush3.bf16.msra.mxu1 %v34293_v10  ;;  %v1235_v10 = vrot.slane %v264_v9, %v35187_v42  ;;  %v34334_v11 = vld [vmem:[%s35143_s27 + $0x3380] sm:$0xff]  }
 0x673   : > { %31578 = vmatprep.subr.bf16.mxu1 %v34296_v13  ;;  %v34335_v13 = vld [vmem:[%s35143_s27 + $0x3478] sm:$0xff]  }
 0x675   : > { %31557 = vmatpush3.bf16.msra.mxu0 %v34295_v12  ;;  %v1228_v12 = vcombine.high %v264_v9, %v264_v9  ;;  %v34371_v9 = vld [vmem:[%s35143_s27 + $0x35f8] sm:$0xff]  }
 0x676   : > { %31558 = vmatprep.subr.bf16.mxu0 %v34298_v15  ;;  %31579 = vmatpush3.bf16.msra.mxu1 %v34297_v14  ;;  %v1243_v14 = vcombine.high %v1235_v10, %v1235_v10 }
 0x677   : > { %31580 = vmatprep.subr.bf16.mxu1 %v34300_v17  ;;  %v1242_v15 = vrot.slane %v1228_v12, %v35187_v42  ;;  %v2108_v17 = vpack.c.bf16 %v1235_v10, %v1235_v10  ;;  %v34372_v12 = vld [vmem:[%s35143_s27 + $0x35b8] sm:$0xff]  }
 0x678   : > { %v2109_v19 = vpack.c.bf16 %v1243_v14, %v1243_v14 }
 0x679   : > { %31559 = vmatpush3.bf16.msra.mxu0 %v34299_v16  ;;  %v34337_v16 = vld [vmem:[%s35143_s27 + $0x3438] sm:$0xff]   ;;  %v2110_v23 = vpack.c.bf16 %v1242_v15, %v1242_v15 }
 0x67a   : > { %31588 = vmatprep.subr.bf16.mxu0 %v34302_v22  ;;  %31581 = vmatpush3.bf16.msra.mxu1 %v34301_v20  ;;  %v1244_v20 = vcombine.high %v1242_v15, %v1242_v15  ;;  %v34373_v15 = vld [vmem:[%s35143_s27 + $0x3570] sm:$0xff]  }
 0x67b   : > { %31610 = vmatprep.subr.bf16.mxu1 %v34305_v27 }
 0x67c   : > { %v31296_v31 = vpop.f32.mrf.mxu0  ;;  %25048 = vmatmul.mubr.bf16.vlgmr.msra.gmra.mxu0 %v2104_v26  ;;  %v34341_v26 = vld [vmem:[%s35143_s27 + $0x3430] sm:$0xff]  }
 0x67d   : > { %v31318_v37 = vpop.f32.mrf.mxu1  ;;  %31589 = vmatpush3.bf16.msra.mxu0 %v34304_v25  ;;  %25088 = vmatmul.mubr.bf16.vlgmr.msra.gmra.mxu1 %v2106_v32  ;;  %v2111_v25 = vpack.c.bf16 %v1244_v20, %v1244_v20  ;;  %v34375_v20 = vld [vmem:[%s35143_s27 + $0x35f0] sm:$0xff]  }
 0x67e   : > { %v31297_v36 = vpop.f32.mrf.mxu0  ;;  %31590 = vmatprep.subr.bf16.mxu0 %v34307_v33  ;;  %31611 = vmatpush3.bf16.msra.mxu1 %v34306_v30 }
 0x67f   : > { %v31298_v39 = vadd.f32 %v31297_v36, %v31296_v31  ;;  %v31319_v43 = vpop.f32.mrf.mxu1  ;;  %31612 = vmatprep.subr.bf16.mxu1 %v34309_v38  ;;  %25127 = vmatprep.mubr.bf16.mxu0 %v2109_v19  ;;  %v34343_v31 = vld [vmem:[%s35143_s27 + $0x34b0] sm:$0xff]  }
 0x680   : > { %v31299_v41 = vpop.f32.mrf.mxu0  ;;  %v31320_v46 = vadd.f32 %v31319_v43, %v31318_v37  ;;  %25167 = vmatprep.mubr.bf16.mxu1 %v2111_v25  ;;  %v34345_v37 = vld [vmem:[%s35143_s27 + $0x3428] sm:$0xff]  }
 0x681   : > { %v24570_v45 = vadd.f32 %v31298_v39, %v37044_v60  ;;  %v31321_v50 = vpop.f32.mrf.mxu1  ;;  %31591 = vmatpush3.bf16.msra.mxu0 %v34308_v35  ;;  %v34321_v60 = vld [vmem:[%s35143_s27 + $0x33d8] sm:$0xff]   ;;  %v34346_v39 = vld [vmem:[%s35143_s27 + $0x34e8] sm:$0xff]  }
 0x682   : > { %v31300_v48 = vpop.f32.mrf.mxu0  ;;  %31592 = vmatprep.subr.bf16.mxu0 %v34311_v44  ;;  %31613 = vmatpush3.bf16.msra.mxu1 %v34310_v40  ;;  %v34347_v43 = vld [vmem:[%s35143_s27 + $0x34a8] sm:$0xff]   ;;  %v34348_v44 = vld [vmem:[%s35143_s27 + $0x3460] sm:$0xff]   ;;  %v34353_v50 = vld [vmem:[%s35143_s27 + $0x3418] sm:$0xff]  }
 0x683   : > { %v37082_v51 = vadd.f32 %v31320_v46, %v24570_v45  ;;  %v31322_v54 = vpop.f32.mrf.mxu1  ;;  %31614 = vmatprep.subr.bf16.mxu1 %v34313_v49  ;;  %v34349_v46 = vld [vmem:[%s35143_s27 + $0x3420] sm:$0xff]   ;;  %v34352_v49 = vld [vmem:[%s35143_s27 + $0x3458] sm:$0xff]   ;;  %v34377_v25 = vld [vmem:[%s35143_s27 + $0x3568] sm:$0xff]  }
 0x684   : > { %v34351_v48 = vld [vmem:[%s35143_s27 + $0x34a0] sm:$0xff]   ;;  %v34357_v54 = vld [vmem:[%s35143_s27 + $0x3410] sm:$0xff]  }
 0x685   : > { %31593 = vmatpush3.bf16.msra.mxu0 %v34312_v47  ;;  %v34350_v47 = vld [vmem:[%s35143_s27 + $0x34e0] sm:$0xff]  }
 0x686   : > { %31594 = vmatprep.subr.bf16.mxu0 %v34315_v53  ;;  %31615 = vmatpush3.bf16.msra.mxu1 %v34314_v52  ;;  %v34355_v52 = vld [vmem:[%s35143_s27 + $0x3498] sm:$0xff]   ;;  %v34356_v53 = vld [vmem:[%s35143_s27 + $0x3450] sm:$0xff]  }
 0x687   : > { %31616 = vmatprep.subr.bf16.mxu1 %v34317_v56  ;;  %v34359_v56 = vld [vmem:[%s35143_s27 + $0x3490] sm:$0xff]  }
 0x689   : > { %31595 = vmatpush3.bf16.msra.mxu0 %v34316_v55  ;;  %v34358_v55 = vld [vmem:[%s35143_s27 + $0x34d0] sm:$0xff]  }
 0x68a   : > { %31596 = vmatprep.subr.bf16.mxu0 %v34319_v58  ;;  %31617 = vmatpush3.bf16.msra.mxu1 %v34318_v57  ;;  %v34360_v57 = vld [vmem:[%s35143_s27 + $0x3448] sm:$0xff]  }
 0x68b   : > { %31618 = vmatprep.subr.bf16.mxu1 %v34321_v60  ;;  %v34361_v58 = vld [vmem:[%s35143_s27 + $0x3408] sm:$0xff]  }
 0x68c   : > { %v34363_v60 = vld [vmem:[%s35143_s27 + $0x3488] sm:$0xff]  }
 0x68d   : > { %31597 = vmatpush3.bf16.msra.mxu0 %v34320_v59  ;;  %v34362_v59 = vld [vmem:[%s35143_s27 + $0x34c8] sm:$0xff]  }
 0x68e   : > { %31598 = vmatprep.subr.bf16.mxu0 %v34323_v62  ;;  %31619 = vmatpush3.bf16.msra.mxu1 %v34322_v61  ;;  %v34364_v61 = vld [vmem:[%s35143_s27 + $0x3440] sm:$0xff]  }
 0x68f   : > { %31620 = vmatprep.subr.bf16.mxu1 %v34325_v0  ;;  %v34365_v62 = vld [vmem:[%s35143_s27 + $0x3400] sm:$0xff]  }
 0x690   : > { %v265_v0 = vld [vmem:[%s35138_s23 + $0x1a0] sm:$0xff] }
 0x691   : > { %31599 = vmatpush3.bf16.msra.mxu0 %v34324_v63  ;;  %v34366_v63 = vld [vmem:[%s35143_s27 + $0x34c0] sm:$0xff]  }
 0x692   : > { %31600 = vmatprep.subr.bf16.mxu0 %v34327_v2  ;;  %31621 = vmatpush3.bf16.msra.mxu1 %v34326_v1  ;;  %v1252_v1 = vrot.slane %v265_v0, %v35187_v42  ;;  %v34367_v2 = vld [vmem:[%s35143_s27 + $0x3480] sm:$0xff]  }
 0x693   : > { %31622 = vmatprep.subr.bf16.mxu1 %v34329_v4  ;;  %v34368_v4 = vld [vmem:[%s35143_s27 + $0x3578] sm:$0xff]  }
 0x695   : > { %31601 = vmatpush3.bf16.msra.mxu0 %v34328_v3  ;;  %v1245_v3 = vcombine.high %v265_v0, %v265_v0  ;;  %v34404_v0 = vld [vmem:[%s35143_s27 + $0x36f8] sm:$0xff]  }
 0x696   : > { %31602 = vmatprep.subr.bf16.mxu0 %v34331_v6  ;;  %31623 = vmatpush3.bf16.msra.mxu1 %v34330_v5  ;;  %v1260_v5 = vcombine.high %v1252_v1, %v1252_v1 }
 0x697   : > { %31624 = vmatprep.subr.bf16.mxu1 %v34333_v8  ;;  %v1259_v6 = vrot.slane %v1245_v3, %v35187_v42  ;;  %v2112_v8 = vpack.c.bf16 %v1252_v1, %v1252_v1  ;;  %v34405_v3 = vld [vmem:[%s35143_s27 + $0x36b8] sm:$0xff]  }
 0x698   : > { %v2113_v10 = vpack.c.bf16 %v1260_v5, %v1260_v5 }
 0x699   : > { %31603 = vmatpush3.bf16.msra.mxu0 %v34332_v7  ;;  %v34370_v7 = vld [vmem:[%s35143_s27 + $0x3538] sm:$0xff]   ;;  %v2114_v14 = vpack.c.bf16 %v1259_v6, %v1259_v6 }
 0x69a   : > { %31632 = vmatprep.subr.bf16.mxu0 %v34335_v13  ;;  %31625 = vmatpush3.bf16.msra.mxu1 %v34334_v11  ;;  %v1261_v11 = vcombine.high %v1259_v6, %v1259_v6  ;;  %v34406_v6 = vld [vmem:[%s35143_s27 + $0x3670] sm:$0xff]  }
 0x69b   : > { %31654 = vmatprep.subr.bf16.mxu1 %v34338_v18 }
 0x69c   : > { %v31340_v22 = vpop.f32.mrf.mxu0  ;;  %25128 = vmatmul.mubr.bf16.vlgmr.msra.gmra.mxu0 %v2108_v17  ;;  %v34374_v17 = vld [vmem:[%s35143_s27 + $0x3530] sm:$0xff]  }
 0x69d   : > { %v31362_v28 = vpop.f32.mrf.mxu1  ;;  %31633 = vmatpush3.bf16.msra.mxu0 %v34337_v16  ;;  %25168 = vmatmul.mubr.bf16.vlgmr.msra.gmra.mxu1 %v2110_v23  ;;  %v2115_v16 = vpack.c.bf16 %v1261_v11, %v1261_v11  ;;  %v34408_v11 = vld [vmem:[%s35143_s27 + $0x36f0] sm:$0xff]  }
 0x69e   : > { %v31341_v27 = vpop.f32.mrf.mxu0  ;;  %31634 = vmatprep.subr.bf16.mxu0 %v34340_v24  ;;  %31655 = vmatpush3.bf16.msra.mxu1 %v34339_v21 }
 0x69f   : > { %v31342_v30 = vadd.f32 %v31341_v27, %v31340_v22  ;;  %v31363_v33 = vpop.f32.mrf.mxu1  ;;  %31656 = vmatprep.subr.bf16.mxu1 %v34342_v29  ;;  %25207 = vmatprep.mubr.bf16.mxu0 %v2113_v10  ;;  %v34376_v22 = vld [vmem:[%s35143_s27 + $0x35b0] sm:$0xff]  }
 0x6a0   : > { %v31343_v32 = vpop.f32.mrf.mxu0  ;;  %v31364_v36 = vadd.f32 %v31363_v33, %v31362_v28  ;;  %25247 = vmatprep.mubr.bf16.mxu1 %v2115_v16  ;;  %v34378_v28 = vld [vmem:[%s35143_s27 + $0x3528] sm:$0xff]  }
 0x6a1   : > { %v24650_v35 = vadd.f32 %v31342_v30, %v37082_v51  ;;  %v31365_v40 = vpop.f32.mrf.mxu1  ;;  %31635 = vmatpush3.bf16.msra.mxu0 %v34341_v26  ;;  %v34354_v51 = vld [vmem:[%s35143_s27 + $0x34d8] sm:$0xff]   ;;  %v34379_v30 = vld [vmem:[%s35143_s27 + $0x35e8] sm:$0xff]  }
 0x6a2   : > { %v31344_v38 = vpop.f32.mrf.mxu0  ;;  %31636 = vmatprep.subr.bf16.mxu0 %v34344_v34  ;;  %31657 = vmatpush3.bf16.msra.mxu1 %v34343_v31  ;;  %v34380_v33 = vld [vmem:[%s35143_s27 + $0x35a8] sm:$0xff]   ;;  %v34381_v34 = vld [vmem:[%s35143_s27 + $0x3560] sm:$0xff]   ;;  %v34386_v40 = vld [vmem:[%s35143_s27 + $0x3518] sm:$0xff]  }
 0x6a3   : > { %v37120_v41 = vadd.f32 %v31364_v36, %v24650_v35  ;;  %v31366_v45 = vpop.f32.mrf.mxu1  ;;  %31658 = vmatprep.subr.bf16.mxu1 %v34346_v39  ;;  %v34382_v36 = vld [vmem:[%s35143_s27 + $0x3520] sm:$0xff]   ;;  %v34385_v39 = vld [vmem:[%s35143_s27 + $0x3558] sm:$0xff]   ;;  %v34410_v16 = vld [vmem:[%s35143_s27 + $0x3668] sm:$0xff]  }
 0x6a4   : > { %v34384_v38 = vld [vmem:[%s35143_s27 + $0x35a0] sm:$0xff]   ;;  %v34390_v45 = vld [vmem:[%s35143_s27 + $0x3510] sm:$0xff]  }
 0x6a5   : > { %31637 = vmatpush3.bf16.msra.mxu0 %v34345_v37  ;;  %v34383_v37 = vld [vmem:[%s35143_s27 + $0x35e0] sm:$0xff]  }
 0x6a6   : > { %31638 = vmatprep.subr.bf16.mxu0 %v34348_v44  ;;  %31659 = vmatpush3.bf16.msra.mxu1 %v34347_v43  ;;  %v34388_v43 = vld [vmem:[%s35143_s27 + $0x3598] sm:$0xff]   ;;  %v34389_v44 = vld [vmem:[%s35143_s27 + $0x3550] sm:$0xff]  }
 0x6a7   : > { %31660 = vmatprep.subr.bf16.mxu1 %v34350_v47  ;;  %v34392_v47 = vld [vmem:[%s35143_s27 + $0x3590] sm:$0xff]  }
 0x6a9   : > { %31639 = vmatpush3.bf16.msra.mxu0 %v34349_v46  ;;  %v34391_v46 = vld [vmem:[%s35143_s27 + $0x35d0] sm:$0xff]  }
 0x6aa   : > { %31640 = vmatprep.subr.bf16.mxu0 %v34352_v49  ;;  %31661 = vmatpush3.bf16.msra.mxu1 %v34351_v48  ;;  %v34393_v48 = vld [vmem:[%s35143_s27 + $0x3548] sm:$0xff]  }
 0x6ab   : > { %31662 = vmatprep.subr.bf16.mxu1 %v34354_v51  ;;  %v34394_v49 = vld [vmem:[%s35143_s27 + $0x3508] sm:$0xff]  }
 0x6ac   : > { %v34396_v51 = vld [vmem:[%s35143_s27 + $0x3588] sm:$0xff]  }
 0x6ad   : > { %31641 = vmatpush3.bf16.msra.mxu0 %v34353_v50  ;;  %v34395_v50 = vld [vmem:[%s35143_s27 + $0x35c8] sm:$0xff]  }
 0x6ae   : > { %31642 = vmatprep.subr.bf16.mxu0 %v34356_v53  ;;  %31663 = vmatpush3.bf16.msra.mxu1 %v34355_v52  ;;  %v34397_v52 = vld [vmem:[%s35143_s27 + $0x3540] sm:$0xff]  }
 0x6af   : > { %31664 = vmatprep.subr.bf16.mxu1 %v34358_v55  ;;  %v34398_v53 = vld [vmem:[%s35143_s27 + $0x3500] sm:$0xff]   ;;  %v266_v55 = vld [vmem:[%s35138_s23 + $0x1a8] sm:$0xff] }
 0x6b1   : > { %31643 = vmatpush3.bf16.msra.mxu0 %v34357_v54  ;;  %v34399_v54 = vld [vmem:[%s35143_s27 + $0x35c0] sm:$0xff]  }
 0x6b2   : > { %31644 = vmatprep.subr.bf16.mxu0 %v34360_v57  ;;  %31665 = vmatpush3.bf16.msra.mxu1 %v34359_v56  ;;  %v1269_v56 = vrot.slane %v266_v55, %v35187_v42  ;;  %v34400_v57 = vld [vmem:[%s35143_s27 + $0x3580] sm:$0xff]  }
 0x6b3   : > { %31666 = vmatprep.subr.bf16.mxu1 %v34362_v59  ;;  %v34401_v59 = vld [vmem:[%s35143_s27 + $0x3678] sm:$0xff]  }
 0x6b5   : > { %31645 = vmatpush3.bf16.msra.mxu0 %v34361_v58  ;;  %v1262_v58 = vcombine.high %v266_v55, %v266_v55  ;;  %v34437_v55 = vld [vmem:[%s35143_s27 + $0x37f8] sm:$0xff]  }
 0x6b6   : > { %31646 = vmatprep.subr.bf16.mxu0 %v34364_v61  ;;  %31667 = vmatpush3.bf16.msra.mxu1 %v34363_v60  ;;  %v1277_v60 = vcombine.high %v1269_v56, %v1269_v56 }
 0x6b7   : > { %31668 = vmatprep.subr.bf16.mxu1 %v34366_v63  ;;  %v1276_v61 = vrot.slane %v1262_v58, %v35187_v42  ;;  %v2116_v63 = vpack.c.bf16 %v1269_v56, %v1269_v56  ;;  %v34438_v58 = vld [vmem:[%s35143_s27 + $0x37b8] sm:$0xff]  }
 0x6b8   : > { %v2117_v1 = vpack.c.bf16 %v1277_v60, %v1277_v60 }
 0x6b9   : > { %31647 = vmatpush3.bf16.msra.mxu0 %v34365_v62  ;;  %v34403_v62 = vld [vmem:[%s35143_s27 + $0x3638] sm:$0xff]   ;;  %v2118_v5 = vpack.c.bf16 %v1276_v61, %v1276_v61 }
 0x6ba   : > { %31676 = vmatprep.subr.bf16.mxu0 %v34368_v4  ;;  %31669 = vmatpush3.bf16.msra.mxu1 %v34367_v2  ;;  %v1278_v2 = vcombine.high %v1276_v61, %v1276_v61  ;;  %v34439_v61 = vld [vmem:[%s35143_s27 + $0x3770] sm:$0xff]  }
 0x6bb   : > { %31698 = vmatprep.subr.bf16.mxu1 %v34371_v9 }
 0x6bc   : > { %v31384_v13 = vpop.f32.mrf.mxu0  ;;  %25208 = vmatmul.mubr.bf16.vlgmr.msra.gmra.mxu0 %v2112_v8  ;;  %v34407_v8 = vld [vmem:[%s35143_s27 + $0x3630] sm:$0xff]  }
 0x6bd   : > { %v31406_v19 = vpop.f32.mrf.mxu1  ;;  %31677 = vmatpush3.bf16.msra.mxu0 %v34370_v7  ;;  %25248 = vmatmul.mubr.bf16.vlgmr.msra.gmra.mxu1 %v2114_v14  ;;  %v2119_v7 = vpack.c.bf16 %v1278_v2, %v1278_v2  ;;  %v34441_v2 = vld [vmem:[%s35143_s27 + $0x37f0] sm:$0xff]  }
 0x6be   : > { %v31385_v18 = vpop.f32.mrf.mxu0  ;;  %31678 = vmatprep.subr.bf16.mxu0 %v34373_v15  ;;  %31699 = vmatpush3.bf16.msra.mxu1 %v34372_v12 }
 0x6bf   : > { %v31386_v21 = vadd.f32 %v31385_v18, %v31384_v13  ;;  %v31407_v24 = vpop.f32.mrf.mxu1  ;;  %31700 = vmatprep.subr.bf16.mxu1 %v34375_v20  ;;  %25287 = vmatprep.mubr.bf16.mxu0 %v2117_v1  ;;  %v34409_v13 = vld [vmem:[%s35143_s27 + $0x36b0] sm:$0xff]  }
 0x6c0   : > { %v31387_v23 = vpop.f32.mrf.mxu0  ;;  %v31408_v27 = vadd.f32 %v31407_v24, %v31406_v19  ;;  %25327 = vmatprep.mubr.bf16.mxu1 %v2119_v7  ;;  %v34411_v19 = vld [vmem:[%s35143_s27 + $0x3628] sm:$0xff]  }
 0x6c1   : > { %v24730_v26 = vadd.f32 %v31386_v21, %v37120_v41  ;;  %v31409_v31 = vpop.f32.mrf.mxu1  ;;  %31679 = vmatpush3.bf16.msra.mxu0 %v34374_v17  ;;  %v34387_v41 = vld [vmem:[%s35143_s27 + $0x35d8] sm:$0xff]   ;;  %v34412_v21 = vld [vmem:[%s35143_s27 + $0x36e8] sm:$0xff]  }
 0x6c2   : > { %v31388_v29 = vpop.f32.mrf.mxu0  ;;  %31680 = vmatprep.subr.bf16.mxu0 %v34377_v25  ;;  %31701 = vmatpush3.bf16.msra.mxu1 %v34376_v22  ;;  %v34413_v24 = vld [vmem:[%s35143_s27 + $0x36a8] sm:$0xff]   ;;  %v34414_v25 = vld [vmem:[%s35143_s27 + $0x3660] sm:$0xff]   ;;  %v34419_v31 = vld [vmem:[%s35143_s27 + $0x3618] sm:$0xff]  }
 0x6c3   : > { %v37158_v32 = vadd.f32 %v31408_v27, %v24730_v26  ;;  %v31410_v35 = vpop.f32.mrf.mxu1  ;;  %31702 = vmatprep.subr.bf16.mxu1 %v34379_v30  ;;  %v34415_v27 = vld [vmem:[%s35143_s27 + $0x3620] sm:$0xff]   ;;  %v34418_v30 = vld [vmem:[%s35143_s27 + $0x3658] sm:$0xff]   ;;  %v34443_v7 = vld [vmem:[%s35143_s27 + $0x3768] sm:$0xff]  }
 0x6c4   : > { %v34417_v29 = vld [vmem:[%s35143_s27 + $0x36a0] sm:$0xff]   ;;  %v34423_v35 = vld [vmem:[%s35143_s27 + $0x3610] sm:$0xff]  }
 0x6c5   : > { %31681 = vmatpush3.bf16.msra.mxu0 %v34378_v28  ;;  %v34416_v28 = vld [vmem:[%s35143_s27 + $0x36e0] sm:$0xff]  }
 0x6c6   : > { %31682 = vmatprep.subr.bf16.mxu0 %v34381_v34  ;;  %31703 = vmatpush3.bf16.msra.mxu1 %v34380_v33  ;;  %v34421_v33 = vld [vmem:[%s35143_s27 + $0x3698] sm:$0xff]   ;;  %v34422_v34 = vld [vmem:[%s35143_s27 + $0x3650] sm:$0xff]  }
 0x6c7   : > { %31704 = vmatprep.subr.bf16.mxu1 %v34383_v37  ;;  %v34425_v37 = vld [vmem:[%s35143_s27 + $0x3690] sm:$0xff]  }
 0x6c9   : > { %31683 = vmatpush3.bf16.msra.mxu0 %v34382_v36  ;;  %v34424_v36 = vld [vmem:[%s35143_s27 + $0x36d0] sm:$0xff]  }
 0x6ca   : > { %31684 = vmatprep.subr.bf16.mxu0 %v34385_v39  ;;  %31705 = vmatpush3.bf16.msra.mxu1 %v34384_v38  ;;  %v34426_v38 = vld [vmem:[%s35143_s27 + $0x3648] sm:$0xff]  }
 0x6cb   : > { %31706 = vmatprep.subr.bf16.mxu1 %v34387_v41  ;;  %v34427_v39 = vld [vmem:[%s35143_s27 + $0x3608] sm:$0xff]  }
 0x6cc   : > { %v34429_v41 = vld [vmem:[%s35143_s27 + $0x3688] sm:$0xff]  }
 0x6cd   : > { %31685 = vmatpush3.bf16.msra.mxu0 %v34386_v40  ;;  %v34428_v40 = vld [vmem:[%s35143_s27 + $0x36c8] sm:$0xff]  }
 0x6ce   : > { %31686 = vmatprep.subr.bf16.mxu0 %v34389_v44  ;;  %31707 = vmatpush3.bf16.msra.mxu1 %v34388_v43  ;;  %v34430_v43 = vld [vmem:[%s35143_s27 + $0x3640] sm:$0xff]  }
 0x6cf   : > { %31708 = vmatprep.subr.bf16.mxu1 %v34391_v46  ;;  %v34431_v44 = vld [vmem:[%s35143_s27 + $0x3600] sm:$0xff]   ;;  %v267_v46 = vld [vmem:[%s35138_s23 + $0x1b0] sm:$0xff] }
 0x6d1   : > { %31687 = vmatpush3.bf16.msra.mxu0 %v34390_v45  ;;  %v34432_v45 = vld [vmem:[%s35143_s27 + $0x36c0] sm:$0xff]  }
 0x6d2   : > { %31688 = vmatprep.subr.bf16.mxu0 %v34393_v48  ;;  %31709 = vmatpush3.bf16.msra.mxu1 %v34392_v47  ;;  %v1286_v47 = vrot.slane %v267_v46, %v35187_v42  ;;  %v34433_v48 = vld [vmem:[%s35143_s27 + $0x3680] sm:$0xff]  }
 0x6d3   : > { %31710 = vmatprep.subr.bf16.mxu1 %v34395_v50  ;;  %v34434_v50 = vld [vmem:[%s35143_s27 + $0x3778] sm:$0xff]  }
 0x6d5   : > { %31689 = vmatpush3.bf16.msra.mxu0 %v34394_v49  ;;  %v1279_v49 = vcombine.high %v267_v46, %v267_v46  ;;  %v34470_v46 = vld [vmem:[%s35143_s27 + $0x38f8] sm:$0xff]  }
 0x6d6   : > { %31690 = vmatprep.subr.bf16.mxu0 %v34397_v52  ;;  %31711 = vmatpush3.bf16.msra.mxu1 %v34396_v51  ;;  %v1294_v51 = vcombine.high %v1286_v47, %v1286_v47 }
 0x6d7   : > { %31712 = vmatprep.subr.bf16.mxu1 %v34399_v54  ;;  %v1293_v52 = vrot.slane %v1279_v49, %v35187_v42  ;;  %v2120_v54 = vpack.c.bf16 %v1286_v47, %v1286_v47  ;;  %v34471_v49 = vld [vmem:[%s35143_s27 + $0x38b8] sm:$0xff]  }
 0x6d8   : > { %v2121_v56 = vpack.c.bf16 %v1294_v51, %v1294_v51 }
 0x6d9   : > { %31691 = vmatpush3.bf16.msra.mxu0 %v34398_v53  ;;  %v34436_v53 = vld [vmem:[%s35143_s27 + $0x3738] sm:$0xff]   ;;  %v2122_v60 = vpack.c.bf16 %v1293_v52, %v1293_v52 }
 0x6da   : > { %31720 = vmatprep.subr.bf16.mxu0 %v34401_v59  ;;  %31713 = vmatpush3.bf16.msra.mxu1 %v34400_v57  ;;  %v1295_v57 = vcombine.high %v1293_v52, %v1293_v52  ;;  %v34472_v52 = vld [vmem:[%s35143_s27 + $0x3870] sm:$0xff]  }
 0x6db   : > { %31742 = vmatprep.subr.bf16.mxu1 %v34404_v0 }
 0x6dc   : > { %v31428_v4 = vpop.f32.mrf.mxu0  ;;  %25288 = vmatmul.mubr.bf16.vlgmr.msra.gmra.mxu0 %v2116_v63  ;;  %v34440_v63 = vld [vmem:[%s35143_s27 + $0x3730] sm:$0xff]  }
 0x6dd   : > { %v31450_v10 = vpop.f32.mrf.mxu1  ;;  %31721 = vmatpush3.bf16.msra.mxu0 %v34403_v62  ;;  %25328 = vmatmul.mubr.bf16.vlgmr.msra.gmra.mxu1 %v2118_v5  ;;  %v2123_v62 = vpack.c.bf16 %v1295_v57, %v1295_v57  ;;  %v34474_v57 = vld [vmem:[%s35143_s27 + $0x38f0] sm:$0xff]  }
 0x6de   : > { %v31429_v9 = vpop.f32.mrf.mxu0  ;;  %31722 = vmatprep.subr.bf16.mxu0 %v34406_v6  ;;  %31743 = vmatpush3.bf16.msra.mxu1 %v34405_v3 }
 0x6df   : > { %v31430_v12 = vadd.f32 %v31429_v9, %v31428_v4  ;;  %v31451_v15 = vpop.f32.mrf.mxu1  ;;  %31744 = vmatprep.subr.bf16.mxu1 %v34408_v11  ;;  %25367 = vmatprep.mubr.bf16.mxu0 %v2121_v56  ;;  %v34442_v4 = vld [vmem:[%s35143_s27 + $0x37b0] sm:$0xff]  }
 0x6e0   : > { %v31431_v14 = vpop.f32.mrf.mxu0  ;;  %v31452_v18 = vadd.f32 %v31451_v15, %v31450_v10  ;;  %25407 = vmatprep.mubr.bf16.mxu1 %v2123_v62  ;;  %v34444_v10 = vld [vmem:[%s35143_s27 + $0x3728] sm:$0xff]  }
 0x6e1   : > { %v24810_v17 = vadd.f32 %v31430_v12, %v37158_v32  ;;  %v31453_v22 = vpop.f32.mrf.mxu1  ;;  %31723 = vmatpush3.bf16.msra.mxu0 %v34407_v8  ;;  %v34420_v32 = vld [vmem:[%s35143_s27 + $0x36d8] sm:$0xff]   ;;  %v34445_v12 = vld [vmem:[%s35143_s27 + $0x37e8] sm:$0xff]  }
 0x6e2   : > { %v31432_v20 = vpop.f32.mrf.mxu0  ;;  %31724 = vmatprep.subr.bf16.mxu0 %v34410_v16  ;;  %31745 = vmatpush3.bf16.msra.mxu1 %v34409_v13  ;;  %v34446_v15 = vld [vmem:[%s35143_s27 + $0x37a8] sm:$0xff]   ;;  %v34447_v16 = vld [vmem:[%s35143_s27 + $0x3760] sm:$0xff]   ;;  %v34452_v22 = vld [vmem:[%s35143_s27 + $0x3718] sm:$0xff]  }
 0x6e3   : > { %v37196_v23 = vadd.f32 %v31452_v18, %v24810_v17  ;;  %v31454_v26 = vpop.f32.mrf.mxu1  ;;  %31746 = vmatprep.subr.bf16.mxu1 %v34412_v21  ;;  %v34448_v18 = vld [vmem:[%s35143_s27 + $0x3720] sm:$0xff]   ;;  %v34451_v21 = vld [vmem:[%s35143_s27 + $0x3758] sm:$0xff]   ;;  %v34476_v62 = vld [vmem:[%s35143_s27 + $0x3868] sm:$0xff]  }
 0x6e4   : > { %v34450_v20 = vld [vmem:[%s35143_s27 + $0x37a0] sm:$0xff]   ;;  %v34456_v26 = vld [vmem:[%s35143_s27 + $0x3710] sm:$0xff]  }
 0x6e5   : > { %31725 = vmatpush3.bf16.msra.mxu0 %v34411_v19  ;;  %v34449_v19 = vld [vmem:[%s35143_s27 + $0x37e0] sm:$0xff]  }
 0x6e6   : > { %31726 = vmatprep.subr.bf16.mxu0 %v34414_v25  ;;  %31747 = vmatpush3.bf16.msra.mxu1 %v34413_v24  ;;  %v34454_v24 = vld [vmem:[%s35143_s27 + $0x3798] sm:$0xff]   ;;  %v34455_v25 = vld [vmem:[%s35143_s27 + $0x3750] sm:$0xff]  }
 0x6e7   : > { %31748 = vmatprep.subr.bf16.mxu1 %v34416_v28  ;;  %v34458_v28 = vld [vmem:[%s35143_s27 + $0x3790] sm:$0xff]  }
 0x6e9   : > { %31727 = vmatpush3.bf16.msra.mxu0 %v34415_v27  ;;  %v34457_v27 = vld [vmem:[%s35143_s27 + $0x37d0] sm:$0xff]  }
 0x6ea   : > { %31728 = vmatprep.subr.bf16.mxu0 %v34418_v30  ;;  %31749 = vmatpush3.bf16.msra.mxu1 %v34417_v29  ;;  %v34459_v29 = vld [vmem:[%s35143_s27 + $0x3748] sm:$0xff]  }
 0x6eb   : > { %31750 = vmatprep.subr.bf16.mxu1 %v34420_v32  ;;  %v34460_v30 = vld [vmem:[%s35143_s27 + $0x3708] sm:$0xff]  }
 0x6ec   : > { %v34462_v32 = vld [vmem:[%s35143_s27 + $0x3788] sm:$0xff]  }
 0x6ed   : > { %31729 = vmatpush3.bf16.msra.mxu0 %v34419_v31  ;;  %v34461_v31 = vld [vmem:[%s35143_s27 + $0x37c8] sm:$0xff]  }
 0x6ee   : > { %31730 = vmatprep.subr.bf16.mxu0 %v34422_v34  ;;  %31751 = vmatpush3.bf16.msra.mxu1 %v34421_v33  ;;  %v34463_v33 = vld [vmem:[%s35143_s27 + $0x3740] sm:$0xff]  }
 0x6ef   : > { %31752 = vmatprep.subr.bf16.mxu1 %v34424_v36  ;;  %v34464_v34 = vld [vmem:[%s35143_s27 + $0x3700] sm:$0xff]   ;;  %v268_v36 = vld [vmem:[%s35138_s23 + $0x1b8] sm:$0xff] }
 0x6f1   : > { %31731 = vmatpush3.bf16.msra.mxu0 %v34423_v35  ;;  %v34465_v35 = vld [vmem:[%s35143_s27 + $0x37c0] sm:$0xff]  }
 0x6f2   : > { %31732 = vmatprep.subr.bf16.mxu0 %v34426_v38  ;;  %31753 = vmatpush3.bf16.msra.mxu1 %v34425_v37  ;;  %v1303_v37 = vrot.slane %v268_v36, %v35187_v42  ;;  %v34466_v38 = vld [vmem:[%s35143_s27 + $0x3780] sm:$0xff]  }
 0x6f3   : > { %31754 = vmatprep.subr.bf16.mxu1 %v34428_v40  ;;  %v34467_v40 = vld [vmem:[%s35143_s27 + $0x3878] sm:$0xff]  }
 0x6f5   : > { %31733 = vmatpush3.bf16.msra.mxu0 %v34427_v39  ;;  %v1296_v39 = vcombine.high %v268_v36, %v268_v36  ;;  %v34503_v36 = vld [vmem:[%s35143_s27 + $0x39f8] sm:$0xff]  }
 0x6f6   : > { %31734 = vmatprep.subr.bf16.mxu0 %v34430_v43  ;;  %31755 = vmatpush3.bf16.msra.mxu1 %v34429_v41  ;;  %v1311_v41 = vcombine.high %v1303_v37, %v1303_v37 }
 0x6f7   : > { %31756 = vmatprep.subr.bf16.mxu1 %v34432_v45  ;;  %v1310_v43 = vrot.slane %v1296_v39, %v35187_v42  ;;  %v2124_v45 = vpack.c.bf16 %v1303_v37, %v1303_v37  ;;  %v34504_v39 = vld [vmem:[%s35143_s27 + $0x39b8] sm:$0xff]  }
 0x6f8   : > { %v2125_v47 = vpack.c.bf16 %v1311_v41, %v1311_v41 }
 0x6f9   : > { %31735 = vmatpush3.bf16.msra.mxu0 %v34431_v44  ;;  %v34469_v44 = vld [vmem:[%s35143_s27 + $0x3838] sm:$0xff]   ;;  %v2126_v51 = vpack.c.bf16 %v1310_v43, %v1310_v43 }
 0x6fa   : > { %31764 = vmatprep.subr.bf16.mxu0 %v34434_v50  ;;  %31757 = vmatpush3.bf16.msra.mxu1 %v34433_v48  ;;  %v1312_v48 = vcombine.high %v1310_v43, %v1310_v43  ;;  %v34505_v43 = vld [vmem:[%s35143_s27 + $0x3970] sm:$0xff]  }
 0x6fb   : > { %31786 = vmatprep.subr.bf16.mxu1 %v34437_v55 }
 0x6fc   : > { %v31472_v59 = vpop.f32.mrf.mxu0  ;;  %25368 = vmatmul.mubr.bf16.vlgmr.msra.gmra.mxu0 %v2120_v54  ;;  %v34473_v54 = vld [vmem:[%s35143_s27 + $0x3830] sm:$0xff]  }
 0x6fd   : > { %v31494_v1 = vpop.f32.mrf.mxu1  ;;  %31765 = vmatpush3.bf16.msra.mxu0 %v34436_v53  ;;  %25408 = vmatmul.mubr.bf16.vlgmr.msra.gmra.mxu1 %v2122_v60  ;;  %v2127_v53 = vpack.c.bf16 %v1312_v48, %v1312_v48  ;;  %v34507_v48 = vld [vmem:[%s35143_s27 + $0x39f0] sm:$0xff]  }
 0x6fe   : > { %v31473_v0 = vpop.f32.mrf.mxu0  ;;  %31766 = vmatprep.subr.bf16.mxu0 %v34439_v61  ;;  %31787 = vmatpush3.bf16.msra.mxu1 %v34438_v58 }
 0x6ff   : > { %v31474_v3 = vadd.f32 %v31473_v0, %v31472_v59  ;;  %v31495_v6 = vpop.f32.mrf.mxu1  ;;  %31788 = vmatprep.subr.bf16.mxu1 %v34441_v2  ;;  %25447 = vmatprep.mubr.bf16.mxu0 %v2125_v47  ;;  %v34475_v59 = vld [vmem:[%s35143_s27 + $0x38b0] sm:$0xff]  }
 0x700   : > { %v31475_v5 = vpop.f32.mrf.mxu0  ;;  %v31496_v9 = vadd.f32 %v31495_v6, %v31494_v1  ;;  %25487 = vmatprep.mubr.bf16.mxu1 %v2127_v53  ;;  %v34477_v1 = vld [vmem:[%s35143_s27 + $0x3828] sm:$0xff]  }
 0x701   : > { %v24890_v8 = vadd.f32 %v31474_v3, %v37196_v23  ;;  %v31497_v13 = vpop.f32.mrf.mxu1  ;;  %31767 = vmatpush3.bf16.msra.mxu0 %v34440_v63  ;;  %v34453_v23 = vld [vmem:[%s35143_s27 + $0x37d8] sm:$0xff]   ;;  %v34478_v3 = vld [vmem:[%s35143_s27 + $0x38e8] sm:$0xff]  }
 0x702   : > { %v31476_v11 = vpop.f32.mrf.mxu0  ;;  %31768 = vmatprep.subr.bf16.mxu0 %v34443_v7  ;;  %31789 = vmatpush3.bf16.msra.mxu1 %v34442_v4  ;;  %v34479_v6 = vld [vmem:[%s35143_s27 + $0x38a8] sm:$0xff]   ;;  %v34480_v7 = vld [vmem:[%s35143_s27 + $0x3860] sm:$0xff]   ;;  %v34485_v13 = vld [vmem:[%s35143_s27 + $0x3818] sm:$0xff]  }
 0x703   : > { %v37234_v14 = vadd.f32 %v31496_v9, %v24890_v8  ;;  %v31498_v17 = vpop.f32.mrf.mxu1  ;;  %31790 = vmatprep.subr.bf16.mxu1 %v34445_v12  ;;  %v34481_v9 = vld [vmem:[%s35143_s27 + $0x3820] sm:$0xff]   ;;  %v34484_v12 = vld [vmem:[%s35143_s27 + $0x3858] sm:$0xff]   ;;  %v34509_v53 = vld [vmem:[%s35143_s27 + $0x3968] sm:$0xff]  }
 0x704   : > { %v34483_v11 = vld [vmem:[%s35143_s27 + $0x38a0] sm:$0xff]   ;;  %v34489_v17 = vld [vmem:[%s35143_s27 + $0x3810] sm:$0xff]  }
 0x705   : > { %31769 = vmatpush3.bf16.msra.mxu0 %v34444_v10  ;;  %v34482_v10 = vld [vmem:[%s35143_s27 + $0x38e0] sm:$0xff]  }
 0x706   : > { %31770 = vmatprep.subr.bf16.mxu0 %v34447_v16  ;;  %31791 = vmatpush3.bf16.msra.mxu1 %v34446_v15  ;;  %v34487_v15 = vld [vmem:[%s35143_s27 + $0x3898] sm:$0xff]   ;;  %v34488_v16 = vld [vmem:[%s35143_s27 + $0x3850] sm:$0xff]  }
 0x707   : > { %31792 = vmatprep.subr.bf16.mxu1 %v34449_v19  ;;  %v34491_v19 = vld [vmem:[%s35143_s27 + $0x3890] sm:$0xff]  }
 0x709   : > { %31771 = vmatpush3.bf16.msra.mxu0 %v34448_v18  ;;  %v34490_v18 = vld [vmem:[%s35143_s27 + $0x38d0] sm:$0xff]  }
 0x70a   : > { %31772 = vmatprep.subr.bf16.mxu0 %v34451_v21  ;;  %31793 = vmatpush3.bf16.msra.mxu1 %v34450_v20  ;;  %v34492_v20 = vld [vmem:[%s35143_s27 + $0x3848] sm:$0xff]  }
 0x70b   : > { %31794 = vmatprep.subr.bf16.mxu1 %v34453_v23  ;;  %v34493_v21 = vld [vmem:[%s35143_s27 + $0x3808] sm:$0xff]  }
 0x70c   : > { %v34495_v23 = vld [vmem:[%s35143_s27 + $0x3888] sm:$0xff]  }
 0x70d   : > { %31773 = vmatpush3.bf16.msra.mxu0 %v34452_v22  ;;  %v34494_v22 = vld [vmem:[%s35143_s27 + $0x38c8] sm:$0xff]  }
 0x70e   : > { %31774 = vmatprep.subr.bf16.mxu0 %v34455_v25  ;;  %31795 = vmatpush3.bf16.msra.mxu1 %v34454_v24  ;;  %v34496_v24 = vld [vmem:[%s35143_s27 + $0x3840] sm:$0xff]  }
 0x70f   : > { %31796 = vmatprep.subr.bf16.mxu1 %v34457_v27  ;;  %v34497_v25 = vld [vmem:[%s35143_s27 + $0x3800] sm:$0xff]  }
 0x710   : > { %v269_v27 = vld [vmem:[%s35138_s23 + $0x1c0] sm:$0xff] }
 0x711   : > { %31775 = vmatpush3.bf16.msra.mxu0 %v34456_v26  ;;  %v34498_v26 = vld [vmem:[%s35143_s27 + $0x38c0] sm:$0xff]  }
 0x712   : > { %31776 = vmatprep.subr.bf16.mxu0 %v34459_v29  ;;  %31797 = vmatpush3.bf16.msra.mxu1 %v34458_v28  ;;  %v1320_v28 = vrot.slane %v269_v27, %v35187_v42  ;;  %v34499_v29 = vld [vmem:[%s35143_s27 + $0x3880] sm:$0xff]  }
 0x713   : > { %31798 = vmatprep.subr.bf16.mxu1 %v34461_v31  ;;  %v34500_v31 = vld [vmem:[%s35143_s27 + $0x3978] sm:$0xff]  }
 0x715   : > { %31777 = vmatpush3.bf16.msra.mxu0 %v34460_v30  ;;  %v1313_v30 = vcombine.high %v269_v27, %v269_v27  ;;  %v34536_v27 = vld [vmem:[%s35143_s27 + $0x3af8] sm:$0xff]  }
 0x716   : > { %31778 = vmatprep.subr.bf16.mxu0 %v34463_v33  ;;  %31799 = vmatpush3.bf16.msra.mxu1 %v34462_v32  ;;  %v1328_v32 = vcombine.high %v1320_v28, %v1320_v28 }
 0x717   : > { %31800 = vmatprep.subr.bf16.mxu1 %v34465_v35  ;;  %v1327_v33 = vrot.slane %v1313_v30, %v35187_v42  ;;  %v2128_v35 = vpack.c.bf16 %v1320_v28, %v1320_v28  ;;  %v34537_v30 = vld [vmem:[%s35143_s27 + $0x3ab8] sm:$0xff]  }
 0x718   : > { %v2129_v37 = vpack.c.bf16 %v1328_v32, %v1328_v32 }
 0x719   : > { %31779 = vmatpush3.bf16.msra.mxu0 %v34464_v34  ;;  %v34502_v34 = vld [vmem:[%s35143_s27 + $0x3938] sm:$0xff]   ;;  %v2130_v41 = vpack.c.bf16 %v1327_v33, %v1327_v33 }
 0x71a   : > { %31808 = vmatprep.subr.bf16.mxu0 %v34467_v40  ;;  %31801 = vmatpush3.bf16.msra.mxu1 %v34466_v38  ;;  %v1329_v38 = vcombine.high %v1327_v33, %v1327_v33  ;;  %v34538_v33 = vld [vmem:[%s35143_s27 + $0x3a70] sm:$0xff]  }
 0x71b   : > { %31830 = vmatprep.subr.bf16.mxu1 %v34470_v46 }
 0x71c   : > { %v31516_v50 = vpop.f32.mrf.mxu0  ;;  %25448 = vmatmul.mubr.bf16.vlgmr.msra.gmra.mxu0 %v2124_v45  ;;  %v34506_v45 = vld [vmem:[%s35143_s27 + $0x3930] sm:$0xff]  }
 0x71d   : > { %v31538_v56 = vpop.f32.mrf.mxu1  ;;  %31809 = vmatpush3.bf16.msra.mxu0 %v34469_v44  ;;  %25488 = vmatmul.mubr.bf16.vlgmr.msra.gmra.mxu1 %v2126_v51  ;;  %v2131_v44 = vpack.c.bf16 %v1329_v38, %v1329_v38  ;;  %v34540_v38 = vld [vmem:[%s35143_s27 + $0x3af0] sm:$0xff]  }
 0x71e   : > { %v31517_v55 = vpop.f32.mrf.mxu0  ;;  %31810 = vmatprep.subr.bf16.mxu0 %v34472_v52  ;;  %31831 = vmatpush3.bf16.msra.mxu1 %v34471_v49 }
 0x71f   : > { %v31518_v58 = vadd.f32 %v31517_v55, %v31516_v50  ;;  %v31539_v61 = vpop.f32.mrf.mxu1  ;;  %31832 = vmatprep.subr.bf16.mxu1 %v34474_v57  ;;  %25527 = vmatprep.mubr.bf16.mxu0 %v2129_v37  ;;  %v34508_v50 = vld [vmem:[%s35143_s27 + $0x39b0] sm:$0xff]  }
 0x720   : > { %v31519_v60 = vpop.f32.mrf.mxu0  ;;  %v31540_v0 = vadd.f32 %v31539_v61, %v31538_v56  ;;  %25567 = vmatprep.mubr.bf16.mxu1 %v2131_v44  ;;  %v34510_v56 = vld [vmem:[%s35143_s27 + $0x3928] sm:$0xff]  }
 0x721   : > { %v24970_v63 = vadd.f32 %v31518_v58, %v37234_v14  ;;  %v31541_v4 = vpop.f32.mrf.mxu1  ;;  %31811 = vmatpush3.bf16.msra.mxu0 %v34473_v54  ;;  %v34486_v14 = vld [vmem:[%s35143_s27 + $0x38d8] sm:$0xff]   ;;  %v34511_v58 = vld [vmem:[%s35143_s27 + $0x39e8] sm:$0xff]  }
 0x722   : > { %v31520_v2 = vpop.f32.mrf.mxu0  ;;  %31812 = vmatprep.subr.bf16.mxu0 %v34476_v62  ;;  %31833 = vmatpush3.bf16.msra.mxu1 %v34475_v59  ;;  %v34512_v61 = vld [vmem:[%s35143_s27 + $0x39a8] sm:$0xff]   ;;  %v34513_v62 = vld [vmem:[%s35143_s27 + $0x3960] sm:$0xff]   ;;  %v34518_v4 = vld [vmem:[%s35143_s27 + $0x3918] sm:$0xff]  }
 0x723   : > { %v37272_v5 = vadd.f32 %v31540_v0, %v24970_v63  ;;  %v31542_v8 = vpop.f32.mrf.mxu1  ;;  %31834 = vmatprep.subr.bf16.mxu1 %v34478_v3  ;;  %v34514_v0 = vld [vmem:[%s35143_s27 + $0x3920] sm:$0xff]   ;;  %v34517_v3 = vld [vmem:[%s35143_s27 + $0x3958] sm:$0xff]   ;;  %v34542_v44 = vld [vmem:[%s35143_s27 + $0x3a68] sm:$0xff]  }
 0x724   : > { %v34516_v2 = vld [vmem:[%s35143_s27 + $0x39a0] sm:$0xff]   ;;  %v34522_v8 = vld [vmem:[%s35143_s27 + $0x3910] sm:$0xff]  }
 0x725   : > { %31813 = vmatpush3.bf16.msra.mxu0 %v34477_v1  ;;  %v34515_v1 = vld [vmem:[%s35143_s27 + $0x39e0] sm:$0xff]  }
 0x726   : > { %31814 = vmatprep.subr.bf16.mxu0 %v34480_v7  ;;  %31835 = vmatpush3.bf16.msra.mxu1 %v34479_v6  ;;  %v34520_v6 = vld [vmem:[%s35143_s27 + $0x3998] sm:$0xff]   ;;  %v34521_v7 = vld [vmem:[%s35143_s27 + $0x3950] sm:$0xff]  }
 0x727   : > { %31836 = vmatprep.subr.bf16.mxu1 %v34482_v10  ;;  %v34524_v10 = vld [vmem:[%s35143_s27 + $0x3990] sm:$0xff]  }
 0x729   : > { %31815 = vmatpush3.bf16.msra.mxu0 %v34481_v9  ;;  %v34523_v9 = vld [vmem:[%s35143_s27 + $0x39d0] sm:$0xff]  }
 0x72a   : > { %31816 = vmatprep.subr.bf16.mxu0 %v34484_v12  ;;  %31837 = vmatpush3.bf16.msra.mxu1 %v34483_v11  ;;  %v34525_v11 = vld [vmem:[%s35143_s27 + $0x3948] sm:$0xff]  }
 0x72b   : > { %31838 = vmatprep.subr.bf16.mxu1 %v34486_v14  ;;  %v34526_v12 = vld [vmem:[%s35143_s27 + $0x3908] sm:$0xff]  }
 0x72c   : > { %v34528_v14 = vld [vmem:[%s35143_s27 + $0x3988] sm:$0xff]  }
 0x72d   : > { %31817 = vmatpush3.bf16.msra.mxu0 %v34485_v13  ;;  %v34527_v13 = vld [vmem:[%s35143_s27 + $0x39c8] sm:$0xff]  }
 0x72e   : > { %31818 = vmatprep.subr.bf16.mxu0 %v34488_v16  ;;  %31839 = vmatpush3.bf16.msra.mxu1 %v34487_v15  ;;  %v34529_v15 = vld [vmem:[%s35143_s27 + $0x3940] sm:$0xff]  }
 0x72f   : > { %31840 = vmatprep.subr.bf16.mxu1 %v34490_v18  ;;  %v34530_v16 = vld [vmem:[%s35143_s27 + $0x3900] sm:$0xff]   ;;  %v270_v18 = vld [vmem:[%s35138_s23 + $0x1c8] sm:$0xff] }
 0x731   : > { %31819 = vmatpush3.bf16.msra.mxu0 %v34489_v17  ;;  %v34531_v17 = vld [vmem:[%s35143_s27 + $0x39c0] sm:$0xff]  }
 0x732   : > { %31820 = vmatprep.subr.bf16.mxu0 %v34492_v20  ;;  %31841 = vmatpush3.bf16.msra.mxu1 %v34491_v19  ;;  %v1337_v19 = vrot.slane %v270_v18, %v35187_v42  ;;  %v34532_v20 = vld [vmem:[%s35143_s27 + $0x3980] sm:$0xff]  }
 0x733   : > { %31842 = vmatprep.subr.bf16.mxu1 %v34494_v22  ;;  %v34533_v22 = vld [vmem:[%s35143_s27 + $0x3a78] sm:$0xff]  }
 0x735   : > { %31821 = vmatpush3.bf16.msra.mxu0 %v34493_v21  ;;  %v1330_v21 = vcombine.high %v270_v18, %v270_v18  ;;  %v34569_v18 = vld [vmem:[%s35143_s27 + $0x3bf8] sm:$0xff]  }
 0x736   : > { %31822 = vmatprep.subr.bf16.mxu0 %v34496_v24  ;;  %31843 = vmatpush3.bf16.msra.mxu1 %v34495_v23  ;;  %v1345_v23 = vcombine.high %v1337_v19, %v1337_v19 }
 0x737   : > { %31844 = vmatprep.subr.bf16.mxu1 %v34498_v26  ;;  %v1344_v24 = vrot.slane %v1330_v21, %v35187_v42  ;;  %v2132_v26 = vpack.c.bf16 %v1337_v19, %v1337_v19  ;;  %v34570_v21 = vld [vmem:[%s35143_s27 + $0x3bb8] sm:$0xff]  }
 0x738   : > { %v2133_v28 = vpack.c.bf16 %v1345_v23, %v1345_v23 }
 0x739   : > { %31823 = vmatpush3.bf16.msra.mxu0 %v34497_v25  ;;  %v34535_v25 = vld [vmem:[%s35143_s27 + $0x3a38] sm:$0xff]   ;;  %v2134_v32 = vpack.c.bf16 %v1344_v24, %v1344_v24 }
 0x73a   : > { %31852 = vmatprep.subr.bf16.mxu0 %v34500_v31  ;;  %31845 = vmatpush3.bf16.msra.mxu1 %v34499_v29  ;;  %v1346_v29 = vcombine.high %v1344_v24, %v1344_v24  ;;  %v34571_v24 = vld [vmem:[%s35143_s27 + $0x3b70] sm:$0xff]  }
 0x73b   : > { %31874 = vmatprep.subr.bf16.mxu1 %v34503_v36 }
 0x73c   : > { %v31560_v40 = vpop.f32.mrf.mxu0  ;;  %25528 = vmatmul.mubr.bf16.vlgmr.msra.gmra.mxu0 %v2128_v35  ;;  %v34539_v35 = vld [vmem:[%s35143_s27 + $0x3a30] sm:$0xff]  }
 0x73d   : > { %v31582_v47 = vpop.f32.mrf.mxu1  ;;  %31853 = vmatpush3.bf16.msra.mxu0 %v34502_v34  ;;  %25568 = vmatmul.mubr.bf16.vlgmr.msra.gmra.mxu1 %v2130_v41  ;;  %v2135_v34 = vpack.c.bf16 %v1346_v29, %v1346_v29  ;;  %v34573_v29 = vld [vmem:[%s35143_s27 + $0x3bf0] sm:$0xff]  }
 0x73e   : > { %v31561_v46 = vpop.f32.mrf.mxu0  ;;  %31854 = vmatprep.subr.bf16.mxu0 %v34505_v43  ;;  %31875 = vmatpush3.bf16.msra.mxu1 %v34504_v39 }
 0x73f   : > { %v31562_v49 = vadd.f32 %v31561_v46, %v31560_v40  ;;  %v31583_v52 = vpop.f32.mrf.mxu1  ;;  %31876 = vmatprep.subr.bf16.mxu1 %v34507_v48  ;;  %25607 = vmatprep.mubr.bf16.mxu0 %v2133_v28  ;;  %v34541_v40 = vld [vmem:[%s35143_s27 + $0x3ab0] sm:$0xff]  }
 0x740   : > { %v31563_v51 = vpop.f32.mrf.mxu0  ;;  %v31584_v55 = vadd.f32 %v31583_v52, %v31582_v47  ;;  %25647 = vmatprep.mubr.bf16.mxu1 %v2135_v34  ;;  %v34543_v47 = vld [vmem:[%s35143_s27 + $0x3a28] sm:$0xff]  }
 0x741   : > { %v25050_v54 = vadd.f32 %v31562_v49, %v37272_v5  ;;  %v31585_v59 = vpop.f32.mrf.mxu1  ;;  %31855 = vmatpush3.bf16.msra.mxu0 %v34506_v45  ;;  %v34519_v5 = vld [vmem:[%s35143_s27 + $0x39d8] sm:$0xff]   ;;  %v34544_v49 = vld [vmem:[%s35143_s27 + $0x3ae8] sm:$0xff]  }
 0x742   : > { %v31564_v57 = vpop.f32.mrf.mxu0  ;;  %31856 = vmatprep.subr.bf16.mxu0 %v34509_v53  ;;  %31877 = vmatpush3.bf16.msra.mxu1 %v34508_v50  ;;  %v34545_v52 = vld [vmem:[%s35143_s27 + $0x3aa8] sm:$0xff]   ;;  %v34546_v53 = vld [vmem:[%s35143_s27 + $0x3a60] sm:$0xff]   ;;  %v34551_v59 = vld [vmem:[%s35143_s27 + $0x3a18] sm:$0xff]  }
 0x743   : > { %v37310_v60 = vadd.f32 %v31584_v55, %v25050_v54  ;;  %v31586_v63 = vpop.f32.mrf.mxu1  ;;  %31878 = vmatprep.subr.bf16.mxu1 %v34511_v58  ;;  %v34547_v55 = vld [vmem:[%s35143_s27 + $0x3a20] sm:$0xff]   ;;  %v34550_v58 = vld [vmem:[%s35143_s27 + $0x3a58] sm:$0xff]   ;;  %v34575_v34 = vld [vmem:[%s35143_s27 + $0x3b68] sm:$0xff]  }
 0x744   : > { %v34549_v57 = vld [vmem:[%s35143_s27 + $0x3aa0] sm:$0xff]   ;;  %v34555_v63 = vld [vmem:[%s35143_s27 + $0x3a10] sm:$0xff]  }
 0x745   : > { %31857 = vmatpush3.bf16.msra.mxu0 %v34510_v56  ;;  %v34548_v56 = vld [vmem:[%s35143_s27 + $0x3ae0] sm:$0xff]  }
 0x746   : > { %31858 = vmatprep.subr.bf16.mxu0 %v34513_v62  ;;  %31879 = vmatpush3.bf16.msra.mxu1 %v34512_v61  ;;  %v34553_v61 = vld [vmem:[%s35143_s27 + $0x3a98] sm:$0xff]   ;;  %v34554_v62 = vld [vmem:[%s35143_s27 + $0x3a50] sm:$0xff]  }
 0x747   : > { %31880 = vmatprep.subr.bf16.mxu1 %v34515_v1  ;;  %v34557_v1 = vld [vmem:[%s35143_s27 + $0x3a90] sm:$0xff]  }
 0x749   : > { %31859 = vmatpush3.bf16.msra.mxu0 %v34514_v0  ;;  %v34556_v0 = vld [vmem:[%s35143_s27 + $0x3ad0] sm:$0xff]  }
 0x74a   : > { %31860 = vmatprep.subr.bf16.mxu0 %v34517_v3  ;;  %31881 = vmatpush3.bf16.msra.mxu1 %v34516_v2  ;;  %v34558_v2 = vld [vmem:[%s35143_s27 + $0x3a48] sm:$0xff]  }
 0x74b   : > { %31882 = vmatprep.subr.bf16.mxu1 %v34519_v5  ;;  %v34559_v3 = vld [vmem:[%s35143_s27 + $0x3a08] sm:$0xff]  }
 0x74c   : > { %v34561_v5 = vld [vmem:[%s35143_s27 + $0x3a88] sm:$0xff]  }
 0x74d   : > { %31861 = vmatpush3.bf16.msra.mxu0 %v34518_v4  ;;  %v34560_v4 = vld [vmem:[%s35143_s27 + $0x3ac8] sm:$0xff]  }
 0x74e   : > { %31862 = vmatprep.subr.bf16.mxu0 %v34521_v7  ;;  %31883 = vmatpush3.bf16.msra.mxu1 %v34520_v6  ;;  %v34562_v6 = vld [vmem:[%s35143_s27 + $0x3a40] sm:$0xff]  }
 0x74f   : > { %31884 = vmatprep.subr.bf16.mxu1 %v34523_v9  ;;  %v34563_v7 = vld [vmem:[%s35143_s27 + $0x3a00] sm:$0xff]   ;;  %v271_v9 = vld [vmem:[%s35138_s23 + $0x1d0] sm:$0xff] }
 0x751   : > { %31863 = vmatpush3.bf16.msra.mxu0 %v34522_v8  ;;  %v34564_v8 = vld [vmem:[%s35143_s27 + $0x3ac0] sm:$0xff]  }
 0x752   : > { %31864 = vmatprep.subr.bf16.mxu0 %v34525_v11  ;;  %31885 = vmatpush3.bf16.msra.mxu1 %v34524_v10  ;;  %v1354_v10 = vrot.slane %v271_v9, %v35187_v42  ;;  %v34565_v11 = vld [vmem:[%s35143_s27 + $0x3a80] sm:$0xff]  }
 0x753   : > { %31886 = vmatprep.subr.bf16.mxu1 %v34527_v13  ;;  %v34566_v13 = vld [vmem:[%s35143_s27 + $0x3b78] sm:$0xff]  }
 0x755   : > { %31865 = vmatpush3.bf16.msra.mxu0 %v34526_v12  ;;  %v1347_v12 = vcombine.high %v271_v9, %v271_v9  ;;  %v34602_v9 = vld [vmem:[%s35143_s27 + $0x3cf8] sm:$0xff]  }
 0x756   : > { %31866 = vmatprep.subr.bf16.mxu0 %v34529_v15  ;;  %31887 = vmatpush3.bf16.msra.mxu1 %v34528_v14  ;;  %v1362_v14 = vcombine.high %v1354_v10, %v1354_v10 }
 0x757   : > { %31888 = vmatprep.subr.bf16.mxu1 %v34531_v17  ;;  %v1361_v15 = vrot.slane %v1347_v12, %v35187_v42  ;;  %v2136_v17 = vpack.c.bf16 %v1354_v10, %v1354_v10  ;;  %v34603_v12 = vld [vmem:[%s35143_s27 + $0x3cb8] sm:$0xff]  }
 0x758   : > { %v2137_v19 = vpack.c.bf16 %v1362_v14, %v1362_v14 }
 0x759   : > { %31867 = vmatpush3.bf16.msra.mxu0 %v34530_v16  ;;  %v34568_v16 = vld [vmem:[%s35143_s27 + $0x3b38] sm:$0xff]   ;;  %v2138_v23 = vpack.c.bf16 %v1361_v15, %v1361_v15 }
 0x75a   : > { %31896 = vmatprep.subr.bf16.mxu0 %v34533_v22  ;;  %31889 = vmatpush3.bf16.msra.mxu1 %v34532_v20  ;;  %v1363_v20 = vcombine.high %v1361_v15, %v1361_v15  ;;  %v34604_v15 = vld [vmem:[%s35143_s27 + $0x3c70] sm:$0xff]  }
 0x75b   : > { %31918 = vmatprep.subr.bf16.mxu1 %v34536_v27 }
 0x75c   : > { %v31604_v31 = vpop.f32.mrf.mxu0  ;;  %25608 = vmatmul.mubr.bf16.vlgmr.msra.gmra.mxu0 %v2132_v26  ;;  %v34572_v26 = vld [vmem:[%s35143_s27 + $0x3b30] sm:$0xff]  }
 0x75d   : > { %v31626_v37 = vpop.f32.mrf.mxu1  ;;  %31897 = vmatpush3.bf16.msra.mxu0 %v34535_v25  ;;  %25648 = vmatmul.mubr.bf16.vlgmr.msra.gmra.mxu1 %v2134_v32  ;;  %v2139_v25 = vpack.c.bf16 %v1363_v20, %v1363_v20  ;;  %v34606_v20 = vld [vmem:[%s35143_s27 + $0x3cf0] sm:$0xff]  }
 0x75e   : > { %v31605_v36 = vpop.f32.mrf.mxu0  ;;  %31898 = vmatprep.subr.bf16.mxu0 %v34538_v33  ;;  %31919 = vmatpush3.bf16.msra.mxu1 %v34537_v30 }
 0x75f   : > { %v31606_v39 = vadd.f32 %v31605_v36, %v31604_v31  ;;  %v31627_v43 = vpop.f32.mrf.mxu1  ;;  %31920 = vmatprep.subr.bf16.mxu1 %v34540_v38  ;;  %25687 = vmatprep.mubr.bf16.mxu0 %v2137_v19  ;;  %v34574_v31 = vld [vmem:[%s35143_s27 + $0x3bb0] sm:$0xff]  }
 0x760   : > { %v31607_v41 = vpop.f32.mrf.mxu0  ;;  %v31628_v46 = vadd.f32 %v31627_v43, %v31626_v37  ;;  %25727 = vmatprep.mubr.bf16.mxu1 %v2139_v25  ;;  %v34576_v37 = vld [vmem:[%s35143_s27 + $0x3b28] sm:$0xff]  }
 0x761   : > { %v25130_v45 = vadd.f32 %v31606_v39, %v37310_v60  ;;  %v31629_v50 = vpop.f32.mrf.mxu1  ;;  %31899 = vmatpush3.bf16.msra.mxu0 %v34539_v35  ;;  %v34552_v60 = vld [vmem:[%s35143_s27 + $0x3ad8] sm:$0xff]   ;;  %v34577_v39 = vld [vmem:[%s35143_s27 + $0x3be8] sm:$0xff]  }
 0x762   : > { %v31608_v48 = vpop.f32.mrf.mxu0  ;;  %31900 = vmatprep.subr.bf16.mxu0 %v34542_v44  ;;  %31921 = vmatpush3.bf16.msra.mxu1 %v34541_v40  ;;  %v34578_v43 = vld [vmem:[%s35143_s27 + $0x3ba8] sm:$0xff]   ;;  %v34579_v44 = vld [vmem:[%s35143_s27 + $0x3b60] sm:$0xff]   ;;  %v34584_v50 = vld [vmem:[%s35143_s27 + $0x3b18] sm:$0xff]  }
 0x763   : > { %v37348_v51 = vadd.f32 %v31628_v46, %v25130_v45  ;;  %v31630_v54 = vpop.f32.mrf.mxu1  ;;  %31922 = vmatprep.subr.bf16.mxu1 %v34544_v49  ;;  %v34580_v46 = vld [vmem:[%s35143_s27 + $0x3b20] sm:$0xff]   ;;  %v34583_v49 = vld [vmem:[%s35143_s27 + $0x3b58] sm:$0xff]   ;;  %v34608_v25 = vld [vmem:[%s35143_s27 + $0x3c68] sm:$0xff]  }
 0x764   : > { %v34582_v48 = vld [vmem:[%s35143_s27 + $0x3ba0] sm:$0xff]   ;;  %v34588_v54 = vld [vmem:[%s35143_s27 + $0x3b10] sm:$0xff]  }
 0x765   : > { %31901 = vmatpush3.bf16.msra.mxu0 %v34543_v47  ;;  %v34581_v47 = vld [vmem:[%s35143_s27 + $0x3be0] sm:$0xff]  }
 0x766   : > { %31902 = vmatprep.subr.bf16.mxu0 %v34546_v53  ;;  %31923 = vmatpush3.bf16.msra.mxu1 %v34545_v52  ;;  %v34586_v52 = vld [vmem:[%s35143_s27 + $0x3b98] sm:$0xff]   ;;  %v34587_v53 = vld [vmem:[%s35143_s27 + $0x3b50] sm:$0xff]  }
 0x767   : > { %31924 = vmatprep.subr.bf16.mxu1 %v34548_v56  ;;  %v34590_v56 = vld [vmem:[%s35143_s27 + $0x3b90] sm:$0xff]  }
 0x769   : > { %31903 = vmatpush3.bf16.msra.mxu0 %v34547_v55  ;;  %v34589_v55 = vld [vmem:[%s35143_s27 + $0x3bd0] sm:$0xff]  }
 0x76a   : > { %31904 = vmatprep.subr.bf16.mxu0 %v34550_v58  ;;  %31925 = vmatpush3.bf16.msra.mxu1 %v34549_v57  ;;  %v34591_v57 = vld [vmem:[%s35143_s27 + $0x3b48] sm:$0xff]  }
 0x76b   : > { %31926 = vmatprep.subr.bf16.mxu1 %v34552_v60  ;;  %v34592_v58 = vld [vmem:[%s35143_s27 + $0x3b08] sm:$0xff]  }
 0x76c   : > { %v34594_v60 = vld [vmem:[%s35143_s27 + $0x3b88] sm:$0xff]  }
 0x76d   : > { %31905 = vmatpush3.bf16.msra.mxu0 %v34551_v59  ;;  %v34593_v59 = vld [vmem:[%s35143_s27 + $0x3bc8] sm:$0xff]  }
 0x76e   : > { %31906 = vmatprep.subr.bf16.mxu0 %v34554_v62  ;;  %31927 = vmatpush3.bf16.msra.mxu1 %v34553_v61  ;;  %v34595_v61 = vld [vmem:[%s35143_s27 + $0x3b40] sm:$0xff]  }
 0x76f   : > { %31928 = vmatprep.subr.bf16.mxu1 %v34556_v0  ;;  %v34596_v62 = vld [vmem:[%s35143_s27 + $0x3b00] sm:$0xff]   ;;  %v272_v0 = vld [vmem:[%s35138_s23 + $0x1d8] sm:$0xff] }
 0x771   : > { %31907 = vmatpush3.bf16.msra.mxu0 %v34555_v63  ;;  %v34597_v63 = vld [vmem:[%s35143_s27 + $0x3bc0] sm:$0xff]  }
 0x772   : > { %31908 = vmatprep.subr.bf16.mxu0 %v34558_v2  ;;  %31929 = vmatpush3.bf16.msra.mxu1 %v34557_v1  ;;  %v1371_v1 = vrot.slane %v272_v0, %v35187_v42  ;;  %v34598_v2 = vld [vmem:[%s35143_s27 + $0x3b80] sm:$0xff]  }
 0x773   : > { %31930 = vmatprep.subr.bf16.mxu1 %v34560_v4  ;;  %v34599_v4 = vld [vmem:[%s35143_s27 + $0x3c78] sm:$0xff]  }
 0x775   : > { %31909 = vmatpush3.bf16.msra.mxu0 %v34559_v3  ;;  %v1364_v3 = vcombine.high %v272_v0, %v272_v0  ;;  %v34635_v0 = vld [vmem:[%s35143_s27 + $0x3df8] sm:$0xff]  }
 0x776   : > { %31910 = vmatprep.subr.bf16.mxu0 %v34562_v6  ;;  %31931 = vmatpush3.bf16.msra.mxu1 %v34561_v5  ;;  %v1379_v5 = vcombine.high %v1371_v1, %v1371_v1 }
 0x777   : > { %31932 = vmatprep.subr.bf16.mxu1 %v34564_v8  ;;  %v1378_v6 = vrot.slane %v1364_v3, %v35187_v42  ;;  %v2140_v8 = vpack.c.bf16 %v1371_v1, %v1371_v1  ;;  %v34636_v3 = vld [vmem:[%s35143_s27 + $0x3db8] sm:$0xff]  }
 0x778   : > { %v2141_v10 = vpack.c.bf16 %v1379_v5, %v1379_v5 }
 0x779   : > { %31911 = vmatpush3.bf16.msra.mxu0 %v34563_v7  ;;  %v34601_v7 = vld [vmem:[%s35143_s27 + $0x3c38] sm:$0xff]   ;;  %v2142_v14 = vpack.c.bf16 %v1378_v6, %v1378_v6 }
 0x77a   : > { %31940 = vmatprep.subr.bf16.mxu0 %v34566_v13  ;;  %31933 = vmatpush3.bf16.msra.mxu1 %v34565_v11  ;;  %v1380_v11 = vcombine.high %v1378_v6, %v1378_v6  ;;  %v34637_v6 = vld [vmem:[%s35143_s27 + $0x3d70] sm:$0xff]  }
 0x77b   : > { %31962 = vmatprep.subr.bf16.mxu1 %v34569_v18 }
 0x77c   : > { %v31648_v22 = vpop.f32.mrf.mxu0  ;;  %25688 = vmatmul.mubr.bf16.vlgmr.msra.gmra.mxu0 %v2136_v17  ;;  %v34605_v17 = vld [vmem:[%s35143_s27 + $0x3c30] sm:$0xff]  }
 0x77d   : > { %v31670_v28 = vpop.f32.mrf.mxu1  ;;  %31941 = vmatpush3.bf16.msra.mxu0 %v34568_v16  ;;  %25728 = vmatmul.mubr.bf16.vlgmr.msra.gmra.mxu1 %v2138_v23  ;;  %v2143_v16 = vpack.c.bf16 %v1380_v11, %v1380_v11  ;;  %v34639_v11 = vld [vmem:[%s35143_s27 + $0x3df0] sm:$0xff]  }
 0x77e   : > { %v31649_v27 = vpop.f32.mrf.mxu0  ;;  %31942 = vmatprep.subr.bf16.mxu0 %v34571_v24  ;;  %31963 = vmatpush3.bf16.msra.mxu1 %v34570_v21 }
 0x77f   : > { %v31650_v30 = vadd.f32 %v31649_v27, %v31648_v22  ;;  %v31671_v33 = vpop.f32.mrf.mxu1  ;;  %31964 = vmatprep.subr.bf16.mxu1 %v34573_v29  ;;  %25767 = vmatprep.mubr.bf16.mxu0 %v2141_v10  ;;  %v34607_v22 = vld [vmem:[%s35143_s27 + $0x3cb0] sm:$0xff]  }
 0x780   : > { %v31651_v32 = vpop.f32.mrf.mxu0  ;;  %v31672_v36 = vadd.f32 %v31671_v33, %v31670_v28  ;;  %25807 = vmatprep.mubr.bf16.mxu1 %v2143_v16  ;;  %v34609_v28 = vld [vmem:[%s35143_s27 + $0x3c28] sm:$0xff]  }
 0x781   : > { %v25210_v35 = vadd.f32 %v31650_v30, %v37348_v51  ;;  %v31673_v40 = vpop.f32.mrf.mxu1  ;;  %31943 = vmatpush3.bf16.msra.mxu0 %v34572_v26  ;;  %v34585_v51 = vld [vmem:[%s35143_s27 + $0x3bd8] sm:$0xff]   ;;  %v34610_v30 = vld [vmem:[%s35143_s27 + $0x3ce8] sm:$0xff]  }
 0x782   : > { %v31652_v38 = vpop.f32.mrf.mxu0  ;;  %31944 = vmatprep.subr.bf16.mxu0 %v34575_v34  ;;  %31965 = vmatpush3.bf16.msra.mxu1 %v34574_v31  ;;  %v34611_v33 = vld [vmem:[%s35143_s27 + $0x3ca8] sm:$0xff]   ;;  %v34612_v34 = vld [vmem:[%s35143_s27 + $0x3c60] sm:$0xff]   ;;  %v34617_v40 = vld [vmem:[%s35143_s27 + $0x3c18] sm:$0xff]  }
 0x783   : > { %v37386_v41 = vadd.f32 %v31672_v36, %v25210_v35  ;;  %v31674_v45 = vpop.f32.mrf.mxu1  ;;  %31966 = vmatprep.subr.bf16.mxu1 %v34577_v39  ;;  %v34613_v36 = vld [vmem:[%s35143_s27 + $0x3c20] sm:$0xff]   ;;  %v34616_v39 = vld [vmem:[%s35143_s27 + $0x3c58] sm:$0xff]   ;;  %v34641_v16 = vld [vmem:[%s35143_s27 + $0x3d68] sm:$0xff]  }
 0x784   : > { %v34615_v38 = vld [vmem:[%s35143_s27 + $0x3ca0] sm:$0xff]   ;;  %v34621_v45 = vld [vmem:[%s35143_s27 + $0x3c10] sm:$0xff]  }
 0x785   : > { %31945 = vmatpush3.bf16.msra.mxu0 %v34576_v37  ;;  %v34614_v37 = vld [vmem:[%s35143_s27 + $0x3ce0] sm:$0xff]  }
 0x786   : > { %31946 = vmatprep.subr.bf16.mxu0 %v34579_v44  ;;  %31967 = vmatpush3.bf16.msra.mxu1 %v34578_v43  ;;  %v34619_v43 = vld [vmem:[%s35143_s27 + $0x3c98] sm:$0xff]   ;;  %v34620_v44 = vld [vmem:[%s35143_s27 + $0x3c50] sm:$0xff]  }
 0x787   : > { %31968 = vmatprep.subr.bf16.mxu1 %v34581_v47  ;;  %v34623_v47 = vld [vmem:[%s35143_s27 + $0x3c90] sm:$0xff]  }
 0x789   : > { %31947 = vmatpush3.bf16.msra.mxu0 %v34580_v46  ;;  %v34622_v46 = vld [vmem:[%s35143_s27 + $0x3cd0] sm:$0xff]  }
 0x78a   : > { %31948 = vmatprep.subr.bf16.mxu0 %v34583_v49  ;;  %31969 = vmatpush3.bf16.msra.mxu1 %v34582_v48  ;;  %v34624_v48 = vld [vmem:[%s35143_s27 + $0x3c48] sm:$0xff]  }
 0x78b   : > { %31970 = vmatprep.subr.bf16.mxu1 %v34585_v51  ;;  %v34625_v49 = vld [vmem:[%s35143_s27 + $0x3c08] sm:$0xff]  }
 0x78c   : > { %v34627_v51 = vld [vmem:[%s35143_s27 + $0x3c88] sm:$0xff]  }
 0x78d   : > { %31949 = vmatpush3.bf16.msra.mxu0 %v34584_v50  ;;  %v34626_v50 = vld [vmem:[%s35143_s27 + $0x3cc8] sm:$0xff]  }
 0x78e   : > { %31950 = vmatprep.subr.bf16.mxu0 %v34587_v53  ;;  %31971 = vmatpush3.bf16.msra.mxu1 %v34586_v52  ;;  %v34628_v52 = vld [vmem:[%s35143_s27 + $0x3c40] sm:$0xff]  }
 0x78f   : > { %31972 = vmatprep.subr.bf16.mxu1 %v34589_v55  ;;  %v34629_v53 = vld [vmem:[%s35143_s27 + $0x3c00] sm:$0xff]  }
 0x790   : > { %v273_v55 = vld [vmem:[%s35138_s23 + $0x1e0] sm:$0xff] }
 0x791   : > { %31951 = vmatpush3.bf16.msra.mxu0 %v34588_v54  ;;  %v34630_v54 = vld [vmem:[%s35143_s27 + $0x3cc0] sm:$0xff]  }
 0x792   : > { %31952 = vmatprep.subr.bf16.mxu0 %v34591_v57  ;;  %31973 = vmatpush3.bf16.msra.mxu1 %v34590_v56  ;;  %v1388_v56 = vrot.slane %v273_v55, %v35187_v42  ;;  %v34631_v57 = vld [vmem:[%s35143_s27 + $0x3c80] sm:$0xff]  }
 0x793   : > { %31974 = vmatprep.subr.bf16.mxu1 %v34593_v59  ;;  %v34632_v59 = vld [vmem:[%s35143_s27 + $0x3d78] sm:$0xff]  }
 0x795   : > { %31953 = vmatpush3.bf16.msra.mxu0 %v34592_v58  ;;  %v1381_v58 = vcombine.high %v273_v55, %v273_v55  ;;  %v34668_v55 = vld [vmem:[%s35143_s27 + $0x3ef8] sm:$0xff]  }
 0x796   : > { %31954 = vmatprep.subr.bf16.mxu0 %v34595_v61  ;;  %31975 = vmatpush3.bf16.msra.mxu1 %v34594_v60  ;;  %v1396_v60 = vcombine.high %v1388_v56, %v1388_v56 }
 0x797   : > { %31976 = vmatprep.subr.bf16.mxu1 %v34597_v63  ;;  %v1395_v61 = vrot.slane %v1381_v58, %v35187_v42  ;;  %v2144_v63 = vpack.c.bf16 %v1388_v56, %v1388_v56  ;;  %v34669_v58 = vld [vmem:[%s35143_s27 + $0x3eb8] sm:$0xff]  }
 0x798   : > { %v2145_v1 = vpack.c.bf16 %v1396_v60, %v1396_v60 }
 0x799   : > { %31955 = vmatpush3.bf16.msra.mxu0 %v34596_v62  ;;  %v34634_v62 = vld [vmem:[%s35143_s27 + $0x3d38] sm:$0xff]   ;;  %v2146_v5 = vpack.c.bf16 %v1395_v61, %v1395_v61 }
 0x79a   : > { %31984 = vmatprep.subr.bf16.mxu0 %v34599_v4  ;;  %31977 = vmatpush3.bf16.msra.mxu1 %v34598_v2  ;;  %v1397_v2 = vcombine.high %v1395_v61, %v1395_v61  ;;  %v34670_v61 = vld [vmem:[%s35143_s27 + $0x3e70] sm:$0xff]  }
 0x79b   : > { %32006 = vmatprep.subr.bf16.mxu1 %v34602_v9 }
 0x79c   : > { %v31692_v13 = vpop.f32.mrf.mxu0  ;;  %25768 = vmatmul.mubr.bf16.vlgmr.msra.gmra.mxu0 %v2140_v8  ;;  %v34638_v8 = vld [vmem:[%s35143_s27 + $0x3d30] sm:$0xff]  }
 0x79d   : > { %v31714_v19 = vpop.f32.mrf.mxu1  ;;  %31985 = vmatpush3.bf16.msra.mxu0 %v34601_v7  ;;  %25808 = vmatmul.mubr.bf16.vlgmr.msra.gmra.mxu1 %v2142_v14  ;;  %v2147_v7 = vpack.c.bf16 %v1397_v2, %v1397_v2  ;;  %v34672_v2 = vld [vmem:[%s35143_s27 + $0x3ef0] sm:$0xff]  }
 0x79e   : > { %v31693_v18 = vpop.f32.mrf.mxu0  ;;  %31986 = vmatprep.subr.bf16.mxu0 %v34604_v15  ;;  %32007 = vmatpush3.bf16.msra.mxu1 %v34603_v12 }
 0x79f   : > { %v31694_v21 = vadd.f32 %v31693_v18, %v31692_v13  ;;  %v31715_v24 = vpop.f32.mrf.mxu1  ;;  %32008 = vmatprep.subr.bf16.mxu1 %v34606_v20  ;;  %25847 = vmatprep.mubr.bf16.mxu0 %v2145_v1  ;;  %v34640_v13 = vld [vmem:[%s35143_s27 + $0x3db0] sm:$0xff]  }
 0x7a0   : > { %v31695_v23 = vpop.f32.mrf.mxu0  ;;  %v31716_v27 = vadd.f32 %v31715_v24, %v31714_v19  ;;  %25887 = vmatprep.mubr.bf16.mxu1 %v2147_v7  ;;  %v34642_v19 = vld [vmem:[%s35143_s27 + $0x3d28] sm:$0xff]  }
 0x7a1   : > { %v25290_v26 = vadd.f32 %v31694_v21, %v37386_v41  ;;  %v31717_v31 = vpop.f32.mrf.mxu1  ;;  %31987 = vmatpush3.bf16.msra.mxu0 %v34605_v17  ;;  %v34618_v41 = vld [vmem:[%s35143_s27 + $0x3cd8] sm:$0xff]   ;;  %v34643_v21 = vld [vmem:[%s35143_s27 + $0x3de8] sm:$0xff]  }
 0x7a2   : > { %v31696_v29 = vpop.f32.mrf.mxu0  ;;  %31988 = vmatprep.subr.bf16.mxu0 %v34608_v25  ;;  %32009 = vmatpush3.bf16.msra.mxu1 %v34607_v22  ;;  %v34644_v24 = vld [vmem:[%s35143_s27 + $0x3da8] sm:$0xff]   ;;  %v34645_v25 = vld [vmem:[%s35143_s27 + $0x3d60] sm:$0xff]   ;;  %v34650_v31 = vld [vmem:[%s35143_s27 + $0x3d18] sm:$0xff]  }
 0x7a3   : > { %v37424_v32 = vadd.f32 %v31716_v27, %v25290_v26  ;;  %v31718_v35 = vpop.f32.mrf.mxu1  ;;  %32010 = vmatprep.subr.bf16.mxu1 %v34610_v30  ;;  %v34646_v27 = vld [vmem:[%s35143_s27 + $0x3d20] sm:$0xff]   ;;  %v34649_v30 = vld [vmem:[%s35143_s27 + $0x3d58] sm:$0xff]   ;;  %v34674_v7 = vld [vmem:[%s35143_s27 + $0x3e68] sm:$0xff]  }
 0x7a4   : > { %v34648_v29 = vld [vmem:[%s35143_s27 + $0x3da0] sm:$0xff]   ;;  %v34654_v35 = vld [vmem:[%s35143_s27 + $0x3d10] sm:$0xff]  }
 0x7a5   : > { %31989 = vmatpush3.bf16.msra.mxu0 %v34609_v28  ;;  %v34647_v28 = vld [vmem:[%s35143_s27 + $0x3de0] sm:$0xff]  }
 0x7a6   : > { %31990 = vmatprep.subr.bf16.mxu0 %v34612_v34  ;;  %32011 = vmatpush3.bf16.msra.mxu1 %v34611_v33  ;;  %v34652_v33 = vld [vmem:[%s35143_s27 + $0x3d98] sm:$0xff]   ;;  %v34653_v34 = vld [vmem:[%s35143_s27 + $0x3d50] sm:$0xff]  }
 0x7a7   : > { %32012 = vmatprep.subr.bf16.mxu1 %v34614_v37  ;;  %v34656_v37 = vld [vmem:[%s35143_s27 + $0x3d90] sm:$0xff]  }
 0x7a9   : > { %31991 = vmatpush3.bf16.msra.mxu0 %v34613_v36  ;;  %v34655_v36 = vld [vmem:[%s35143_s27 + $0x3dd0] sm:$0xff]  }
 0x7aa   : > { %31992 = vmatprep.subr.bf16.mxu0 %v34616_v39  ;;  %32013 = vmatpush3.bf16.msra.mxu1 %v34615_v38  ;;  %v34657_v38 = vld [vmem:[%s35143_s27 + $0x3d48] sm:$0xff]  }
 0x7ab   : > { %32014 = vmatprep.subr.bf16.mxu1 %v34618_v41  ;;  %v34658_v39 = vld [vmem:[%s35143_s27 + $0x3d08] sm:$0xff]  }
 0x7ac   : > { %v34660_v41 = vld [vmem:[%s35143_s27 + $0x3d88] sm:$0xff]  }
 0x7ad   : > { %31993 = vmatpush3.bf16.msra.mxu0 %v34617_v40  ;;  %v34659_v40 = vld [vmem:[%s35143_s27 + $0x3dc8] sm:$0xff]  }
 0x7ae   : > { %31994 = vmatprep.subr.bf16.mxu0 %v34620_v44  ;;  %32015 = vmatpush3.bf16.msra.mxu1 %v34619_v43  ;;  %v34661_v43 = vld [vmem:[%s35143_s27 + $0x3d40] sm:$0xff]  }
 0x7af   : > { %32016 = vmatprep.subr.bf16.mxu1 %v34622_v46  ;;  %v34662_v44 = vld [vmem:[%s35143_s27 + $0x3d00] sm:$0xff]   ;;  %v274_v46 = vld [vmem:[%s35138_s23 + $0x1e8] sm:$0xff] }
 0x7b1   : > { %31995 = vmatpush3.bf16.msra.mxu0 %v34621_v45  ;;  %v34663_v45 = vld [vmem:[%s35143_s27 + $0x3dc0] sm:$0xff]  }
 0x7b2   : > { %31996 = vmatprep.subr.bf16.mxu0 %v34624_v48  ;;  %32017 = vmatpush3.bf16.msra.mxu1 %v34623_v47  ;;  %v1405_v47 = vrot.slane %v274_v46, %v35187_v42  ;;  %v34664_v48 = vld [vmem:[%s35143_s27 + $0x3d80] sm:$0xff]  }
 0x7b3   : > { %32018 = vmatprep.subr.bf16.mxu1 %v34626_v50  ;;  %v34665_v50 = vld [vmem:[%s35143_s27 + $0x3e78] sm:$0xff]  }
 0x7b5   : > { %31997 = vmatpush3.bf16.msra.mxu0 %v34625_v49  ;;  %v1398_v49 = vcombine.high %v274_v46, %v274_v46  ;;  %v34701_v46 = vld [vmem:[%s35143_s27 + $0x3ff8] sm:$0xff]  }
 0x7b6   : > { %31998 = vmatprep.subr.bf16.mxu0 %v34628_v52  ;;  %32019 = vmatpush3.bf16.msra.mxu1 %v34627_v51  ;;  %v1413_v51 = vcombine.high %v1405_v47, %v1405_v47 }
 0x7b7   : > { %32020 = vmatprep.subr.bf16.mxu1 %v34630_v54  ;;  %v1412_v52 = vrot.slane %v1398_v49, %v35187_v42  ;;  %v2148_v54 = vpack.c.bf16 %v1405_v47, %v1405_v47  ;;  %v34702_v49 = vld [vmem:[%s35143_s27 + $0x3fb8] sm:$0xff]  }
 0x7b8   : > { %v2149_v56 = vpack.c.bf16 %v1413_v51, %v1413_v51 }
 0x7b9   : > { %31999 = vmatpush3.bf16.msra.mxu0 %v34629_v53  ;;  %v34667_v53 = vld [vmem:[%s35143_s27 + $0x3e38] sm:$0xff]   ;;  %v2150_v60 = vpack.c.bf16 %v1412_v52, %v1412_v52 }
 0x7ba   : > { %32028 = vmatprep.subr.bf16.mxu0 %v34632_v59  ;;  %32021 = vmatpush3.bf16.msra.mxu1 %v34631_v57  ;;  %v1414_v57 = vcombine.high %v1412_v52, %v1412_v52  ;;  %v34703_v52 = vld [vmem:[%s35143_s27 + $0x3f70] sm:$0xff]  }
 0x7bb   : > { %32050 = vmatprep.subr.bf16.mxu1 %v34635_v0 }
 0x7bc   : > { %v31736_v4 = vpop.f32.mrf.mxu0  ;;  %25848 = vmatmul.mubr.bf16.vlgmr.msra.gmra.mxu0 %v2144_v63  ;;  %v34671_v63 = vld [vmem:[%s35143_s27 + $0x3e30] sm:$0xff]  }
 0x7bd   : > { %v31758_v10 = vpop.f32.mrf.mxu1  ;;  %32029 = vmatpush3.bf16.msra.mxu0 %v34634_v62  ;;  %25888 = vmatmul.mubr.bf16.vlgmr.msra.gmra.mxu1 %v2146_v5  ;;  %v2151_v62 = vpack.c.bf16 %v1414_v57, %v1414_v57  ;;  %v34705_v57 = vld [vmem:[%s35143_s27 + $0x3ff0] sm:$0xff]  }
 0x7be   : > { %v31737_v9 = vpop.f32.mrf.mxu0  ;;  %32030 = vmatprep.subr.bf16.mxu0 %v34637_v6  ;;  %32051 = vmatpush3.bf16.msra.mxu1 %v34636_v3 }
 0x7bf   : > { %v31738_v12 = vadd.f32 %v31737_v9, %v31736_v4  ;;  %v31759_v15 = vpop.f32.mrf.mxu1  ;;  %32052 = vmatprep.subr.bf16.mxu1 %v34639_v11  ;;  %25927 = vmatprep.mubr.bf16.mxu0 %v2149_v56  ;;  %v34673_v4 = vld [vmem:[%s35143_s27 + $0x3eb0] sm:$0xff]  }
 0x7c0   : > { %v31739_v14 = vpop.f32.mrf.mxu0  ;;  %v31760_v18 = vadd.f32 %v31759_v15, %v31758_v10  ;;  %25967 = vmatprep.mubr.bf16.mxu1 %v2151_v62  ;;  %v34675_v10 = vld [vmem:[%s35143_s27 + $0x3e28] sm:$0xff]  }
 0x7c1   : > { %v25370_v17 = vadd.f32 %v31738_v12, %v37424_v32  ;;  %v31761_v22 = vpop.f32.mrf.mxu1  ;;  %32031 = vmatpush3.bf16.msra.mxu0 %v34638_v8  ;;  %v34651_v32 = vld [vmem:[%s35143_s27 + $0x3dd8] sm:$0xff]   ;;  %v34676_v12 = vld [vmem:[%s35143_s27 + $0x3ee8] sm:$0xff]  }
 0x7c2   : > { %v31740_v20 = vpop.f32.mrf.mxu0  ;;  %32032 = vmatprep.subr.bf16.mxu0 %v34641_v16  ;;  %32053 = vmatpush3.bf16.msra.mxu1 %v34640_v13  ;;  %v34677_v15 = vld [vmem:[%s35143_s27 + $0x3ea8] sm:$0xff]   ;;  %v34678_v16 = vld [vmem:[%s35143_s27 + $0x3e60] sm:$0xff]   ;;  %v34683_v22 = vld [vmem:[%s35143_s27 + $0x3e18] sm:$0xff]  }
 0x7c3   : > { %v37462_v23 = vadd.f32 %v31760_v18, %v25370_v17  ;;  %v31762_v26 = vpop.f32.mrf.mxu1  ;;  %32054 = vmatprep.subr.bf16.mxu1 %v34643_v21  ;;  %v34679_v18 = vld [vmem:[%s35143_s27 + $0x3e20] sm:$0xff]   ;;  %v34682_v21 = vld [vmem:[%s35143_s27 + $0x3e58] sm:$0xff]   ;;  %v34707_v62 = vld [vmem:[%s35143_s27 + $0x3f68] sm:$0xff]  }
 0x7c4   : > { %v34681_v20 = vld [vmem:[%s35143_s27 + $0x3ea0] sm:$0xff]   ;;  %v34687_v26 = vld [vmem:[%s35143_s27 + $0x3e10] sm:$0xff]  }
 0x7c5   : > { %32033 = vmatpush3.bf16.msra.mxu0 %v34642_v19  ;;  %v34680_v19 = vld [vmem:[%s35143_s27 + $0x3ee0] sm:$0xff]  }
 0x7c6   : > { %32034 = vmatprep.subr.bf16.mxu0 %v34645_v25  ;;  %32055 = vmatpush3.bf16.msra.mxu1 %v34644_v24  ;;  %v34685_v24 = vld [vmem:[%s35143_s27 + $0x3e98] sm:$0xff]   ;;  %v34686_v25 = vld [vmem:[%s35143_s27 + $0x3e50] sm:$0xff]  }
 0x7c7   : > { %32056 = vmatprep.subr.bf16.mxu1 %v34647_v28  ;;  %v34689_v28 = vld [vmem:[%s35143_s27 + $0x3e90] sm:$0xff]  }
 0x7c9   : > { %32035 = vmatpush3.bf16.msra.mxu0 %v34646_v27  ;;  %v34688_v27 = vld [vmem:[%s35143_s27 + $0x3ed0] sm:$0xff]  }
 0x7ca   : > { %32036 = vmatprep.subr.bf16.mxu0 %v34649_v30  ;;  %32057 = vmatpush3.bf16.msra.mxu1 %v34648_v29  ;;  %v34690_v29 = vld [vmem:[%s35143_s27 + $0x3e48] sm:$0xff]  }
 0x7cb   : > { %32058 = vmatprep.subr.bf16.mxu1 %v34651_v32  ;;  %v34691_v30 = vld [vmem:[%s35143_s27 + $0x3e08] sm:$0xff]  }
 0x7cc   : > { %v34693_v32 = vld [vmem:[%s35143_s27 + $0x3e88] sm:$0xff]  }
 0x7cd   : > { %32037 = vmatpush3.bf16.msra.mxu0 %v34650_v31  ;;  %v34692_v31 = vld [vmem:[%s35143_s27 + $0x3ec8] sm:$0xff]  }
 0x7ce   : > { %32038 = vmatprep.subr.bf16.mxu0 %v34653_v34  ;;  %32059 = vmatpush3.bf16.msra.mxu1 %v34652_v33  ;;  %v34694_v33 = vld [vmem:[%s35143_s27 + $0x3e40] sm:$0xff]  }
 0x7cf   : > { %32060 = vmatprep.subr.bf16.mxu1 %v34655_v36  ;;  %v34695_v34 = vld [vmem:[%s35143_s27 + $0x3e00] sm:$0xff]   ;;  %v275_v36 = vld [vmem:[%s35138_s23 + $0x1f0] sm:$0xff] }
 0x7d1   : > { %32039 = vmatpush3.bf16.msra.mxu0 %v34654_v35  ;;  %v34696_v35 = vld [vmem:[%s35143_s27 + $0x3ec0] sm:$0xff]  }
 0x7d2   : > { %32040 = vmatprep.subr.bf16.mxu0 %v34657_v38  ;;  %32061 = vmatpush3.bf16.msra.mxu1 %v34656_v37  ;;  %v1422_v37 = vrot.slane %v275_v36, %v35187_v42  ;;  %v34697_v38 = vld [vmem:[%s35143_s27 + $0x3e80] sm:$0xff]  }
 0x7d3   : > { %32062 = vmatprep.subr.bf16.mxu1 %v34659_v40  ;;  %v34698_v40 = vld [vmem:[%s35143_s27 + $0x3f78] sm:$0xff]  }
 0x7d5   : > { %32041 = vmatpush3.bf16.msra.mxu0 %v34658_v39  ;;  %v1415_v39 = vcombine.high %v275_v36, %v275_v36  ;;  %v34734_v36 = vld [vmem:[%s35143_s27 + $0x40f8] sm:$0xff]  }
 0x7d6   : > { %32042 = vmatprep.subr.bf16.mxu0 %v34661_v43  ;;  %32063 = vmatpush3.bf16.msra.mxu1 %v34660_v41  ;;  %v1430_v41 = vcombine.high %v1422_v37, %v1422_v37 }
 0x7d7   : > { %32064 = vmatprep.subr.bf16.mxu1 %v34663_v45  ;;  %v1429_v43 = vrot.slane %v1415_v39, %v35187_v42  ;;  %v2152_v45 = vpack.c.bf16 %v1422_v37, %v1422_v37  ;;  %v34735_v39 = vld [vmem:[%s35143_s27 + $0x40b8] sm:$0xff]  }
 0x7d8   : > { %v2153_v47 = vpack.c.bf16 %v1430_v41, %v1430_v41 }
 0x7d9   : > { %32043 = vmatpush3.bf16.msra.mxu0 %v34662_v44  ;;  %v34700_v44 = vld [vmem:[%s35143_s27 + $0x3f38] sm:$0xff]   ;;  %v2154_v51 = vpack.c.bf16 %v1429_v43, %v1429_v43 }
 0x7da   : > { %32072 = vmatprep.subr.bf16.mxu0 %v34665_v50  ;;  %32065 = vmatpush3.bf16.msra.mxu1 %v34664_v48  ;;  %v1431_v48 = vcombine.high %v1429_v43, %v1429_v43  ;;  %v34736_v43 = vld [vmem:[%s35143_s27 + $0x4070] sm:$0xff]  }
 0x7db   : > { %32094 = vmatprep.subr.bf16.mxu1 %v34668_v55 }
 0x7dc   : > { %v31780_v59 = vpop.f32.mrf.mxu0  ;;  %25928 = vmatmul.mubr.bf16.vlgmr.msra.gmra.mxu0 %v2148_v54  ;;  %v34704_v54 = vld [vmem:[%s35143_s27 + $0x3f30] sm:$0xff]  }
 0x7dd   : > { %v31802_v1 = vpop.f32.mrf.mxu1  ;;  %32073 = vmatpush3.bf16.msra.mxu0 %v34667_v53  ;;  %25968 = vmatmul.mubr.bf16.vlgmr.msra.gmra.mxu1 %v2150_v60  ;;  %v2155_v53 = vpack.c.bf16 %v1431_v48, %v1431_v48  ;;  %v34738_v48 = vld [vmem:[%s35143_s27 + $0x40f0] sm:$0xff]  }
 0x7de   : > { %v31781_v0 = vpop.f32.mrf.mxu0  ;;  %32074 = vmatprep.subr.bf16.mxu0 %v34670_v61  ;;  %32095 = vmatpush3.bf16.msra.mxu1 %v34669_v58 }
 0x7df   : > { %v31782_v3 = vadd.f32 %v31781_v0, %v31780_v59  ;;  %v31803_v6 = vpop.f32.mrf.mxu1  ;;  %32096 = vmatprep.subr.bf16.mxu1 %v34672_v2  ;;  %26007 = vmatprep.mubr.bf16.mxu0 %v2153_v47  ;;  %v34706_v59 = vld [vmem:[%s35143_s27 + $0x3fb0] sm:$0xff]  }
 0x7e0   : > { %v31783_v5 = vpop.f32.mrf.mxu0  ;;  %v31804_v9 = vadd.f32 %v31803_v6, %v31802_v1  ;;  %26047 = vmatprep.mubr.bf16.mxu1 %v2155_v53  ;;  %v34708_v1 = vld [vmem:[%s35143_s27 + $0x3f28] sm:$0xff]  }
 0x7e1   : > { %v25450_v8 = vadd.f32 %v31782_v3, %v37462_v23  ;;  %v31805_v13 = vpop.f32.mrf.mxu1  ;;  %32075 = vmatpush3.bf16.msra.mxu0 %v34671_v63  ;;  %v34684_v23 = vld [vmem:[%s35143_s27 + $0x3ed8] sm:$0xff]   ;;  %v34709_v3 = vld [vmem:[%s35143_s27 + $0x3fe8] sm:$0xff]  }
 0x7e2   : > { %v31784_v11 = vpop.f32.mrf.mxu0  ;;  %32076 = vmatprep.subr.bf16.mxu0 %v34674_v7  ;;  %32097 = vmatpush3.bf16.msra.mxu1 %v34673_v4  ;;  %v34710_v6 = vld [vmem:[%s35143_s27 + $0x3fa8] sm:$0xff]   ;;  %v34711_v7 = vld [vmem:[%s35143_s27 + $0x3f60] sm:$0xff]   ;;  %v34716_v13 = vld [vmem:[%s35143_s27 + $0x3f18] sm:$0xff]  }
 0x7e3   : > { %v37500_v14 = vadd.f32 %v31804_v9, %v25450_v8  ;;  %v31806_v17 = vpop.f32.mrf.mxu1  ;;  %32098 = vmatprep.subr.bf16.mxu1 %v34676_v12  ;;  %v34712_v9 = vld [vmem:[%s35143_s27 + $0x3f20] sm:$0xff]   ;;  %v34715_v12 = vld [vmem:[%s35143_s27 + $0x3f58] sm:$0xff]   ;;  %v34740_v53 = vld [vmem:[%s35143_s27 + $0x4068] sm:$0xff]  }
 0x7e4   : > { %v34714_v11 = vld [vmem:[%s35143_s27 + $0x3fa0] sm:$0xff]   ;;  %v34720_v17 = vld [vmem:[%s35143_s27 + $0x3f10] sm:$0xff]  }
 0x7e5   : > { %32077 = vmatpush3.bf16.msra.mxu0 %v34675_v10  ;;  %v34713_v10 = vld [vmem:[%s35143_s27 + $0x3fe0] sm:$0xff]  }
 0x7e6   : > { %32078 = vmatprep.subr.bf16.mxu0 %v34678_v16  ;;  %32099 = vmatpush3.bf16.msra.mxu1 %v34677_v15  ;;  %v34718_v15 = vld [vmem:[%s35143_s27 + $0x3f98] sm:$0xff]   ;;  %v34719_v16 = vld [vmem:[%s35143_s27 + $0x3f50] sm:$0xff]  }
 0x7e7   : > { %32100 = vmatprep.subr.bf16.mxu1 %v34680_v19  ;;  %v34722_v19 = vld [vmem:[%s35143_s27 + $0x3f90] sm:$0xff]  }
 0x7e9   : > { %32079 = vmatpush3.bf16.msra.mxu0 %v34679_v18  ;;  %v34721_v18 = vld [vmem:[%s35143_s27 + $0x3fd0] sm:$0xff]  }
 0x7ea   : > { %32080 = vmatprep.subr.bf16.mxu0 %v34682_v21  ;;  %32101 = vmatpush3.bf16.msra.mxu1 %v34681_v20  ;;  %v34723_v20 = vld [vmem:[%s35143_s27 + $0x3f48] sm:$0xff]  }
 0x7eb   : > { %32102 = vmatprep.subr.bf16.mxu1 %v34684_v23  ;;  %v34724_v21 = vld [vmem:[%s35143_s27 + $0x3f08] sm:$0xff]  }
 0x7ec   : > { %v34726_v23 = vld [vmem:[%s35143_s27 + $0x3f88] sm:$0xff]  }
 0x7ed   : > { %32081 = vmatpush3.bf16.msra.mxu0 %v34683_v22  ;;  %v34725_v22 = vld [vmem:[%s35143_s27 + $0x3fc8] sm:$0xff]  }
 0x7ee   : > { %32082 = vmatprep.subr.bf16.mxu0 %v34686_v25  ;;  %32103 = vmatpush3.bf16.msra.mxu1 %v34685_v24  ;;  %v34727_v24 = vld [vmem:[%s35143_s27 + $0x3f40] sm:$0xff]  }
 0x7ef   : > { %32104 = vmatprep.subr.bf16.mxu1 %v34688_v27  ;;  %v34728_v25 = vld [vmem:[%s35143_s27 + $0x3f00] sm:$0xff]   ;;  %v276_v27 = vld [vmem:[%s35138_s23 + $0x1f8] sm:$0xff] }
 0x7f1   : > { %32083 = vmatpush3.bf16.msra.mxu0 %v34687_v26  ;;  %v34729_v26 = vld [vmem:[%s35143_s27 + $0x3fc0] sm:$0xff]  }
 0x7f2   : > { %32084 = vmatprep.subr.bf16.mxu0 %v34690_v29  ;;  %32105 = vmatpush3.bf16.msra.mxu1 %v34689_v28  ;;  %v1439_v28 = vrot.slane %v276_v27, %v35187_v42  ;;  %v34730_v29 = vld [vmem:[%s35143_s27 + $0x3f80] sm:$0xff]  }
 0x7f3   : > { %32106 = vmatprep.subr.bf16.mxu1 %v34692_v31  ;;  %v34731_v31 = vld [vmem:[%s35143_s27 + $0x4078] sm:$0xff]  }
 0x7f5   : > { %32085 = vmatpush3.bf16.msra.mxu0 %v34691_v30  ;;  %v1432_v30 = vcombine.high %v276_v27, %v276_v27  ;;  %v34767_v27 = vld [vmem:[%s35143_s27 + $0x41f8] sm:$0xff]  }
 0x7f6   : > { %32086 = vmatprep.subr.bf16.mxu0 %v34694_v33  ;;  %32107 = vmatpush3.bf16.msra.mxu1 %v34693_v32  ;;  %v1447_v32 = vcombine.high %v1439_v28, %v1439_v28 }
 0x7f7   : > { %32108 = vmatprep.subr.bf16.mxu1 %v34696_v35  ;;  %v1446_v33 = vrot.slane %v1432_v30, %v35187_v42  ;;  %v2156_v35 = vpack.c.bf16 %v1439_v28, %v1439_v28  ;;  %v34768_v30 = vld [vmem:[%s35143_s27 + $0x41b8] sm:$0xff]  }
 0x7f8   : > { %v2157_v37 = vpack.c.bf16 %v1447_v32, %v1447_v32 }
 0x7f9   : > { %32087 = vmatpush3.bf16.msra.mxu0 %v34695_v34  ;;  %v34733_v34 = vld [vmem:[%s35143_s27 + $0x4038] sm:$0xff]   ;;  %v2158_v41 = vpack.c.bf16 %v1446_v33, %v1446_v33 }
 0x7fa   : > { %32116 = vmatprep.subr.bf16.mxu0 %v34698_v40  ;;  %32109 = vmatpush3.bf16.msra.mxu1 %v34697_v38  ;;  %v1448_v38 = vcombine.high %v1446_v33, %v1446_v33  ;;  %v34769_v33 = vld [vmem:[%s35143_s27 + $0x4170] sm:$0xff]  }
 0x7fb   : > { %32138 = vmatprep.subr.bf16.mxu1 %v34701_v46 }
 0x7fc   : > { %v31824_v50 = vpop.f32.mrf.mxu0  ;;  %26008 = vmatmul.mubr.bf16.vlgmr.msra.gmra.mxu0 %v2152_v45  ;;  %v34737_v45 = vld [vmem:[%s35143_s27 + $0x4030] sm:$0xff]  }
 0x7fd   : > { %v31846_v56 = vpop.f32.mrf.mxu1  ;;  %32117 = vmatpush3.bf16.msra.mxu0 %v34700_v44  ;;  %26048 = vmatmul.mubr.bf16.vlgmr.msra.gmra.mxu1 %v2154_v51  ;;  %v2159_v44 = vpack.c.bf16 %v1448_v38, %v1448_v38  ;;  %v34771_v38 = vld [vmem:[%s35143_s27 + $0x41f0] sm:$0xff]  }
 0x7fe   : > { %v31825_v55 = vpop.f32.mrf.mxu0  ;;  %32118 = vmatprep.subr.bf16.mxu0 %v34703_v52  ;;  %32139 = vmatpush3.bf16.msra.mxu1 %v34702_v49 }
 0x7ff   : > { %v31826_v58 = vadd.f32 %v31825_v55, %v31824_v50  ;;  %v31847_v61 = vpop.f32.mrf.mxu1  ;;  %32140 = vmatprep.subr.bf16.mxu1 %v34705_v57  ;;  %26087 = vmatprep.mubr.bf16.mxu0 %v2157_v37  ;;  %v34739_v50 = vld [vmem:[%s35143_s27 + $0x40b0] sm:$0xff]  }
 0x800   : > { %v31827_v60 = vpop.f32.mrf.mxu0  ;;  %v31848_v0 = vadd.f32 %v31847_v61, %v31846_v56  ;;  %26127 = vmatprep.mubr.bf16.mxu1 %v2159_v44  ;;  %v34741_v56 = vld [vmem:[%s35143_s27 + $0x4028] sm:$0xff]  }
 0x801   : > { %v25530_v63 = vadd.f32 %v31826_v58, %v37500_v14  ;;  %v31849_v4 = vpop.f32.mrf.mxu1  ;;  %32119 = vmatpush3.bf16.msra.mxu0 %v34704_v54  ;;  %v34717_v14 = vld [vmem:[%s35143_s27 + $0x3fd8] sm:$0xff]   ;;  %v34742_v58 = vld [vmem:[%s35143_s27 + $0x40e8] sm:$0xff]  }
 0x802   : > { %v31828_v2 = vpop.f32.mrf.mxu0  ;;  %32120 = vmatprep.subr.bf16.mxu0 %v34707_v62  ;;  %32141 = vmatpush3.bf16.msra.mxu1 %v34706_v59  ;;  %v34743_v61 = vld [vmem:[%s35143_s27 + $0x40a8] sm:$0xff]   ;;  %v34744_v62 = vld [vmem:[%s35143_s27 + $0x4060] sm:$0xff]   ;;  %v34749_v4 = vld [vmem:[%s35143_s27 + $0x4018] sm:$0xff]  }
 0x803   : > { %v37538_v5 = vadd.f32 %v31848_v0, %v25530_v63  ;;  %v31850_v8 = vpop.f32.mrf.mxu1  ;;  %32142 = vmatprep.subr.bf16.mxu1 %v34709_v3  ;;  %v34745_v0 = vld [vmem:[%s35143_s27 + $0x4020] sm:$0xff]   ;;  %v34748_v3 = vld [vmem:[%s35143_s27 + $0x4058] sm:$0xff]   ;;  %v34773_v44 = vld [vmem:[%s35143_s27 + $0x4168] sm:$0xff]  }
 0x804   : > { %v34747_v2 = vld [vmem:[%s35143_s27 + $0x40a0] sm:$0xff]   ;;  %v34753_v8 = vld [vmem:[%s35143_s27 + $0x4010] sm:$0xff]  }
 0x805   : > { %32121 = vmatpush3.bf16.msra.mxu0 %v34708_v1  ;;  %v34746_v1 = vld [vmem:[%s35143_s27 + $0x40e0] sm:$0xff]  }
 0x806   : > { %32122 = vmatprep.subr.bf16.mxu0 %v34711_v7  ;;  %32143 = vmatpush3.bf16.msra.mxu1 %v34710_v6  ;;  %v34751_v6 = vld [vmem:[%s35143_s27 + $0x4098] sm:$0xff]   ;;  %v34752_v7 = vld [vmem:[%s35143_s27 + $0x4050] sm:$0xff]  }
 0x807   : > { %32144 = vmatprep.subr.bf16.mxu1 %v34713_v10  ;;  %v34755_v10 = vld [vmem:[%s35143_s27 + $0x4090] sm:$0xff]  }
 0x809   : > { %32123 = vmatpush3.bf16.msra.mxu0 %v34712_v9  ;;  %v34754_v9 = vld [vmem:[%s35143_s27 + $0x40d0] sm:$0xff]  }
 0x80a   : > { %32124 = vmatprep.subr.bf16.mxu0 %v34715_v12  ;;  %32145 = vmatpush3.bf16.msra.mxu1 %v34714_v11  ;;  %v34756_v11 = vld [vmem:[%s35143_s27 + $0x4048] sm:$0xff]  }
 0x80b   : > { %32146 = vmatprep.subr.bf16.mxu1 %v34717_v14  ;;  %v34757_v12 = vld [vmem:[%s35143_s27 + $0x4008] sm:$0xff]  }
 0x80c   : > { %v34759_v14 = vld [vmem:[%s35143_s27 + $0x4088] sm:$0xff]  }
 0x80d   : > { %32125 = vmatpush3.bf16.msra.mxu0 %v34716_v13  ;;  %v34758_v13 = vld [vmem:[%s35143_s27 + $0x40c8] sm:$0xff]  }
 0x80e   : > { %32126 = vmatprep.subr.bf16.mxu0 %v34719_v16  ;;  %32147 = vmatpush3.bf16.msra.mxu1 %v34718_v15  ;;  %v34760_v15 = vld [vmem:[%s35143_s27 + $0x4040] sm:$0xff]  }
 0x80f   : > { %32148 = vmatprep.subr.bf16.mxu1 %v34721_v18  ;;  %v34761_v16 = vld [vmem:[%s35143_s27 + $0x4000] sm:$0xff]  }
 0x810   : > { %v277_v18 = vld [vmem:[%s35138_s23 + $0x200] sm:$0xff] }
 0x811   : > { %32127 = vmatpush3.bf16.msra.mxu0 %v34720_v17  ;;  %v34762_v17 = vld [vmem:[%s35143_s27 + $0x40c0] sm:$0xff]  }
 0x812   : > { %32128 = vmatprep.subr.bf16.mxu0 %v34723_v20  ;;  %32149 = vmatpush3.bf16.msra.mxu1 %v34722_v19  ;;  %v1456_v19 = vrot.slane %v277_v18, %v35187_v42  ;;  %v34763_v20 = vld [vmem:[%s35143_s27 + $0x4080] sm:$0xff]  }
 0x813   : > { %32150 = vmatprep.subr.bf16.mxu1 %v34725_v22  ;;  %v34764_v22 = vld [vmem:[%s35143_s27 + $0x4178] sm:$0xff]  }
 0x815   : > { %32129 = vmatpush3.bf16.msra.mxu0 %v34724_v21  ;;  %v1449_v21 = vcombine.high %v277_v18, %v277_v18  ;;  %v34800_v18 = vld [vmem:[%s35143_s27 + $0x42f8] sm:$0xff]  }
 0x816   : > { %32130 = vmatprep.subr.bf16.mxu0 %v34727_v24  ;;  %32151 = vmatpush3.bf16.msra.mxu1 %v34726_v23  ;;  %v1464_v23 = vcombine.high %v1456_v19, %v1456_v19 }
 0x817   : > { %32152 = vmatprep.subr.bf16.mxu1 %v34729_v26  ;;  %v1463_v24 = vrot.slane %v1449_v21, %v35187_v42  ;;  %v2160_v26 = vpack.c.bf16 %v1456_v19, %v1456_v19  ;;  %v34801_v21 = vld [vmem:[%s35143_s27 + $0x42b8] sm:$0xff]  }
 0x818   : > { %v2161_v28 = vpack.c.bf16 %v1464_v23, %v1464_v23 }
 0x819   : > { %32131 = vmatpush3.bf16.msra.mxu0 %v34728_v25  ;;  %v34766_v25 = vld [vmem:[%s35143_s27 + $0x4138] sm:$0xff]   ;;  %v2162_v32 = vpack.c.bf16 %v1463_v24, %v1463_v24 }
 0x81a   : > { %32160 = vmatprep.subr.bf16.mxu0 %v34731_v31  ;;  %32153 = vmatpush3.bf16.msra.mxu1 %v34730_v29  ;;  %v1465_v29 = vcombine.high %v1463_v24, %v1463_v24  ;;  %v34802_v24 = vld [vmem:[%s35143_s27 + $0x4270] sm:$0xff]  }
 0x81b   : > { %32182 = vmatprep.subr.bf16.mxu1 %v34734_v36 }
 0x81c   : > { %v31868_v40 = vpop.f32.mrf.mxu0  ;;  %26088 = vmatmul.mubr.bf16.vlgmr.msra.gmra.mxu0 %v2156_v35  ;;  %v34770_v35 = vld [vmem:[%s35143_s27 + $0x4130] sm:$0xff]  }
 0x81d   : > { %v31890_v47 = vpop.f32.mrf.mxu1  ;;  %32161 = vmatpush3.bf16.msra.mxu0 %v34733_v34  ;;  %26128 = vmatmul.mubr.bf16.vlgmr.msra.gmra.mxu1 %v2158_v41  ;;  %v2163_v34 = vpack.c.bf16 %v1465_v29, %v1465_v29  ;;  %v34804_v29 = vld [vmem:[%s35143_s27 + $0x42f0] sm:$0xff]  }
 0x81e   : > { %v31869_v46 = vpop.f32.mrf.mxu0  ;;  %32162 = vmatprep.subr.bf16.mxu0 %v34736_v43  ;;  %32183 = vmatpush3.bf16.msra.mxu1 %v34735_v39 }
 0x81f   : > { %v31870_v49 = vadd.f32 %v31869_v46, %v31868_v40  ;;  %v31891_v52 = vpop.f32.mrf.mxu1  ;;  %32184 = vmatprep.subr.bf16.mxu1 %v34738_v48  ;;  %26167 = vmatprep.mubr.bf16.mxu0 %v2161_v28  ;;  %v34772_v40 = vld [vmem:[%s35143_s27 + $0x41b0] sm:$0xff]  }
 0x820   : > { %v31871_v51 = vpop.f32.mrf.mxu0  ;;  %v31892_v55 = vadd.f32 %v31891_v52, %v31890_v47  ;;  %26207 = vmatprep.mubr.bf16.mxu1 %v2163_v34  ;;  %v34774_v47 = vld [vmem:[%s35143_s27 + $0x4128] sm:$0xff]  }
 0x821   : > { %v25610_v54 = vadd.f32 %v31870_v49, %v37538_v5  ;;  %v31893_v59 = vpop.f32.mrf.mxu1  ;;  %32163 = vmatpush3.bf16.msra.mxu0 %v34737_v45  ;;  %v34750_v5 = vld [vmem:[%s35143_s27 + $0x40d8] sm:$0xff]   ;;  %v34775_v49 = vld [vmem:[%s35143_s27 + $0x41e8] sm:$0xff]  }
 0x822   : > { %v31872_v57 = vpop.f32.mrf.mxu0  ;;  %32164 = vmatprep.subr.bf16.mxu0 %v34740_v53  ;;  %32185 = vmatpush3.bf16.msra.mxu1 %v34739_v50  ;;  %v34776_v52 = vld [vmem:[%s35143_s27 + $0x41a8] sm:$0xff]   ;;  %v34777_v53 = vld [vmem:[%s35143_s27 + $0x4160] sm:$0xff]   ;;  %v34782_v59 = vld [vmem:[%s35143_s27 + $0x4118] sm:$0xff]  }
 0x823   : > { %v37576_v60 = vadd.f32 %v31892_v55, %v25610_v54  ;;  %v31894_v63 = vpop.f32.mrf.mxu1  ;;  %32186 = vmatprep.subr.bf16.mxu1 %v34742_v58  ;;  %v34778_v55 = vld [vmem:[%s35143_s27 + $0x4120] sm:$0xff]   ;;  %v34781_v58 = vld [vmem:[%s35143_s27 + $0x4158] sm:$0xff]   ;;  %v34806_v34 = vld [vmem:[%s35143_s27 + $0x4268] sm:$0xff]  }
 0x824   : > { %v34780_v57 = vld [vmem:[%s35143_s27 + $0x41a0] sm:$0xff]   ;;  %v34786_v63 = vld [vmem:[%s35143_s27 + $0x4110] sm:$0xff]  }
 0x825   : > { %32165 = vmatpush3.bf16.msra.mxu0 %v34741_v56  ;;  %v34779_v56 = vld [vmem:[%s35143_s27 + $0x41e0] sm:$0xff]  }
 0x826   : > { %32166 = vmatprep.subr.bf16.mxu0 %v34744_v62  ;;  %32187 = vmatpush3.bf16.msra.mxu1 %v34743_v61  ;;  %v34784_v61 = vld [vmem:[%s35143_s27 + $0x4198] sm:$0xff]   ;;  %v34785_v62 = vld [vmem:[%s35143_s27 + $0x4150] sm:$0xff]  }
 0x827   : > { %32188 = vmatprep.subr.bf16.mxu1 %v34746_v1  ;;  %v34788_v1 = vld [vmem:[%s35143_s27 + $0x4190] sm:$0xff]  }
 0x829   : > { %32167 = vmatpush3.bf16.msra.mxu0 %v34745_v0  ;;  %v34787_v0 = vld [vmem:[%s35143_s27 + $0x41d0] sm:$0xff]  }
 0x82a   : > { %32168 = vmatprep.subr.bf16.mxu0 %v34748_v3  ;;  %32189 = vmatpush3.bf16.msra.mxu1 %v34747_v2  ;;  %v34789_v2 = vld [vmem:[%s35143_s27 + $0x4148] sm:$0xff]  }
 0x82b   : > { %32190 = vmatprep.subr.bf16.mxu1 %v34750_v5  ;;  %v34790_v3 = vld [vmem:[%s35143_s27 + $0x4108] sm:$0xff]  }
 0x82c   : > { %v34792_v5 = vld [vmem:[%s35143_s27 + $0x4188] sm:$0xff]  }
 0x82d   : > { %32169 = vmatpush3.bf16.msra.mxu0 %v34749_v4  ;;  %v34791_v4 = vld [vmem:[%s35143_s27 + $0x41c8] sm:$0xff]  }
 0x82e   : > { %32170 = vmatprep.subr.bf16.mxu0 %v34752_v7  ;;  %32191 = vmatpush3.bf16.msra.mxu1 %v34751_v6  ;;  %v34793_v6 = vld [vmem:[%s35143_s27 + $0x4140] sm:$0xff]  }
 0x82f   : > { %32192 = vmatprep.subr.bf16.mxu1 %v34754_v9  ;;  %v34794_v7 = vld [vmem:[%s35143_s27 + $0x4100] sm:$0xff]   ;;  %v278_v9 = vld [vmem:[%s35138_s23 + $0x208] sm:$0xff] }
 0x831   : > { %32171 = vmatpush3.bf16.msra.mxu0 %v34753_v8  ;;  %v34795_v8 = vld [vmem:[%s35143_s27 + $0x41c0] sm:$0xff]  }
 0x832   : > { %32172 = vmatprep.subr.bf16.mxu0 %v34756_v11  ;;  %32193 = vmatpush3.bf16.msra.mxu1 %v34755_v10  ;;  %v1473_v10 = vrot.slane %v278_v9, %v35187_v42  ;;  %v34796_v11 = vld [vmem:[%s35143_s27 + $0x4180] sm:$0xff]  }
 0x833   : > { %32194 = vmatprep.subr.bf16.mxu1 %v34758_v13  ;;  %v34797_v13 = vld [vmem:[%s35143_s27 + $0x4278] sm:$0xff]  }
 0x835   : > { %32173 = vmatpush3.bf16.msra.mxu0 %v34757_v12  ;;  %v1466_v12 = vcombine.high %v278_v9, %v278_v9  ;;  %v34833_v9 = vld [vmem:[%s35143_s27 + $0x43f8] sm:$0xff]  }
 0x836   : > { %32174 = vmatprep.subr.bf16.mxu0 %v34760_v15  ;;  %32195 = vmatpush3.bf16.msra.mxu1 %v34759_v14  ;;  %v1481_v14 = vcombine.high %v1473_v10, %v1473_v10 }
 0x837   : > { %32196 = vmatprep.subr.bf16.mxu1 %v34762_v17  ;;  %v1480_v15 = vrot.slane %v1466_v12, %v35187_v42  ;;  %v2164_v17 = vpack.c.bf16 %v1473_v10, %v1473_v10  ;;  %v34834_v12 = vld [vmem:[%s35143_s27 + $0x43b8] sm:$0xff]  }
 0x838   : > { %v2165_v19 = vpack.c.bf16 %v1481_v14, %v1481_v14 }
 0x839   : > { %32175 = vmatpush3.bf16.msra.mxu0 %v34761_v16  ;;  %v34799_v16 = vld [vmem:[%s35143_s27 + $0x4238] sm:$0xff]   ;;  %v2166_v23 = vpack.c.bf16 %v1480_v15, %v1480_v15 }
 0x83a   : > { %32204 = vmatprep.subr.bf16.mxu0 %v34764_v22  ;;  %32197 = vmatpush3.bf16.msra.mxu1 %v34763_v20  ;;  %v1482_v20 = vcombine.high %v1480_v15, %v1480_v15  ;;  %v34835_v15 = vld [vmem:[%s35143_s27 + $0x4370] sm:$0xff]  }
 0x83b   : > { %32226 = vmatprep.subr.bf16.mxu1 %v34767_v27 }
 0x83c   : > { %v31912_v31 = vpop.f32.mrf.mxu0  ;;  %26168 = vmatmul.mubr.bf16.vlgmr.msra.gmra.mxu0 %v2160_v26  ;;  %v34803_v26 = vld [vmem:[%s35143_s27 + $0x4230] sm:$0xff]  }
 0x83d   : > { %v31934_v37 = vpop.f32.mrf.mxu1  ;;  %32205 = vmatpush3.bf16.msra.mxu0 %v34766_v25  ;;  %26208 = vmatmul.mubr.bf16.vlgmr.msra.gmra.mxu1 %v2162_v32  ;;  %v2167_v25 = vpack.c.bf16 %v1482_v20, %v1482_v20  ;;  %v34837_v20 = vld [vmem:[%s35143_s27 + $0x43f0] sm:$0xff]  }
 0x83e   : > { %v31913_v36 = vpop.f32.mrf.mxu0  ;;  %32206 = vmatprep.subr.bf16.mxu0 %v34769_v33  ;;  %32227 = vmatpush3.bf16.msra.mxu1 %v34768_v30 }
 0x83f   : > { %v31914_v39 = vadd.f32 %v31913_v36, %v31912_v31  ;;  %v31935_v43 = vpop.f32.mrf.mxu1  ;;  %32228 = vmatprep.subr.bf16.mxu1 %v34771_v38  ;;  %26247 = vmatprep.mubr.bf16.mxu0 %v2165_v19  ;;  %v34805_v31 = vld [vmem:[%s35143_s27 + $0x42b0] sm:$0xff]  }
 0x840   : > { %v31915_v41 = vpop.f32.mrf.mxu0  ;;  %v31936_v46 = vadd.f32 %v31935_v43, %v31934_v37  ;;  %26287 = vmatprep.mubr.bf16.mxu1 %v2167_v25  ;;  %v34807_v37 = vld [vmem:[%s35143_s27 + $0x4228] sm:$0xff]  }
 0x841   : > { %v25690_v45 = vadd.f32 %v31914_v39, %v37576_v60  ;;  %v31937_v50 = vpop.f32.mrf.mxu1  ;;  %32207 = vmatpush3.bf16.msra.mxu0 %v34770_v35  ;;  %v34783_v60 = vld [vmem:[%s35143_s27 + $0x41d8] sm:$0xff]   ;;  %v34808_v39 = vld [vmem:[%s35143_s27 + $0x42e8] sm:$0xff]  }
 0x842   : > { %v31916_v48 = vpop.f32.mrf.mxu0  ;;  %32208 = vmatprep.subr.bf16.mxu0 %v34773_v44  ;;  %32229 = vmatpush3.bf16.msra.mxu1 %v34772_v40  ;;  %v34809_v43 = vld [vmem:[%s35143_s27 + $0x42a8] sm:$0xff]   ;;  %v34810_v44 = vld [vmem:[%s35143_s27 + $0x4260] sm:$0xff]   ;;  %v34815_v50 = vld [vmem:[%s35143_s27 + $0x4218] sm:$0xff]  }
 0x843   : > { %v37614_v51 = vadd.f32 %v31936_v46, %v25690_v45  ;;  %v31938_v54 = vpop.f32.mrf.mxu1  ;;  %32230 = vmatprep.subr.bf16.mxu1 %v34775_v49  ;;  %v34811_v46 = vld [vmem:[%s35143_s27 + $0x4220] sm:$0xff]   ;;  %v34814_v49 = vld [vmem:[%s35143_s27 + $0x4258] sm:$0xff]   ;;  %v34839_v25 = vld [vmem:[%s35143_s27 + $0x4368] sm:$0xff]  }
 0x844   : > { %v34813_v48 = vld [vmem:[%s35143_s27 + $0x42a0] sm:$0xff]   ;;  %v34819_v54 = vld [vmem:[%s35143_s27 + $0x4210] sm:$0xff]  }
 0x845   : > { %32209 = vmatpush3.bf16.msra.mxu0 %v34774_v47  ;;  %v34812_v47 = vld [vmem:[%s35143_s27 + $0x42e0] sm:$0xff]  }
 0x846   : > { %32210 = vmatprep.subr.bf16.mxu0 %v34777_v53  ;;  %32231 = vmatpush3.bf16.msra.mxu1 %v34776_v52  ;;  %v34817_v52 = vld [vmem:[%s35143_s27 + $0x4298] sm:$0xff]   ;;  %v34818_v53 = vld [vmem:[%s35143_s27 + $0x4250] sm:$0xff]  }
 0x847   : > { %32232 = vmatprep.subr.bf16.mxu1 %v34779_v56  ;;  %v34821_v56 = vld [vmem:[%s35143_s27 + $0x4290] sm:$0xff]  }
 0x849   : > { %32211 = vmatpush3.bf16.msra.mxu0 %v34778_v55  ;;  %v34820_v55 = vld [vmem:[%s35143_s27 + $0x42d0] sm:$0xff]  }
 0x84a   : > { %32212 = vmatprep.subr.bf16.mxu0 %v34781_v58  ;;  %32233 = vmatpush3.bf16.msra.mxu1 %v34780_v57  ;;  %v34822_v57 = vld [vmem:[%s35143_s27 + $0x4248] sm:$0xff]  }
 0x84b   : > { %32234 = vmatprep.subr.bf16.mxu1 %v34783_v60  ;;  %v34823_v58 = vld [vmem:[%s35143_s27 + $0x4208] sm:$0xff]  }
 0x84c   : > { %v34825_v60 = vld [vmem:[%s35143_s27 + $0x4288] sm:$0xff]  }
 0x84d   : > { %32213 = vmatpush3.bf16.msra.mxu0 %v34782_v59  ;;  %v34824_v59 = vld [vmem:[%s35143_s27 + $0x42c8] sm:$0xff]  }
 0x84e   : > { %32214 = vmatprep.subr.bf16.mxu0 %v34785_v62  ;;  %32235 = vmatpush3.bf16.msra.mxu1 %v34784_v61  ;;  %v34826_v61 = vld [vmem:[%s35143_s27 + $0x4240] sm:$0xff]  }
 0x84f   : > { %32236 = vmatprep.subr.bf16.mxu1 %v34787_v0  ;;  %v34827_v62 = vld [vmem:[%s35143_s27 + $0x4200] sm:$0xff]   ;;  %v279_v0 = vld [vmem:[%s35138_s23 + $0x210] sm:$0xff] }
 0x851   : > { %32215 = vmatpush3.bf16.msra.mxu0 %v34786_v63  ;;  %v34828_v63 = vld [vmem:[%s35143_s27 + $0x42c0] sm:$0xff]  }
 0x852   : > { %32216 = vmatprep.subr.bf16.mxu0 %v34789_v2  ;;  %32237 = vmatpush3.bf16.msra.mxu1 %v34788_v1  ;;  %v1490_v1 = vrot.slane %v279_v0, %v35187_v42  ;;  %v34829_v2 = vld [vmem:[%s35143_s27 + $0x4280] sm:$0xff]  }
 0x853   : > { %32238 = vmatprep.subr.bf16.mxu1 %v34791_v4  ;;  %v34830_v4 = vld [vmem:[%s35143_s27 + $0x4378] sm:$0xff]  }
 0x855   : > { %32217 = vmatpush3.bf16.msra.mxu0 %v34790_v3  ;;  %v1483_v3 = vcombine.high %v279_v0, %v279_v0  ;;  %v34866_v0 = vld [vmem:[%s35143_s27 + $0x44f8] sm:$0xff]  }
 0x856   : > { %32218 = vmatprep.subr.bf16.mxu0 %v34793_v6  ;;  %32239 = vmatpush3.bf16.msra.mxu1 %v34792_v5  ;;  %v1498_v5 = vcombine.high %v1490_v1, %v1490_v1 }
 0x857   : > { %32240 = vmatprep.subr.bf16.mxu1 %v34795_v8  ;;  %v1497_v6 = vrot.slane %v1483_v3, %v35187_v42  ;;  %v2168_v8 = vpack.c.bf16 %v1490_v1, %v1490_v1  ;;  %v34867_v3 = vld [vmem:[%s35143_s27 + $0x44b8] sm:$0xff]  }
 0x858   : > { %v2169_v10 = vpack.c.bf16 %v1498_v5, %v1498_v5 }
 0x859   : > { %32219 = vmatpush3.bf16.msra.mxu0 %v34794_v7  ;;  %v34832_v7 = vld [vmem:[%s35143_s27 + $0x4338] sm:$0xff]   ;;  %v2170_v14 = vpack.c.bf16 %v1497_v6, %v1497_v6 }
 0x85a   : > { %32248 = vmatprep.subr.bf16.mxu0 %v34797_v13  ;;  %32241 = vmatpush3.bf16.msra.mxu1 %v34796_v11  ;;  %v1499_v11 = vcombine.high %v1497_v6, %v1497_v6  ;;  %v34868_v6 = vld [vmem:[%s35143_s27 + $0x4470] sm:$0xff]  }
 0x85b   : > { %32270 = vmatprep.subr.bf16.mxu1 %v34800_v18 }
 0x85c   : > { %v31956_v22 = vpop.f32.mrf.mxu0  ;;  %26248 = vmatmul.mubr.bf16.vlgmr.msra.gmra.mxu0 %v2164_v17  ;;  %v34836_v17 = vld [vmem:[%s35143_s27 + $0x4330] sm:$0xff]  }
 0x85d   : > { %v31978_v28 = vpop.f32.mrf.mxu1  ;;  %32249 = vmatpush3.bf16.msra.mxu0 %v34799_v16  ;;  %26288 = vmatmul.mubr.bf16.vlgmr.msra.gmra.mxu1 %v2166_v23  ;;  %v2171_v16 = vpack.c.bf16 %v1499_v11, %v1499_v11  ;;  %v34870_v11 = vld [vmem:[%s35143_s27 + $0x44f0] sm:$0xff]  }
 0x85e   : > { %v31957_v27 = vpop.f32.mrf.mxu0  ;;  %32250 = vmatprep.subr.bf16.mxu0 %v34802_v24  ;;  %32271 = vmatpush3.bf16.msra.mxu1 %v34801_v21 }
 0x85f   : > { %v31958_v30 = vadd.f32 %v31957_v27, %v31956_v22  ;;  %v31979_v33 = vpop.f32.mrf.mxu1  ;;  %32272 = vmatprep.subr.bf16.mxu1 %v34804_v29  ;;  %26327 = vmatprep.mubr.bf16.mxu0 %v2169_v10  ;;  %v34838_v22 = vld [vmem:[%s35143_s27 + $0x43b0] sm:$0xff]  }
 0x860   : > { %v31959_v32 = vpop.f32.mrf.mxu0  ;;  %v31980_v36 = vadd.f32 %v31979_v33, %v31978_v28  ;;  %26367 = vmatprep.mubr.bf16.mxu1 %v2171_v16  ;;  %v34840_v28 = vld [vmem:[%s35143_s27 + $0x4328] sm:$0xff]  }
 0x861   : > { %v25770_v35 = vadd.f32 %v31958_v30, %v37614_v51  ;;  %v31981_v40 = vpop.f32.mrf.mxu1  ;;  %32251 = vmatpush3.bf16.msra.mxu0 %v34803_v26  ;;  %v34816_v51 = vld [vmem:[%s35143_s27 + $0x42d8] sm:$0xff]   ;;  %v34841_v30 = vld [vmem:[%s35143_s27 + $0x43e8] sm:$0xff]  }
 0x862   : > { %v31960_v38 = vpop.f32.mrf.mxu0  ;;  %32252 = vmatprep.subr.bf16.mxu0 %v34806_v34  ;;  %32273 = vmatpush3.bf16.msra.mxu1 %v34805_v31  ;;  %v34842_v33 = vld [vmem:[%s35143_s27 + $0x43a8] sm:$0xff]   ;;  %v34843_v34 = vld [vmem:[%s35143_s27 + $0x4360] sm:$0xff]   ;;  %v34848_v40 = vld [vmem:[%s35143_s27 + $0x4318] sm:$0xff]  }
 0x863   : > { %v37652_v41 = vadd.f32 %v31980_v36, %v25770_v35  ;;  %v31982_v45 = vpop.f32.mrf.mxu1  ;;  %32274 = vmatprep.subr.bf16.mxu1 %v34808_v39  ;;  %v34844_v36 = vld [vmem:[%s35143_s27 + $0x4320] sm:$0xff]   ;;  %v34847_v39 = vld [vmem:[%s35143_s27 + $0x4358] sm:$0xff]   ;;  %v34872_v16 = vld [vmem:[%s35143_s27 + $0x4468] sm:$0xff]  }
 0x864   : > { %v34846_v38 = vld [vmem:[%s35143_s27 + $0x43a0] sm:$0xff]   ;;  %v34852_v45 = vld [vmem:[%s35143_s27 + $0x4310] sm:$0xff]  }
 0x865   : > { %32253 = vmatpush3.bf16.msra.mxu0 %v34807_v37  ;;  %v34845_v37 = vld [vmem:[%s35143_s27 + $0x43e0] sm:$0xff]  }
 0x866   : > { %32254 = vmatprep.subr.bf16.mxu0 %v34810_v44  ;;  %32275 = vmatpush3.bf16.msra.mxu1 %v34809_v43  ;;  %v34850_v43 = vld [vmem:[%s35143_s27 + $0x4398] sm:$0xff]   ;;  %v34851_v44 = vld [vmem:[%s35143_s27 + $0x4350] sm:$0xff]  }
 0x867   : > { %32276 = vmatprep.subr.bf16.mxu1 %v34812_v47  ;;  %v34854_v47 = vld [vmem:[%s35143_s27 + $0x4390] sm:$0xff]  }
 0x869   : > { %32255 = vmatpush3.bf16.msra.mxu0 %v34811_v46  ;;  %v34853_v46 = vld [vmem:[%s35143_s27 + $0x43d0] sm:$0xff]  }
 0x86a   : > { %32256 = vmatprep.subr.bf16.mxu0 %v34814_v49  ;;  %32277 = vmatpush3.bf16.msra.mxu1 %v34813_v48  ;;  %v34855_v48 = vld [vmem:[%s35143_s27 + $0x4348] sm:$0xff]  }
 0x86b   : > { %32278 = vmatprep.subr.bf16.mxu1 %v34816_v51  ;;  %v34856_v49 = vld [vmem:[%s35143_s27 + $0x4308] sm:$0xff]  }
 0x86c   : > { %v34858_v51 = vld [vmem:[%s35143_s27 + $0x4388] sm:$0xff]  }
 0x86d   : > { %32257 = vmatpush3.bf16.msra.mxu0 %v34815_v50  ;;  %v34857_v50 = vld [vmem:[%s35143_s27 + $0x43c8] sm:$0xff]  }
 0x86e   : > { %32258 = vmatprep.subr.bf16.mxu0 %v34818_v53  ;;  %32279 = vmatpush3.bf16.msra.mxu1 %v34817_v52  ;;  %v34859_v52 = vld [vmem:[%s35143_s27 + $0x4340] sm:$0xff]  }
 0x86f   : > { %32280 = vmatprep.subr.bf16.mxu1 %v34820_v55  ;;  %v34860_v53 = vld [vmem:[%s35143_s27 + $0x4300] sm:$0xff]   ;;  %v280_v55 = vld [vmem:[%s35138_s23 + $0x218] sm:$0xff] }
 0x871   : > { %32259 = vmatpush3.bf16.msra.mxu0 %v34819_v54  ;;  %v34861_v54 = vld [vmem:[%s35143_s27 + $0x43c0] sm:$0xff]  }
 0x872   : > { %32260 = vmatprep.subr.bf16.mxu0 %v34822_v57  ;;  %32281 = vmatpush3.bf16.msra.mxu1 %v34821_v56  ;;  %v1507_v56 = vrot.slane %v280_v55, %v35187_v42  ;;  %v34862_v57 = vld [vmem:[%s35143_s27 + $0x4380] sm:$0xff]  }
 0x873   : > { %32282 = vmatprep.subr.bf16.mxu1 %v34824_v59  ;;  %v34863_v59 = vld [vmem:[%s35143_s27 + $0x4478] sm:$0xff]  }
 0x875   : > { %32261 = vmatpush3.bf16.msra.mxu0 %v34823_v58  ;;  %v1500_v58 = vcombine.high %v280_v55, %v280_v55  ;;  %v34899_v55 = vld [vmem:[%s35143_s27 + $0x45f8] sm:$0xff]  }
 0x876   : > { %32262 = vmatprep.subr.bf16.mxu0 %v34826_v61  ;;  %32283 = vmatpush3.bf16.msra.mxu1 %v34825_v60  ;;  %v1515_v60 = vcombine.high %v1507_v56, %v1507_v56 }
 0x877   : > { %32284 = vmatprep.subr.bf16.mxu1 %v34828_v63  ;;  %v1514_v61 = vrot.slane %v1500_v58, %v35187_v42  ;;  %v2172_v63 = vpack.c.bf16 %v1507_v56, %v1507_v56  ;;  %v34900_v58 = vld [vmem:[%s35143_s27 + $0x45b8] sm:$0xff]  }
 0x878   : > { %v2173_v1 = vpack.c.bf16 %v1515_v60, %v1515_v60 }
 0x879   : > { %32263 = vmatpush3.bf16.msra.mxu0 %v34827_v62  ;;  %v34865_v62 = vld [vmem:[%s35143_s27 + $0x4438] sm:$0xff]   ;;  %v2174_v5 = vpack.c.bf16 %v1514_v61, %v1514_v61 }
 0x87a   : > { %32292 = vmatprep.subr.bf16.mxu0 %v34830_v4  ;;  %32285 = vmatpush3.bf16.msra.mxu1 %v34829_v2  ;;  %v1516_v2 = vcombine.high %v1514_v61, %v1514_v61  ;;  %v34901_v61 = vld [vmem:[%s35143_s27 + $0x4570] sm:$0xff]  }
 0x87b   : > { %32314 = vmatprep.subr.bf16.mxu1 %v34833_v9 }
 0x87c   : > { %v32000_v13 = vpop.f32.mrf.mxu0  ;;  %26328 = vmatmul.mubr.bf16.vlgmr.msra.gmra.mxu0 %v2168_v8  ;;  %v34869_v8 = vld [vmem:[%s35143_s27 + $0x4430] sm:$0xff]  }
 0x87d   : > { %v32022_v19 = vpop.f32.mrf.mxu1  ;;  %32293 = vmatpush3.bf16.msra.mxu0 %v34832_v7  ;;  %26368 = vmatmul.mubr.bf16.vlgmr.msra.gmra.mxu1 %v2170_v14  ;;  %v2175_v7 = vpack.c.bf16 %v1516_v2, %v1516_v2  ;;  %v34903_v2 = vld [vmem:[%s35143_s27 + $0x45f0] sm:$0xff]  }
 0x87e   : > { %v32001_v18 = vpop.f32.mrf.mxu0  ;;  %32294 = vmatprep.subr.bf16.mxu0 %v34835_v15  ;;  %32315 = vmatpush3.bf16.msra.mxu1 %v34834_v12 }
 0x87f   : > { %v32002_v21 = vadd.f32 %v32001_v18, %v32000_v13  ;;  %v32023_v24 = vpop.f32.mrf.mxu1  ;;  %32316 = vmatprep.subr.bf16.mxu1 %v34837_v20  ;;  %26407 = vmatprep.mubr.bf16.mxu0 %v2173_v1  ;;  %v34871_v13 = vld [vmem:[%s35143_s27 + $0x44b0] sm:$0xff]  }
 0x880   : > { %v32003_v23 = vpop.f32.mrf.mxu0  ;;  %v32024_v27 = vadd.f32 %v32023_v24, %v32022_v19  ;;  %26447 = vmatprep.mubr.bf16.mxu1 %v2175_v7  ;;  %v34873_v19 = vld [vmem:[%s35143_s27 + $0x4428] sm:$0xff]  }
 0x881   : > { %v25850_v26 = vadd.f32 %v32002_v21, %v37652_v41  ;;  %v32025_v31 = vpop.f32.mrf.mxu1  ;;  %32295 = vmatpush3.bf16.msra.mxu0 %v34836_v17  ;;  %v34849_v41 = vld [vmem:[%s35143_s27 + $0x43d8] sm:$0xff]   ;;  %v34874_v21 = vld [vmem:[%s35143_s27 + $0x44e8] sm:$0xff]  }
 0x882   : > { %v32004_v29 = vpop.f32.mrf.mxu0  ;;  %32296 = vmatprep.subr.bf16.mxu0 %v34839_v25  ;;  %32317 = vmatpush3.bf16.msra.mxu1 %v34838_v22  ;;  %v34875_v24 = vld [vmem:[%s35143_s27 + $0x44a8] sm:$0xff]   ;;  %v34876_v25 = vld [vmem:[%s35143_s27 + $0x4460] sm:$0xff]   ;;  %v34881_v31 = vld [vmem:[%s35143_s27 + $0x4418] sm:$0xff]  }
 0x883   : > { %v37690_v32 = vadd.f32 %v32024_v27, %v25850_v26  ;;  %v32026_v35 = vpop.f32.mrf.mxu1  ;;  %32318 = vmatprep.subr.bf16.mxu1 %v34841_v30  ;;  %v34877_v27 = vld [vmem:[%s35143_s27 + $0x4420] sm:$0xff]   ;;  %v34880_v30 = vld [vmem:[%s35143_s27 + $0x4458] sm:$0xff]   ;;  %v34905_v7 = vld [vmem:[%s35143_s27 + $0x4568] sm:$0xff]  }
 0x884   : > { %v34879_v29 = vld [vmem:[%s35143_s27 + $0x44a0] sm:$0xff]   ;;  %v34885_v35 = vld [vmem:[%s35143_s27 + $0x4410] sm:$0xff]  }
 0x885   : > { %32297 = vmatpush3.bf16.msra.mxu0 %v34840_v28  ;;  %v34878_v28 = vld [vmem:[%s35143_s27 + $0x44e0] sm:$0xff]  }
 0x886   : > { %32298 = vmatprep.subr.bf16.mxu0 %v34843_v34  ;;  %32319 = vmatpush3.bf16.msra.mxu1 %v34842_v33  ;;  %v34883_v33 = vld [vmem:[%s35143_s27 + $0x4498] sm:$0xff]   ;;  %v34884_v34 = vld [vmem:[%s35143_s27 + $0x4450] sm:$0xff]  }
 0x887   : > { %32320 = vmatprep.subr.bf16.mxu1 %v34845_v37  ;;  %v34887_v37 = vld [vmem:[%s35143_s27 + $0x4490] sm:$0xff]  }
 0x889   : > { %32299 = vmatpush3.bf16.msra.mxu0 %v34844_v36  ;;  %v34886_v36 = vld [vmem:[%s35143_s27 + $0x44d0] sm:$0xff]  }
 0x88a   : > { %32300 = vmatprep.subr.bf16.mxu0 %v34847_v39  ;;  %32321 = vmatpush3.bf16.msra.mxu1 %v34846_v38  ;;  %v34888_v38 = vld [vmem:[%s35143_s27 + $0x4448] sm:$0xff]  }
 0x88b   : > { %32322 = vmatprep.subr.bf16.mxu1 %v34849_v41  ;;  %v34889_v39 = vld [vmem:[%s35143_s27 + $0x4408] sm:$0xff]  }
 0x88c   : > { %v34891_v41 = vld [vmem:[%s35143_s27 + $0x4488] sm:$0xff]  }
 0x88d   : > { %32301 = vmatpush3.bf16.msra.mxu0 %v34848_v40  ;;  %v34890_v40 = vld [vmem:[%s35143_s27 + $0x44c8] sm:$0xff]  }
 0x88e   : > { %32302 = vmatprep.subr.bf16.mxu0 %v34851_v44  ;;  %32323 = vmatpush3.bf16.msra.mxu1 %v34850_v43  ;;  %v34892_v43 = vld [vmem:[%s35143_s27 + $0x4440] sm:$0xff]  }
 0x88f   : > { %32324 = vmatprep.subr.bf16.mxu1 %v34853_v46  ;;  %v34893_v44 = vld [vmem:[%s35143_s27 + $0x4400] sm:$0xff]  }
 0x890   : > { %v281_v46 = vld [vmem:[%s35138_s23 + $0x220] sm:$0xff] }
 0x891   : > { %32303 = vmatpush3.bf16.msra.mxu0 %v34852_v45  ;;  %v34894_v45 = vld [vmem:[%s35143_s27 + $0x44c0] sm:$0xff]  }
 0x892   : > { %32304 = vmatprep.subr.bf16.mxu0 %v34855_v48  ;;  %32325 = vmatpush3.bf16.msra.mxu1 %v34854_v47  ;;  %v1524_v47 = vrot.slane %v281_v46, %v35187_v42  ;;  %v34895_v48 = vld [vmem:[%s35143_s27 + $0x4480] sm:$0xff]  }
 0x893   : > { %32326 = vmatprep.subr.bf16.mxu1 %v34857_v50  ;;  %v34896_v50 = vld [vmem:[%s35143_s27 + $0x4578] sm:$0xff]  }
 0x895   : > { %32305 = vmatpush3.bf16.msra.mxu0 %v34856_v49  ;;  %v1517_v49 = vcombine.high %v281_v46, %v281_v46  ;;  %v34932_v46 = vld [vmem:[%s35143_s27 + $0x46f8] sm:$0xff]  }
 0x896   : > { %32306 = vmatprep.subr.bf16.mxu0 %v34859_v52  ;;  %32327 = vmatpush3.bf16.msra.mxu1 %v34858_v51  ;;  %v1532_v51 = vcombine.high %v1524_v47, %v1524_v47 }
 0x897   : > { %32328 = vmatprep.subr.bf16.mxu1 %v34861_v54  ;;  %v1531_v52 = vrot.slane %v1517_v49, %v35187_v42  ;;  %v2176_v54 = vpack.c.bf16 %v1524_v47, %v1524_v47  ;;  %v34933_v49 = vld [vmem:[%s35143_s27 + $0x46b8] sm:$0xff]  }
 0x898   : > { %v2177_v56 = vpack.c.bf16 %v1532_v51, %v1532_v51 }
 0x899   : > { %32307 = vmatpush3.bf16.msra.mxu0 %v34860_v53  ;;  %v34898_v53 = vld [vmem:[%s35143_s27 + $0x4538] sm:$0xff]   ;;  %v2178_v60 = vpack.c.bf16 %v1531_v52, %v1531_v52 }
 0x89a   : > { %32336 = vmatprep.subr.bf16.mxu0 %v34863_v59  ;;  %32329 = vmatpush3.bf16.msra.mxu1 %v34862_v57  ;;  %v1533_v57 = vcombine.high %v1531_v52, %v1531_v52  ;;  %v34934_v52 = vld [vmem:[%s35143_s27 + $0x4670] sm:$0xff]  }
 0x89b   : > { %32358 = vmatprep.subr.bf16.mxu1 %v34866_v0 }
 0x89c   : > { %v32044_v4 = vpop.f32.mrf.mxu0  ;;  %26408 = vmatmul.mubr.bf16.vlgmr.msra.gmra.mxu0 %v2172_v63  ;;  %v34902_v63 = vld [vmem:[%s35143_s27 + $0x4530] sm:$0xff]  }
 0x89d   : > { %v32066_v10 = vpop.f32.mrf.mxu1  ;;  %32337 = vmatpush3.bf16.msra.mxu0 %v34865_v62  ;;  %26448 = vmatmul.mubr.bf16.vlgmr.msra.gmra.mxu1 %v2174_v5  ;;  %v2179_v62 = vpack.c.bf16 %v1533_v57, %v1533_v57  ;;  %v34936_v57 = vld [vmem:[%s35143_s27 + $0x46f0] sm:$0xff]  }
 0x89e   : > { %v32045_v9 = vpop.f32.mrf.mxu0  ;;  %32338 = vmatprep.subr.bf16.mxu0 %v34868_v6  ;;  %32359 = vmatpush3.bf16.msra.mxu1 %v34867_v3 }
 0x89f   : > { %v32046_v12 = vadd.f32 %v32045_v9, %v32044_v4  ;;  %v32067_v15 = vpop.f32.mrf.mxu1  ;;  %32360 = vmatprep.subr.bf16.mxu1 %v34870_v11  ;;  %26487 = vmatprep.mubr.bf16.mxu0 %v2177_v56  ;;  %v34904_v4 = vld [vmem:[%s35143_s27 + $0x45b0] sm:$0xff]  }
 0x8a0   : > { %v32047_v14 = vpop.f32.mrf.mxu0  ;;  %v32068_v18 = vadd.f32 %v32067_v15, %v32066_v10  ;;  %26527 = vmatprep.mubr.bf16.mxu1 %v2179_v62  ;;  %v34906_v10 = vld [vmem:[%s35143_s27 + $0x4528] sm:$0xff]  }
 0x8a1   : > { %v25930_v17 = vadd.f32 %v32046_v12, %v37690_v32  ;;  %v32069_v22 = vpop.f32.mrf.mxu1  ;;  %32339 = vmatpush3.bf16.msra.mxu0 %v34869_v8  ;;  %v34882_v32 = vld [vmem:[%s35143_s27 + $0x44d8] sm:$0xff]   ;;  %v34907_v12 = vld [vmem:[%s35143_s27 + $0x45e8] sm:$0xff]  }
 0x8a2   : > { %v32048_v20 = vpop.f32.mrf.mxu0  ;;  %32340 = vmatprep.subr.bf16.mxu0 %v34872_v16  ;;  %32361 = vmatpush3.bf16.msra.mxu1 %v34871_v13  ;;  %v34908_v15 = vld [vmem:[%s35143_s27 + $0x45a8] sm:$0xff]   ;;  %v34909_v16 = vld [vmem:[%s35143_s27 + $0x4560] sm:$0xff]   ;;  %v34914_v22 = vld [vmem:[%s35143_s27 + $0x4518] sm:$0xff]  }
 0x8a3   : > { %v37728_v23 = vadd.f32 %v32068_v18, %v25930_v17  ;;  %v32070_v26 = vpop.f32.mrf.mxu1  ;;  %32362 = vmatprep.subr.bf16.mxu1 %v34874_v21  ;;  %v34910_v18 = vld [vmem:[%s35143_s27 + $0x4520] sm:$0xff]   ;;  %v34913_v21 = vld [vmem:[%s35143_s27 + $0x4558] sm:$0xff]   ;;  %v34938_v62 = vld [vmem:[%s35143_s27 + $0x4668] sm:$0xff]  }
 0x8a4   : > { %v34912_v20 = vld [vmem:[%s35143_s27 + $0x45a0] sm:$0xff]   ;;  %v34918_v26 = vld [vmem:[%s35143_s27 + $0x4510] sm:$0xff]  }
 0x8a5   : > { %32341 = vmatpush3.bf16.msra.mxu0 %v34873_v19  ;;  %v34911_v19 = vld [vmem:[%s35143_s27 + $0x45e0] sm:$0xff]  }
 0x8a6   : > { %32342 = vmatprep.subr.bf16.mxu0 %v34876_v25  ;;  %32363 = vmatpush3.bf16.msra.mxu1 %v34875_v24  ;;  %v34916_v24 = vld [vmem:[%s35143_s27 + $0x4598] sm:$0xff]   ;;  %v34917_v25 = vld [vmem:[%s35143_s27 + $0x4550] sm:$0xff]  }
 0x8a7   : > { %32364 = vmatprep.subr.bf16.mxu1 %v34878_v28  ;;  %v34920_v28 = vld [vmem:[%s35143_s27 + $0x4590] sm:$0xff]  }
 0x8a9   : > { %32343 = vmatpush3.bf16.msra.mxu0 %v34877_v27  ;;  %v34919_v27 = vld [vmem:[%s35143_s27 + $0x45d0] sm:$0xff]  }
 0x8aa   : > { %32344 = vmatprep.subr.bf16.mxu0 %v34880_v30  ;;  %32365 = vmatpush3.bf16.msra.mxu1 %v34879_v29  ;;  %v34921_v29 = vld [vmem:[%s35143_s27 + $0x4548] sm:$0xff]  }
 0x8ab   : > { %32366 = vmatprep.subr.bf16.mxu1 %v34882_v32  ;;  %v34922_v30 = vld [vmem:[%s35143_s27 + $0x4508] sm:$0xff]  }
 0x8ac   : > { %v34924_v32 = vld [vmem:[%s35143_s27 + $0x4588] sm:$0xff]  }
 0x8ad   : > { %32345 = vmatpush3.bf16.msra.mxu0 %v34881_v31  ;;  %v34923_v31 = vld [vmem:[%s35143_s27 + $0x45c8] sm:$0xff]  }
 0x8ae   : > { %32346 = vmatprep.subr.bf16.mxu0 %v34884_v34  ;;  %32367 = vmatpush3.bf16.msra.mxu1 %v34883_v33  ;;  %v34925_v33 = vld [vmem:[%s35143_s27 + $0x4540] sm:$0xff]  }
 0x8af   : > { %32368 = vmatprep.subr.bf16.mxu1 %v34886_v36  ;;  %v34926_v34 = vld [vmem:[%s35143_s27 + $0x4500] sm:$0xff]   ;;  %v282_v36 = vld [vmem:[%s35138_s23 + $0x228] sm:$0xff] }
 0x8b1   : > { %32347 = vmatpush3.bf16.msra.mxu0 %v34885_v35  ;;  %v34927_v35 = vld [vmem:[%s35143_s27 + $0x45c0] sm:$0xff]  }
 0x8b2   : > { %32348 = vmatprep.subr.bf16.mxu0 %v34888_v38  ;;  %32369 = vmatpush3.bf16.msra.mxu1 %v34887_v37  ;;  %v1541_v37 = vrot.slane %v282_v36, %v35187_v42  ;;  %v34928_v38 = vld [vmem:[%s35143_s27 + $0x4580] sm:$0xff]  }
 0x8b3   : > { %32370 = vmatprep.subr.bf16.mxu1 %v34890_v40  ;;  %v34929_v40 = vld [vmem:[%s35143_s27 + $0x4678] sm:$0xff]  }
 0x8b5   : > { %32349 = vmatpush3.bf16.msra.mxu0 %v34889_v39  ;;  %v1534_v39 = vcombine.high %v282_v36, %v282_v36  ;;  %v34965_v36 = vld [vmem:[%s35143_s27 + $0x47f8] sm:$0xff]  }
 0x8b6   : > { %32350 = vmatprep.subr.bf16.mxu0 %v34892_v43  ;;  %32371 = vmatpush3.bf16.msra.mxu1 %v34891_v41  ;;  %v1549_v41 = vcombine.high %v1541_v37, %v1541_v37 }
 0x8b7   : > { %32372 = vmatprep.subr.bf16.mxu1 %v34894_v45  ;;  %v1548_v43 = vrot.slane %v1534_v39, %v35187_v42  ;;  %v2180_v45 = vpack.c.bf16 %v1541_v37, %v1541_v37  ;;  %v34966_v39 = vld [vmem:[%s35143_s27 + $0x47b8] sm:$0xff]  }
 0x8b8   : > { %v2181_v47 = vpack.c.bf16 %v1549_v41, %v1549_v41 }
 0x8b9   : > { %32351 = vmatpush3.bf16.msra.mxu0 %v34893_v44  ;;  %v34931_v44 = vld [vmem:[%s35143_s27 + $0x4638] sm:$0xff]   ;;  %v2182_v51 = vpack.c.bf16 %v1548_v43, %v1548_v43 }
 0x8ba   : > { %32380 = vmatprep.subr.bf16.mxu0 %v34896_v50  ;;  %32373 = vmatpush3.bf16.msra.mxu1 %v34895_v48  ;;  %v1550_v48 = vcombine.high %v1548_v43, %v1548_v43  ;;  %v34967_v43 = vld [vmem:[%s35143_s27 + $0x4770] sm:$0xff]  }
 0x8bb   : > { %32402 = vmatprep.subr.bf16.mxu1 %v34899_v55 }
 0x8bc   : > { %v32088_v59 = vpop.f32.mrf.mxu0  ;;  %26488 = vmatmul.mubr.bf16.vlgmr.msra.gmra.mxu0 %v2176_v54  ;;  %v34935_v54 = vld [vmem:[%s35143_s27 + $0x4630] sm:$0xff]  }
 0x8bd   : > { %v32110_v1 = vpop.f32.mrf.mxu1  ;;  %32381 = vmatpush3.bf16.msra.mxu0 %v34898_v53  ;;  %26528 = vmatmul.mubr.bf16.vlgmr.msra.gmra.mxu1 %v2178_v60  ;;  %v2183_v53 = vpack.c.bf16 %v1550_v48, %v1550_v48  ;;  %v34969_v48 = vld [vmem:[%s35143_s27 + $0x47f0] sm:$0xff]  }
 0x8be   : > { %v32089_v0 = vpop.f32.mrf.mxu0  ;;  %32382 = vmatprep.subr.bf16.mxu0 %v34901_v61  ;;  %32403 = vmatpush3.bf16.msra.mxu1 %v34900_v58 }
 0x8bf   : > { %v32090_v3 = vadd.f32 %v32089_v0, %v32088_v59  ;;  %v32111_v6 = vpop.f32.mrf.mxu1  ;;  %32404 = vmatprep.subr.bf16.mxu1 %v34903_v2  ;;  %26567 = vmatprep.mubr.bf16.mxu0 %v2181_v47  ;;  %v34937_v59 = vld [vmem:[%s35143_s27 + $0x46b0] sm:$0xff]  }
 0x8c0   : > { %v32091_v5 = vpop.f32.mrf.mxu0  ;;  %v32112_v9 = vadd.f32 %v32111_v6, %v32110_v1  ;;  %26607 = vmatprep.mubr.bf16.mxu1 %v2183_v53  ;;  %v34939_v1 = vld [vmem:[%s35143_s27 + $0x4628] sm:$0xff]  }
 0x8c1   : > { %v26010_v8 = vadd.f32 %v32090_v3, %v37728_v23  ;;  %v32113_v13 = vpop.f32.mrf.mxu1  ;;  %32383 = vmatpush3.bf16.msra.mxu0 %v34902_v63  ;;  %v34915_v23 = vld [vmem:[%s35143_s27 + $0x45d8] sm:$0xff]   ;;  %v34940_v3 = vld [vmem:[%s35143_s27 + $0x46e8] sm:$0xff]  }
 0x8c2   : > { %v32092_v11 = vpop.f32.mrf.mxu0  ;;  %32384 = vmatprep.subr.bf16.mxu0 %v34905_v7  ;;  %32405 = vmatpush3.bf16.msra.mxu1 %v34904_v4  ;;  %v34941_v6 = vld [vmem:[%s35143_s27 + $0x46a8] sm:$0xff]   ;;  %v34942_v7 = vld [vmem:[%s35143_s27 + $0x4660] sm:$0xff]   ;;  %v34947_v13 = vld [vmem:[%s35143_s27 + $0x4618] sm:$0xff]  }
 0x8c3   : > { %v37766_v14 = vadd.f32 %v32112_v9, %v26010_v8  ;;  %v32114_v17 = vpop.f32.mrf.mxu1  ;;  %32406 = vmatprep.subr.bf16.mxu1 %v34907_v12  ;;  %v34943_v9 = vld [vmem:[%s35143_s27 + $0x4620] sm:$0xff]   ;;  %v34946_v12 = vld [vmem:[%s35143_s27 + $0x4658] sm:$0xff]   ;;  %v34971_v53 = vld [vmem:[%s35143_s27 + $0x4768] sm:$0xff]  }
 0x8c4   : > { %v34945_v11 = vld [vmem:[%s35143_s27 + $0x46a0] sm:$0xff]   ;;  %v34951_v17 = vld [vmem:[%s35143_s27 + $0x4610] sm:$0xff]  }
 0x8c5   : > { %32385 = vmatpush3.bf16.msra.mxu0 %v34906_v10  ;;  %v34944_v10 = vld [vmem:[%s35143_s27 + $0x46e0] sm:$0xff]  }
 0x8c6   : > { %32386 = vmatprep.subr.bf16.mxu0 %v34909_v16  ;;  %32407 = vmatpush3.bf16.msra.mxu1 %v34908_v15  ;;  %v34949_v15 = vld [vmem:[%s35143_s27 + $0x4698] sm:$0xff]   ;;  %v34950_v16 = vld [vmem:[%s35143_s27 + $0x4650] sm:$0xff]  }
 0x8c7   : > { %32408 = vmatprep.subr.bf16.mxu1 %v34911_v19  ;;  %v34953_v19 = vld [vmem:[%s35143_s27 + $0x4690] sm:$0xff]  }
 0x8c9   : > { %32387 = vmatpush3.bf16.msra.mxu0 %v34910_v18  ;;  %v34952_v18 = vld [vmem:[%s35143_s27 + $0x46d0] sm:$0xff]  }
 0x8ca   : > { %32388 = vmatprep.subr.bf16.mxu0 %v34913_v21  ;;  %32409 = vmatpush3.bf16.msra.mxu1 %v34912_v20  ;;  %v34954_v20 = vld [vmem:[%s35143_s27 + $0x4648] sm:$0xff]  }
 0x8cb   : > { %32410 = vmatprep.subr.bf16.mxu1 %v34915_v23  ;;  %v34955_v21 = vld [vmem:[%s35143_s27 + $0x4608] sm:$0xff]  }
 0x8cc   : > { %v34957_v23 = vld [vmem:[%s35143_s27 + $0x4688] sm:$0xff]  }
 0x8cd   : > { %32389 = vmatpush3.bf16.msra.mxu0 %v34914_v22  ;;  %v34956_v22 = vld [vmem:[%s35143_s27 + $0x46c8] sm:$0xff]  }
 0x8ce   : > { %32390 = vmatprep.subr.bf16.mxu0 %v34917_v25  ;;  %32411 = vmatpush3.bf16.msra.mxu1 %v34916_v24  ;;  %v34958_v24 = vld [vmem:[%s35143_s27 + $0x4640] sm:$0xff]  }
 0x8cf   : > { %32412 = vmatprep.subr.bf16.mxu1 %v34919_v27  ;;  %v34959_v25 = vld [vmem:[%s35143_s27 + $0x4600] sm:$0xff]   ;;  %v283_v27 = vld [vmem:[%s35138_s23 + $0x230] sm:$0xff] }
 0x8d1   : > { %32391 = vmatpush3.bf16.msra.mxu0 %v34918_v26  ;;  %v34960_v26 = vld [vmem:[%s35143_s27 + $0x46c0] sm:$0xff]  }
 0x8d2   : > { %32392 = vmatprep.subr.bf16.mxu0 %v34921_v29  ;;  %32413 = vmatpush3.bf16.msra.mxu1 %v34920_v28  ;;  %v1558_v28 = vrot.slane %v283_v27, %v35187_v42  ;;  %v34961_v29 = vld [vmem:[%s35143_s27 + $0x4680] sm:$0xff]  }
 0x8d3   : > { %32414 = vmatprep.subr.bf16.mxu1 %v34923_v31  ;;  %v34962_v31 = vld [vmem:[%s35143_s27 + $0x4778] sm:$0xff]  }
 0x8d5   : > { %32393 = vmatpush3.bf16.msra.mxu0 %v34922_v30  ;;  %v1551_v30 = vcombine.high %v283_v27, %v283_v27  ;;  %v34998_v27 = vld [vmem:[%s35143_s27 + $0x48f8] sm:$0xff]  }
 0x8d6   : > { %32394 = vmatprep.subr.bf16.mxu0 %v34925_v33  ;;  %32415 = vmatpush3.bf16.msra.mxu1 %v34924_v32  ;;  %v1566_v32 = vcombine.high %v1558_v28, %v1558_v28 }
 0x8d7   : > { %32416 = vmatprep.subr.bf16.mxu1 %v34927_v35  ;;  %v1565_v33 = vrot.slane %v1551_v30, %v35187_v42  ;;  %v2184_v35 = vpack.c.bf16 %v1558_v28, %v1558_v28  ;;  %v34999_v30 = vld [vmem:[%s35143_s27 + $0x48b8] sm:$0xff]  }
 0x8d8   : > { %v2185_v37 = vpack.c.bf16 %v1566_v32, %v1566_v32 }
 0x8d9   : > { %32395 = vmatpush3.bf16.msra.mxu0 %v34926_v34  ;;  %v34964_v34 = vld [vmem:[%s35143_s27 + $0x4738] sm:$0xff]   ;;  %v2186_v41 = vpack.c.bf16 %v1565_v33, %v1565_v33 }
 0x8da   : > { %32424 = vmatprep.subr.bf16.mxu0 %v34929_v40  ;;  %32417 = vmatpush3.bf16.msra.mxu1 %v34928_v38  ;;  %v1567_v38 = vcombine.high %v1565_v33, %v1565_v33  ;;  %v35000_v33 = vld [vmem:[%s35143_s27 + $0x4870] sm:$0xff]  }
 0x8db   : > { %32446 = vmatprep.subr.bf16.mxu1 %v34932_v46 }
 0x8dc   : > { %v32132_v50 = vpop.f32.mrf.mxu0  ;;  %26568 = vmatmul.mubr.bf16.vlgmr.msra.gmra.mxu0 %v2180_v45  ;;  %v34968_v45 = vld [vmem:[%s35143_s27 + $0x4730] sm:$0xff]  }
 0x8dd   : > { %v32154_v56 = vpop.f32.mrf.mxu1  ;;  %32425 = vmatpush3.bf16.msra.mxu0 %v34931_v44  ;;  %26608 = vmatmul.mubr.bf16.vlgmr.msra.gmra.mxu1 %v2182_v51  ;;  %v2187_v44 = vpack.c.bf16 %v1567_v38, %v1567_v38  ;;  %v35002_v38 = vld [vmem:[%s35143_s27 + $0x48f0] sm:$0xff]  }
 0x8de   : > { %v32133_v55 = vpop.f32.mrf.mxu0  ;;  %32426 = vmatprep.subr.bf16.mxu0 %v34934_v52  ;;  %32447 = vmatpush3.bf16.msra.mxu1 %v34933_v49 }
 0x8df   : > { %v32134_v58 = vadd.f32 %v32133_v55, %v32132_v50  ;;  %v32155_v61 = vpop.f32.mrf.mxu1  ;;  %32448 = vmatprep.subr.bf16.mxu1 %v34936_v57  ;;  %26647 = vmatprep.mubr.bf16.mxu0 %v2185_v37  ;;  %v34970_v50 = vld [vmem:[%s35143_s27 + $0x47b0] sm:$0xff]  }
 0x8e0   : > { %v32135_v60 = vpop.f32.mrf.mxu0  ;;  %v32156_v0 = vadd.f32 %v32155_v61, %v32154_v56  ;;  %26687 = vmatprep.mubr.bf16.mxu1 %v2187_v44  ;;  %v34972_v56 = vld [vmem:[%s35143_s27 + $0x4728] sm:$0xff]  }
 0x8e1   : > { %v26090_v63 = vadd.f32 %v32134_v58, %v37766_v14  ;;  %v32157_v4 = vpop.f32.mrf.mxu1  ;;  %32427 = vmatpush3.bf16.msra.mxu0 %v34935_v54  ;;  %v34948_v14 = vld [vmem:[%s35143_s27 + $0x46d8] sm:$0xff]   ;;  %v34973_v58 = vld [vmem:[%s35143_s27 + $0x47e8] sm:$0xff]  }
 0x8e2   : > { %v32136_v2 = vpop.f32.mrf.mxu0  ;;  %32428 = vmatprep.subr.bf16.mxu0 %v34938_v62  ;;  %32449 = vmatpush3.bf16.msra.mxu1 %v34937_v59  ;;  %v34974_v61 = vld [vmem:[%s35143_s27 + $0x47a8] sm:$0xff]   ;;  %v34975_v62 = vld [vmem:[%s35143_s27 + $0x4760] sm:$0xff]   ;;  %v34980_v4 = vld [vmem:[%s35143_s27 + $0x4718] sm:$0xff]  }
 0x8e3   : > { %v37804_v5 = vadd.f32 %v32156_v0, %v26090_v63  ;;  %v32158_v8 = vpop.f32.mrf.mxu1  ;;  %32450 = vmatprep.subr.bf16.mxu1 %v34940_v3  ;;  %v34976_v0 = vld [vmem:[%s35143_s27 + $0x4720] sm:$0xff]   ;;  %v34979_v3 = vld [vmem:[%s35143_s27 + $0x4758] sm:$0xff]   ;;  %v35004_v44 = vld [vmem:[%s35143_s27 + $0x4868] sm:$0xff]  }
 0x8e4   : > { %v34978_v2 = vld [vmem:[%s35143_s27 + $0x47a0] sm:$0xff]   ;;  %v34984_v8 = vld [vmem:[%s35143_s27 + $0x4710] sm:$0xff]  }
 0x8e5   : > { %32429 = vmatpush3.bf16.msra.mxu0 %v34939_v1  ;;  %v34977_v1 = vld [vmem:[%s35143_s27 + $0x47e0] sm:$0xff]  }
 0x8e6   : > { %32430 = vmatprep.subr.bf16.mxu0 %v34942_v7  ;;  %32451 = vmatpush3.bf16.msra.mxu1 %v34941_v6  ;;  %v34982_v6 = vld [vmem:[%s35143_s27 + $0x4798] sm:$0xff]   ;;  %v34983_v7 = vld [vmem:[%s35143_s27 + $0x4750] sm:$0xff]  }
 0x8e7   : > { %32452 = vmatprep.subr.bf16.mxu1 %v34944_v10  ;;  %v34986_v10 = vld [vmem:[%s35143_s27 + $0x4790] sm:$0xff]  }
 0x8e9   : > { %32431 = vmatpush3.bf16.msra.mxu0 %v34943_v9  ;;  %v34985_v9 = vld [vmem:[%s35143_s27 + $0x47d0] sm:$0xff]  }
 0x8ea   : > { %32432 = vmatprep.subr.bf16.mxu0 %v34946_v12  ;;  %32453 = vmatpush3.bf16.msra.mxu1 %v34945_v11  ;;  %v34987_v11 = vld [vmem:[%s35143_s27 + $0x4748] sm:$0xff]  }
 0x8eb   : > { %32454 = vmatprep.subr.bf16.mxu1 %v34948_v14  ;;  %v34988_v12 = vld [vmem:[%s35143_s27 + $0x4708] sm:$0xff]  }
 0x8ec   : > { %v34990_v14 = vld [vmem:[%s35143_s27 + $0x4788] sm:$0xff]  }
 0x8ed   : > { %32433 = vmatpush3.bf16.msra.mxu0 %v34947_v13  ;;  %v34989_v13 = vld [vmem:[%s35143_s27 + $0x47c8] sm:$0xff]  }
 0x8ee   : > { %32434 = vmatprep.subr.bf16.mxu0 %v34950_v16  ;;  %32455 = vmatpush3.bf16.msra.mxu1 %v34949_v15  ;;  %v34991_v15 = vld [vmem:[%s35143_s27 + $0x4740] sm:$0xff]  }
 0x8ef   : > { %32456 = vmatprep.subr.bf16.mxu1 %v34952_v18  ;;  %v34992_v16 = vld [vmem:[%s35143_s27 + $0x4700] sm:$0xff]   ;;  %v284_v18 = vld [vmem:[%s35138_s23 + $0x238] sm:$0xff] }
 0x8f1   : > { %32435 = vmatpush3.bf16.msra.mxu0 %v34951_v17  ;;  %v34993_v17 = vld [vmem:[%s35143_s27 + $0x47c0] sm:$0xff]  }
 0x8f2   : > { %32436 = vmatprep.subr.bf16.mxu0 %v34954_v20  ;;  %32457 = vmatpush3.bf16.msra.mxu1 %v34953_v19  ;;  %v1575_v19 = vrot.slane %v284_v18, %v35187_v42  ;;  %v34994_v20 = vld [vmem:[%s35143_s27 + $0x4780] sm:$0xff]  }
 0x8f3   : > { %32458 = vmatprep.subr.bf16.mxu1 %v34956_v22  ;;  %v34995_v22 = vld [vmem:[%s35143_s27 + $0x4878] sm:$0xff]  }
 0x8f5   : > { %32437 = vmatpush3.bf16.msra.mxu0 %v34955_v21  ;;  %v1568_v21 = vcombine.high %v284_v18, %v284_v18 }
 0x8f6   : > { %32438 = vmatprep.subr.bf16.mxu0 %v34958_v24  ;;  %32459 = vmatpush3.bf16.msra.mxu1 %v34957_v23  ;;  %v1583_v23 = vcombine.high %v1575_v19, %v1575_v19 }
 0x8f7   : > { %32460 = vmatprep.subr.bf16.mxu1 %v34960_v26  ;;  %v1582_v24 = vrot.slane %v1568_v21, %v35187_v42  ;;  %v2188_v26 = vpack.c.bf16 %v1575_v19, %v1575_v19  ;;  %v35030_v19 = vld [vmem:[%s35143_s27 + $0x4938] sm:$0xff]  }
 0x8f8   : > { %v2189_v28 = vpack.c.bf16 %v1583_v23, %v1583_v23 }
 0x8f9   : > { %32439 = vmatpush3.bf16.msra.mxu0 %v34959_v25  ;;  %v34997_v25 = vld [vmem:[%s35143_s27 + $0x4838] sm:$0xff]   ;;  %v2190_v32 = vpack.c.bf16 %v1582_v24, %v1582_v24 }
 0x8fa   : > { %32468 = vmatprep.subr.bf16.mxu0 %v34962_v31  ;;  %32461 = vmatpush3.bf16.msra.mxu1 %v34961_v29  ;;  %v1584_v29 = vcombine.high %v1582_v24, %v1582_v24 }
 0x8fb   : > { %32490 = vmatprep.subr.bf16.mxu1 %v34965_v36 }
 0x8fc   : > { %v32176_v40 = vpop.f32.mrf.mxu0  ;;  %26648 = vmatmul.mubr.bf16.vlgmr.msra.gmra.mxu0 %v2184_v35  ;;  %v35001_v35 = vld [vmem:[%s35143_s27 + $0x4830] sm:$0xff]  }
 0x8fd   : > { %v32198_v47 = vpop.f32.mrf.mxu1  ;;  %32469 = vmatpush3.bf16.msra.mxu0 %v34964_v34  ;;  %26688 = vmatmul.mubr.bf16.vlgmr.msra.gmra.mxu1 %v2186_v41  ;;  %v2191_v34 = vpack.c.bf16 %v1584_v29, %v1584_v29  ;;  %v35033_v29 = vld [vmem:[%s35143_s27 + $0x4968] sm:$0xff]  }
 0x8fe   : > { %v32177_v46 = vpop.f32.mrf.mxu0  ;;  %32470 = vmatprep.subr.bf16.mxu0 %v34967_v43  ;;  %32491 = vmatpush3.bf16.msra.mxu1 %v34966_v39 }
 0x8ff   : > { %v32178_v49 = vadd.f32 %v32177_v46, %v32176_v40  ;;  %v32199_v52 = vpop.f32.mrf.mxu1  ;;  %32492 = vmatprep.subr.bf16.mxu1 %v34969_v48  ;;  %26727 = vmatprep.mubr.bf16.mxu0 %v2189_v28  ;;  %v35003_v40 = vld [vmem:[%s35143_s27 + $0x48b0] sm:$0xff]  }
 0x900   : > { %v32179_v51 = vpop.f32.mrf.mxu0  ;;  %v32200_v55 = vadd.f32 %v32199_v52, %v32198_v47  ;;  %26767 = vmatprep.mubr.bf16.mxu1 %v2191_v34  ;;  %v35005_v47 = vld [vmem:[%s35143_s27 + $0x4828] sm:$0xff]  }
 0x901   : > { %v26170_v54 = vadd.f32 %v32178_v49, %v37804_v5  ;;  %v32201_v59 = vpop.f32.mrf.mxu1  ;;  %32471 = vmatpush3.bf16.msra.mxu0 %v34968_v45  ;;  %v34981_v5 = vld [vmem:[%s35143_s27 + $0x47d8] sm:$0xff]   ;;  %v35006_v49 = vld [vmem:[%s35143_s27 + $0x48e8] sm:$0xff]  }
 0x902   : > { %v32180_v57 = vpop.f32.mrf.mxu0  ;;  %32472 = vmatprep.subr.bf16.mxu0 %v34971_v53  ;;  %32493 = vmatpush3.bf16.msra.mxu1 %v34970_v50  ;;  %v35007_v52 = vld [vmem:[%s35143_s27 + $0x48a8] sm:$0xff]   ;;  %v35008_v53 = vld [vmem:[%s35143_s27 + $0x4860] sm:$0xff]   ;;  %v35013_v59 = vld [vmem:[%s35143_s27 + $0x4818] sm:$0xff]  }
 0x903   : > { %v37842_v60 = vadd.f32 %v32200_v55, %v26170_v54  ;;  %v32202_v63 = vpop.f32.mrf.mxu1  ;;  %32494 = vmatprep.subr.bf16.mxu1 %v34973_v58  ;;  %v35009_v55 = vld [vmem:[%s35143_s27 + $0x4820] sm:$0xff]   ;;  %v35012_v58 = vld [vmem:[%s35143_s27 + $0x4858] sm:$0xff]  }
 0x904   : > { %v35011_v57 = vld [vmem:[%s35143_s27 + $0x48a0] sm:$0xff]   ;;  %v35017_v63 = vld [vmem:[%s35143_s27 + $0x4810] sm:$0xff]  }
 0x905   : > { %32473 = vmatpush3.bf16.msra.mxu0 %v34972_v56  ;;  %v35010_v56 = vld [vmem:[%s35143_s27 + $0x48e0] sm:$0xff]  }
 0x906   : > { %32474 = vmatprep.subr.bf16.mxu0 %v34975_v62  ;;  %32495 = vmatpush3.bf16.msra.mxu1 %v34974_v61  ;;  %v35015_v61 = vld [vmem:[%s35143_s27 + $0x4898] sm:$0xff]   ;;  %v35016_v62 = vld [vmem:[%s35143_s27 + $0x4850] sm:$0xff]  }
 0x907   : > { %32496 = vmatprep.subr.bf16.mxu1 %v34977_v1  ;;  %v35019_v1 = vld [vmem:[%s35143_s27 + $0x4890] sm:$0xff]  }
 0x909   : > { %32475 = vmatpush3.bf16.msra.mxu0 %v34976_v0  ;;  %v35018_v0 = vld [vmem:[%s35143_s27 + $0x48d0] sm:$0xff]  }
 0x90a   : > { %32476 = vmatprep.subr.bf16.mxu0 %v34979_v3  ;;  %32497 = vmatpush3.bf16.msra.mxu1 %v34978_v2  ;;  %v35020_v2 = vld [vmem:[%s35143_s27 + $0x4848] sm:$0xff]  }
 0x90b   : > { %32498 = vmatprep.subr.bf16.mxu1 %v34981_v5  ;;  %v35021_v3 = vld [vmem:[%s35143_s27 + $0x4808] sm:$0xff]  }
 0x90c   : > { %v35023_v5 = vld [vmem:[%s35143_s27 + $0x4888] sm:$0xff]  }
 0x90d   : > { %32477 = vmatpush3.bf16.msra.mxu0 %v34980_v4  ;;  %v35022_v4 = vld [vmem:[%s35143_s27 + $0x48c8] sm:$0xff]  }
 0x90e   : > { %32478 = vmatprep.subr.bf16.mxu0 %v34983_v7  ;;  %32499 = vmatpush3.bf16.msra.mxu1 %v34982_v6  ;;  %v35024_v6 = vld [vmem:[%s35143_s27 + $0x4840] sm:$0xff]  }
 0x90f   : > { %32500 = vmatprep.subr.bf16.mxu1 %v34985_v9  ;;  %v35025_v7 = vld [vmem:[%s35143_s27 + $0x4800] sm:$0xff]  }
 0x910   : > { %v285_v9 = vld [vmem:[%s35138_s23 + $0x240] sm:$0xff] }
 0x911   : > { %32479 = vmatpush3.bf16.msra.mxu0 %v34984_v8  ;;  %v35026_v8 = vld [vmem:[%s35143_s27 + $0x48c0] sm:$0xff]  }
 0x912   : > { %32480 = vmatprep.subr.bf16.mxu0 %v34987_v11  ;;  %32501 = vmatpush3.bf16.msra.mxu1 %v34986_v10  ;;  %v1592_v10 = vrot.slane %v285_v9, %v35187_v42  ;;  %v35027_v11 = vld [vmem:[%s35143_s27 + $0x4880] sm:$0xff]  }
 0x913   : > { %32502 = vmatprep.subr.bf16.mxu1 %v34989_v13  ;;  %v35028_v13 = vld [vmem:[%s35143_s27 + $0x4978] sm:$0xff]  }
 0x915   : > { %32481 = vmatpush3.bf16.msra.mxu0 %v34988_v12  ;;  %v1585_v12 = vcombine.high %v285_v9, %v285_v9 }
 0x916   : > { %32482 = vmatprep.subr.bf16.mxu0 %v34991_v15  ;;  %32503 = vmatpush3.bf16.msra.mxu1 %v34990_v14  ;;  %v1600_v14 = vcombine.high %v1592_v10, %v1592_v10 }
 0x917   : > { %32504 = vmatprep.subr.bf16.mxu1 %v34993_v17  ;;  %v1599_v15 = vrot.slane %v1585_v12, %v35187_v42 }
 0x918   : > { %v2193_v17 = vpack.c.bf16 %v1600_v14, %v1600_v14 }
 0x919   : > { %32483 = vmatpush3.bf16.msra.mxu0 %v34992_v16  ;;  %v2192_v16 = vpack.c.bf16 %v1592_v10, %v1592_v10  ;;  %v1601_v18 = vcombine.high %v1599_v15, %v1599_v15  ;;  %v2194_v21 = vpack.c.bf16 %v1599_v15, %v1599_v15 }
 0x91a   : > { %32512 = vmatprep.subr.bf16.mxu0 %v34995_v22  ;;  %32505 = vmatpush3.bf16.msra.mxu1 %v34994_v20  ;;  %v35031_v22 = vld [vmem:[%s35143_s27 + $0x4970] sm:$0xff]  }
 0x91b   : > { %32534 = vmatprep.subr.bf16.mxu1 %v34998_v27  ;;  %v2195_v23 = vpack.c.bf16 %v1601_v18, %v1601_v18 }
 0x91c   : > { %v32220_v31 = vpop.f32.mrf.mxu0  ;;  %26728 = vmatmul.mubr.bf16.vlgmr.msra.gmra.mxu0 %v2188_v26  ;;  %v35032_v26 = vld [vmem:[%s35143_s27 + $0x4930] sm:$0xff]  }
 0x91d   : > { %v32242_v37 = vpop.f32.mrf.mxu1  ;;  %32513 = vmatpush3.bf16.msra.mxu0 %v34997_v25  ;;  %26768 = vmatmul.mubr.bf16.vlgmr.msra.gmra.mxu1 %v2190_v32 }
 0x91e   : > { %v32221_v36 = vpop.f32.mrf.mxu0  ;;  %32514 = vmatprep.subr.bf16.mxu0 %v35000_v33  ;;  %32535 = vmatpush3.bf16.msra.mxu1 %v34999_v30 }
 0x91f   : > { %v32222_v39 = vadd.f32 %v32221_v36, %v32220_v31  ;;  %v32243_v43 = vpop.f32.mrf.mxu1  ;;  %32536 = vmatprep.subr.bf16.mxu1 %v35002_v38  ;;  %26807 = vmatprep.mubr.bf16.mxu0 %v2193_v17  ;;  %v35035_v36 = vld [vmem:[%s35143_s27 + $0x4960] sm:$0xff]  }
 0x920   : > { %v32223_v41 = vpop.f32.mrf.mxu0  ;;  %v32244_v46 = vadd.f32 %v32243_v43, %v32242_v37  ;;  %26847 = vmatprep.mubr.bf16.mxu1 %v2195_v23  ;;  %v35036_v38 = vld [vmem:[%s35143_s27 + $0x4920] sm:$0xff]  }
 0x921   : > { %v26250_v45 = vadd.f32 %v32222_v39, %v37842_v60  ;;  %v32245_v50 = vpop.f32.mrf.mxu1  ;;  %32515 = vmatpush3.bf16.msra.mxu0 %v35001_v35  ;;  %v35014_v60 = vld [vmem:[%s35143_s27 + $0x48d8] sm:$0xff]   ;;  %v35034_v35 = vld [vmem:[%s35143_s27 + $0x4928] sm:$0xff]  }
 0x922   : > { %v32224_v48 = vpop.f32.mrf.mxu0  ;;  %32516 = vmatprep.subr.bf16.mxu0 %v35004_v44  ;;  %32537 = vmatpush3.bf16.msra.mxu1 %v35003_v40  ;;  %v26989_v39 = vld.sshfl [vmem:[%s35138_s23 + $0x248] sm:$0x33 pattern:$0x76325410]  ;;  %v35037_v40 = vld [vmem:[%s35143_s27 + $0x4958] sm:$0xff]   ;;  %v35044_v50 = vld [vmem:[%s35143_s27 + $0x4900] sm:$0xff]  }
 0x923   : > { %v37880_v51 = vadd.f32 %v32244_v46, %v26250_v45  ;;  %v32246_v54 = vpop.f32.mrf.mxu1  ;;  %32538 = vmatprep.subr.bf16.mxu1 %v35006_v49  ;;  %v1609_v41 = vcombine.high %v26989_v39, %v26989_v39  ;;  %v35038_v44 = vld [vmem:[%s35143_s27 + $0x4918] sm:$0xff]   ;;  %v35039_v45 = vld [vmem:[%s35143_s27 + $0x4950] sm:$0xff]   ;;  %v35042_v48 = vld [vmem:[%s35143_s27 + $0x4908] sm:$0xff]  }
 0x924   : > { %v35040_v46 = vld [vmem:[%s35143_s27 + $0x4910] sm:$0xff]   ;;  %v35043_v49 = vld [vmem:[%s35143_s27 + $0x4940] sm:$0xff]  }
 0x925   : > { %32517 = vmatpush3.bf16.msra.mxu0 %v35005_v47  ;;  %v2197_v43 = vpack.c.bf16 %v1609_v41, %v1609_v41  ;;  %v35041_v47 = vld [vmem:[%s35143_s27 + $0x4948] sm:$0xff]  }
 0x926   : > { %32518 = vmatprep.subr.bf16.mxu0 %v35008_v53  ;;  %32539 = vmatpush3.bf16.msra.mxu1 %v35007_v52 }
 0x927   : > { %32540 = vmatprep.subr.bf16.mxu1 %v35010_v56 }
 0x929   : > { %32519 = vmatpush3.bf16.msra.mxu0 %v35009_v55 }
 0x92a   : > { %32520 = vmatprep.subr.bf16.mxu0 %v35012_v58  ;;  %32541 = vmatpush3.bf16.msra.mxu1 %v35011_v57 }
 0x92b   : > { %32542 = vmatprep.subr.bf16.mxu1 %v35014_v60 }
 0x92d   : > { %32521 = vmatpush3.bf16.msra.mxu0 %v35013_v59 }
 0x92e   : > { %32522 = vmatprep.subr.bf16.mxu0 %v35016_v62  ;;  %32543 = vmatpush3.bf16.msra.mxu1 %v35015_v61 }
 0x92f   : > { %32544 = vmatprep.subr.bf16.mxu1 %v35018_v0 }
 0x931   : > { %32523 = vmatpush3.bf16.msra.mxu0 %v35017_v63 }
 0x932   : > { %32524 = vmatprep.subr.bf16.mxu0 %v35020_v2  ;;  %32545 = vmatpush3.bf16.msra.mxu1 %v35019_v1 }
 0x933   : > { %32546 = vmatprep.subr.bf16.mxu1 %v35022_v4 }
 0x935   : > { %32525 = vmatpush3.bf16.msra.mxu0 %v35021_v3 }
 0x936   : > { %32526 = vmatprep.subr.bf16.mxu0 %v35024_v6  ;;  %32547 = vmatpush3.bf16.msra.mxu1 %v35023_v5 }
 0x937   : > { %32548 = vmatprep.subr.bf16.mxu1 %v35026_v8 }
 0x939   : > { %32527 = vmatpush3.bf16.msra.mxu0 %v35025_v7 }
 0x93a   : > { %32556 = vmatprep.subr.bf16.mxu0 %v35028_v13  ;;  %32549 = vmatpush3.bf16.msra.mxu1 %v35027_v11 }
 0x93c   : > { %v32264_v20 = vpop.f32.mrf.mxu0  ;;  %26808 = vmatmul.mubr.bf16.vlgmr.msra.gmra.mxu0 %v2192_v16 }
 0x93d   : > { %v32286_v25 = vpop.f32.mrf.mxu1  ;;  %32557 = vmatpush3.bf16.msra.mxu0 %v35030_v19  ;;  %26848 = vmatmul.mubr.bf16.vlgmr.msra.gmra.mxu1 %v2194_v21 }
 0x93e   : > { %v32265_v24 = vpop.f32.mrf.mxu0  ;;  %32558 = vmatprep.subr.bf16.mxu0 %v35031_v22  ;;  %26887 = vmatprep.mubr.bf16.mxu0 %v2197_v43 }
 0x93f   : > { %v32266_v42 = vadd.f32 %v32265_v24, %v32264_v20  ;;  %v32287_v28 = vpop.f32.mrf.mxu1 }
 0x940   : > { %v32267_v27 = vpop.f32.mrf.mxu0  ;;  %v32288_v31 = vadd.f32 %v32287_v28, %v32286_v25 }
 0x941   : > { %v26330_v30 = vadd.f32 %v32266_v42, %v37880_v51  ;;  %v32289_v33 = vpop.f32.mrf.mxu1  ;;  %32559 = vmatpush3.bf16.msra.mxu0 %v35032_v26  ;;  %v2196_v51 = vpack.c.bf16 %v26989_v39, %v26989_v39 }
 0x942   : > { %v32268_v32 = vpop.f32.mrf.mxu0  ;;  %32560 = vmatprep.subr.bf16.mxu0 %v35033_v29 }
 0x943   : > { %v26370_v34 = vadd.f32 %v32288_v31, %v26330_v30  ;;  %v32290_v37 = vpop.f32.mrf.mxu1 }
 0x945   : > { %32561 = vmatpush3.bf16.msra.mxu0 %v35034_v35 }
 0x946   : > { %32562 = vmatprep.subr.bf16.mxu0 %v35035_v36 }
 0x949   : > { %32563 = vmatpush3.bf16.msra.mxu0 %v35036_v38 }
 0x94a   : > { %32564 = vmatprep.subr.bf16.mxu0 %v35037_v40 }
 0x94d   : > { %32565 = vmatpush3.bf16.msra.mxu0 %v35038_v44 }
 0x94e   : > { %32566 = vmatprep.subr.bf16.mxu0 %v35039_v45 }
 0x951   : > { %32567 = vmatpush3.bf16.msra.mxu0 %v35040_v46 }
 0x952   : > { %32568 = vmatprep.subr.bf16.mxu0 %v35041_v47 }
 0x955   : > { %32569 = vmatpush3.bf16.msra.mxu0 %v35042_v48 }
 0x956   : > { %32570 = vmatprep.subr.bf16.mxu0 %v35043_v49 }
 0x959   : > { %32571 = vmatpush3.bf16.msra.mxu0 %v35044_v50 }
 0x95c   : > { %v32308_v52 = vpop.f32.mrf.mxu0  ;;  %26888 = vmatmul.mubr.bf16.vlgmr.msra.gmra.mxu0 %v2196_v51 }
 0x95d   : > { %v32330_v54 = vpop.f32.mrf.mxu1 }
 0x95e   : > { %v32309_v53 = vpop.f32.mrf.mxu0 }
 0x95f   : > { %v32310_v55 = vadd.f32 %v32309_v53, %v32308_v52  ;;  %v32331_v57 = vpop.f32.mrf.mxu1 }
 0x960   : > { %v32311_v56 = vpop.f32.mrf.mxu0  ;;  %v32332_v59 = vadd.f32 %v32331_v57, %v32330_v54 }
 0x961   : > { %v26410_v58 = vadd.f32 %v32310_v55, %v26370_v34  ;;  %v32333_v61 = vpop.f32.mrf.mxu1 }
 0x962   : > { %v32312_v60 = vpop.f32.mrf.mxu0 }
 0x963   : > { %v26450_v62 = vadd.f32 %v32332_v59, %v26410_v58  ;;  %v32334_v63 = vpop.f32.mrf.mxu1 }
 0x964   : > { %v2198_v63 = vld [vmem:[%s35148_s3] sm:$0x3] }
 0x97c   : > { %v32352_v0 = vpop.f32.mrf.mxu0 }
 0x97d   : > { %v32374_v2 = vpop.f32.mrf.mxu1 }
 0x97e   : > { %v32353_v1 = vpop.f32.mrf.mxu0 }
 0x97f   : > { %v32354_v3 = vadd.f32 %v32353_v1, %v32352_v0  ;;  %v32375_v5 = vpop.f32.mrf.mxu1 }
 0x980   : > { %v32355_v4 = vpop.f32.mrf.mxu0  ;;  %v32376_v7 = vadd.f32 %v32375_v5, %v32374_v2 }
 0x981   : > { %v26490_v6 = vadd.f32 %v32354_v3, %v26450_v62  ;;  %v32377_v9 = vpop.f32.mrf.mxu1 }
 0x982   : > { %v32356_v8 = vpop.f32.mrf.mxu0 }
 0x983   : > { %v26530_v10 = vadd.f32 %v32376_v7, %v26490_v6  ;;  %v32378_v11 = vpop.f32.mrf.mxu1 }
 0x99c   : > { %v32396_v12 = vpop.f32.mrf.mxu0 }
 0x99d   : > { %v32418_v14 = vpop.f32.mrf.mxu1 }
 0x99e   : > { %v32397_v13 = vpop.f32.mrf.mxu0 }
 0x99f   : > { %v32398_v15 = vadd.f32 %v32397_v13, %v32396_v12  ;;  %v32419_v17 = vpop.f32.mrf.mxu1 }
 0x9a0   : > { %v32399_v16 = vpop.f32.mrf.mxu0  ;;  %v32420_v19 = vadd.f32 %v32419_v17, %v32418_v14 }
 0x9a1   : > { %v26570_v18 = vadd.f32 %v32398_v15, %v26530_v10  ;;  %v32421_v21 = vpop.f32.mrf.mxu1 }
 0x9a2   : > { %v32400_v20 = vpop.f32.mrf.mxu0 }
 0x9a3   : > { %v26610_v22 = vadd.f32 %v32420_v19, %v26570_v18  ;;  %v32422_v23 = vpop.f32.mrf.mxu1 }
 0x9bc   : > { %v32440_v24 = vpop.f32.mrf.mxu0 }
 0x9bd   : > { %v32462_v42 = vpop.f32.mrf.mxu1 }
 0x9be   : > { %v32441_v25 = vpop.f32.mrf.mxu0 }
 0x9bf   : > { %v32442_v26 = vadd.f32 %v32441_v25, %v32440_v24  ;;  %v32463_v28 = vpop.f32.mrf.mxu1 }
 0x9c0   : > { %v32443_v27 = vpop.f32.mrf.mxu0  ;;  %v32464_v30 = vadd.f32 %v32463_v28, %v32462_v42 }
 0x9c1   : > { %v26650_v29 = vadd.f32 %v32442_v26, %v26610_v22  ;;  %v32465_v32 = vpop.f32.mrf.mxu1 }
 0x9c2   : > { %v32444_v31 = vpop.f32.mrf.mxu0 }
 0x9c3   : > { %v26690_v33 = vadd.f32 %v32464_v30, %v26650_v29  ;;  %v32466_v34 = vpop.f32.mrf.mxu1 }
 0x9dc   : > { %v32484_v35 = vpop.f32.mrf.mxu0 }
 0x9dd   : > { %v32506_v37 = vpop.f32.mrf.mxu1 }
 0x9de   : > { %v32485_v36 = vpop.f32.mrf.mxu0 }
 0x9df   : > { %v32507_v39 = vpop.f32.mrf.mxu1  ;;  %v32486_v52 = vadd.f32 %v32485_v36, %v32484_v35 }
 0x9e0   : > { %v32487_v38 = vpop.f32.mrf.mxu0  ;;  %v32508_v54 = vadd.f32 %v32507_v39, %v32506_v37 }
 0x9e1   : > { %v32509_v41 = vpop.f32.mrf.mxu1  ;;  %v26730_v53 = vadd.f32 %v32486_v52, %v26690_v33 }
 0x9e2   : > { %v32488_v40 = vpop.f32.mrf.mxu0 }
 0x9e3   : > { %v32510_v43 = vpop.f32.mrf.mxu1  ;;  %v26770_v56 = vadd.f32 %v32508_v54, %v26730_v53 }
 0x9fc   : > { %v32528_v44 = vpop.f32.mrf.mxu0 }
 0x9fd   : > { %v32550_v46 = vpop.f32.mrf.mxu1 }
 0x9fe   : > { %v32529_v45 = vpop.f32.mrf.mxu0 }
 0x9ff   : > { %v32551_v48 = vpop.f32.mrf.mxu1  ;;  %v32530_v55 = vadd.f32 %v32529_v45, %v32528_v44 }
 0xa00   : > { %v32531_v47 = vpop.f32.mrf.mxu0  ;;  %v32552_v58 = vadd.f32 %v32551_v48, %v32550_v46 }
 0xa01   : > { %v32553_v50 = vpop.f32.mrf.mxu1  ;;  %v26810_v57 = vadd.f32 %v32530_v55, %v26770_v56 }
 0xa02   : > { %v32532_v49 = vpop.f32.mrf.mxu0 }
 0xa03   : > { %v32554_v51 = vpop.f32.mrf.mxu1  ;;  %v26850_v61 = vadd.f32 %v32552_v58, %v26810_v57 }
 0xa1c   : > { %v32572_v59 = vpop.f32.mrf.mxu0 }
 0xa1e   : > { %v32573_v60 = vpop.f32.mrf.mxu0 }
 0xa1f   : > { %v32574_v62 = vadd.f32 %v32573_v60, %v32572_v59 }
 0xa20   : > { %v32575_v0 = vpop.f32.mrf.mxu0 }
 0xa21   : > { %v26890_v1 = vadd.f32 %v32574_v62, %v26850_v61 }
 0xa22   : > { %v32576_v2 = vpop.f32.mrf.mxu0 }
 0xa23   : > { %v26895_v3 = vadd.f32 %v26890_v1, %v2198_v63 }
 0xa25   : > { %26897 = vst.msk [vmem:[%s35148_s3] sm:$0x3] %vm26896_vm1, %v26895_v3 }
 0xa26 PF: > { %s12_s13 = sadd.s32 1, %s35083_s13   ;;  %s37944_s9 = smov %s35075_s11 }
 0xa27   : > { %p9_p9 = scmp.ge.s32.totalorder %s12_s13, 6   ;;  %s37945_s10 = smov %s35079_s12 }
 0xa28   : > { %s37946_s11 = smov %s37949_s14  ;;  %s37947_s12 = smov %s37953_s15 }
 0xa29   :  { %11 = sbr.rel (!%p9_p9) target bundleno = 3 (0x3), region = 65 }

</bundles_post_ra>
